<compile_context>
chip_gen: v6e
topology: v6e:2x2x1
jax: 0.10.0
libtpu: 0.0.40
codegen_flags: <defaults>
</compile_context>

<pallas_src>
import jax
import jax.numpy as jnp
from jax import lax
from jax.experimental import pallas as pl
from jax.experimental.pallas import tpu as pltpu

PITCH = 32            # flat spatial row pitch (kept constant through the net)
SRC_W = 1152          # 32*32 flat input + >=132 shift margin (lane-aligned)
A1_W = 480            # 14 rows * 32 + >=132 shift margin (conv2 reads <=451)
A2_W = 192            # 5 rows * 32 + >=132 shift margin (c5 reads <=163)


# ------------------------------ kernel helpers ------------------------------

def _even_select(width_in, width_out):
    # 0/1 matrix S[t, j] = (t == 2j): picks every other lane via one tiny dot.
    r = lax.broadcasted_iota(jnp.int32, (width_in, width_out), 0)
    c = lax.broadcasted_iota(jnp.int32, (width_in, width_out), 1)
    return jnp.where(r == 2 * c, 1.0, 0.0).astype(jnp.bfloat16)


def _conv_flat(w_taps_ref, src, out_ch, out_w):
    """5x5 'valid' conv on flat pitch-32 layout as 25 shifted matmuls.

    src: (C_in, S) bf16 value, element [c, i*32 + j] = input pixel (c, i, j).
    w_taps_ref: (25, C_out, C_in) bf16 ref, taps ordered ki*5 + kj.
    Returns (C_out, out_w) f32; column d = i*32 + j (only j < out_cols valid).
    """
    acc = jnp.zeros((out_ch, out_w), jnp.float32)
    for ki in range(5):
        for kj in range(5):
            off = ki * PITCH + kj
            acc = acc + jnp.dot(w_taps_ref[ki * 5 + kj],
                                src[:, off:off + out_w],
                                preferred_element_type=jnp.float32)
    return acc


def _pool_to_scratch(v, n_rows, dst_ref, sel):
    """Fused 2x2/s2 max-pool on flat pitch-32 data -> bf16 scratch (pitch 32).

    v: (C, W) f32 post-ReLU conv output.  Pooled (i2, j2) = max of v at flat
    positions 64*i2 + 2*j2 + {0, 1, 32, 33}; the per-row selection matmul
    compacts the stride-2 lanes back to a dense pitch-32 layout.
    """
    L = v.shape[1] - 33
    m = jnp.maximum(jnp.maximum(v[:, 0:L], v[:, 1:L + 1]),
                    jnp.maximum(v[:, 32:L + 32], v[:, 33:L + 33]))
    blk_w, n_cols = sel.shape
    for r in range(n_rows):
        blk = m[:, 64 * r: 64 * r + blk_w].astype(jnp.bfloat16)
        piece = jnp.dot(blk, sel, preferred_element_type=jnp.float32)
        dst_ref[:, r * PITCH: r * PITCH + n_cols] = piece.astype(jnp.bfloat16)


# --------------------------------- kernel -----------------------------------

def _lenet5_kernel(x_ref, w1_ref, b1_ref, w2_ref, b2_ref, w5_ref, b5_ref,
                   w6_ref, b6_ref, w7_ref, b7_ref, out_ref, a1_ref, a2_ref):
    # Zero the activation scratch (padding lanes are never used by valid
    # outputs, but keep them deterministic).
    a1_ref[...] = jnp.zeros(a1_ref.shape, a1_ref.dtype)
    a2_ref[...] = jnp.zeros(a2_ref.shape, a2_ref.dtype)

    # ---- stage 1: conv1 5x5 (3->6) + bias + ReLU + maxpool 2x2 ----
    xv = x_ref[0]                                      # (3, 1152) bf16
    v1 = _conv_flat(w1_ref, xv, 6, 28 * PITCH)         # (6, 896) f32
    v1 = jnp.maximum(v1 + b1_ref[...], 0.0)
    _pool_to_scratch(v1, 14, a1_ref, _even_select(28, 14))   # -> (6, 14x14)

    # ---- stage 2: conv3 5x5 (6->16) + bias + ReLU + maxpool 2x2 ----
    a1 = a1_ref[...]                                   # (6, 480) bf16
    v2 = _conv_flat(w2_ref, a1, 16, 10 * PITCH)        # (16, 320) f32
    v2 = jnp.maximum(v2 + b2_ref[...], 0.0)
    _pool_to_scratch(v2, 5, a2_ref, _even_select(10, 5))     # -> (16, 5x5)

    # ---- stage 3: c5 5x5 (16->120) on the 5x5 map (only column 0 valid) ----
    a2 = a2_ref[...]                                   # (16, 192) bf16
    h5 = _conv_flat(w5_ref, a2, 120, PITCH)            # (120, 32) f32
    h5 = jnp.maximum(h5 + b5_ref[...], 0.0).astype(jnp.bfloat16)

    # ---- f6 / f7 (column orientation; columns >0 are harmless garbage) ----
    h6 = jnp.dot(w6_ref[...], h5, preferred_element_type=jnp.float32)
    h6 = jnp.maximum(h6 + b6_ref[...], 0.0).astype(jnp.bfloat16)   # (84, 32)
    h7 = jnp.dot(w7_ref[...], h6, preferred_element_type=jnp.float32)
    h7 = h7 + b7_ref[...]                              # (10, 32) f32
    out_ref[0] = h7[:, 0:1]                            # (10, 1)


# ------------------------------ host wrappers --------------------------------

def lenet5_forward(x, kp):
    """x: (N, 3, 32, 32) f32, kp: packed params (see pack_params)."""
    N = x.shape[0]
    xf = jnp.pad(x.reshape(N, 3, 32 * 32), ((0, 0), (0, 0), (0, SRC_W - 1024)))
    xf = xf.astype(jnp.bfloat16)

    grid_spec = pltpu.PrefetchScalarGridSpec(
        num_scalar_prefetch=0,
        grid=(N,),
        in_specs=[
            pl.BlockSpec((1, 3, SRC_W), lambda n: (n, 0, 0)),
            pl.BlockSpec((25, 6, 3), lambda n: (0, 0, 0)),
            pl.BlockSpec((6, 1), lambda n: (0, 0)),
            pl.BlockSpec((25, 16, 6), lambda n: (0, 0, 0)),
            pl.BlockSpec((16, 1), lambda n: (0, 0)),
            pl.BlockSpec((25, 120, 16), lambda n: (0, 0, 0)),
            pl.BlockSpec((120, 1), lambda n: (0, 0)),
            pl.BlockSpec((84, 120), lambda n: (0, 0)),
            pl.BlockSpec((84, 1), lambda n: (0, 0)),
            pl.BlockSpec((10, 84), lambda n: (0, 0)),
            pl.BlockSpec((10, 1), lambda n: (0, 0)),
        ],
        out_specs=pl.BlockSpec((1, 10, 1), lambda n: (n, 0, 0)),
        scratch_shapes=[
            pltpu.VMEM((6, A1_W), jnp.bfloat16),
            pltpu.VMEM((16, A2_W), jnp.bfloat16),
        ],
    )
    out = pl.pallas_call(
        _lenet5_kernel,
        out_shape=jax.ShapeDtypeStruct((N, 10, 1), jnp.float32),
        grid_spec=grid_spec,
        compiler_params=pltpu.CompilerParams(
            dimension_semantics=("parallel",)),
    )(xf, kp["w1"], kp["b1"], kp["w2"], kp["b2"], kp["w5"], kp["b5"],
      kp["w6"], kp["b6"], kp["w7"], kp["b7"])
    return out.reshape(N, 10)


def pack_params(p):
    """One-time repack of PyTorch-layout params into the kernel layout."""
    def taps(w):  # (O, C, 5, 5) -> (25, O, C), tap index = ki*5 + kj
        O, C, KH, KW = w.shape
        return jnp.transpose(w, (2, 3, 0, 1)).reshape(KH * KW, O, C)

    bf, f32 = jnp.bfloat16, jnp.float32
    return {
        "w1": taps(p["c1_w"]).astype(bf), "b1": p["c1_b"].reshape(6, 1).astype(f32),
        "w2": taps(p["c3_w"]).astype(bf), "b2": p["c3_b"].reshape(16, 1).astype(f32),
        "w5": taps(p["c5_w"]).astype(bf), "b5": p["c5_b"].reshape(120, 1).astype(f32),
        "w6": p["f6_w"].astype(bf), "b6": p["f6_b"].reshape(84, 1).astype(f32),
        "w7": p["f7_w"].astype(bf), "b7": p["f7_b"].reshape(10, 1).astype(f32),
    }


def init_params(key):
    # PyTorch-style default init U(-1/sqrt(fan_in), +1/sqrt(fan_in)).
    ks = jax.random.split(key, 10)

    def u(k, shape, fan_in):
        bound = 1.0 / jnp.sqrt(jnp.float32(fan_in))
        return jax.random.uniform(k, shape, jnp.float32, -bound, bound)

    return {
        "c1_w": u(ks[0], (6, 3, 5, 5), 3 * 25), "c1_b": u(ks[1], (6,), 3 * 25),
        "c3_w": u(ks[2], (16, 6, 5, 5), 6 * 25), "c3_b": u(ks[3], (16,), 6 * 25),
        "c5_w": u(ks[4], (120, 16, 5, 5), 16 * 25), "c5_b": u(ks[5], (120,), 16 * 25),
        "f6_w": u(ks[6], (84, 120), 120), "f6_b": u(ks[7], (84,), 120),
        "f7_w": u(ks[8], (10, 84), 84), "f7_b": u(ks[9], (10,), 84),
    }


def lenet5_reference(x, p):
    # Plain-JAX f32 reference of the PyTorch module (for the self-check).
    n = x.shape[0]
    dn = ("NCHW", "OIHW", "NCHW")

    def conv(x, w, b):
        y = lax.conv_general_dilated(x, w, (1, 1), "VALID", dimension_numbers=dn)
        return jax.nn.relu(y + b.reshape(1, -1, 1, 1))

    def pool(x):
        return jnp.maximum(jnp.maximum(x[:, :, 0::2, 0::2], x[:, :, 0::2, 1::2]),
                           jnp.maximum(x[:, :, 1::2, 0::2], x[:, :, 1::2, 1::2]))

    x = pool(conv(x, p["c1_w"], p["c1_b"]))
    x = pool(conv(x, p["c3_w"], p["c3_b"]))
    x = conv(x, p["c5_w"], p["c5_b"]).reshape(n, 120)
    x = jax.nn.relu(x @ p["f6_w"].T + p["f6_b"])
    return x @ p["f7_w"].T + p["f7_b"]


if __name__ == "__main__":
    key = jax.random.PRNGKey(0)
    pkey, xkey = jax.random.split(key)
    params = init_params(pkey)
    kp = pack_params(params)
    # LeNet5 geometry requires 3x32x32 inputs; small batch of 2.
    x = jax.random.normal(xkey, (2, 3, 32, 32), jnp.float32)

    fwd = jax.jit(lenet5_forward)
    out = jax.block_until_ready(fwd(x, kp))
    assert out.shape == (2, 10) and out.dtype == jnp.float32

    # Self-check against the f32 reference (bf16 MXU operands -> loose tol).
    ref = jax.block_until_ready(jax.jit(lenet5_reference)(x, params))
    err = float(jnp.max(jnp.abs(out - ref)))
    assert err < 5e-2, f"max abs err vs reference: {err}"
    print("KERNEL_OK")
</pallas_src>

<mosaic_0001>
module attributes {stable_mosaic.version = 11 : i64} {
  func.func @_lenet5_kernel(%arg0: i32, %arg1: memref<1x3x1152xbf16, #tpu.memory_space<vmem>>, %arg2: memref<25x6x3xbf16, #tpu.memory_space<vmem>>, %arg3: memref<6x1xf32, #tpu.memory_space<vmem>>, %arg4: memref<25x16x6xbf16, #tpu.memory_space<vmem>>, %arg5: memref<16x1xf32, #tpu.memory_space<vmem>>, %arg6: memref<25x120x16xbf16, #tpu.memory_space<vmem>>, %arg7: memref<120x1xf32, #tpu.memory_space<vmem>>, %arg8: memref<84x120xbf16, #tpu.memory_space<vmem>>, %arg9: memref<84x1xf32, #tpu.memory_space<vmem>>, %arg10: memref<10x84xbf16, #tpu.memory_space<vmem>>, %arg11: memref<10x1xf32, #tpu.memory_space<vmem>>, %arg12: memref<1x10x1xf32, #tpu.memory_space<vmem>>, %arg13: memref<6x480xbf16, #tpu.memory_space<vmem>>, %arg14: memref<16x192xbf16, #tpu.memory_space<vmem>>) attributes {dimension_semantics = [#tpu.dimension_semantics<parallel>], iteration_bounds = array<i64: 2>, scalar_prefetch = 0 : i64, scratch_operands = 2 : i64, tpu.core_type = #tpu.core_type<tc>, window_params = [{transform_indices = @transform_0, window_bounds = array<i64: 1, 3, 1152>}, {pipeline_mode = #tpu.pipeline_mode<synchronous>, transform_indices = @transform_1, window_bounds = array<i64: 25, 6, 3>}, {pipeline_mode = #tpu.pipeline_mode<synchronous>, transform_indices = @transform_2, window_bounds = array<i64: 6, 1>}, {pipeline_mode = #tpu.pipeline_mode<synchronous>, transform_indices = @transform_3, window_bounds = array<i64: 25, 16, 6>}, {pipeline_mode = #tpu.pipeline_mode<synchronous>, transform_indices = @transform_4, window_bounds = array<i64: 16, 1>}, {pipeline_mode = #tpu.pipeline_mode<synchronous>, transform_indices = @transform_5, window_bounds = array<i64: 25, 120, 16>}, {pipeline_mode = #tpu.pipeline_mode<synchronous>, transform_indices = @transform_6, window_bounds = array<i64: 120, 1>}, {pipeline_mode = #tpu.pipeline_mode<synchronous>, transform_indices = @transform_7, window_bounds = array<i64: 84, 120>}, {pipeline_mode = #tpu.pipeline_mode<synchronous>, transform_indices = @transform_8, window_bounds = array<i64: 84, 1>}, {pipeline_mode = #tpu.pipeline_mode<synchronous>, transform_indices = @transform_9, window_bounds = array<i64: 10, 84>}, {pipeline_mode = #tpu.pipeline_mode<synchronous>, transform_indices = @transform_10, window_bounds = array<i64: 10, 1>}, {transform_indices = @transform_11, window_bounds = array<i64: 1, 10, 1>}]} {
    %cst = arith.constant 0.000000e+00 : bf16
    %0 = vector.broadcast %cst : bf16 to vector<6x480xbf16>
    %c0 = arith.constant 0 : index
    %c0_0 = arith.constant 0 : index
    %1 = vector.load %arg13[%c0, %c0_0] : memref<6x480xbf16, #tpu.memory_space<vmem>>, vector<6x480xbf16>
    tpu.vector_store %arg13[%c0, %c0_0], %0 {strides = array<i32>} : memref<6x480xbf16, #tpu.memory_space<vmem>>, vector<6x480xbf16>,
    %cst_1 = arith.constant 0.000000e+00 : bf16
    %2 = vector.broadcast %cst_1 : bf16 to vector<16x192xbf16>
    %c0_2 = arith.constant 0 : index
    %c0_3 = arith.constant 0 : index
    %3 = vector.load %arg14[%c0_2, %c0_3] : memref<16x192xbf16, #tpu.memory_space<vmem>>, vector<16x192xbf16>
    tpu.vector_store %arg14[%c0_2, %c0_3], %2 {strides = array<i32>} : memref<16x192xbf16, #tpu.memory_space<vmem>>, vector<16x192xbf16>,
    %c0_4 = arith.constant 0 : index
    %c0_5 = arith.constant 0 : index
    %c0_6 = arith.constant 0 : index
    %4 = vector.load %arg1[%c0_4, %c0_5, %c0_6] : memref<1x3x1152xbf16, #tpu.memory_space<vmem>>, vector<1x3x1152xbf16>
    %5 = vector.shape_cast %4 : vector<1x3x1152xbf16> to vector<3x1152xbf16>
    %cst_7 = arith.constant 0.000000e+00 : f32
    %6 = vector.broadcast %cst_7 : f32 to vector<6x896xf32>
    %c0_8 = arith.constant 0 : index
    %c0_9 = arith.constant 0 : index
    %c0_10 = arith.constant 0 : index
    %7 = vector.load %arg2[%c0_8, %c0_9, %c0_10] : memref<25x6x3xbf16, #tpu.memory_space<vmem>>, vector<1x6x3xbf16>
    %8 = vector.shape_cast %7 : vector<1x6x3xbf16> to vector<6x3xbf16>
    %9 = vector.extract_strided_slice %5 {offsets = [0, 0], sizes = [3, 896], strides = [1, 1]} : vector<3x1152xbf16> to vector<3x896xbf16>
    %cst_11 = arith.constant dense<0.000000e+00> : vector<6x896xf32>
    %10 = tpu.matmul %8, %9, %cst_11 {dimension_numbers = #tpu.dot_dimension_numbers<[1], [0], [0], [1], [0, 0, 1, 1], [], []>} : vector<6x3xbf16>, vector<3x896xbf16>, vector<6x896xf32> -> vector<6x896xf32>
    %11 = arith.addf %6, %10 : vector<6x896xf32>
    %c1 = arith.constant 1 : index
    %c0_12 = arith.constant 0 : index
    %c0_13 = arith.constant 0 : index
    %12 = vector.load %arg2[%c1, %c0_12, %c0_13] : memref<25x6x3xbf16, #tpu.memory_space<vmem>>, vector<1x6x3xbf16>
    %13 = vector.shape_cast %12 : vector<1x6x3xbf16> to vector<6x3xbf16>
    %14 = vector.extract_strided_slice %5 {offsets = [0, 1], sizes = [3, 896], strides = [1, 1]} : vector<3x1152xbf16> to vector<3x896xbf16>
    %cst_14 = arith.constant dense<0.000000e+00> : vector<6x896xf32>
    %15 = tpu.matmul %13, %14, %cst_14 {dimension_numbers = #tpu.dot_dimension_numbers<[1], [0], [0], [1], [0, 0, 1, 1], [], []>} : vector<6x3xbf16>, vector<3x896xbf16>, vector<6x896xf32> -> vector<6x896xf32>
    %16 = arith.addf %11, %15 : vector<6x896xf32>
    %c2 = arith.constant 2 : index
    %c0_15 = arith.constant 0 : index
    %c0_16 = arith.constant 0 : index
    %17 = vector.load %arg2[%c2, %c0_15, %c0_16] : memref<25x6x3xbf16, #tpu.memory_space<vmem>>, vector<1x6x3xbf16>
    %18 = vector.shape_cast %17 : vector<1x6x3xbf16> to vector<6x3xbf16>
    %19 = vector.extract_strided_slice %5 {offsets = [0, 2], sizes = [3, 896], strides = [1, 1]} : vector<3x1152xbf16> to vector<3x896xbf16>
    %cst_17 = arith.constant dense<0.000000e+00> : vector<6x896xf32>
    %20 = tpu.matmul %18, %19, %cst_17 {dimension_numbers = #tpu.dot_dimension_numbers<[1], [0], [0], [1], [0, 0, 1, 1], [], []>} : vector<6x3xbf16>, vector<3x896xbf16>, vector<6x896xf32> -> vector<6x896xf32>
    %21 = arith.addf %16, %20 : vector<6x896xf32>
    %c3 = arith.constant 3 : index
    %c0_18 = arith.constant 0 : index
    %c0_19 = arith.constant 0 : index
    %22 = vector.load %arg2[%c3, %c0_18, %c0_19] : memref<25x6x3xbf16, #tpu.memory_space<vmem>>, vector<1x6x3xbf16>
    %23 = vector.shape_cast %22 : vector<1x6x3xbf16> to vector<6x3xbf16>
    %24 = vector.extract_strided_slice %5 {offsets = [0, 3], sizes = [3, 896], strides = [1, 1]} : vector<3x1152xbf16> to vector<3x896xbf16>
    %cst_20 = arith.constant dense<0.000000e+00> : vector<6x896xf32>
    %25 = tpu.matmul %23, %24, %cst_20 {dimension_numbers = #tpu.dot_dimension_numbers<[1], [0], [0], [1], [0, 0, 1, 1], [], []>} : vector<6x3xbf16>, vector<3x896xbf16>, vector<6x896xf32> -> vector<6x896xf32>
    %26 = arith.addf %21, %25 : vector<6x896xf32>
    %c4 = arith.constant 4 : index
    %c0_21 = arith.constant 0 : index
    %c0_22 = arith.constant 0 : index
    %27 = vector.load %arg2[%c4, %c0_21, %c0_22] : memref<25x6x3xbf16, #tpu.memory_space<vmem>>, vector<1x6x3xbf16>
    %28 = vector.shape_cast %27 : vector<1x6x3xbf16> to vector<6x3xbf16>
    %29 = vector.extract_strided_slice %5 {offsets = [0, 4], sizes = [3, 896], strides = [1, 1]} : vector<3x1152xbf16> to vector<3x896xbf16>
    %cst_23 = arith.constant dense<0.000000e+00> : vector<6x896xf32>
    %30 = tpu.matmul %28, %29, %cst_23 {dimension_numbers = #tpu.dot_dimension_numbers<[1], [0], [0], [1], [0, 0, 1, 1], [], []>} : vector<6x3xbf16>, vector<3x896xbf16>, vector<6x896xf32> -> vector<6x896xf32>
    %31 = arith.addf %26, %30 : vector<6x896xf32>
    %c5 = arith.constant 5 : index
    %c0_24 = arith.constant 0 : index
    %c0_25 = arith.constant 0 : index
    %32 = vector.load %arg2[%c5, %c0_24, %c0_25] : memref<25x6x3xbf16, #tpu.memory_space<vmem>>, vector<1x6x3xbf16>
    %33 = vector.shape_cast %32 : vector<1x6x3xbf16> to vector<6x3xbf16>
    %34 = vector.extract_strided_slice %5 {offsets = [0, 32], sizes = [3, 896], strides = [1, 1]} : vector<3x1152xbf16> to vector<3x896xbf16>
    %cst_26 = arith.constant dense<0.000000e+00> : vector<6x896xf32>
    %35 = tpu.matmul %33, %34, %cst_26 {dimension_numbers = #tpu.dot_dimension_numbers<[1], [0], [0], [1], [0, 0, 1, 1], [], []>} : vector<6x3xbf16>, vector<3x896xbf16>, vector<6x896xf32> -> vector<6x896xf32>
    %36 = arith.addf %31, %35 : vector<6x896xf32>
    %c6 = arith.constant 6 : index
    %c0_27 = arith.constant 0 : index
    %c0_28 = arith.constant 0 : index
    %37 = vector.load %arg2[%c6, %c0_27, %c0_28] : memref<25x6x3xbf16, #tpu.memory_space<vmem>>, vector<1x6x3xbf16>
    %38 = vector.shape_cast %37 : vector<1x6x3xbf16> to vector<6x3xbf16>
    %39 = vector.extract_strided_slice %5 {offsets = [0, 33], sizes = [3, 896], strides = [1, 1]} : vector<3x1152xbf16> to vector<3x896xbf16>
    %cst_29 = arith.constant dense<0.000000e+00> : vector<6x896xf32>
    %40 = tpu.matmul %38, %39, %cst_29 {dimension_numbers = #tpu.dot_dimension_numbers<[1], [0], [0], [1], [0, 0, 1, 1], [], []>} : vector<6x3xbf16>, vector<3x896xbf16>, vector<6x896xf32> -> vector<6x896xf32>
    %41 = arith.addf %36, %40 : vector<6x896xf32>
    %c7 = arith.constant 7 : index
    %c0_30 = arith.constant 0 : index
    %c0_31 = arith.constant 0 : index
    %42 = vector.load %arg2[%c7, %c0_30, %c0_31] : memref<25x6x3xbf16, #tpu.memory_space<vmem>>, vector<1x6x3xbf16>
    %43 = vector.shape_cast %42 : vector<1x6x3xbf16> to vector<6x3xbf16>
    %44 = vector.extract_strided_slice %5 {offsets = [0, 34], sizes = [3, 896], strides = [1, 1]} : vector<3x1152xbf16> to vector<3x896xbf16>
    %cst_32 = arith.constant dense<0.000000e+00> : vector<6x896xf32>
    %45 = tpu.matmul %43, %44, %cst_32 {dimension_numbers = #tpu.dot_dimension_numbers<[1], [0], [0], [1], [0, 0, 1, 1], [], []>} : vector<6x3xbf16>, vector<3x896xbf16>, vector<6x896xf32> -> vector<6x896xf32>
    %46 = arith.addf %41, %45 : vector<6x896xf32>
    %c8 = arith.constant 8 : index
    %c0_33 = arith.constant 0 : index
    %c0_34 = arith.constant 0 : index
    %47 = vector.load %arg2[%c8, %c0_33, %c0_34] : memref<25x6x3xbf16, #tpu.memory_space<vmem>>, vector<1x6x3xbf16>
    %48 = vector.shape_cast %47 : vector<1x6x3xbf16> to vector<6x3xbf16>
    %49 = vector.extract_strided_slice %5 {offsets = [0, 35], sizes = [3, 896], strides = [1, 1]} : vector<3x1152xbf16> to vector<3x896xbf16>
    %cst_35 = arith.constant dense<0.000000e+00> : vector<6x896xf32>
    %50 = tpu.matmul %48, %49, %cst_35 {dimension_numbers = #tpu.dot_dimension_numbers<[1], [0], [0], [1], [0, 0, 1, 1], [], []>} : vector<6x3xbf16>, vector<3x896xbf16>, vector<6x896xf32> -> vector<6x896xf32>
    %51 = arith.addf %46, %50 : vector<6x896xf32>
    %c9 = arith.constant 9 : index
    %c0_36 = arith.constant 0 : index
    %c0_37 = arith.constant 0 : index
    %52 = vector.load %arg2[%c9, %c0_36, %c0_37] : memref<25x6x3xbf16, #tpu.memory_space<vmem>>, vector<1x6x3xbf16>
    %53 = vector.shape_cast %52 : vector<1x6x3xbf16> to vector<6x3xbf16>
    %54 = vector.extract_strided_slice %5 {offsets = [0, 36], sizes = [3, 896], strides = [1, 1]} : vector<3x1152xbf16> to vector<3x896xbf16>
    %cst_38 = arith.constant dense<0.000000e+00> : vector<6x896xf32>
    %55 = tpu.matmul %53, %54, %cst_38 {dimension_numbers = #tpu.dot_dimension_numbers<[1], [0], [0], [1], [0, 0, 1, 1], [], []>} : vector<6x3xbf16>, vector<3x896xbf16>, vector<6x896xf32> -> vector<6x896xf32>
    %56 = arith.addf %51, %55 : vector<6x896xf32>
    %c10 = arith.constant 10 : index
    %c0_39 = arith.constant 0 : index
    %c0_40 = arith.constant 0 : index
    %57 = vector.load %arg2[%c10, %c0_39, %c0_40] : memref<25x6x3xbf16, #tpu.memory_space<vmem>>, vector<1x6x3xbf16>
    %58 = vector.shape_cast %57 : vector<1x6x3xbf16> to vector<6x3xbf16>
    %59 = vector.extract_strided_slice %5 {offsets = [0, 64], sizes = [3, 896], strides = [1, 1]} : vector<3x1152xbf16> to vector<3x896xbf16>
    %cst_41 = arith.constant dense<0.000000e+00> : vector<6x896xf32>
    %60 = tpu.matmul %58, %59, %cst_41 {dimension_numbers = #tpu.dot_dimension_numbers<[1], [0], [0], [1], [0, 0, 1, 1], [], []>} : vector<6x3xbf16>, vector<3x896xbf16>, vector<6x896xf32> -> vector<6x896xf32>
    %61 = arith.addf %56, %60 : vector<6x896xf32>
    %c11 = arith.constant 11 : index
    %c0_42 = arith.constant 0 : index
    %c0_43 = arith.constant 0 : index
    %62 = vector.load %arg2[%c11, %c0_42, %c0_43] : memref<25x6x3xbf16, #tpu.memory_space<vmem>>, vector<1x6x3xbf16>
    %63 = vector.shape_cast %62 : vector<1x6x3xbf16> to vector<6x3xbf16>
    %64 = vector.extract_strided_slice %5 {offsets = [0, 65], sizes = [3, 896], strides = [1, 1]} : vector<3x1152xbf16> to vector<3x896xbf16>
    %cst_44 = arith.constant dense<0.000000e+00> : vector<6x896xf32>
    %65 = tpu.matmul %63, %64, %cst_44 {dimension_numbers = #tpu.dot_dimension_numbers<[1], [0], [0], [1], [0, 0, 1, 1], [], []>} : vector<6x3xbf16>, vector<3x896xbf16>, vector<6x896xf32> -> vector<6x896xf32>
    %66 = arith.addf %61, %65 : vector<6x896xf32>
    %c12 = arith.constant 12 : index
    %c0_45 = arith.constant 0 : index
    %c0_46 = arith.constant 0 : index
    %67 = vector.load %arg2[%c12, %c0_45, %c0_46] : memref<25x6x3xbf16, #tpu.memory_space<vmem>>, vector<1x6x3xbf16>
    %68 = vector.shape_cast %67 : vector<1x6x3xbf16> to vector<6x3xbf16>
    %69 = vector.extract_strided_slice %5 {offsets = [0, 66], sizes = [3, 896], strides = [1, 1]} : vector<3x1152xbf16> to vector<3x896xbf16>
    %cst_47 = arith.constant dense<0.000000e+00> : vector<6x896xf32>
    %70 = tpu.matmul %68, %69, %cst_47 {dimension_numbers = #tpu.dot_dimension_numbers<[1], [0], [0], [1], [0, 0, 1, 1], [], []>} : vector<6x3xbf16>, vector<3x896xbf16>, vector<6x896xf32> -> vector<6x896xf32>
    %71 = arith.addf %66, %70 : vector<6x896xf32>
    %c13 = arith.constant 13 : index
    %c0_48 = arith.constant 0 : index
    %c0_49 = arith.constant 0 : index
    %72 = vector.load %arg2[%c13, %c0_48, %c0_49] : memref<25x6x3xbf16, #tpu.memory_space<vmem>>, vector<1x6x3xbf16>
    %73 = vector.shape_cast %72 : vector<1x6x3xbf16> to vector<6x3xbf16>
    %74 = vector.extract_strided_slice %5 {offsets = [0, 67], sizes = [3, 896], strides = [1, 1]} : vector<3x1152xbf16> to vector<3x896xbf16>
    %cst_50 = arith.constant dense<0.000000e+00> : vector<6x896xf32>
    %75 = tpu.matmul %73, %74, %cst_50 {dimension_numbers = #tpu.dot_dimension_numbers<[1], [0], [0], [1], [0, 0, 1, 1], [], []>} : vector<6x3xbf16>, vector<3x896xbf16>, vector<6x896xf32> -> vector<6x896xf32>
    %76 = arith.addf %71, %75 : vector<6x896xf32>
    %c14 = arith.constant 14 : index
    %c0_51 = arith.constant 0 : index
    %c0_52 = arith.constant 0 : index
    %77 = vector.load %arg2[%c14, %c0_51, %c0_52] : memref<25x6x3xbf16, #tpu.memory_space<vmem>>, vector<1x6x3xbf16>
    %78 = vector.shape_cast %77 : vector<1x6x3xbf16> to vector<6x3xbf16>
    %79 = vector.extract_strided_slice %5 {offsets = [0, 68], sizes = [3, 896], strides = [1, 1]} : vector<3x1152xbf16> to vector<3x896xbf16>
    %cst_53 = arith.constant dense<0.000000e+00> : vector<6x896xf32>
    %80 = tpu.matmul %78, %79, %cst_53 {dimension_numbers = #tpu.dot_dimension_numbers<[1], [0], [0], [1], [0, 0, 1, 1], [], []>} : vector<6x3xbf16>, vector<3x896xbf16>, vector<6x896xf32> -> vector<6x896xf32>
    %81 = arith.addf %76, %80 : vector<6x896xf32>
    %c15 = arith.constant 15 : index
    %c0_54 = arith.constant 0 : index
    %c0_55 = arith.constant 0 : index
    %82 = vector.load %arg2[%c15, %c0_54, %c0_55] : memref<25x6x3xbf16, #tpu.memory_space<vmem>>, vector<1x6x3xbf16>
    %83 = vector.shape_cast %82 : vector<1x6x3xbf16> to vector<6x3xbf16>
    %84 = vector.extract_strided_slice %5 {offsets = [0, 96], sizes = [3, 896], strides = [1, 1]} : vector<3x1152xbf16> to vector<3x896xbf16>
    %cst_56 = arith.constant dense<0.000000e+00> : vector<6x896xf32>
    %85 = tpu.matmul %83, %84, %cst_56 {dimension_numbers = #tpu.dot_dimension_numbers<[1], [0], [0], [1], [0, 0, 1, 1], [], []>} : vector<6x3xbf16>, vector<3x896xbf16>, vector<6x896xf32> -> vector<6x896xf32>
    %86 = arith.addf %81, %85 : vector<6x896xf32>
    %c16 = arith.constant 16 : index
    %c0_57 = arith.constant 0 : index
    %c0_58 = arith.constant 0 : index
    %87 = vector.load %arg2[%c16, %c0_57, %c0_58] : memref<25x6x3xbf16, #tpu.memory_space<vmem>>, vector<1x6x3xbf16>
    %88 = vector.shape_cast %87 : vector<1x6x3xbf16> to vector<6x3xbf16>
    %89 = vector.extract_strided_slice %5 {offsets = [0, 97], sizes = [3, 896], strides = [1, 1]} : vector<3x1152xbf16> to vector<3x896xbf16>
    %cst_59 = arith.constant dense<0.000000e+00> : vector<6x896xf32>
    %90 = tpu.matmul %88, %89, %cst_59 {dimension_numbers = #tpu.dot_dimension_numbers<[1], [0], [0], [1], [0, 0, 1, 1], [], []>} : vector<6x3xbf16>, vector<3x896xbf16>, vector<6x896xf32> -> vector<6x896xf32>
    %91 = arith.addf %86, %90 : vector<6x896xf32>
    %c17 = arith.constant 17 : index
    %c0_60 = arith.constant 0 : index
    %c0_61 = arith.constant 0 : index
    %92 = vector.load %arg2[%c17, %c0_60, %c0_61] : memref<25x6x3xbf16, #tpu.memory_space<vmem>>, vector<1x6x3xbf16>
    %93 = vector.shape_cast %92 : vector<1x6x3xbf16> to vector<6x3xbf16>
    %94 = vector.extract_strided_slice %5 {offsets = [0, 98], sizes = [3, 896], strides = [1, 1]} : vector<3x1152xbf16> to vector<3x896xbf16>
    %cst_62 = arith.constant dense<0.000000e+00> : vector<6x896xf32>
    %95 = tpu.matmul %93, %94, %cst_62 {dimension_numbers = #tpu.dot_dimension_numbers<[1], [0], [0], [1], [0, 0, 1, 1], [], []>} : vector<6x3xbf16>, vector<3x896xbf16>, vector<6x896xf32> -> vector<6x896xf32>
    %96 = arith.addf %91, %95 : vector<6x896xf32>
    %c18 = arith.constant 18 : index
    %c0_63 = arith.constant 0 : index
    %c0_64 = arith.constant 0 : index
    %97 = vector.load %arg2[%c18, %c0_63, %c0_64] : memref<25x6x3xbf16, #tpu.memory_space<vmem>>, vector<1x6x3xbf16>
    %98 = vector.shape_cast %97 : vector<1x6x3xbf16> to vector<6x3xbf16>
    %99 = vector.extract_strided_slice %5 {offsets = [0, 99], sizes = [3, 896], strides = [1, 1]} : vector<3x1152xbf16> to vector<3x896xbf16>
    %cst_65 = arith.constant dense<0.000000e+00> : vector<6x896xf32>
    %100 = tpu.matmul %98, %99, %cst_65 {dimension_numbers = #tpu.dot_dimension_numbers<[1], [0], [0], [1], [0, 0, 1, 1], [], []>} : vector<6x3xbf16>, vector<3x896xbf16>, vector<6x896xf32> -> vector<6x896xf32>
    %101 = arith.addf %96, %100 : vector<6x896xf32>
    %c19 = arith.constant 19 : index
    %c0_66 = arith.constant 0 : index
    %c0_67 = arith.constant 0 : index
    %102 = vector.load %arg2[%c19, %c0_66, %c0_67] : memref<25x6x3xbf16, #tpu.memory_space<vmem>>, vector<1x6x3xbf16>
    %103 = vector.shape_cast %102 : vector<1x6x3xbf16> to vector<6x3xbf16>
    %104 = vector.extract_strided_slice %5 {offsets = [0, 100], sizes = [3, 896], strides = [1, 1]} : vector<3x1152xbf16> to vector<3x896xbf16>
    %cst_68 = arith.constant dense<0.000000e+00> : vector<6x896xf32>
    %105 = tpu.matmul %103, %104, %cst_68 {dimension_numbers = #tpu.dot_dimension_numbers<[1], [0], [0], [1], [0, 0, 1, 1], [], []>} : vector<6x3xbf16>, vector<3x896xbf16>, vector<6x896xf32> -> vector<6x896xf32>
    %106 = arith.addf %101, %105 : vector<6x896xf32>
    %c20 = arith.constant 20 : index
    %c0_69 = arith.constant 0 : index
    %c0_70 = arith.constant 0 : index
    %107 = vector.load %arg2[%c20, %c0_69, %c0_70] : memref<25x6x3xbf16, #tpu.memory_space<vmem>>, vector<1x6x3xbf16>
    %108 = vector.shape_cast %107 : vector<1x6x3xbf16> to vector<6x3xbf16>
    %109 = vector.extract_strided_slice %5 {offsets = [0, 128], sizes = [3, 896], strides = [1, 1]} : vector<3x1152xbf16> to vector<3x896xbf16>
    %cst_71 = arith.constant dense<0.000000e+00> : vector<6x896xf32>
    %110 = tpu.matmul %108, %109, %cst_71 {dimension_numbers = #tpu.dot_dimension_numbers<[1], [0], [0], [1], [0, 0, 1, 1], [], []>} : vector<6x3xbf16>, vector<3x896xbf16>, vector<6x896xf32> -> vector<6x896xf32>
    %111 = arith.addf %106, %110 : vector<6x896xf32>
    %c21 = arith.constant 21 : index
    %c0_72 = arith.constant 0 : index
    %c0_73 = arith.constant 0 : index
    %112 = vector.load %arg2[%c21, %c0_72, %c0_73] : memref<25x6x3xbf16, #tpu.memory_space<vmem>>, vector<1x6x3xbf16>
    %113 = vector.shape_cast %112 : vector<1x6x3xbf16> to vector<6x3xbf16>
    %114 = vector.extract_strided_slice %5 {offsets = [0, 129], sizes = [3, 896], strides = [1, 1]} : vector<3x1152xbf16> to vector<3x896xbf16>
    %cst_74 = arith.constant dense<0.000000e+00> : vector<6x896xf32>
    %115 = tpu.matmul %113, %114, %cst_74 {dimension_numbers = #tpu.dot_dimension_numbers<[1], [0], [0], [1], [0, 0, 1, 1], [], []>} : vector<6x3xbf16>, vector<3x896xbf16>, vector<6x896xf32> -> vector<6x896xf32>
    %116 = arith.addf %111, %115 : vector<6x896xf32>
    %c22 = arith.constant 22 : index
    %c0_75 = arith.constant 0 : index
    %c0_76 = arith.constant 0 : index
    %117 = vector.load %arg2[%c22, %c0_75, %c0_76] : memref<25x6x3xbf16, #tpu.memory_space<vmem>>, vector<1x6x3xbf16>
    %118 = vector.shape_cast %117 : vector<1x6x3xbf16> to vector<6x3xbf16>
    %119 = vector.extract_strided_slice %5 {offsets = [0, 130], sizes = [3, 896], strides = [1, 1]} : vector<3x1152xbf16> to vector<3x896xbf16>
    %cst_77 = arith.constant dense<0.000000e+00> : vector<6x896xf32>
    %120 = tpu.matmul %118, %119, %cst_77 {dimension_numbers = #tpu.dot_dimension_numbers<[1], [0], [0], [1], [0, 0, 1, 1], [], []>} : vector<6x3xbf16>, vector<3x896xbf16>, vector<6x896xf32> -> vector<6x896xf32>
    %121 = arith.addf %116, %120 : vector<6x896xf32>
    %c23 = arith.constant 23 : index
    %c0_78 = arith.constant 0 : index
    %c0_79 = arith.constant 0 : index
    %122 = vector.load %arg2[%c23, %c0_78, %c0_79] : memref<25x6x3xbf16, #tpu.memory_space<vmem>>, vector<1x6x3xbf16>
    %123 = vector.shape_cast %122 : vector<1x6x3xbf16> to vector<6x3xbf16>
    %124 = vector.extract_strided_slice %5 {offsets = [0, 131], sizes = [3, 896], strides = [1, 1]} : vector<3x1152xbf16> to vector<3x896xbf16>
    %cst_80 = arith.constant dense<0.000000e+00> : vector<6x896xf32>
    %125 = tpu.matmul %123, %124, %cst_80 {dimension_numbers = #tpu.dot_dimension_numbers<[1], [0], [0], [1], [0, 0, 1, 1], [], []>} : vector<6x3xbf16>, vector<3x896xbf16>, vector<6x896xf32> -> vector<6x896xf32>
    %126 = arith.addf %121, %125 : vector<6x896xf32>
    %c24 = arith.constant 24 : index
    %c0_81 = arith.constant 0 : index
    %c0_82 = arith.constant 0 : index
    %127 = vector.load %arg2[%c24, %c0_81, %c0_82] : memref<25x6x3xbf16, #tpu.memory_space<vmem>>, vector<1x6x3xbf16>
    %128 = vector.shape_cast %127 : vector<1x6x3xbf16> to vector<6x3xbf16>
    %129 = vector.extract_strided_slice %5 {offsets = [0, 132], sizes = [3, 896], strides = [1, 1]} : vector<3x1152xbf16> to vector<3x896xbf16>
    %cst_83 = arith.constant dense<0.000000e+00> : vector<6x896xf32>
    %130 = tpu.matmul %128, %129, %cst_83 {dimension_numbers = #tpu.dot_dimension_numbers<[1], [0], [0], [1], [0, 0, 1, 1], [], []>} : vector<6x3xbf16>, vector<3x896xbf16>, vector<6x896xf32> -> vector<6x896xf32>
    %131 = arith.addf %126, %130 : vector<6x896xf32>
    %c0_84 = arith.constant 0 : index
    %c0_85 = arith.constant 0 : index
    %132 = vector.load %arg3[%c0_84, %c0_85] : memref<6x1xf32, #tpu.memory_space<vmem>>, vector<6x1xf32>
    %133 = vector.broadcast %132 : vector<6x1xf32> to vector<6x896xf32>
    %134 = arith.addf %131, %133 : vector<6x896xf32>
    %cst_86 = arith.constant 0.000000e+00 : f32
    %135 = vector.broadcast %cst_86 : f32 to vector<6x896xf32>
    %136 = arith.maximumf %134, %135 : vector<6x896xf32>
    %137 = tpu.iota {dimensions = array<i32: 0>} : vector<28x14xi32>
    %138 = tpu.iota {dimensions = array<i32: 1>} : vector<28x14xi32>
    %c2_i32 = arith.constant 2 : i32
    %139 = vector.broadcast %c2_i32 : i32 to vector<28x14xi32>
    %140 = arith.muli %139, %138 : vector<28x14xi32>
    %141 = arith.cmpi eq, %137, %140 : vector<28x14xi32>
    %cst_87 = arith.constant 1.000000e+00 : f32
    %cst_88 = arith.constant 0.000000e+00 : f32
    %142 = vector.broadcast %cst_87 : f32 to vector<28x14xf32>
    %143 = vector.broadcast %cst_88 : f32 to vector<28x14xf32>
    %144 = arith.select %141, %142, %143 : vector<28x14xi1>, vector<28x14xf32>
    %145 = arith.truncf %144 : vector<28x14xf32> to vector<28x14xbf16>
    %146 = vector.extract_strided_slice %136 {offsets = [0, 0], sizes = [6, 863], strides = [1, 1]} : vector<6x896xf32> to vector<6x863xf32>
    %147 = vector.extract_strided_slice %136 {offsets = [0, 1], sizes = [6, 863], strides = [1, 1]} : vector<6x896xf32> to vector<6x863xf32>
    %148 = arith.maximumf %146, %147 : vector<6x863xf32>
    %149 = vector.extract_strided_slice %136 {offsets = [0, 32], sizes = [6, 863], strides = [1, 1]} : vector<6x896xf32> to vector<6x863xf32>
    %150 = vector.extract_strided_slice %136 {offsets = [0, 33], sizes = [6, 863], strides = [1, 1]} : vector<6x896xf32> to vector<6x863xf32>
    %151 = arith.maximumf %149, %150 : vector<6x863xf32>
    %152 = arith.maximumf %148, %151 : vector<6x863xf32>
    %153 = vector.extract_strided_slice %152 {offsets = [0, 0], sizes = [6, 28], strides = [1, 1]} : vector<6x863xf32> to vector<6x28xf32>
    %154 = arith.truncf %153 : vector<6x28xf32> to vector<6x28xbf16>
    %cst_89 = arith.constant dense<0.000000e+00> : vector<6x14xf32>
    %155 = tpu.matmul %154, %145, %cst_89 {dimension_numbers = #tpu.dot_dimension_numbers<[1], [0], [0], [1], [0, 0, 1, 1], [], []>} : vector<6x28xbf16>, vector<28x14xbf16>, vector<6x14xf32> -> vector<6x14xf32>
    %156 = arith.truncf %155 : vector<6x14xf32> to vector<6x14xbf16>
    %c0_90 = arith.constant 0 : index
    %c0_91 = arith.constant 0 : index
    %157 = vector.load %arg13[%c0_90, %c0_91] : memref<6x480xbf16, #tpu.memory_space<vmem>>, vector<6x14xbf16>
    tpu.vector_store %arg13[%c0_90, %c0_91], %156 {strides = array<i32>} : memref<6x480xbf16, #tpu.memory_space<vmem>>, vector<6x14xbf16>,
    %158 = vector.extract_strided_slice %152 {offsets = [0, 64], sizes = [6, 28], strides = [1, 1]} : vector<6x863xf32> to vector<6x28xf32>
    %159 = arith.truncf %158 : vector<6x28xf32> to vector<6x28xbf16>
    %cst_92 = arith.constant dense<0.000000e+00> : vector<6x14xf32>
    %160 = tpu.matmul %159, %145, %cst_92 {dimension_numbers = #tpu.dot_dimension_numbers<[1], [0], [0], [1], [0, 0, 1, 1], [], []>} : vector<6x28xbf16>, vector<28x14xbf16>, vector<6x14xf32> -> vector<6x14xf32>
    %161 = arith.truncf %160 : vector<6x14xf32> to vector<6x14xbf16>
    %c0_93 = arith.constant 0 : index
    %c32 = arith.constant 32 : index
    %162 = vector.load %arg13[%c0_93, %c32] : memref<6x480xbf16, #tpu.memory_space<vmem>>, vector<6x14xbf16>
    tpu.vector_store %arg13[%c0_93, %c32], %161 {strides = array<i32>} : memref<6x480xbf16, #tpu.memory_space<vmem>>, vector<6x14xbf16>,
    %163 = vector.extract_strided_slice %152 {offsets = [0, 128], sizes = [6, 28], strides = [1, 1]} : vector<6x863xf32> to vector<6x28xf32>
    %164 = arith.truncf %163 : vector<6x28xf32> to vector<6x28xbf16>
    %cst_94 = arith.constant dense<0.000000e+00> : vector<6x14xf32>
    %165 = tpu.matmul %164, %145, %cst_94 {dimension_numbers = #tpu.dot_dimension_numbers<[1], [0], [0], [1], [0, 0, 1, 1], [], []>} : vector<6x28xbf16>, vector<28x14xbf16>, vector<6x14xf32> -> vector<6x14xf32>
    %166 = arith.truncf %165 : vector<6x14xf32> to vector<6x14xbf16>
    %c0_95 = arith.constant 0 : index
    %c64 = arith.constant 64 : index
    %167 = vector.load %arg13[%c0_95, %c64] : memref<6x480xbf16, #tpu.memory_space<vmem>>, vector<6x14xbf16>
    tpu.vector_store %arg13[%c0_95, %c64], %166 {strides = array<i32>} : memref<6x480xbf16, #tpu.memory_space<vmem>>, vector<6x14xbf16>,
    %168 = vector.extract_strided_slice %152 {offsets = [0, 192], sizes = [6, 28], strides = [1, 1]} : vector<6x863xf32> to vector<6x28xf32>
    %169 = arith.truncf %168 : vector<6x28xf32> to vector<6x28xbf16>
    %cst_96 = arith.constant dense<0.000000e+00> : vector<6x14xf32>
    %170 = tpu.matmul %169, %145, %cst_96 {dimension_numbers = #tpu.dot_dimension_numbers<[1], [0], [0], [1], [0, 0, 1, 1], [], []>} : vector<6x28xbf16>, vector<28x14xbf16>, vector<6x14xf32> -> vector<6x14xf32>
    %171 = arith.truncf %170 : vector<6x14xf32> to vector<6x14xbf16>
    %c0_97 = arith.constant 0 : index
    %c96 = arith.constant 96 : index
    %172 = vector.load %arg13[%c0_97, %c96] : memref<6x480xbf16, #tpu.memory_space<vmem>>, vector<6x14xbf16>
    tpu.vector_store %arg13[%c0_97, %c96], %171 {strides = array<i32>} : memref<6x480xbf16, #tpu.memory_space<vmem>>, vector<6x14xbf16>,
    %173 = vector.extract_strided_slice %152 {offsets = [0, 256], sizes = [6, 28], strides = [1, 1]} : vector<6x863xf32> to vector<6x28xf32>
    %174 = arith.truncf %173 : vector<6x28xf32> to vector<6x28xbf16>
    %cst_98 = arith.constant dense<0.000000e+00> : vector<6x14xf32>
    %175 = tpu.matmul %174, %145, %cst_98 {dimension_numbers = #tpu.dot_dimension_numbers<[1], [0], [0], [1], [0, 0, 1, 1], [], []>} : vector<6x28xbf16>, vector<28x14xbf16>, vector<6x14xf32> -> vector<6x14xf32>
    %176 = arith.truncf %175 : vector<6x14xf32> to vector<6x14xbf16>
    %c0_99 = arith.constant 0 : index
    %c128 = arith.constant 128 : index
    %177 = vector.load %arg13[%c0_99, %c128] : memref<6x480xbf16, #tpu.memory_space<vmem>>, vector<6x14xbf16>
    tpu.vector_store %arg13[%c0_99, %c128], %176 {strides = array<i32>} : memref<6x480xbf16, #tpu.memory_space<vmem>>, vector<6x14xbf16>,
    %178 = vector.extract_strided_slice %152 {offsets = [0, 320], sizes = [6, 28], strides = [1, 1]} : vector<6x863xf32> to vector<6x28xf32>
    %179 = arith.truncf %178 : vector<6x28xf32> to vector<6x28xbf16>
    %cst_100 = arith.constant dense<0.000000e+00> : vector<6x14xf32>
    %180 = tpu.matmul %179, %145, %cst_100 {dimension_numbers = #tpu.dot_dimension_numbers<[1], [0], [0], [1], [0, 0, 1, 1], [], []>} : vector<6x28xbf16>, vector<28x14xbf16>, vector<6x14xf32> -> vector<6x14xf32>
    %181 = arith.truncf %180 : vector<6x14xf32> to vector<6x14xbf16>
    %c0_101 = arith.constant 0 : index
    %c160 = arith.constant 160 : index
    %182 = vector.load %arg13[%c0_101, %c160] : memref<6x480xbf16, #tpu.memory_space<vmem>>, vector<6x14xbf16>
    tpu.vector_store %arg13[%c0_101, %c160], %181 {strides = array<i32>} : memref<6x480xbf16, #tpu.memory_space<vmem>>, vector<6x14xbf16>,
    %183 = vector.extract_strided_slice %152 {offsets = [0, 384], sizes = [6, 28], strides = [1, 1]} : vector<6x863xf32> to vector<6x28xf32>
    %184 = arith.truncf %183 : vector<6x28xf32> to vector<6x28xbf16>
    %cst_102 = arith.constant dense<0.000000e+00> : vector<6x14xf32>
    %185 = tpu.matmul %184, %145, %cst_102 {dimension_numbers = #tpu.dot_dimension_numbers<[1], [0], [0], [1], [0, 0, 1, 1], [], []>} : vector<6x28xbf16>, vector<28x14xbf16>, vector<6x14xf32> -> vector<6x14xf32>
    %186 = arith.truncf %185 : vector<6x14xf32> to vector<6x14xbf16>
    %c0_103 = arith.constant 0 : index
    %c192 = arith.constant 192 : index
    %187 = vector.load %arg13[%c0_103, %c192] : memref<6x480xbf16, #tpu.memory_space<vmem>>, vector<6x14xbf16>
    tpu.vector_store %arg13[%c0_103, %c192], %186 {strides = array<i32>} : memref<6x480xbf16, #tpu.memory_space<vmem>>, vector<6x14xbf16>,
    %188 = vector.extract_strided_slice %152 {offsets = [0, 448], sizes = [6, 28], strides = [1, 1]} : vector<6x863xf32> to vector<6x28xf32>
    %189 = arith.truncf %188 : vector<6x28xf32> to vector<6x28xbf16>
    %cst_104 = arith.constant dense<0.000000e+00> : vector<6x14xf32>
    %190 = tpu.matmul %189, %145, %cst_104 {dimension_numbers = #tpu.dot_dimension_numbers<[1], [0], [0], [1], [0, 0, 1, 1], [], []>} : vector<6x28xbf16>, vector<28x14xbf16>, vector<6x14xf32> -> vector<6x14xf32>
    %191 = arith.truncf %190 : vector<6x14xf32> to vector<6x14xbf16>
    %c0_105 = arith.constant 0 : index
    %c224 = arith.constant 224 : index
    %192 = vector.load %arg13[%c0_105, %c224] : memref<6x480xbf16, #tpu.memory_space<vmem>>, vector<6x14xbf16>
    tpu.vector_store %arg13[%c0_105, %c224], %191 {strides = array<i32>} : memref<6x480xbf16, #tpu.memory_space<vmem>>, vector<6x14xbf16>,
    %193 = vector.extract_strided_slice %152 {offsets = [0, 512], sizes = [6, 28], strides = [1, 1]} : vector<6x863xf32> to vector<6x28xf32>
    %194 = arith.truncf %193 : vector<6x28xf32> to vector<6x28xbf16>
    %cst_106 = arith.constant dense<0.000000e+00> : vector<6x14xf32>
    %195 = tpu.matmul %194, %145, %cst_106 {dimension_numbers = #tpu.dot_dimension_numbers<[1], [0], [0], [1], [0, 0, 1, 1], [], []>} : vector<6x28xbf16>, vector<28x14xbf16>, vector<6x14xf32> -> vector<6x14xf32>
    %196 = arith.truncf %195 : vector<6x14xf32> to vector<6x14xbf16>
    %c0_107 = arith.constant 0 : index
    %c256 = arith.constant 256 : index
    %197 = vector.load %arg13[%c0_107, %c256] : memref<6x480xbf16, #tpu.memory_space<vmem>>, vector<6x14xbf16>
    tpu.vector_store %arg13[%c0_107, %c256], %196 {strides = array<i32>} : memref<6x480xbf16, #tpu.memory_space<vmem>>, vector<6x14xbf16>,
    %198 = vector.extract_strided_slice %152 {offsets = [0, 576], sizes = [6, 28], strides = [1, 1]} : vector<6x863xf32> to vector<6x28xf32>
    %199 = arith.truncf %198 : vector<6x28xf32> to vector<6x28xbf16>
    %cst_108 = arith.constant dense<0.000000e+00> : vector<6x14xf32>
    %200 = tpu.matmul %199, %145, %cst_108 {dimension_numbers = #tpu.dot_dimension_numbers<[1], [0], [0], [1], [0, 0, 1, 1], [], []>} : vector<6x28xbf16>, vector<28x14xbf16>, vector<6x14xf32> -> vector<6x14xf32>
    %201 = arith.truncf %200 : vector<6x14xf32> to vector<6x14xbf16>
    %c0_109 = arith.constant 0 : index
    %c288 = arith.constant 288 : index
    %202 = vector.load %arg13[%c0_109, %c288] : memref<6x480xbf16, #tpu.memory_space<vmem>>, vector<6x14xbf16>
    tpu.vector_store %arg13[%c0_109, %c288], %201 {strides = array<i32>} : memref<6x480xbf16, #tpu.memory_space<vmem>>, vector<6x14xbf16>,
    %203 = vector.extract_strided_slice %152 {offsets = [0, 640], sizes = [6, 28], strides = [1, 1]} : vector<6x863xf32> to vector<6x28xf32>
    %204 = arith.truncf %203 : vector<6x28xf32> to vector<6x28xbf16>
    %cst_110 = arith.constant dense<0.000000e+00> : vector<6x14xf32>
    %205 = tpu.matmul %204, %145, %cst_110 {dimension_numbers = #tpu.dot_dimension_numbers<[1], [0], [0], [1], [0, 0, 1, 1], [], []>} : vector<6x28xbf16>, vector<28x14xbf16>, vector<6x14xf32> -> vector<6x14xf32>
    %206 = arith.truncf %205 : vector<6x14xf32> to vector<6x14xbf16>
    %c0_111 = arith.constant 0 : index
    %c320 = arith.constant 320 : index
    %207 = vector.load %arg13[%c0_111, %c320] : memref<6x480xbf16, #tpu.memory_space<vmem>>, vector<6x14xbf16>
    tpu.vector_store %arg13[%c0_111, %c320], %206 {strides = array<i32>} : memref<6x480xbf16, #tpu.memory_space<vmem>>, vector<6x14xbf16>,
    %208 = vector.extract_strided_slice %152 {offsets = [0, 704], sizes = [6, 28], strides = [1, 1]} : vector<6x863xf32> to vector<6x28xf32>
    %209 = arith.truncf %208 : vector<6x28xf32> to vector<6x28xbf16>
    %cst_112 = arith.constant dense<0.000000e+00> : vector<6x14xf32>
    %210 = tpu.matmul %209, %145, %cst_112 {dimension_numbers = #tpu.dot_dimension_numbers<[1], [0], [0], [1], [0, 0, 1, 1], [], []>} : vector<6x28xbf16>, vector<28x14xbf16>, vector<6x14xf32> -> vector<6x14xf32>
    %211 = arith.truncf %210 : vector<6x14xf32> to vector<6x14xbf16>
    %c0_113 = arith.constant 0 : index
    %c352 = arith.constant 352 : index
    %212 = vector.load %arg13[%c0_113, %c352] : memref<6x480xbf16, #tpu.memory_space<vmem>>, vector<6x14xbf16>
    tpu.vector_store %arg13[%c0_113, %c352], %211 {strides = array<i32>} : memref<6x480xbf16, #tpu.memory_space<vmem>>, vector<6x14xbf16>,
    %213 = vector.extract_strided_slice %152 {offsets = [0, 768], sizes = [6, 28], strides = [1, 1]} : vector<6x863xf32> to vector<6x28xf32>
    %214 = arith.truncf %213 : vector<6x28xf32> to vector<6x28xbf16>
    %cst_114 = arith.constant dense<0.000000e+00> : vector<6x14xf32>
    %215 = tpu.matmul %214, %145, %cst_114 {dimension_numbers = #tpu.dot_dimension_numbers<[1], [0], [0], [1], [0, 0, 1, 1], [], []>} : vector<6x28xbf16>, vector<28x14xbf16>, vector<6x14xf32> -> vector<6x14xf32>
    %216 = arith.truncf %215 : vector<6x14xf32> to vector<6x14xbf16>
    %c0_115 = arith.constant 0 : index
    %c384 = arith.constant 384 : index
    %217 = vector.load %arg13[%c0_115, %c384] : memref<6x480xbf16, #tpu.memory_space<vmem>>, vector<6x14xbf16>
    tpu.vector_store %arg13[%c0_115, %c384], %216 {strides = array<i32>} : memref<6x480xbf16, #tpu.memory_space<vmem>>, vector<6x14xbf16>,
    %218 = vector.extract_strided_slice %152 {offsets = [0, 832], sizes = [6, 28], strides = [1, 1]} : vector<6x863xf32> to vector<6x28xf32>
    %219 = arith.truncf %218 : vector<6x28xf32> to vector<6x28xbf16>
    %cst_116 = arith.constant dense<0.000000e+00> : vector<6x14xf32>
    %220 = tpu.matmul %219, %145, %cst_116 {dimension_numbers = #tpu.dot_dimension_numbers<[1], [0], [0], [1], [0, 0, 1, 1], [], []>} : vector<6x28xbf16>, vector<28x14xbf16>, vector<6x14xf32> -> vector<6x14xf32>
    %221 = arith.truncf %220 : vector<6x14xf32> to vector<6x14xbf16>
    %c0_117 = arith.constant 0 : index
    %c416 = arith.constant 416 : index
    %222 = vector.load %arg13[%c0_117, %c416] : memref<6x480xbf16, #tpu.memory_space<vmem>>, vector<6x14xbf16>
    tpu.vector_store %arg13[%c0_117, %c416], %221 {strides = array<i32>} : memref<6x480xbf16, #tpu.memory_space<vmem>>, vector<6x14xbf16>,
    %c0_118 = arith.constant 0 : index
    %c0_119 = arith.constant 0 : index
    %223 = vector.load %arg13[%c0_118, %c0_119] : memref<6x480xbf16, #tpu.memory_space<vmem>>, vector<6x480xbf16>
    %cst_120 = arith.constant 0.000000e+00 : f32
    %224 = vector.broadcast %cst_120 : f32 to vector<16x320xf32>
    %c0_121 = arith.constant 0 : index
    %c0_122 = arith.constant 0 : index
    %c0_123 = arith.constant 0 : index
    %225 = vector.load %arg4[%c0_121, %c0_122, %c0_123] : memref<25x16x6xbf16, #tpu.memory_space<vmem>>, vector<1x16x6xbf16>
    %226 = vector.shape_cast %225 : vector<1x16x6xbf16> to vector<16x6xbf16>
    %227 = vector.extract_strided_slice %223 {offsets = [0, 0], sizes = [6, 320], strides = [1, 1]} : vector<6x480xbf16> to vector<6x320xbf16>
    %cst_124 = arith.constant dense<0.000000e+00> : vector<16x320xf32>
    %228 = tpu.matmul %226, %227, %cst_124 {dimension_numbers = #tpu.dot_dimension_numbers<[1], [0], [0], [1], [0, 0, 1, 1], [], []>} : vector<16x6xbf16>, vector<6x320xbf16>, vector<16x320xf32> -> vector<16x320xf32>
    %229 = arith.addf %224, %228 : vector<16x320xf32>
    %c1_125 = arith.constant 1 : index
    %c0_126 = arith.constant 0 : index
    %c0_127 = arith.constant 0 : index
    %230 = vector.load %arg4[%c1_125, %c0_126, %c0_127] : memref<25x16x6xbf16, #tpu.memory_space<vmem>>, vector<1x16x6xbf16>
    %231 = vector.shape_cast %230 : vector<1x16x6xbf16> to vector<16x6xbf16>
    %232 = vector.extract_strided_slice %223 {offsets = [0, 1], sizes = [6, 320], strides = [1, 1]} : vector<6x480xbf16> to vector<6x320xbf16>
    %cst_128 = arith.constant dense<0.000000e+00> : vector<16x320xf32>
    %233 = tpu.matmul %231, %232, %cst_128 {dimension_numbers = #tpu.dot_dimension_numbers<[1], [0], [0], [1], [0, 0, 1, 1], [], []>} : vector<16x6xbf16>, vector<6x320xbf16>, vector<16x320xf32> -> vector<16x320xf32>
    %234 = arith.addf %229, %233 : vector<16x320xf32>
    %c2_129 = arith.constant 2 : index
    %c0_130 = arith.constant 0 : index
    %c0_131 = arith.constant 0 : index
    %235 = vector.load %arg4[%c2_129, %c0_130, %c0_131] : memref<25x16x6xbf16, #tpu.memory_space<vmem>>, vector<1x16x6xbf16>
    %236 = vector.shape_cast %235 : vector<1x16x6xbf16> to vector<16x6xbf16>
    %237 = vector.extract_strided_slice %223 {offsets = [0, 2], sizes = [6, 320], strides = [1, 1]} : vector<6x480xbf16> to vector<6x320xbf16>
    %cst_132 = arith.constant dense<0.000000e+00> : vector<16x320xf32>
    %238 = tpu.matmul %236, %237, %cst_132 {dimension_numbers = #tpu.dot_dimension_numbers<[1], [0], [0], [1], [0, 0, 1, 1], [], []>} : vector<16x6xbf16>, vector<6x320xbf16>, vector<16x320xf32> -> vector<16x320xf32>
    %239 = arith.addf %234, %238 : vector<16x320xf32>
    %c3_133 = arith.constant 3 : index
    %c0_134 = arith.constant 0 : index
    %c0_135 = arith.constant 0 : index
    %240 = vector.load %arg4[%c3_133, %c0_134, %c0_135] : memref<25x16x6xbf16, #tpu.memory_space<vmem>>, vector<1x16x6xbf16>
    %241 = vector.shape_cast %240 : vector<1x16x6xbf16> to vector<16x6xbf16>
    %242 = vector.extract_strided_slice %223 {offsets = [0, 3], sizes = [6, 320], strides = [1, 1]} : vector<6x480xbf16> to vector<6x320xbf16>
    %cst_136 = arith.constant dense<0.000000e+00> : vector<16x320xf32>
    %243 = tpu.matmul %241, %242, %cst_136 {dimension_numbers = #tpu.dot_dimension_numbers<[1], [0], [0], [1], [0, 0, 1, 1], [], []>} : vector<16x6xbf16>, vector<6x320xbf16>, vector<16x320xf32> -> vector<16x320xf32>
    %244 = arith.addf %239, %243 : vector<16x320xf32>
    %c4_137 = arith.constant 4 : index
    %c0_138 = arith.constant 0 : index
    %c0_139 = arith.constant 0 : index
    %245 = vector.load %arg4[%c4_137, %c0_138, %c0_139] : memref<25x16x6xbf16, #tpu.memory_space<vmem>>, vector<1x16x6xbf16>
    %246 = vector.shape_cast %245 : vector<1x16x6xbf16> to vector<16x6xbf16>
    %247 = vector.extract_strided_slice %223 {offsets = [0, 4], sizes = [6, 320], strides = [1, 1]} : vector<6x480xbf16> to vector<6x320xbf16>
    %cst_140 = arith.constant dense<0.000000e+00> : vector<16x320xf32>
    %248 = tpu.matmul %246, %247, %cst_140 {dimension_numbers = #tpu.dot_dimension_numbers<[1], [0], [0], [1], [0, 0, 1, 1], [], []>} : vector<16x6xbf16>, vector<6x320xbf16>, vector<16x320xf32> -> vector<16x320xf32>
    %249 = arith.addf %244, %248 : vector<16x320xf32>
    %c5_141 = arith.constant 5 : index
    %c0_142 = arith.constant 0 : index
    %c0_143 = arith.constant 0 : index
    %250 = vector.load %arg4[%c5_141, %c0_142, %c0_143] : memref<25x16x6xbf16, #tpu.memory_space<vmem>>, vector<1x16x6xbf16>
    %251 = vector.shape_cast %250 : vector<1x16x6xbf16> to vector<16x6xbf16>
    %252 = vector.extract_strided_slice %223 {offsets = [0, 32], sizes = [6, 320], strides = [1, 1]} : vector<6x480xbf16> to vector<6x320xbf16>
    %cst_144 = arith.constant dense<0.000000e+00> : vector<16x320xf32>
    %253 = tpu.matmul %251, %252, %cst_144 {dimension_numbers = #tpu.dot_dimension_numbers<[1], [0], [0], [1], [0, 0, 1, 1], [], []>} : vector<16x6xbf16>, vector<6x320xbf16>, vector<16x320xf32> -> vector<16x320xf32>
    %254 = arith.addf %249, %253 : vector<16x320xf32>
    %c6_145 = arith.constant 6 : index
    %c0_146 = arith.constant 0 : index
    %c0_147 = arith.constant 0 : index
    %255 = vector.load %arg4[%c6_145, %c0_146, %c0_147] : memref<25x16x6xbf16, #tpu.memory_space<vmem>>, vector<1x16x6xbf16>
    %256 = vector.shape_cast %255 : vector<1x16x6xbf16> to vector<16x6xbf16>
    %257 = vector.extract_strided_slice %223 {offsets = [0, 33], sizes = [6, 320], strides = [1, 1]} : vector<6x480xbf16> to vector<6x320xbf16>
    %cst_148 = arith.constant dense<0.000000e+00> : vector<16x320xf32>
    %258 = tpu.matmul %256, %257, %cst_148 {dimension_numbers = #tpu.dot_dimension_numbers<[1], [0], [0], [1], [0, 0, 1, 1], [], []>} : vector<16x6xbf16>, vector<6x320xbf16>, vector<16x320xf32> -> vector<16x320xf32>
    %259 = arith.addf %254, %258 : vector<16x320xf32>
    %c7_149 = arith.constant 7 : index
    %c0_150 = arith.constant 0 : index
    %c0_151 = arith.constant 0 : index
    %260 = vector.load %arg4[%c7_149, %c0_150, %c0_151] : memref<25x16x6xbf16, #tpu.memory_space<vmem>>, vector<1x16x6xbf16>
    %261 = vector.shape_cast %260 : vector<1x16x6xbf16> to vector<16x6xbf16>
    %262 = vector.extract_strided_slice %223 {offsets = [0, 34], sizes = [6, 320], strides = [1, 1]} : vector<6x480xbf16> to vector<6x320xbf16>
    %cst_152 = arith.constant dense<0.000000e+00> : vector<16x320xf32>
    %263 = tpu.matmul %261, %262, %cst_152 {dimension_numbers = #tpu.dot_dimension_numbers<[1], [0], [0], [1], [0, 0, 1, 1], [], []>} : vector<16x6xbf16>, vector<6x320xbf16>, vector<16x320xf32> -> vector<16x320xf32>
    %264 = arith.addf %259, %263 : vector<16x320xf32>
    %c8_153 = arith.constant 8 : index
    %c0_154 = arith.constant 0 : index
    %c0_155 = arith.constant 0 : index
    %265 = vector.load %arg4[%c8_153, %c0_154, %c0_155] : memref<25x16x6xbf16, #tpu.memory_space<vmem>>, vector<1x16x6xbf16>
    %266 = vector.shape_cast %265 : vector<1x16x6xbf16> to vector<16x6xbf16>
    %267 = vector.extract_strided_slice %223 {offsets = [0, 35], sizes = [6, 320], strides = [1, 1]} : vector<6x480xbf16> to vector<6x320xbf16>
    %cst_156 = arith.constant dense<0.000000e+00> : vector<16x320xf32>
    %268 = tpu.matmul %266, %267, %cst_156 {dimension_numbers = #tpu.dot_dimension_numbers<[1], [0], [0], [1], [0, 0, 1, 1], [], []>} : vector<16x6xbf16>, vector<6x320xbf16>, vector<16x320xf32> -> vector<16x320xf32>
    %269 = arith.addf %264, %268 : vector<16x320xf32>
    %c9_157 = arith.constant 9 : index
    %c0_158 = arith.constant 0 : index
    %c0_159 = arith.constant 0 : index
    %270 = vector.load %arg4[%c9_157, %c0_158, %c0_159] : memref<25x16x6xbf16, #tpu.memory_space<vmem>>, vector<1x16x6xbf16>
    %271 = vector.shape_cast %270 : vector<1x16x6xbf16> to vector<16x6xbf16>
    %272 = vector.extract_strided_slice %223 {offsets = [0, 36], sizes = [6, 320], strides = [1, 1]} : vector<6x480xbf16> to vector<6x320xbf16>
    %cst_160 = arith.constant dense<0.000000e+00> : vector<16x320xf32>
    %273 = tpu.matmul %271, %272, %cst_160 {dimension_numbers = #tpu.dot_dimension_numbers<[1], [0], [0], [1], [0, 0, 1, 1], [], []>} : vector<16x6xbf16>, vector<6x320xbf16>, vector<16x320xf32> -> vector<16x320xf32>
    %274 = arith.addf %269, %273 : vector<16x320xf32>
    %c10_161 = arith.constant 10 : index
    %c0_162 = arith.constant 0 : index
    %c0_163 = arith.constant 0 : index
    %275 = vector.load %arg4[%c10_161, %c0_162, %c0_163] : memref<25x16x6xbf16, #tpu.memory_space<vmem>>, vector<1x16x6xbf16>
    %276 = vector.shape_cast %275 : vector<1x16x6xbf16> to vector<16x6xbf16>
    %277 = vector.extract_strided_slice %223 {offsets = [0, 64], sizes = [6, 320], strides = [1, 1]} : vector<6x480xbf16> to vector<6x320xbf16>
    %cst_164 = arith.constant dense<0.000000e+00> : vector<16x320xf32>
    %278 = tpu.matmul %276, %277, %cst_164 {dimension_numbers = #tpu.dot_dimension_numbers<[1], [0], [0], [1], [0, 0, 1, 1], [], []>} : vector<16x6xbf16>, vector<6x320xbf16>, vector<16x320xf32> -> vector<16x320xf32>
    %279 = arith.addf %274, %278 : vector<16x320xf32>
    %c11_165 = arith.constant 11 : index
    %c0_166 = arith.constant 0 : index
    %c0_167 = arith.constant 0 : index
    %280 = vector.load %arg4[%c11_165, %c0_166, %c0_167] : memref<25x16x6xbf16, #tpu.memory_space<vmem>>, vector<1x16x6xbf16>
    %281 = vector.shape_cast %280 : vector<1x16x6xbf16> to vector<16x6xbf16>
    %282 = vector.extract_strided_slice %223 {offsets = [0, 65], sizes = [6, 320], strides = [1, 1]} : vector<6x480xbf16> to vector<6x320xbf16>
    %cst_168 = arith.constant dense<0.000000e+00> : vector<16x320xf32>
    %283 = tpu.matmul %281, %282, %cst_168 {dimension_numbers = #tpu.dot_dimension_numbers<[1], [0], [0], [1], [0, 0, 1, 1], [], []>} : vector<16x6xbf16>, vector<6x320xbf16>, vector<16x320xf32> -> vector<16x320xf32>
    %284 = arith.addf %279, %283 : vector<16x320xf32>
    %c12_169 = arith.constant 12 : index
    %c0_170 = arith.constant 0 : index
    %c0_171 = arith.constant 0 : index
    %285 = vector.load %arg4[%c12_169, %c0_170, %c0_171] : memref<25x16x6xbf16, #tpu.memory_space<vmem>>, vector<1x16x6xbf16>
    %286 = vector.shape_cast %285 : vector<1x16x6xbf16> to vector<16x6xbf16>
    %287 = vector.extract_strided_slice %223 {offsets = [0, 66], sizes = [6, 320], strides = [1, 1]} : vector<6x480xbf16> to vector<6x320xbf16>
    %cst_172 = arith.constant dense<0.000000e+00> : vector<16x320xf32>
    %288 = tpu.matmul %286, %287, %cst_172 {dimension_numbers = #tpu.dot_dimension_numbers<[1], [0], [0], [1], [0, 0, 1, 1], [], []>} : vector<16x6xbf16>, vector<6x320xbf16>, vector<16x320xf32> -> vector<16x320xf32>
    %289 = arith.addf %284, %288 : vector<16x320xf32>
    %c13_173 = arith.constant 13 : index
    %c0_174 = arith.constant 0 : index
    %c0_175 = arith.constant 0 : index
    %290 = vector.load %arg4[%c13_173, %c0_174, %c0_175] : memref<25x16x6xbf16, #tpu.memory_space<vmem>>, vector<1x16x6xbf16>
    %291 = vector.shape_cast %290 : vector<1x16x6xbf16> to vector<16x6xbf16>
    %292 = vector.extract_strided_slice %223 {offsets = [0, 67], sizes = [6, 320], strides = [1, 1]} : vector<6x480xbf16> to vector<6x320xbf16>
    %cst_176 = arith.constant dense<0.000000e+00> : vector<16x320xf32>
    %293 = tpu.matmul %291, %292, %cst_176 {dimension_numbers = #tpu.dot_dimension_numbers<[1], [0], [0], [1], [0, 0, 1, 1], [], []>} : vector<16x6xbf16>, vector<6x320xbf16>, vector<16x320xf32> -> vector<16x320xf32>
    %294 = arith.addf %289, %293 : vector<16x320xf32>
    %c14_177 = arith.constant 14 : index
    %c0_178 = arith.constant 0 : index
    %c0_179 = arith.constant 0 : index
    %295 = vector.load %arg4[%c14_177, %c0_178, %c0_179] : memref<25x16x6xbf16, #tpu.memory_space<vmem>>, vector<1x16x6xbf16>
    %296 = vector.shape_cast %295 : vector<1x16x6xbf16> to vector<16x6xbf16>
    %297 = vector.extract_strided_slice %223 {offsets = [0, 68], sizes = [6, 320], strides = [1, 1]} : vector<6x480xbf16> to vector<6x320xbf16>
    %cst_180 = arith.constant dense<0.000000e+00> : vector<16x320xf32>
    %298 = tpu.matmul %296, %297, %cst_180 {dimension_numbers = #tpu.dot_dimension_numbers<[1], [0], [0], [1], [0, 0, 1, 1], [], []>} : vector<16x6xbf16>, vector<6x320xbf16>, vector<16x320xf32> -> vector<16x320xf32>
    %299 = arith.addf %294, %298 : vector<16x320xf32>
    %c15_181 = arith.constant 15 : index
    %c0_182 = arith.constant 0 : index
    %c0_183 = arith.constant 0 : index
    %300 = vector.load %arg4[%c15_181, %c0_182, %c0_183] : memref<25x16x6xbf16, #tpu.memory_space<vmem>>, vector<1x16x6xbf16>
    %301 = vector.shape_cast %300 : vector<1x16x6xbf16> to vector<16x6xbf16>
    %302 = vector.extract_strided_slice %223 {offsets = [0, 96], sizes = [6, 320], strides = [1, 1]} : vector<6x480xbf16> to vector<6x320xbf16>
    %cst_184 = arith.constant dense<0.000000e+00> : vector<16x320xf32>
    %303 = tpu.matmul %301, %302, %cst_184 {dimension_numbers = #tpu.dot_dimension_numbers<[1], [0], [0], [1], [0, 0, 1, 1], [], []>} : vector<16x6xbf16>, vector<6x320xbf16>, vector<16x320xf32> -> vector<16x320xf32>
    %304 = arith.addf %299, %303 : vector<16x320xf32>
    %c16_185 = arith.constant 16 : index
    %c0_186 = arith.constant 0 : index
    %c0_187 = arith.constant 0 : index
    %305 = vector.load %arg4[%c16_185, %c0_186, %c0_187] : memref<25x16x6xbf16, #tpu.memory_space<vmem>>, vector<1x16x6xbf16>
    %306 = vector.shape_cast %305 : vector<1x16x6xbf16> to vector<16x6xbf16>
    %307 = vector.extract_strided_slice %223 {offsets = [0, 97], sizes = [6, 320], strides = [1, 1]} : vector<6x480xbf16> to vector<6x320xbf16>
    %cst_188 = arith.constant dense<0.000000e+00> : vector<16x320xf32>
    %308 = tpu.matmul %306, %307, %cst_188 {dimension_numbers = #tpu.dot_dimension_numbers<[1], [0], [0], [1], [0, 0, 1, 1], [], []>} : vector<16x6xbf16>, vector<6x320xbf16>, vector<16x320xf32> -> vector<16x320xf32>
    %309 = arith.addf %304, %308 : vector<16x320xf32>
    %c17_189 = arith.constant 17 : index
    %c0_190 = arith.constant 0 : index
    %c0_191 = arith.constant 0 : index
    %310 = vector.load %arg4[%c17_189, %c0_190, %c0_191] : memref<25x16x6xbf16, #tpu.memory_space<vmem>>, vector<1x16x6xbf16>
    %311 = vector.shape_cast %310 : vector<1x16x6xbf16> to vector<16x6xbf16>
    %312 = vector.extract_strided_slice %223 {offsets = [0, 98], sizes = [6, 320], strides = [1, 1]} : vector<6x480xbf16> to vector<6x320xbf16>
    %cst_192 = arith.constant dense<0.000000e+00> : vector<16x320xf32>
    %313 = tpu.matmul %311, %312, %cst_192 {dimension_numbers = #tpu.dot_dimension_numbers<[1], [0], [0], [1], [0, 0, 1, 1], [], []>} : vector<16x6xbf16>, vector<6x320xbf16>, vector<16x320xf32> -> vector<16x320xf32>
    %314 = arith.addf %309, %313 : vector<16x320xf32>
    %c18_193 = arith.constant 18 : index
    %c0_194 = arith.constant 0 : index
    %c0_195 = arith.constant 0 : index
    %315 = vector.load %arg4[%c18_193, %c0_194, %c0_195] : memref<25x16x6xbf16, #tpu.memory_space<vmem>>, vector<1x16x6xbf16>
    %316 = vector.shape_cast %315 : vector<1x16x6xbf16> to vector<16x6xbf16>
    %317 = vector.extract_strided_slice %223 {offsets = [0, 99], sizes = [6, 320], strides = [1, 1]} : vector<6x480xbf16> to vector<6x320xbf16>
    %cst_196 = arith.constant dense<0.000000e+00> : vector<16x320xf32>
    %318 = tpu.matmul %316, %317, %cst_196 {dimension_numbers = #tpu.dot_dimension_numbers<[1], [0], [0], [1], [0, 0, 1, 1], [], []>} : vector<16x6xbf16>, vector<6x320xbf16>, vector<16x320xf32> -> vector<16x320xf32>
    %319 = arith.addf %314, %318 : vector<16x320xf32>
    %c19_197 = arith.constant 19 : index
    %c0_198 = arith.constant 0 : index
    %c0_199 = arith.constant 0 : index
    %320 = vector.load %arg4[%c19_197, %c0_198, %c0_199] : memref<25x16x6xbf16, #tpu.memory_space<vmem>>, vector<1x16x6xbf16>
    %321 = vector.shape_cast %320 : vector<1x16x6xbf16> to vector<16x6xbf16>
    %322 = vector.extract_strided_slice %223 {offsets = [0, 100], sizes = [6, 320], strides = [1, 1]} : vector<6x480xbf16> to vector<6x320xbf16>
    %cst_200 = arith.constant dense<0.000000e+00> : vector<16x320xf32>
    %323 = tpu.matmul %321, %322, %cst_200 {dimension_numbers = #tpu.dot_dimension_numbers<[1], [0], [0], [1], [0, 0, 1, 1], [], []>} : vector<16x6xbf16>, vector<6x320xbf16>, vector<16x320xf32> -> vector<16x320xf32>
    %324 = arith.addf %319, %323 : vector<16x320xf32>
    %c20_201 = arith.constant 20 : index
    %c0_202 = arith.constant 0 : index
    %c0_203 = arith.constant 0 : index
    %325 = vector.load %arg4[%c20_201, %c0_202, %c0_203] : memref<25x16x6xbf16, #tpu.memory_space<vmem>>, vector<1x16x6xbf16>
    %326 = vector.shape_cast %325 : vector<1x16x6xbf16> to vector<16x6xbf16>
    %327 = vector.extract_strided_slice %223 {offsets = [0, 128], sizes = [6, 320], strides = [1, 1]} : vector<6x480xbf16> to vector<6x320xbf16>
    %cst_204 = arith.constant dense<0.000000e+00> : vector<16x320xf32>
    %328 = tpu.matmul %326, %327, %cst_204 {dimension_numbers = #tpu.dot_dimension_numbers<[1], [0], [0], [1], [0, 0, 1, 1], [], []>} : vector<16x6xbf16>, vector<6x320xbf16>, vector<16x320xf32> -> vector<16x320xf32>
    %329 = arith.addf %324, %328 : vector<16x320xf32>
    %c21_205 = arith.constant 21 : index
    %c0_206 = arith.constant 0 : index
    %c0_207 = arith.constant 0 : index
    %330 = vector.load %arg4[%c21_205, %c0_206, %c0_207] : memref<25x16x6xbf16, #tpu.memory_space<vmem>>, vector<1x16x6xbf16>
    %331 = vector.shape_cast %330 : vector<1x16x6xbf16> to vector<16x6xbf16>
    %332 = vector.extract_strided_slice %223 {offsets = [0, 129], sizes = [6, 320], strides = [1, 1]} : vector<6x480xbf16> to vector<6x320xbf16>
    %cst_208 = arith.constant dense<0.000000e+00> : vector<16x320xf32>
    %333 = tpu.matmul %331, %332, %cst_208 {dimension_numbers = #tpu.dot_dimension_numbers<[1], [0], [0], [1], [0, 0, 1, 1], [], []>} : vector<16x6xbf16>, vector<6x320xbf16>, vector<16x320xf32> -> vector<16x320xf32>
    %334 = arith.addf %329, %333 : vector<16x320xf32>
    %c22_209 = arith.constant 22 : index
    %c0_210 = arith.constant 0 : index
    %c0_211 = arith.constant 0 : index
    %335 = vector.load %arg4[%c22_209, %c0_210, %c0_211] : memref<25x16x6xbf16, #tpu.memory_space<vmem>>, vector<1x16x6xbf16>
    %336 = vector.shape_cast %335 : vector<1x16x6xbf16> to vector<16x6xbf16>
    %337 = vector.extract_strided_slice %223 {offsets = [0, 130], sizes = [6, 320], strides = [1, 1]} : vector<6x480xbf16> to vector<6x320xbf16>
    %cst_212 = arith.constant dense<0.000000e+00> : vector<16x320xf32>
    %338 = tpu.matmul %336, %337, %cst_212 {dimension_numbers = #tpu.dot_dimension_numbers<[1], [0], [0], [1], [0, 0, 1, 1], [], []>} : vector<16x6xbf16>, vector<6x320xbf16>, vector<16x320xf32> -> vector<16x320xf32>
    %339 = arith.addf %334, %338 : vector<16x320xf32>
    %c23_213 = arith.constant 23 : index
    %c0_214 = arith.constant 0 : index
    %c0_215 = arith.constant 0 : index
    %340 = vector.load %arg4[%c23_213, %c0_214, %c0_215] : memref<25x16x6xbf16, #tpu.memory_space<vmem>>, vector<1x16x6xbf16>
    %341 = vector.shape_cast %340 : vector<1x16x6xbf16> to vector<16x6xbf16>
    %342 = vector.extract_strided_slice %223 {offsets = [0, 131], sizes = [6, 320], strides = [1, 1]} : vector<6x480xbf16> to vector<6x320xbf16>
    %cst_216 = arith.constant dense<0.000000e+00> : vector<16x320xf32>
    %343 = tpu.matmul %341, %342, %cst_216 {dimension_numbers = #tpu.dot_dimension_numbers<[1], [0], [0], [1], [0, 0, 1, 1], [], []>} : vector<16x6xbf16>, vector<6x320xbf16>, vector<16x320xf32> -> vector<16x320xf32>
    %344 = arith.addf %339, %343 : vector<16x320xf32>
    %c24_217 = arith.constant 24 : index
    %c0_218 = arith.constant 0 : index
    %c0_219 = arith.constant 0 : index
    %345 = vector.load %arg4[%c24_217, %c0_218, %c0_219] : memref<25x16x6xbf16, #tpu.memory_space<vmem>>, vector<1x16x6xbf16>
    %346 = vector.shape_cast %345 : vector<1x16x6xbf16> to vector<16x6xbf16>
    %347 = vector.extract_strided_slice %223 {offsets = [0, 132], sizes = [6, 320], strides = [1, 1]} : vector<6x480xbf16> to vector<6x320xbf16>
    %cst_220 = arith.constant dense<0.000000e+00> : vector<16x320xf32>
    %348 = tpu.matmul %346, %347, %cst_220 {dimension_numbers = #tpu.dot_dimension_numbers<[1], [0], [0], [1], [0, 0, 1, 1], [], []>} : vector<16x6xbf16>, vector<6x320xbf16>, vector<16x320xf32> -> vector<16x320xf32>
    %349 = arith.addf %344, %348 : vector<16x320xf32>
    %c0_221 = arith.constant 0 : index
    %c0_222 = arith.constant 0 : index
    %350 = vector.load %arg5[%c0_221, %c0_222] : memref<16x1xf32, #tpu.memory_space<vmem>>, vector<16x1xf32>
    %351 = vector.broadcast %350 : vector<16x1xf32> to vector<16x320xf32>
    %352 = arith.addf %349, %351 : vector<16x320xf32>
    %cst_223 = arith.constant 0.000000e+00 : f32
    %353 = vector.broadcast %cst_223 : f32 to vector<16x320xf32>
    %354 = arith.maximumf %352, %353 : vector<16x320xf32>
    %355 = tpu.iota {dimensions = array<i32: 0>} : vector<10x5xi32>
    %356 = tpu.iota {dimensions = array<i32: 1>} : vector<10x5xi32>
    %c2_i32_224 = arith.constant 2 : i32
    %357 = vector.broadcast %c2_i32_224 : i32 to vector<10x5xi32>
    %358 = arith.muli %357, %356 : vector<10x5xi32>
    %359 = arith.cmpi eq, %355, %358 : vector<10x5xi32>
    %cst_225 = arith.constant 1.000000e+00 : f32
    %cst_226 = arith.constant 0.000000e+00 : f32
    %360 = vector.broadcast %cst_225 : f32 to vector<10x5xf32>
    %361 = vector.broadcast %cst_226 : f32 to vector<10x5xf32>
    %362 = arith.select %359, %360, %361 : vector<10x5xi1>, vector<10x5xf32>
    %363 = arith.truncf %362 : vector<10x5xf32> to vector<10x5xbf16>
    %364 = vector.extract_strided_slice %354 {offsets = [0, 0], sizes = [16, 287], strides = [1, 1]} : vector<16x320xf32> to vector<16x287xf32>
    %365 = vector.extract_strided_slice %354 {offsets = [0, 1], sizes = [16, 287], strides = [1, 1]} : vector<16x320xf32> to vector<16x287xf32>
    %366 = arith.maximumf %364, %365 : vector<16x287xf32>
    %367 = vector.extract_strided_slice %354 {offsets = [0, 32], sizes = [16, 287], strides = [1, 1]} : vector<16x320xf32> to vector<16x287xf32>
    %368 = vector.extract_strided_slice %354 {offsets = [0, 33], sizes = [16, 287], strides = [1, 1]} : vector<16x320xf32> to vector<16x287xf32>
    %369 = arith.maximumf %367, %368 : vector<16x287xf32>
    %370 = arith.maximumf %366, %369 : vector<16x287xf32>
    %371 = vector.extract_strided_slice %370 {offsets = [0, 0], sizes = [16, 10], strides = [1, 1]} : vector<16x287xf32> to vector<16x10xf32>
    %372 = arith.truncf %371 : vector<16x10xf32> to vector<16x10xbf16>
    %cst_227 = arith.constant dense<0.000000e+00> : vector<16x5xf32>
    %373 = tpu.matmul %372, %363, %cst_227 {dimension_numbers = #tpu.dot_dimension_numbers<[1], [0], [0], [1], [0, 0, 1, 1], [], []>} : vector<16x10xbf16>, vector<10x5xbf16>, vector<16x5xf32> -> vector<16x5xf32>
    %374 = arith.truncf %373 : vector<16x5xf32> to vector<16x5xbf16>
    %c0_228 = arith.constant 0 : index
    %c0_229 = arith.constant 0 : index
    %375 = vector.load %arg14[%c0_228, %c0_229] : memref<16x192xbf16, #tpu.memory_space<vmem>>, vector<16x5xbf16>
    tpu.vector_store %arg14[%c0_228, %c0_229], %374 {strides = array<i32>} : memref<16x192xbf16, #tpu.memory_space<vmem>>, vector<16x5xbf16>,
    %376 = vector.extract_strided_slice %370 {offsets = [0, 64], sizes = [16, 10], strides = [1, 1]} : vector<16x287xf32> to vector<16x10xf32>
    %377 = arith.truncf %376 : vector<16x10xf32> to vector<16x10xbf16>
    %cst_230 = arith.constant dense<0.000000e+00> : vector<16x5xf32>
    %378 = tpu.matmul %377, %363, %cst_230 {dimension_numbers = #tpu.dot_dimension_numbers<[1], [0], [0], [1], [0, 0, 1, 1], [], []>} : vector<16x10xbf16>, vector<10x5xbf16>, vector<16x5xf32> -> vector<16x5xf32>
    %379 = arith.truncf %378 : vector<16x5xf32> to vector<16x5xbf16>
    %c0_231 = arith.constant 0 : index
    %c32_232 = arith.constant 32 : index
    %380 = vector.load %arg14[%c0_231, %c32_232] : memref<16x192xbf16, #tpu.memory_space<vmem>>, vector<16x5xbf16>
    tpu.vector_store %arg14[%c0_231, %c32_232], %379 {strides = array<i32>} : memref<16x192xbf16, #tpu.memory_space<vmem>>, vector<16x5xbf16>,
    %381 = vector.extract_strided_slice %370 {offsets = [0, 128], sizes = [16, 10], strides = [1, 1]} : vector<16x287xf32> to vector<16x10xf32>
    %382 = arith.truncf %381 : vector<16x10xf32> to vector<16x10xbf16>
    %cst_233 = arith.constant dense<0.000000e+00> : vector<16x5xf32>
    %383 = tpu.matmul %382, %363, %cst_233 {dimension_numbers = #tpu.dot_dimension_numbers<[1], [0], [0], [1], [0, 0, 1, 1], [], []>} : vector<16x10xbf16>, vector<10x5xbf16>, vector<16x5xf32> -> vector<16x5xf32>
    %384 = arith.truncf %383 : vector<16x5xf32> to vector<16x5xbf16>
    %c0_234 = arith.constant 0 : index
    %c64_235 = arith.constant 64 : index
    %385 = vector.load %arg14[%c0_234, %c64_235] : memref<16x192xbf16, #tpu.memory_space<vmem>>, vector<16x5xbf16>
    tpu.vector_store %arg14[%c0_234, %c64_235], %384 {strides = array<i32>} : memref<16x192xbf16, #tpu.memory_space<vmem>>, vector<16x5xbf16>,
    %386 = vector.extract_strided_slice %370 {offsets = [0, 192], sizes = [16, 10], strides = [1, 1]} : vector<16x287xf32> to vector<16x10xf32>
    %387 = arith.truncf %386 : vector<16x10xf32> to vector<16x10xbf16>
    %cst_236 = arith.constant dense<0.000000e+00> : vector<16x5xf32>
    %388 = tpu.matmul %387, %363, %cst_236 {dimension_numbers = #tpu.dot_dimension_numbers<[1], [0], [0], [1], [0, 0, 1, 1], [], []>} : vector<16x10xbf16>, vector<10x5xbf16>, vector<16x5xf32> -> vector<16x5xf32>
    %389 = arith.truncf %388 : vector<16x5xf32> to vector<16x5xbf16>
    %c0_237 = arith.constant 0 : index
    %c96_238 = arith.constant 96 : index
    %390 = vector.load %arg14[%c0_237, %c96_238] : memref<16x192xbf16, #tpu.memory_space<vmem>>, vector<16x5xbf16>
    tpu.vector_store %arg14[%c0_237, %c96_238], %389 {strides = array<i32>} : memref<16x192xbf16, #tpu.memory_space<vmem>>, vector<16x5xbf16>,
    %391 = vector.extract_strided_slice %370 {offsets = [0, 256], sizes = [16, 10], strides = [1, 1]} : vector<16x287xf32> to vector<16x10xf32>
    %392 = arith.truncf %391 : vector<16x10xf32> to vector<16x10xbf16>
    %cst_239 = arith.constant dense<0.000000e+00> : vector<16x5xf32>
    %393 = tpu.matmul %392, %363, %cst_239 {dimension_numbers = #tpu.dot_dimension_numbers<[1], [0], [0], [1], [0, 0, 1, 1], [], []>} : vector<16x10xbf16>, vector<10x5xbf16>, vector<16x5xf32> -> vector<16x5xf32>
    %394 = arith.truncf %393 : vector<16x5xf32> to vector<16x5xbf16>
    %c0_240 = arith.constant 0 : index
    %c128_241 = arith.constant 128 : index
    %395 = vector.load %arg14[%c0_240, %c128_241] : memref<16x192xbf16, #tpu.memory_space<vmem>>, vector<16x5xbf16>
    tpu.vector_store %arg14[%c0_240, %c128_241], %394 {strides = array<i32>} : memref<16x192xbf16, #tpu.memory_space<vmem>>, vector<16x5xbf16>,
    %c0_242 = arith.constant 0 : index
    %c0_243 = arith.constant 0 : index
    %396 = vector.load %arg14[%c0_242, %c0_243] : memref<16x192xbf16, #tpu.memory_space<vmem>>, vector<16x192xbf16>
    %cst_244 = arith.constant 0.000000e+00 : f32
    %397 = vector.broadcast %cst_244 : f32 to vector<120x32xf32>
    %c0_245 = arith.constant 0 : index
    %c0_246 = arith.constant 0 : index
    %c0_247 = arith.constant 0 : index
    %398 = vector.load %arg6[%c0_245, %c0_246, %c0_247] : memref<25x120x16xbf16, #tpu.memory_space<vmem>>, vector<1x120x16xbf16>
    %399 = vector.shape_cast %398 : vector<1x120x16xbf16> to vector<120x16xbf16>
    %400 = vector.extract_strided_slice %396 {offsets = [0, 0], sizes = [16, 32], strides = [1, 1]} : vector<16x192xbf16> to vector<16x32xbf16>
    %cst_248 = arith.constant dense<0.000000e+00> : vector<120x32xf32>
    %401 = tpu.matmul %399, %400, %cst_248 {dimension_numbers = #tpu.dot_dimension_numbers<[1], [0], [0], [1], [0, 0, 1, 1], [], []>} : vector<120x16xbf16>, vector<16x32xbf16>, vector<120x32xf32> -> vector<120x32xf32>
    %402 = arith.addf %397, %401 : vector<120x32xf32>
    %c1_249 = arith.constant 1 : index
    %c0_250 = arith.constant 0 : index
    %c0_251 = arith.constant 0 : index
    %403 = vector.load %arg6[%c1_249, %c0_250, %c0_251] : memref<25x120x16xbf16, #tpu.memory_space<vmem>>, vector<1x120x16xbf16>
    %404 = vector.shape_cast %403 : vector<1x120x16xbf16> to vector<120x16xbf16>
    %405 = vector.extract_strided_slice %396 {offsets = [0, 1], sizes = [16, 32], strides = [1, 1]} : vector<16x192xbf16> to vector<16x32xbf16>
    %cst_252 = arith.constant dense<0.000000e+00> : vector<120x32xf32>
    %406 = tpu.matmul %404, %405, %cst_252 {dimension_numbers = #tpu.dot_dimension_numbers<[1], [0], [0], [1], [0, 0, 1, 1], [], []>} : vector<120x16xbf16>, vector<16x32xbf16>, vector<120x32xf32> -> vector<120x32xf32>
    %407 = arith.addf %402, %406 : vector<120x32xf32>
    %c2_253 = arith.constant 2 : index
    %c0_254 = arith.constant 0 : index
    %c0_255 = arith.constant 0 : index
    %408 = vector.load %arg6[%c2_253, %c0_254, %c0_255] : memref<25x120x16xbf16, #tpu.memory_space<vmem>>, vector<1x120x16xbf16>
    %409 = vector.shape_cast %408 : vector<1x120x16xbf16> to vector<120x16xbf16>
    %410 = vector.extract_strided_slice %396 {offsets = [0, 2], sizes = [16, 32], strides = [1, 1]} : vector<16x192xbf16> to vector<16x32xbf16>
    %cst_256 = arith.constant dense<0.000000e+00> : vector<120x32xf32>
    %411 = tpu.matmul %409, %410, %cst_256 {dimension_numbers = #tpu.dot_dimension_numbers<[1], [0], [0], [1], [0, 0, 1, 1], [], []>} : vector<120x16xbf16>, vector<16x32xbf16>, vector<120x32xf32> -> vector<120x32xf32>
    %412 = arith.addf %407, %411 : vector<120x32xf32>
    %c3_257 = arith.constant 3 : index
    %c0_258 = arith.constant 0 : index
    %c0_259 = arith.constant 0 : index
    %413 = vector.load %arg6[%c3_257, %c0_258, %c0_259] : memref<25x120x16xbf16, #tpu.memory_space<vmem>>, vector<1x120x16xbf16>
    %414 = vector.shape_cast %413 : vector<1x120x16xbf16> to vector<120x16xbf16>
    %415 = vector.extract_strided_slice %396 {offsets = [0, 3], sizes = [16, 32], strides = [1, 1]} : vector<16x192xbf16> to vector<16x32xbf16>
    %cst_260 = arith.constant dense<0.000000e+00> : vector<120x32xf32>
    %416 = tpu.matmul %414, %415, %cst_260 {dimension_numbers = #tpu.dot_dimension_numbers<[1], [0], [0], [1], [0, 0, 1, 1], [], []>} : vector<120x16xbf16>, vector<16x32xbf16>, vector<120x32xf32> -> vector<120x32xf32>
    %417 = arith.addf %412, %416 : vector<120x32xf32>
    %c4_261 = arith.constant 4 : index
    %c0_262 = arith.constant 0 : index
    %c0_263 = arith.constant 0 : index
    %418 = vector.load %arg6[%c4_261, %c0_262, %c0_263] : memref<25x120x16xbf16, #tpu.memory_space<vmem>>, vector<1x120x16xbf16>
    %419 = vector.shape_cast %418 : vector<1x120x16xbf16> to vector<120x16xbf16>
    %420 = vector.extract_strided_slice %396 {offsets = [0, 4], sizes = [16, 32], strides = [1, 1]} : vector<16x192xbf16> to vector<16x32xbf16>
    %cst_264 = arith.constant dense<0.000000e+00> : vector<120x32xf32>
    %421 = tpu.matmul %419, %420, %cst_264 {dimension_numbers = #tpu.dot_dimension_numbers<[1], [0], [0], [1], [0, 0, 1, 1], [], []>} : vector<120x16xbf16>, vector<16x32xbf16>, vector<120x32xf32> -> vector<120x32xf32>
    %422 = arith.addf %417, %421 : vector<120x32xf32>
    %c5_265 = arith.constant 5 : index
    %c0_266 = arith.constant 0 : index
    %c0_267 = arith.constant 0 : index
    %423 = vector.load %arg6[%c5_265, %c0_266, %c0_267] : memref<25x120x16xbf16, #tpu.memory_space<vmem>>, vector<1x120x16xbf16>
    %424 = vector.shape_cast %423 : vector<1x120x16xbf16> to vector<120x16xbf16>
    %425 = vector.extract_strided_slice %396 {offsets = [0, 32], sizes = [16, 32], strides = [1, 1]} : vector<16x192xbf16> to vector<16x32xbf16>
    %cst_268 = arith.constant dense<0.000000e+00> : vector<120x32xf32>
    %426 = tpu.matmul %424, %425, %cst_268 {dimension_numbers = #tpu.dot_dimension_numbers<[1], [0], [0], [1], [0, 0, 1, 1], [], []>} : vector<120x16xbf16>, vector<16x32xbf16>, vector<120x32xf32> -> vector<120x32xf32>
    %427 = arith.addf %422, %426 : vector<120x32xf32>
    %c6_269 = arith.constant 6 : index
    %c0_270 = arith.constant 0 : index
    %c0_271 = arith.constant 0 : index
    %428 = vector.load %arg6[%c6_269, %c0_270, %c0_271] : memref<25x120x16xbf16, #tpu.memory_space<vmem>>, vector<1x120x16xbf16>
    %429 = vector.shape_cast %428 : vector<1x120x16xbf16> to vector<120x16xbf16>
    %430 = vector.extract_strided_slice %396 {offsets = [0, 33], sizes = [16, 32], strides = [1, 1]} : vector<16x192xbf16> to vector<16x32xbf16>
    %cst_272 = arith.constant dense<0.000000e+00> : vector<120x32xf32>
    %431 = tpu.matmul %429, %430, %cst_272 {dimension_numbers = #tpu.dot_dimension_numbers<[1], [0], [0], [1], [0, 0, 1, 1], [], []>} : vector<120x16xbf16>, vector<16x32xbf16>, vector<120x32xf32> -> vector<120x32xf32>
    %432 = arith.addf %427, %431 : vector<120x32xf32>
    %c7_273 = arith.constant 7 : index
    %c0_274 = arith.constant 0 : index
    %c0_275 = arith.constant 0 : index
    %433 = vector.load %arg6[%c7_273, %c0_274, %c0_275] : memref<25x120x16xbf16, #tpu.memory_space<vmem>>, vector<1x120x16xbf16>
    %434 = vector.shape_cast %433 : vector<1x120x16xbf16> to vector<120x16xbf16>
    %435 = vector.extract_strided_slice %396 {offsets = [0, 34], sizes = [16, 32], strides = [1, 1]} : vector<16x192xbf16> to vector<16x32xbf16>
    %cst_276 = arith.constant dense<0.000000e+00> : vector<120x32xf32>
    %436 = tpu.matmul %434, %435, %cst_276 {dimension_numbers = #tpu.dot_dimension_numbers<[1], [0], [0], [1], [0, 0, 1, 1], [], []>} : vector<120x16xbf16>, vector<16x32xbf16>, vector<120x32xf32> -> vector<120x32xf32>
    %437 = arith.addf %432, %436 : vector<120x32xf32>
    %c8_277 = arith.constant 8 : index
    %c0_278 = arith.constant 0 : index
    %c0_279 = arith.constant 0 : index
    %438 = vector.load %arg6[%c8_277, %c0_278, %c0_279] : memref<25x120x16xbf16, #tpu.memory_space<vmem>>, vector<1x120x16xbf16>
    %439 = vector.shape_cast %438 : vector<1x120x16xbf16> to vector<120x16xbf16>
    %440 = vector.extract_strided_slice %396 {offsets = [0, 35], sizes = [16, 32], strides = [1, 1]} : vector<16x192xbf16> to vector<16x32xbf16>
    %cst_280 = arith.constant dense<0.000000e+00> : vector<120x32xf32>
    %441 = tpu.matmul %439, %440, %cst_280 {dimension_numbers = #tpu.dot_dimension_numbers<[1], [0], [0], [1], [0, 0, 1, 1], [], []>} : vector<120x16xbf16>, vector<16x32xbf16>, vector<120x32xf32> -> vector<120x32xf32>
    %442 = arith.addf %437, %441 : vector<120x32xf32>
    %c9_281 = arith.constant 9 : index
    %c0_282 = arith.constant 0 : index
    %c0_283 = arith.constant 0 : index
    %443 = vector.load %arg6[%c9_281, %c0_282, %c0_283] : memref<25x120x16xbf16, #tpu.memory_space<vmem>>, vector<1x120x16xbf16>
    %444 = vector.shape_cast %443 : vector<1x120x16xbf16> to vector<120x16xbf16>
    %445 = vector.extract_strided_slice %396 {offsets = [0, 36], sizes = [16, 32], strides = [1, 1]} : vector<16x192xbf16> to vector<16x32xbf16>
    %cst_284 = arith.constant dense<0.000000e+00> : vector<120x32xf32>
    %446 = tpu.matmul %444, %445, %cst_284 {dimension_numbers = #tpu.dot_dimension_numbers<[1], [0], [0], [1], [0, 0, 1, 1], [], []>} : vector<120x16xbf16>, vector<16x32xbf16>, vector<120x32xf32> -> vector<120x32xf32>
    %447 = arith.addf %442, %446 : vector<120x32xf32>
    %c10_285 = arith.constant 10 : index
    %c0_286 = arith.constant 0 : index
    %c0_287 = arith.constant 0 : index
    %448 = vector.load %arg6[%c10_285, %c0_286, %c0_287] : memref<25x120x16xbf16, #tpu.memory_space<vmem>>, vector<1x120x16xbf16>
    %449 = vector.shape_cast %448 : vector<1x120x16xbf16> to vector<120x16xbf16>
    %450 = vector.extract_strided_slice %396 {offsets = [0, 64], sizes = [16, 32], strides = [1, 1]} : vector<16x192xbf16> to vector<16x32xbf16>
    %cst_288 = arith.constant dense<0.000000e+00> : vector<120x32xf32>
    %451 = tpu.matmul %449, %450, %cst_288 {dimension_numbers = #tpu.dot_dimension_numbers<[1], [0], [0], [1], [0, 0, 1, 1], [], []>} : vector<120x16xbf16>, vector<16x32xbf16>, vector<120x32xf32> -> vector<120x32xf32>
    %452 = arith.addf %447, %451 : vector<120x32xf32>
    %c11_289 = arith.constant 11 : index
    %c0_290 = arith.constant 0 : index
    %c0_291 = arith.constant 0 : index
    %453 = vector.load %arg6[%c11_289, %c0_290, %c0_291] : memref<25x120x16xbf16, #tpu.memory_space<vmem>>, vector<1x120x16xbf16>
    %454 = vector.shape_cast %453 : vector<1x120x16xbf16> to vector<120x16xbf16>
    %455 = vector.extract_strided_slice %396 {offsets = [0, 65], sizes = [16, 32], strides = [1, 1]} : vector<16x192xbf16> to vector<16x32xbf16>
    %cst_292 = arith.constant dense<0.000000e+00> : vector<120x32xf32>
    %456 = tpu.matmul %454, %455, %cst_292 {dimension_numbers = #tpu.dot_dimension_numbers<[1], [0], [0], [1], [0, 0, 1, 1], [], []>} : vector<120x16xbf16>, vector<16x32xbf16>, vector<120x32xf32> -> vector<120x32xf32>
    %457 = arith.addf %452, %456 : vector<120x32xf32>
    %c12_293 = arith.constant 12 : index
    %c0_294 = arith.constant 0 : index
    %c0_295 = arith.constant 0 : index
    %458 = vector.load %arg6[%c12_293, %c0_294, %c0_295] : memref<25x120x16xbf16, #tpu.memory_space<vmem>>, vector<1x120x16xbf16>
    %459 = vector.shape_cast %458 : vector<1x120x16xbf16> to vector<120x16xbf16>
    %460 = vector.extract_strided_slice %396 {offsets = [0, 66], sizes = [16, 32], strides = [1, 1]} : vector<16x192xbf16> to vector<16x32xbf16>
    %cst_296 = arith.constant dense<0.000000e+00> : vector<120x32xf32>
    %461 = tpu.matmul %459, %460, %cst_296 {dimension_numbers = #tpu.dot_dimension_numbers<[1], [0], [0], [1], [0, 0, 1, 1], [], []>} : vector<120x16xbf16>, vector<16x32xbf16>, vector<120x32xf32> -> vector<120x32xf32>
    %462 = arith.addf %457, %461 : vector<120x32xf32>
    %c13_297 = arith.constant 13 : index
    %c0_298 = arith.constant 0 : index
    %c0_299 = arith.constant 0 : index
    %463 = vector.load %arg6[%c13_297, %c0_298, %c0_299] : memref<25x120x16xbf16, #tpu.memory_space<vmem>>, vector<1x120x16xbf16>
    %464 = vector.shape_cast %463 : vector<1x120x16xbf16> to vector<120x16xbf16>
    %465 = vector.extract_strided_slice %396 {offsets = [0, 67], sizes = [16, 32], strides = [1, 1]} : vector<16x192xbf16> to vector<16x32xbf16>
    %cst_300 = arith.constant dense<0.000000e+00> : vector<120x32xf32>
    %466 = tpu.matmul %464, %465, %cst_300 {dimension_numbers = #tpu.dot_dimension_numbers<[1], [0], [0], [1], [0, 0, 1, 1], [], []>} : vector<120x16xbf16>, vector<16x32xbf16>, vector<120x32xf32> -> vector<120x32xf32>
    %467 = arith.addf %462, %466 : vector<120x32xf32>
    %c14_301 = arith.constant 14 : index
    %c0_302 = arith.constant 0 : index
    %c0_303 = arith.constant 0 : index
    %468 = vector.load %arg6[%c14_301, %c0_302, %c0_303] : memref<25x120x16xbf16, #tpu.memory_space<vmem>>, vector<1x120x16xbf16>
    %469 = vector.shape_cast %468 : vector<1x120x16xbf16> to vector<120x16xbf16>
    %470 = vector.extract_strided_slice %396 {offsets = [0, 68], sizes = [16, 32], strides = [1, 1]} : vector<16x192xbf16> to vector<16x32xbf16>
    %cst_304 = arith.constant dense<0.000000e+00> : vector<120x32xf32>
    %471 = tpu.matmul %469, %470, %cst_304 {dimension_numbers = #tpu.dot_dimension_numbers<[1], [0], [0], [1], [0, 0, 1, 1], [], []>} : vector<120x16xbf16>, vector<16x32xbf16>, vector<120x32xf32> -> vector<120x32xf32>
    %472 = arith.addf %467, %471 : vector<120x32xf32>
    %c15_305 = arith.constant 15 : index
    %c0_306 = arith.constant 0 : index
    %c0_307 = arith.constant 0 : index
    %473 = vector.load %arg6[%c15_305, %c0_306, %c0_307] : memref<25x120x16xbf16, #tpu.memory_space<vmem>>, vector<1x120x16xbf16>
    %474 = vector.shape_cast %473 : vector<1x120x16xbf16> to vector<120x16xbf16>
    %475 = vector.extract_strided_slice %396 {offsets = [0, 96], sizes = [16, 32], strides = [1, 1]} : vector<16x192xbf16> to vector<16x32xbf16>
    %cst_308 = arith.constant dense<0.000000e+00> : vector<120x32xf32>
    %476 = tpu.matmul %474, %475, %cst_308 {dimension_numbers = #tpu.dot_dimension_numbers<[1], [0], [0], [1], [0, 0, 1, 1], [], []>} : vector<120x16xbf16>, vector<16x32xbf16>, vector<120x32xf32> -> vector<120x32xf32>
    %477 = arith.addf %472, %476 : vector<120x32xf32>
    %c16_309 = arith.constant 16 : index
    %c0_310 = arith.constant 0 : index
    %c0_311 = arith.constant 0 : index
    %478 = vector.load %arg6[%c16_309, %c0_310, %c0_311] : memref<25x120x16xbf16, #tpu.memory_space<vmem>>, vector<1x120x16xbf16>
    %479 = vector.shape_cast %478 : vector<1x120x16xbf16> to vector<120x16xbf16>
    %480 = vector.extract_strided_slice %396 {offsets = [0, 97], sizes = [16, 32], strides = [1, 1]} : vector<16x192xbf16> to vector<16x32xbf16>
    %cst_312 = arith.constant dense<0.000000e+00> : vector<120x32xf32>
    %481 = tpu.matmul %479, %480, %cst_312 {dimension_numbers = #tpu.dot_dimension_numbers<[1], [0], [0], [1], [0, 0, 1, 1], [], []>} : vector<120x16xbf16>, vector<16x32xbf16>, vector<120x32xf32> -> vector<120x32xf32>
    %482 = arith.addf %477, %481 : vector<120x32xf32>
    %c17_313 = arith.constant 17 : index
    %c0_314 = arith.constant 0 : index
    %c0_315 = arith.constant 0 : index
    %483 = vector.load %arg6[%c17_313, %c0_314, %c0_315] : memref<25x120x16xbf16, #tpu.memory_space<vmem>>, vector<1x120x16xbf16>
    %484 = vector.shape_cast %483 : vector<1x120x16xbf16> to vector<120x16xbf16>
    %485 = vector.extract_strided_slice %396 {offsets = [0, 98], sizes = [16, 32], strides = [1, 1]} : vector<16x192xbf16> to vector<16x32xbf16>
    %cst_316 = arith.constant dense<0.000000e+00> : vector<120x32xf32>
    %486 = tpu.matmul %484, %485, %cst_316 {dimension_numbers = #tpu.dot_dimension_numbers<[1], [0], [0], [1], [0, 0, 1, 1], [], []>} : vector<120x16xbf16>, vector<16x32xbf16>, vector<120x32xf32> -> vector<120x32xf32>
    %487 = arith.addf %482, %486 : vector<120x32xf32>
    %c18_317 = arith.constant 18 : index
    %c0_318 = arith.constant 0 : index
    %c0_319 = arith.constant 0 : index
    %488 = vector.load %arg6[%c18_317, %c0_318, %c0_319] : memref<25x120x16xbf16, #tpu.memory_space<vmem>>, vector<1x120x16xbf16>
    %489 = vector.shape_cast %488 : vector<1x120x16xbf16> to vector<120x16xbf16>
    %490 = vector.extract_strided_slice %396 {offsets = [0, 99], sizes = [16, 32], strides = [1, 1]} : vector<16x192xbf16> to vector<16x32xbf16>
    %cst_320 = arith.constant dense<0.000000e+00> : vector<120x32xf32>
    %491 = tpu.matmul %489, %490, %cst_320 {dimension_numbers = #tpu.dot_dimension_numbers<[1], [0], [0], [1], [0, 0, 1, 1], [], []>} : vector<120x16xbf16>, vector<16x32xbf16>, vector<120x32xf32> -> vector<120x32xf32>
    %492 = arith.addf %487, %491 : vector<120x32xf32>
    %c19_321 = arith.constant 19 : index
    %c0_322 = arith.constant 0 : index
    %c0_323 = arith.constant 0 : index
    %493 = vector.load %arg6[%c19_321, %c0_322, %c0_323] : memref<25x120x16xbf16, #tpu.memory_space<vmem>>, vector<1x120x16xbf16>
    %494 = vector.shape_cast %493 : vector<1x120x16xbf16> to vector<120x16xbf16>
    %495 = vector.extract_strided_slice %396 {offsets = [0, 100], sizes = [16, 32], strides = [1, 1]} : vector<16x192xbf16> to vector<16x32xbf16>
    %cst_324 = arith.constant dense<0.000000e+00> : vector<120x32xf32>
    %496 = tpu.matmul %494, %495, %cst_324 {dimension_numbers = #tpu.dot_dimension_numbers<[1], [0], [0], [1], [0, 0, 1, 1], [], []>} : vector<120x16xbf16>, vector<16x32xbf16>, vector<120x32xf32> -> vector<120x32xf32>
    %497 = arith.addf %492, %496 : vector<120x32xf32>
    %c20_325 = arith.constant 20 : index
    %c0_326 = arith.constant 0 : index
    %c0_327 = arith.constant 0 : index
    %498 = vector.load %arg6[%c20_325, %c0_326, %c0_327] : memref<25x120x16xbf16, #tpu.memory_space<vmem>>, vector<1x120x16xbf16>
    %499 = vector.shape_cast %498 : vector<1x120x16xbf16> to vector<120x16xbf16>
    %500 = vector.extract_strided_slice %396 {offsets = [0, 128], sizes = [16, 32], strides = [1, 1]} : vector<16x192xbf16> to vector<16x32xbf16>
    %cst_328 = arith.constant dense<0.000000e+00> : vector<120x32xf32>
    %501 = tpu.matmul %499, %500, %cst_328 {dimension_numbers = #tpu.dot_dimension_numbers<[1], [0], [0], [1], [0, 0, 1, 1], [], []>} : vector<120x16xbf16>, vector<16x32xbf16>, vector<120x32xf32> -> vector<120x32xf32>
    %502 = arith.addf %497, %501 : vector<120x32xf32>
    %c21_329 = arith.constant 21 : index
    %c0_330 = arith.constant 0 : index
    %c0_331 = arith.constant 0 : index
    %503 = vector.load %arg6[%c21_329, %c0_330, %c0_331] : memref<25x120x16xbf16, #tpu.memory_space<vmem>>, vector<1x120x16xbf16>
    %504 = vector.shape_cast %503 : vector<1x120x16xbf16> to vector<120x16xbf16>
    %505 = vector.extract_strided_slice %396 {offsets = [0, 129], sizes = [16, 32], strides = [1, 1]} : vector<16x192xbf16> to vector<16x32xbf16>
    %cst_332 = arith.constant dense<0.000000e+00> : vector<120x32xf32>
    %506 = tpu.matmul %504, %505, %cst_332 {dimension_numbers = #tpu.dot_dimension_numbers<[1], [0], [0], [1], [0, 0, 1, 1], [], []>} : vector<120x16xbf16>, vector<16x32xbf16>, vector<120x32xf32> -> vector<120x32xf32>
    %507 = arith.addf %502, %506 : vector<120x32xf32>
    %c22_333 = arith.constant 22 : index
    %c0_334 = arith.constant 0 : index
    %c0_335 = arith.constant 0 : index
    %508 = vector.load %arg6[%c22_333, %c0_334, %c0_335] : memref<25x120x16xbf16, #tpu.memory_space<vmem>>, vector<1x120x16xbf16>
    %509 = vector.shape_cast %508 : vector<1x120x16xbf16> to vector<120x16xbf16>
    %510 = vector.extract_strided_slice %396 {offsets = [0, 130], sizes = [16, 32], strides = [1, 1]} : vector<16x192xbf16> to vector<16x32xbf16>
    %cst_336 = arith.constant dense<0.000000e+00> : vector<120x32xf32>
    %511 = tpu.matmul %509, %510, %cst_336 {dimension_numbers = #tpu.dot_dimension_numbers<[1], [0], [0], [1], [0, 0, 1, 1], [], []>} : vector<120x16xbf16>, vector<16x32xbf16>, vector<120x32xf32> -> vector<120x32xf32>
    %512 = arith.addf %507, %511 : vector<120x32xf32>
    %c23_337 = arith.constant 23 : index
    %c0_338 = arith.constant 0 : index
    %c0_339 = arith.constant 0 : index
    %513 = vector.load %arg6[%c23_337, %c0_338, %c0_339] : memref<25x120x16xbf16, #tpu.memory_space<vmem>>, vector<1x120x16xbf16>
    %514 = vector.shape_cast %513 : vector<1x120x16xbf16> to vector<120x16xbf16>
    %515 = vector.extract_strided_slice %396 {offsets = [0, 131], sizes = [16, 32], strides = [1, 1]} : vector<16x192xbf16> to vector<16x32xbf16>
    %cst_340 = arith.constant dense<0.000000e+00> : vector<120x32xf32>
    %516 = tpu.matmul %514, %515, %cst_340 {dimension_numbers = #tpu.dot_dimension_numbers<[1], [0], [0], [1], [0, 0, 1, 1], [], []>} : vector<120x16xbf16>, vector<16x32xbf16>, vector<120x32xf32> -> vector<120x32xf32>
    %517 = arith.addf %512, %516 : vector<120x32xf32>
    %c24_341 = arith.constant 24 : index
    %c0_342 = arith.constant 0 : index
    %c0_343 = arith.constant 0 : index
    %518 = vector.load %arg6[%c24_341, %c0_342, %c0_343] : memref<25x120x16xbf16, #tpu.memory_space<vmem>>, vector<1x120x16xbf16>
    %519 = vector.shape_cast %518 : vector<1x120x16xbf16> to vector<120x16xbf16>
    %520 = vector.extract_strided_slice %396 {offsets = [0, 132], sizes = [16, 32], strides = [1, 1]} : vector<16x192xbf16> to vector<16x32xbf16>
    %cst_344 = arith.constant dense<0.000000e+00> : vector<120x32xf32>
    %521 = tpu.matmul %519, %520, %cst_344 {dimension_numbers = #tpu.dot_dimension_numbers<[1], [0], [0], [1], [0, 0, 1, 1], [], []>} : vector<120x16xbf16>, vector<16x32xbf16>, vector<120x32xf32> -> vector<120x32xf32>
    %522 = arith.addf %517, %521 : vector<120x32xf32>
    %c0_345 = arith.constant 0 : index
    %c0_346 = arith.constant 0 : index
    %523 = vector.load %arg7[%c0_345, %c0_346] : memref<120x1xf32, #tpu.memory_space<vmem>>, vector<120x1xf32>
    %524 = vector.broadcast %523 : vector<120x1xf32> to vector<120x32xf32>
    %525 = arith.addf %522, %524 : vector<120x32xf32>
    %cst_347 = arith.constant 0.000000e+00 : f32
    %526 = vector.broadcast %cst_347 : f32 to vector<120x32xf32>
    %527 = arith.maximumf %525, %526 : vector<120x32xf32>
    %528 = arith.truncf %527 : vector<120x32xf32> to vector<120x32xbf16>
    %c0_348 = arith.constant 0 : index
    %c0_349 = arith.constant 0 : index
    %529 = vector.load %arg8[%c0_348, %c0_349] : memref<84x120xbf16, #tpu.memory_space<vmem>>, vector<84x120xbf16>
    %cst_350 = arith.constant dense<0.000000e+00> : vector<84x32xf32>
    %530 = tpu.matmul %529, %528, %cst_350 {dimension_numbers = #tpu.dot_dimension_numbers<[1], [0], [0], [1], [0, 0, 1, 1], [], []>} : vector<84x120xbf16>, vector<120x32xbf16>, vector<84x32xf32> -> vector<84x32xf32>
    %c0_351 = arith.constant 0 : index
    %c0_352 = arith.constant 0 : index
    %531 = vector.load %arg9[%c0_351, %c0_352] : memref<84x1xf32, #tpu.memory_space<vmem>>, vector<84x1xf32>
    %532 = vector.broadcast %531 : vector<84x1xf32> to vector<84x32xf32>
    %533 = arith.addf %530, %532 : vector<84x32xf32>
    %cst_353 = arith.constant 0.000000e+00 : f32
    %534 = vector.broadcast %cst_353 : f32 to vector<84x32xf32>
    %535 = arith.maximumf %533, %534 : vector<84x32xf32>
    %536 = arith.truncf %535 : vector<84x32xf32> to vector<84x32xbf16>
    %c0_354 = arith.constant 0 : index
    %c0_355 = arith.constant 0 : index
    %537 = vector.load %arg10[%c0_354, %c0_355] : memref<10x84xbf16, #tpu.memory_space<vmem>>, vector<10x84xbf16>
    %cst_356 = arith.constant dense<0.000000e+00> : vector<10x32xf32>
    %538 = tpu.matmul %537, %536, %cst_356 {dimension_numbers = #tpu.dot_dimension_numbers<[1], [0], [0], [1], [0, 0, 1, 1], [], []>} : vector<10x84xbf16>, vector<84x32xbf16>, vector<10x32xf32> -> vector<10x32xf32>
    %c0_357 = arith.constant 0 : index
    %c0_358 = arith.constant 0 : index
    %539 = vector.load %arg11[%c0_357, %c0_358] : memref<10x1xf32, #tpu.memory_space<vmem>>, vector<10x1xf32>
    %540 = vector.broadcast %539 : vector<10x1xf32> to vector<10x32xf32>
    %541 = arith.addf %538, %540 : vector<10x32xf32>
    %542 = vector.extract_strided_slice %541 {offsets = [0, 0], sizes = [10, 1], strides = [1, 1]} : vector<10x32xf32> to vector<10x1xf32>
    %c0_359 = arith.constant 0 : index
    %c0_360 = arith.constant 0 : index
    %c0_361 = arith.constant 0 : index
    %543 = vector.load %arg12[%c0_359, %c0_360, %c0_361] : memref<1x10x1xf32, #tpu.memory_space<vmem>>, vector<1x10x1xf32>
    %544 = vector.shape_cast %543 : vector<1x10x1xf32> to vector<10x1xf32>
    %545 = vector.shape_cast %542 : vector<10x1xf32> to vector<1x10x1xf32>
    tpu.vector_store %arg12[%c0_359, %c0_360, %c0_361], %545 {strides = array<i32>} : memref<1x10x1xf32, #tpu.memory_space<vmem>>, vector<1x10x1xf32>,
    return
  }
  func.func @transform_0(%arg0: i32) -> (i32, i32, i32) {
    %c0_i32 = arith.constant 0 : i32
    %c0_i32_0 = arith.constant 0 : i32
    %c0_i32_1 = arith.constant 0 : i32
    return %arg0, %c0_i32, %c0_i32_0 : i32, i32, i32
  }
  func.func @transform_1(%arg0: i32) -> (i32, i32, i32) {
    %c0_i32 = arith.constant 0 : i32
    %c0_i32_0 = arith.constant 0 : i32
    %c0_i32_1 = arith.constant 0 : i32
    %c0_i32_2 = arith.constant 0 : i32
    return %c0_i32, %c0_i32_0, %c0_i32_1 : i32, i32, i32
  }
  func.func @transform_2(%arg0: i32) -> (i32, i32) {
    %c0_i32 = arith.constant 0 : i32
    %c0_i32_0 = arith.constant 0 : i32
    %c0_i32_1 = arith.constant 0 : i32
    return %c0_i32, %c0_i32_0 : i32, i32
  }
  func.func @transform_3(%arg0: i32) -> (i32, i32, i32) {
    %c0_i32 = arith.constant 0 : i32
    %c0_i32_0 = arith.constant 0 : i32
    %c0_i32_1 = arith.constant 0 : i32
    %c0_i32_2 = arith.constant 0 : i32
    return %c0_i32, %c0_i32_0, %c0_i32_1 : i32, i32, i32
  }
  func.func @transform_4(%arg0: i32) -> (i32, i32) {
    %c0_i32 = arith.constant 0 : i32
    %c0_i32_0 = arith.constant 0 : i32
    %c0_i32_1 = arith.constant 0 : i32
    return %c0_i32, %c0_i32_0 : i32, i32
  }
  func.func @transform_5(%arg0: i32) -> (i32, i32, i32) {
    %c0_i32 = arith.constant 0 : i32
    %c0_i32_0 = arith.constant 0 : i32
    %c0_i32_1 = arith.constant 0 : i32
    %c0_i32_2 = arith.constant 0 : i32
    return %c0_i32, %c0_i32_0, %c0_i32_1 : i32, i32, i32
  }
  func.func @transform_6(%arg0: i32) -> (i32, i32) {
    %c0_i32 = arith.constant 0 : i32
    %c0_i32_0 = arith.constant 0 : i32
    %c0_i32_1 = arith.constant 0 : i32
    return %c0_i32, %c0_i32_0 : i32, i32
  }
  func.func @transform_7(%arg0: i32) -> (i32, i32) {
    %c0_i32 = arith.constant 0 : i32
    %c0_i32_0 = arith.constant 0 : i32
    %c0_i32_1 = arith.constant 0 : i32
    return %c0_i32, %c0_i32_0 : i32, i32
  }
  func.func @transform_8(%arg0: i32) -> (i32, i32) {
    %c0_i32 = arith.constant 0 : i32
    %c0_i32_0 = arith.constant 0 : i32
    %c0_i32_1 = arith.constant 0 : i32
    return %c0_i32, %c0_i32_0 : i32, i32
  }
  func.func @transform_9(%arg0: i32) -> (i32, i32) {
    %c0_i32 = arith.constant 0 : i32
    %c0_i32_0 = arith.constant 0 : i32
    %c0_i32_1 = arith.constant 0 : i32
    return %c0_i32, %c0_i32_0 : i32, i32
  }
  func.func @transform_10(%arg0: i32) -> (i32, i32) {
    %c0_i32 = arith.constant 0 : i32
    %c0_i32_0 = arith.constant 0 : i32
    %c0_i32_1 = arith.constant 0 : i32
    return %c0_i32, %c0_i32_0 : i32, i32
  }
  func.func @transform_11(%arg0: i32) -> (i32, i32, i32) {
    %c0_i32 = arith.constant 0 : i32
    %c0_i32_0 = arith.constant 0 : i32
    %c0_i32_1 = arith.constant 0 : i32
    return %arg0, %c0_i32, %c0_i32_0 : i32, i32, i32
  }
}

</mosaic_0001>

<bundles_post_ra>
// kernel: lenet5_forward.1
= control target key start
LH: loop header
LB: loop body
LE: loop exit
PB: predicated region body
PF: predicated region fallthrough
CT: control target
= control target key end

     0   :  { %s18036_s17 = smov 0   ;;  %s22126_s0 = inlined_call_operand.vmem [shape: bf16[2,3,1152], index: 0, kind: input, shape index: {}]   ;;  %s22127_s1 = inlined_call_operand.vmem [shape: bf16[25,6,3], index: 1, kind: input, shape index: {}]   ;;  %s22128_s2 = inlined_call_operand.vmem [shape: f32[6,1], index: 2, kind: input, shape index: {}]   ;;  %s22129_s3 = inlined_call_operand.vmem [shape: bf16[25,16,6], index: 3, kind: input, shape index: {}]   ;;  %s22130_s4 = inlined_call_operand.vmem [shape: f32[16,1], index: 4, kind: input, shape index: {}]   ;;  %s22131_s5 = inlined_call_operand.vmem [shape: bf16[25,120,16], index: 5, kind: input, shape index: {}]   ;;  %s22132_s6 = inlined_call_operand.vmem [shape: f32[120,1], index: 6, kind: input, shape index: {}]   ;;  %s22133_s7 = inlined_call_operand.vmem [shape: bf16[84,120], index: 7, kind: input, shape index: {}]   ;;  %s22134_s8 = inlined_call_operand.vmem [shape: f32[84,1], index: 8, kind: input, shape index: {}]   ;;  %s22135_s9 = inlined_call_operand.vmem [shape: bf16[10,84], index: 9, kind: input, shape index: {}]   ;;  %s22136_s10 = inlined_call_operand.vmem [shape: f32[10,1], index: 10, kind: input, shape index: {}]   ;;  %s22137_s11 = inlined_call_operand.vmem [shape: f32[2,10,1], index: 11, kind: output, shape index: {}]  }
   0x1 LB: > { %s15143_s18 = sadd.s32 4294967295, %s17949_s17   ;;  %p15147_p0 = scmp.ge.s32.totalorder %s17949_s17, 1  ;;  %s17949_s17 = sphi %s18036_s17, %s21_s17  }
   0x2   : > { %p337_p1 = scmp.lt.s32.totalorder %s17949_s17, 3 }
   0x4   : > { %p338_p2 = pnand %p15147_p0, %p337_p1 }
   0x6   : > { %341 = sbr.rel (%p338_p2) target bundleno = 3878 (0xf26), region = 64 }
   0xb   : > { %p377_p3 = scmp.lt.s32.totalorder %s15143_s18, 1  ;;  %v22138_v0 = vlaneseq  ;;  %v17951_v1 = vmov 1983009808   ;;  %s17952_s23 = smov 127   ;;  %v22158_v14 = vmov 0   ;;  %vm468_vm0 = vcmask 1040384  }
   0xc   : > { %v408_v2 = vunpack.c.l.s4 %v17951_v1  ;;  %388 = vst [vmem:[#allocation2] sm:$0x77] %v22158_v14  ;;  %525 = vmatprep.mubr.bf16.mxu0 %v22158_v14  ;;  %566 = vmatprep.mubr.bf16.mxu1 %v22158_v14  ;;  %s22188_s24 = smov 126   ;;  %s22190_s25 = smov 125   ;;  %v17960_v19 = vmov 65535   ;;  %vm22153_vm1 = vcmask 1041408  }
   0xd   : > { %s22263_s18 = smov (!%p377_p3, %s15143_s18), 1  ;;  %v18047_v3 = vshrl.u32 %v22138_v0, 7  ;;  %17674 = vset.pattern.permute.xlu1 %v22158_v14  ;;  %17663 = vset.pattern.permute.xlu0 %v22158_v14  ;;  %s22189_s26 = smov 124   ;;  %v470_v20 = vsel %vm468_vm0, 4294967295, %v17960_v19  ;;  %vm456_vm2 = vcmask 1039360   ;;  %vm464_vm3 = vcmask 23552  }
   0xe   : > { %v409_v4 = vunpack.c.0.s8 %v408_v2  ;;  %s17629_s19 = smul.u32 18, %s22263_s18  ;;  %s17957_s27 = smov 96   ;;  %v18202_v21 = vsel %vm22153_vm1, %v470_v20, 0  ;;  %v15151_v31 = vld [vmem:[%s22127_s1 + $0x4] sm:$0x7]  ;;  %vm861_vm4 = vcmask 1031168  }
   0xf   : > { %22191 = vst [vmem:[#allocation4_spill] sm:$0xff] %v18047_v3  ;;  %s22179_s28 = smov 95   ;;  %s22175_s29 = smov 94   ;;  %v22139_v46 = vmov 0.0   ;;  %vm17964_vm5 = vmmov 0   ;;  %vm1081_vm6 = vcmask 1022976  }
  0x10   : > { %v412_v5 = vsub.s32 %v409_v4, %v18047_v3  ;;  %s18054_s22 = scalar_lea.vmem %s22126_s0, %s17629_s19  ;;  %s22176_s30 = smov 93   ;;  %v401_v57 = vld [vmem:[%s22127_s1] sm:$0x7]  ;;  %vm1301_vm7 = vcmask 1014784   ;;  %vm1521_vm8 = vcmask 785408   ;;  %vm1741_vm9 = vcmask 777216  }
  0x11   : > { %v398_v6 = vld [vmem:[%s18054_s22] sm:$0xff]  ;;  %v399_v7 = vld [vmem:[%s18054_s22 + $0x8] sm:$0xff]  ;;  %s22174_s14 = smov 92   ;;  %s22187_s19 = smov 64   ;;  %vm1961_vm10 = vcmask 769024   ;;  %vm2181_vm11 = vcmask 760832  }
  0x12   : > { %v18058_v8 = vrot.slane %v398_v6, %v412_v5  ;;  %v406_v9 = vcombine.high %v398_v6, %v398_v6  ;;  %v423_v10 = vcombine.high %v399_v7, %v399_v7  ;;  %v18060_v11 = vrot.slane %v399_v7, %v412_v5  ;;  %s22173_s12 = smov 63   ;;  %s22147_s16 = smov 62  }
  0x13   : > { %s22141_s13 = smov 61   ;;  %s22145_s21 = smov 60   ;;  %vm2401_vm12 = vcmask 752640   ;;  %vm2621_vm13 = vcmask 523264   ;;  %vm22172_vm14 = vcmask 515072   ;;  %vm22169_vm15 = vcmask 506880  }
  0x14   : > { %440 = vrot.lane.b32.xlu1 %v18058_v8, %s17952_s23  ;;  %v18064_v12 = vrot.slane %v406_v9, %v412_v5  ;;  %v18068_v13 = vcombine.high %v18058_v8, %v18058_v8  ;;  %v18081_v16 = vrot.slane %v423_v10, %v412_v5  ;;  %v18087_v17 = vcombine.high %v18060_v11, %v18060_v11  ;;  %s22210_s15 = smov 62   ;;  %s22211_s20 = smov 61  }
  0x15   : > { %v660_v49 = vand.u32 %v18202_v21, %v18058_v8  ;;  %v18309_v59 = vand.u32 %v18202_v21, %v18060_v11  ;;  %vm22160_vm0 = vcmask 498688   ;;  %vm22162_vm1 = vcmask 490496  }
  0x16   : > { %442 = vrot.lane.b32.xlu0 %v18068_v13, %s17952_s23  ;;  %v18077_v15 = vcombine.high %v18064_v12, %v18064_v12  ;;  %v18095_v18 = vcombine.high %v18081_v16, %v18081_v16  ;;  %v18264_v47 = vand.u32 %v18202_v21, %v18068_v13  ;;  %v18285_v52 = vand.u32 %v18202_v21, %v18087_v17 }
  0x17   : > { %v18296_v55 = vand.u32 %v18202_v21, %v18064_v12  ;;  %v18335_v4 = vand.u32 %v18202_v21, %v18081_v16 }
  0x18   : > { %446 = vrot.lane.b32.xlu1 %v18077_v15, %s17952_s23  ;;  %v18278_v51 = vand.u32 %v18202_v21, %v18077_v15 }
  0x1a   : > { %444 = vrot.lane.b32.xlu0 %v18064_v12, %s17952_s23 }
  0x1c   : > { %450 = vrot.lane.b32.xlu1 %v18087_v17, %s17952_s23 }
  0x1e   : > { %448 = vrot.lane.b32.xlu0 %v18060_v11, %s17952_s23 }
  0x20   : > { %454 = vrot.lane.b32.xlu1 %v18095_v18, %s17952_s23 }
  0x22   : > { %452 = vrot.lane.b32.xlu0 %v18081_v16, %s17952_s23 }
  0x24   : > { %849 = vrot.lane.b32.xlu1 %v18064_v12, %s22188_s24 }
  0x26   : > { %847 = vrot.lane.b32.xlu0 %v18068_v13, %s22188_s24 }
  0x28   : > { %851 = vrot.lane.b32.xlu1 %v18077_v15, %s22188_s24 }
  0x2a   : > { %845 = vrot.lane.b32.xlu0 %v18058_v8, %s22188_s24 }
  0x2c   : > { %855 = vrot.lane.b32.xlu1 %v18087_v17, %s22188_s24 }
  0x2e   : > { %853 = vrot.lane.b32.xlu0 %v18060_v11, %s22188_s24 }
  0x30   : > { %859 = vrot.lane.b32.xlu1 %v18095_v18, %s22188_s24 }
  0x32   : > { %857 = vrot.lane.b32.xlu0 %v18081_v16, %s22188_s24 }
  0x34   : > { %1069 = vrot.lane.b32.xlu1 %v18064_v12, %s22190_s25 }
  0x36   : > { %1067 = vrot.lane.b32.xlu0 %v18068_v13, %s22190_s25 }
  0x38   : > { %1071 = vrot.lane.b32.xlu1 %v18077_v15, %s22190_s25 }
  0x3a   : > { %1065 = vrot.lane.b32.xlu0 %v18058_v8, %s22190_s25 }
  0x3c   : > { %1075 = vrot.lane.b32.xlu1 %v18087_v17, %s22190_s25 }
  0x3e   : > { %1073 = vrot.lane.b32.xlu0 %v18060_v11, %s22190_s25 }
  0x40   : > { %1079 = vrot.lane.b32.xlu1 %v18095_v18, %s22190_s25 }
  0x42   : > { %1077 = vrot.lane.b32.xlu0 %v18081_v16, %s22190_s25 }
  0x44   : > { %1289 = vrot.lane.b32.xlu1 %v18064_v12, %s22189_s26 }
  0x46   : > { %1287 = vrot.lane.b32.xlu0 %v18068_v13, %s22189_s26 }
  0x48   : > { %1291 = vrot.lane.b32.xlu1 %v18077_v15, %s22189_s26 }
  0x4a   : > { %1285 = vrot.lane.b32.xlu0 %v18058_v8, %s22189_s26 }
  0x4c   : > { %1295 = vrot.lane.b32.xlu1 %v18087_v17, %s22189_s26 }
  0x4e   : > { %1293 = vrot.lane.b32.xlu0 %v18060_v11, %s22189_s26 }
  0x50   : > { %1299 = vrot.lane.b32.xlu1 %v18095_v18, %s22189_s26 }
  0x52   : > { %1297 = vrot.lane.b32.xlu0 %v18081_v16, %s22189_s26 }
  0x54   : > { %1509 = vrot.lane.b32.xlu1 %v18064_v12, %s17957_s27 }
  0x56   : > { %1507 = vrot.lane.b32.xlu0 %v18068_v13, %s17957_s27 }
  0x58   : > { %1511 = vrot.lane.b32.xlu1 %v18077_v15, %s17957_s27 }
  0x5a   : > { %1505 = vrot.lane.b32.xlu0 %v18058_v8, %s17957_s27 }
  0x5c   : > { %1515 = vrot.lane.b32.xlu1 %v18087_v17, %s17957_s27 }
  0x5e   : > { %1513 = vrot.lane.b32.xlu0 %v18060_v11, %s17957_s27 }
  0x60   : > { %1519 = vrot.lane.b32.xlu1 %v18095_v18, %s17957_s27 }
  0x62   : > { %1517 = vrot.lane.b32.xlu0 %v18081_v16, %s17957_s27 }
  0x64   : > { %1729 = vrot.lane.b32.xlu1 %v18064_v12, %s22179_s28 }
  0x66   : > { %1727 = vrot.lane.b32.xlu0 %v18068_v13, %s22179_s28 }
  0x68   : > { %1731 = vrot.lane.b32.xlu1 %v18077_v15, %s22179_s28 }
  0x6a   : > { %1725 = vrot.lane.b32.xlu0 %v18058_v8, %s22179_s28 }
  0x6c   : > { %1735 = vrot.lane.b32.xlu1 %v18087_v17, %s22179_s28 }
  0x6e   : > { %1733 = vrot.lane.b32.xlu0 %v18060_v11, %s22179_s28 }
  0x70   : > { %1739 = vrot.lane.b32.xlu1 %v18095_v18, %s22179_s28 }
  0x72   : > { %1737 = vrot.lane.b32.xlu0 %v18081_v16, %s22179_s28 }
  0x74   : > { %1949 = vrot.lane.b32.xlu1 %v18064_v12, %s22175_s29 }
  0x76   : > { %1947 = vrot.lane.b32.xlu0 %v18068_v13, %s22175_s29 }
  0x78   : > { %1951 = vrot.lane.b32.xlu1 %v18077_v15, %s22175_s29 }
  0x7a   : > { %1945 = vrot.lane.b32.xlu0 %v18058_v8, %s22175_s29 }
  0x7c   : > { %1955 = vrot.lane.b32.xlu1 %v18087_v17, %s22175_s29 }
  0x7e   : > { %1953 = vrot.lane.b32.xlu0 %v18060_v11, %s22175_s29 }
  0x80   : > { %1959 = vrot.lane.b32.xlu1 %v18095_v18, %s22175_s29 }
  0x82   : > { %1957 = vrot.lane.b32.xlu0 %v18081_v16, %s22175_s29 }
  0x84   : > { %2169 = vrot.lane.b32.xlu1 %v18064_v12, %s22176_s30 }
  0x86   : > { %v441_v22 = vpop.permute.xlu1 %440  ;;  %2167 = vrot.lane.b32.xlu0 %v18068_v13, %s22176_s30 }
  0x88   : > { %v443_v23 = vpop.permute.xlu0 %442  ;;  %2171 = vrot.lane.b32.xlu1 %v18077_v15, %s22176_s30 }
  0x89   : > { %v457_v26 = vsel %vm456_vm2, %v441_v22, %v443_v23 }
  0x8a   : > { %2165 = vrot.lane.b32.xlu0 %v18058_v8, %s22176_s30  ;;  %v447_v24 = vpop.permute.xlu1 %446  ;;  %v473_v30 = vand.u32 %v18202_v21, %v457_v26 }
  0x8c   : > { %v445_v25 = vpop.permute.xlu0 %444  ;;  %2175 = vrot.lane.b32.xlu1 %v18087_v17, %s22176_s30 }
  0x8d   : > { %v458_v27 = vsel %vm456_vm2, %v443_v23, %v445_v25  ;;  %v459_v34 = vsel %vm456_vm2, %v445_v25, %v447_v24 }
  0x8e   : > { %2173 = vrot.lane.b32.xlu0 %v18060_v11, %s22176_s30  ;;  %v451_v28 = vpop.permute.xlu1 %450  ;;  %v18217_v29 = vand.u32 %v18202_v21, %v458_v27  ;;  %v18240_v39 = vand.u32 %v18202_v21, %v459_v34 }
  0x90   : > { %507 = vmatprep.subr.bf16.mxu0 %v18217_v29  ;;  %v449_v32 = vpop.permute.xlu0 %448  ;;  %2179 = vrot.lane.b32.xlu1 %v18095_v18, %s22176_s30 }
  0x91   : > { %508 = vmatpush1.bf16.msra.mxu0 %v473_v30  ;;  %v460_v33 = vsel %vm456_vm2, %v447_v24, %v449_v32  ;;  %v461_v37 = vsel %vm456_vm2, %v449_v32, %v451_v28  ;;  %v15160_v30 = vld [vmem:[%s22127_s1 + $0x8] sm:$0x7] }
  0x92   : > { %2177 = vrot.lane.b32.xlu0 %v18081_v16, %s22176_s30  ;;  %v18230_v35 = vpop.permute.xlu1 %454  ;;  %v18233_v36 = vand.u32 %v18202_v21, %v460_v33  ;;  %v18259_v45 = vand.u32 %v18202_v21, %v461_v37 }
  0x94   : > { %15152 = vmatmul.mubr.msk.bf16.vlgmr.msra.gmra.mxu0 %vm464_vm3, %v15151_v31  ;;  %v453_v38 = vpop.permute.xlu0 %452  ;;  %2389 = vrot.lane.b32.xlu1 %v18064_v12, %s22174_s14 }
  0x95   : > { %v462_v40 = vsel %vm456_vm2, %v451_v28, %v453_v38  ;;  %v463_v41 = vsel %vm456_vm2, %v453_v38, %v18230_v35  ;;  %548 = vmatprep.subr.bf16.mxu1 %v18233_v36  ;;  %607 = vmatprep.mubr.bf16.mxu0 %v22158_v14 }
  0x96   : > { %v18248_v42 = vand.u32 %v18202_v21, %v463_v41  ;;  %549 = vmatpush1.bf16.msra.mxu1 %v18240_v39  ;;  %2387 = vrot.lane.b32.xlu0 %v18068_v13, %s22174_s14  ;;  %v18253_v43 = vpop.permute.xlu1 %849  ;;  %v18256_v44 = vand.u32 %v18202_v21, %v462_v40 }
  0x97   : > { %16692 = vmatprep.subr.bf16.mxu1 %v22139_v46 }
  0x98   : > { %v848_v48 = vpop.permute.xlu0 %847  ;;  %2391 = vrot.lane.b32.xlu1 %v18077_v15, %s22174_s14  ;;  %589 = vmatprep.subr.bf16.mxu0 %v18256_v44 }
  0x99   : > { %15153 = vmatmul.mubr.msk.bf16.vlgmr.msra.gmra.mxu1 %vm464_vm3, %v15151_v31  ;;  %590 = vmatpush1.bf16.msra.mxu0 %v18259_v45  ;;  %v863_v56 = vsel %vm861_vm4, %v848_v48, %v18253_v43 }
  0x9a   : > { %16693 = vmatpush3.bf16.msra.mxu1 %v18248_v42  ;;  %2385 = vrot.lane.b32.xlu0 %v18058_v8, %s22174_s14  ;;  %v852_v50 = vpop.permute.xlu1 %851  ;;  %v18317_v61 = vand.u32 %v863_v56, %v18202_v21 }
  0x9b   : > { %16694 = vmatprep.mubr.msk.bf16.mxu1 %vm17964_vm5, %v22139_v46  ;;  %694 = vmatprep.subr.bf16.mxu0 %v18264_v47  ;;  %v864_v20 = vsel %vm861_vm4, %v18253_v43, %v852_v50 }
  0x9c   : > { %v846_v53 = vpop.permute.xlu0 %845  ;;  %2395 = vrot.lane.b32.xlu1 %v18087_v17, %s22174_s14  ;;  %15154 = vmatmul.mubr.msk.bf16.vlgmr.msra.gmra.mxu0 %vm464_vm3, %v15151_v31  ;;  %v18361_v23 = vand.u32 %v864_v20, %v18202_v21 }
  0x9d   : > { %695 = vmatpush1.bf16.msra.mxu0 %v660_v49  ;;  %712 = vmatprep.mubr.bf16.mxu0 %v22158_v14  ;;  %v862_v1 = vsel %vm861_vm4, %v846_v53, %v848_v48 }
  0x9e   : > { %2393 = vrot.lane.b32.xlu0 %v18060_v11, %s22174_s14  ;;  %v856_v54 = vpop.permute.xlu1 %855  ;;  %735 = vmatprep.subr.bf16.mxu1 %v18278_v51  ;;  %v873_v9 = vand.u32 %v862_v1, %v18202_v21 }
  0x9f   : > { %776 = vmatprep.subr.bf16.mxu0 %v18285_v52 }
  0xa0   : > { %v854_v58 = vpop.permute.xlu0 %853  ;;  %2399 = vrot.lane.b32.xlu1 %v18095_v18, %s22174_s14 }
  0xa1   : > { %16695 = vmatmul.mubr.msk.bf16.vlgmr.msra.gmra.mxu1 %vm464_vm3, %v15151_v31  ;;  %v865_v62 = vsel %vm861_vm4, %v852_v50, %v854_v58  ;;  %v866_v24 = vsel %vm861_vm4, %v854_v58, %v856_v54 }
  0xa2   : > { %2397 = vrot.lane.b32.xlu0 %v18081_v16, %s22174_s14  ;;  %v18313_v60 = vpop.permute.xlu1 %859  ;;  %736 = vmatpush1.bf16.msra.mxu1 %v18296_v55  ;;  %v18339_v6 = vand.u32 %v865_v62, %v18202_v21  ;;  %v18372_v28 = vand.u32 %v866_v24, %v18202_v21 }
  0xa3   : > { %753 = vmatprep.mubr.bf16.mxu1 %v22158_v14  ;;  %16698 = vmatprep.subr.bf16.mxu1 %v22139_v46 }
  0xa4   : > { %v858_v63 = vpop.permute.xlu0 %857  ;;  %2609 = vrot.lane.b32.xlu1 %v18064_v12, %s22187_s19  ;;  %15156 = vmatmul.mubr.msk.bf16.vlgmr.msra.gmra.mxu0 %vm464_vm3, %v401_v57 }
  0xa5   : > { %777 = vmatpush1.bf16.msra.mxu0 %v18309_v59  ;;  %794 = vmatprep.mubr.bf16.mxu0 %v22158_v14  ;;  %v867_v5 = vsel %vm861_vm4, %v856_v54, %v858_v63  ;;  %v868_v33 = vsel %vm861_vm4, %v858_v63, %v18313_v60 }
  0xa6   : > { %2607 = vrot.lane.b32.xlu0 %v18068_v13, %s22187_s19  ;;  %v18330_v2 = vpop.permute.xlu1 %1069  ;;  %907 = vmatprep.subr.bf16.mxu0 %v18317_v61  ;;  %v18349_v19 = vand.u32 %v867_v5, %v18202_v21  ;;  %v18397_v38 = vand.u32 %v868_v33, %v18202_v21 }
  0xa8   : > { %v1068_v7 = vpop.permute.xlu0 %1067  ;;  %2611 = vrot.lane.b32.xlu1 %v18077_v15, %s22187_s19 }
  0xa9   : > { %15157 = vmatmul.mubr.msk.bf16.vlgmr.msra.gmra.mxu1 %vm464_vm3, %v401_v57  ;;  %v1083_v26 = vsel %vm1081_vm6, %v1068_v7, %v18330_v2 }
  0xaa   : > { %2605 = vrot.lane.b32.xlu0 %v18058_v8, %s22187_s19  ;;  %v1072_v10 = vpop.permute.xlu1 %1071  ;;  %16699 = vmatpush3.bf16.msra.mxu1 %v18335_v4  ;;  %v18384_v32 = vand.u32 %v1083_v26, %v18202_v21 }
  0xab   : > { %16700 = vmatprep.mubr.msk.bf16.mxu1 %vm17964_vm5, %v22139_v46  ;;  %948 = vmatprep.subr.bf16.mxu1 %v18339_v6  ;;  %v1084_v56 = vsel %vm1081_vm6, %v18330_v2, %v1072_v10 }
  0xac   : > { %v1066_v22 = vpop.permute.xlu0 %1065  ;;  %2615 = vrot.lane.b32.xlu1 %v18087_v17, %s22187_s19  ;;  %15158 = vmatmul.mubr.msk.bf16.vlgmr.msra.gmra.mxu0 %vm464_vm3, %v401_v57  ;;  %v18427_v58 = vand.u32 %v1084_v56, %v18202_v21 }
  0xad   : > { %908 = vmatpush1.bf16.msra.mxu0 %v873_v9  ;;  %925 = vmatprep.mubr.bf16.mxu0 %v22158_v14  ;;  %v1082_v40 = vsel %vm1081_vm6, %v1066_v22, %v1068_v7  ;;  %v15165_v7 = vld [vmem:[%s22127_s1 + $0xc] sm:$0x7] }
  0xae   : > { %2613 = vrot.lane.b32.xlu0 %v18060_v11, %s22187_s19  ;;  %v1076_v25 = vpop.permute.xlu1 %1075  ;;  %989 = vmatprep.subr.bf16.mxu0 %v18349_v19  ;;  %v1093_v50 = vand.u32 %v1082_v40, %v18202_v21 }
  0xb0   : > { %v1074_v27 = vpop.permute.xlu0 %1073  ;;  %2619 = vrot.lane.b32.xlu1 %v18095_v18, %s22187_s19 }
  0xb1   : > { %16701 = vmatmul.mubr.msk.bf16.vlgmr.msra.gmra.mxu1 %vm464_vm3, %v401_v57  ;;  %v1085_v34 = vsel %vm1081_vm6, %v1072_v10, %v1074_v27  ;;  %v1086_v62 = vsel %vm1081_vm6, %v1074_v27, %v1076_v25 }
  0xb2   : > { %949 = vmatpush1.bf16.msra.mxu1 %v18361_v23  ;;  %2617 = vrot.lane.b32.xlu0 %v18081_v16, %s22187_s19  ;;  %v18381_v31 = vpop.permute.xlu1 %1079  ;;  %v18405_v48 = vand.u32 %v1085_v34, %v18202_v21  ;;  %v18437_v5 = vand.u32 %v1086_v62, %v18202_v21 }
  0xb3   : > { %966 = vmatprep.mubr.bf16.mxu1 %v22158_v14  ;;  %16704 = vmatprep.subr.bf16.mxu1 %v22139_v46 }
  0xb4   : > { %v1078_v37 = vpop.permute.xlu0 %1077  ;;  %2829 = vrot.lane.b32.xlu1 %v18064_v12, %s22173_s12  ;;  %15161 = vmatmul.mubr.msk.bf16.vlgmr.msra.gmra.mxu0 %vm464_vm3, %v15160_v30 }
  0xb5   : > { %990 = vmatpush1.bf16.msra.mxu0 %v18372_v28  ;;  %1007 = vmatprep.mubr.bf16.mxu0 %v22158_v14  ;;  %v1087_v43 = vsel %vm1081_vm6, %v1076_v25, %v1078_v37  ;;  %v1088_v20 = vsel %vm1081_vm6, %v1078_v37, %v18381_v31 }
  0xb6   : > { %2827 = vrot.lane.b32.xlu0 %v18068_v13, %s22173_s12  ;;  %v1290_v41 = vpop.permute.xlu1 %1289  ;;  %1127 = vmatprep.subr.bf16.mxu0 %v18384_v32  ;;  %v18415_v54 = vand.u32 %v1087_v43, %v18202_v21  ;;  %v18462_v25 = vand.u32 %v1088_v20, %v18202_v21 }
  0xb8   : > { %v1288_v49 = vpop.permute.xlu0 %1287  ;;  %2831 = vrot.lane.b32.xlu1 %v18077_v15, %s22173_s12 }
  0xb9   : > { %15162 = vmatmul.mubr.msk.bf16.vlgmr.msra.gmra.mxu1 %vm464_vm3, %v15160_v30  ;;  %v1303_v1 = vsel %vm1301_vm7, %v1288_v49, %v1290_v41 }
  0xba   : > { %16705 = vmatpush3.bf16.msra.mxu1 %v18397_v38  ;;  %2825 = vrot.lane.b32.xlu0 %v18058_v8, %s22173_s12  ;;  %v1292_v53 = vpop.permute.xlu1 %1291  ;;  %v18449_v10 = vand.u32 %v1303_v1, %v18202_v21 }
  0xbb   : > { %16706 = vmatprep.mubr.msk.bf16.mxu1 %vm17964_vm5, %v22139_v46  ;;  %1168 = vmatprep.subr.bf16.mxu1 %v18405_v48 }
  0xbc   : > { %v1286_v57 = vpop.permute.xlu0 %1285  ;;  %2835 = vrot.lane.b32.xlu1 %v18087_v17, %s22173_s12  ;;  %15163 = vmatmul.mubr.msk.bf16.vlgmr.msra.gmra.mxu0 %vm464_vm3, %v15160_v30  ;;  %22193 = vst [vmem:[#allocation6_spill] sm:$0xff] %v18449_v10 }
  0xbd   : > { %1128 = vmatpush1.bf16.msra.mxu0 %v1093_v50  ;;  %1145 = vmatprep.mubr.bf16.mxu0 %v22158_v14  ;;  %v1302_v26 = vsel %vm1301_vm7, %v1286_v57, %v1288_v49  ;;  %v1304_v49 = vsel %vm1301_vm7, %v1290_v41, %v1292_v53 }
  0xbe   : > { %2833 = vrot.lane.b32.xlu0 %v18060_v11, %s22173_s12  ;;  %v1296_v63 = vpop.permute.xlu1 %1295  ;;  %1209 = vmatprep.subr.bf16.mxu0 %v18415_v54  ;;  %v1313_v37 = vand.u32 %v1302_v26, %v18202_v21  ;;  %v18491_v56 = vand.u32 %v1304_v49, %v18202_v21 }
  0xc0   : > { %v1294_v2 = vpop.permute.xlu0 %1293  ;;  %2839 = vrot.lane.b32.xlu1 %v18095_v18, %s22173_s12 }
  0xc1   : > { %16707 = vmatmul.mubr.msk.bf16.vlgmr.msra.gmra.mxu1 %vm464_vm3, %v15160_v30  ;;  %v1305_v22 = vsel %vm1301_vm7, %v1292_v53, %v1294_v2  ;;  %v1306_v41 = vsel %vm1301_vm7, %v1294_v2, %v1296_v63 }
  0xc2   : > { %1169 = vmatpush1.bf16.msra.mxu1 %v18427_v58  ;;  %2837 = vrot.lane.b32.xlu0 %v18081_v16, %s22173_s12  ;;  %v18446_v9 = vpop.permute.xlu1 %1299  ;;  %v18470_v33 = vand.u32 %v1305_v22, %v18202_v21  ;;  %v18501_v1 = vand.u32 %v1306_v41, %v18202_v21 }
  0xc3   : > { %22192 = vst [vmem:[#allocation5_spill] sm:$0xff] %v18446_v9  ;;  %1186 = vmatprep.mubr.bf16.mxu1 %v22158_v14  ;;  %16710 = vmatprep.subr.bf16.mxu1 %v22139_v46 }
  0xc4   : > { %v1298_v24 = vpop.permute.xlu0 %1297  ;;  %3049 = vrot.lane.b32.xlu1 %v18064_v12, %s22147_s16  ;;  %15166 = vmatmul.mubr.msk.bf16.vlgmr.msra.gmra.mxu0 %vm464_vm3, %v15165_v7  ;;  %22194 = vst [vmem:[#allocation7_spill] sm:$0xff] %v18470_v33 }
  0xc5   : > { %1210 = vmatpush1.bf16.msra.mxu0 %v18437_v5  ;;  %1227 = vmatprep.mubr.bf16.mxu0 %v22158_v14  ;;  %v1307_v30 = vsel %vm1301_vm7, %v1296_v63, %v1298_v24  ;;  %v15170_v63 = vld [vmem:[%s22127_s1 + $0x10] sm:$0x7]  ;;  %v1308_v22 = vsel %vm1301_vm7, %v1298_v24, %v18446_v9 }
  0xc6   : > { %3047 = vrot.lane.b32.xlu0 %v18068_v13, %s22147_s16  ;;  %v1510_v27 = vpop.permute.xlu1 %1509  ;;  %1347 = vmatprep.subr.bf16.mxu0 %v18449_v10  ;;  %v18480_v43 = vand.u32 %v1307_v30, %v18202_v21  ;;  %v18522_v30 = vand.u32 %v1308_v22, %v18202_v21 }
  0xc8   : > { %v1508_v34 = vpop.permute.xlu0 %1507  ;;  %3051 = vrot.lane.b32.xlu1 %v18077_v15, %s22147_s16  ;;  %22195 = vst [vmem:[#allocation8_spill] sm:$0xff] %v18480_v43  ;;  %22196 = vst [vmem:[#allocation9_spill] sm:$0xff] %v18522_v30 }
  0xc9   : > { %15167 = vmatmul.mubr.msk.bf16.vlgmr.msra.gmra.mxu1 %vm464_vm3, %v15165_v7  ;;  %v1523_v57 = vsel %vm1521_vm8, %v1508_v34, %v1510_v27 }
  0xca   : > { %16711 = vmatpush3.bf16.msra.mxu1 %v18462_v25  ;;  %3045 = vrot.lane.b32.xlu0 %v18058_v8, %s22147_s16  ;;  %v1512_v40 = vpop.permute.xlu1 %1511  ;;  %v1536_v20 = vand.u32 %v1523_v57, %v18202_v21 }
  0xcb   : > { %16712 = vmatprep.mubr.msk.bf16.mxu1 %vm17964_vm5, %v22139_v46  ;;  %1388 = vmatprep.subr.bf16.mxu1 %v18470_v33 }
  0xcc   : > { %v1506_v50 = vpop.permute.xlu0 %1505  ;;  %3055 = vrot.lane.b32.xlu1 %v18087_v17, %s22147_s16  ;;  %15168 = vmatmul.mubr.msk.bf16.vlgmr.msra.gmra.mxu0 %vm464_vm3, %v15165_v7 }
  0xcd   : > { %1348 = vmatpush1.bf16.msra.mxu0 %v1313_v37  ;;  %1365 = vmatprep.mubr.bf16.mxu0 %v22158_v14  ;;  %v1522_v24 = vsel %vm1521_vm8, %v1506_v50, %v1508_v34 }
  0xce   : > { %3053 = vrot.lane.b32.xlu0 %v18060_v11, %s22147_s16  ;;  %v1516_v53 = vpop.permute.xlu1 %1515  ;;  %1429 = vmatprep.subr.bf16.mxu0 %v18480_v43  ;;  %v1533_v0 = vand.u32 %v1522_v24, %v18202_v21 }
  0xd0   : > { %v1514_v62 = vpop.permute.xlu0 %1513  ;;  %3059 = vrot.lane.b32.xlu1 %v18095_v18, %s22147_s16 }
  0xd1   : > { %16713 = vmatmul.mubr.msk.bf16.vlgmr.msra.gmra.mxu1 %vm464_vm3, %v15165_v7  ;;  %v1525_v7 = vsel %vm1521_vm8, %v1512_v40, %v1514_v62  ;;  %v1526_v24 = vsel %vm1521_vm8, %v1514_v62, %v1516_v53 }
  0xd2   : > { %1389 = vmatpush1.bf16.msra.mxu1 %v18491_v56  ;;  %3057 = vrot.lane.b32.xlu0 %v18081_v16, %s22147_s16  ;;  %v1520_v2 = vpop.permute.xlu1 %1519  ;;  %v1542_v41 = vand.u32 %v1525_v7, %v18202_v21  ;;  %s22151_s16 = smov 30  }
  0xd3   : > { %1406 = vmatprep.mubr.bf16.mxu1 %v22158_v14  ;;  %16716 = vmatprep.subr.bf16.mxu1 %v22139_v46 }
  0xd4   : > { %v1518_v26 = vpop.permute.xlu0 %1517  ;;  %3269 = vrot.lane.b32.xlu1 %v18064_v12, %s22141_s13  ;;  %15171 = vmatmul.mubr.msk.bf16.vlgmr.msra.gmra.mxu0 %vm464_vm3, %v15170_v63 }
  0xd5   : > { %1430 = vmatpush1.bf16.msra.mxu0 %v18501_v1  ;;  %1447 = vmatprep.mubr.bf16.mxu0 %v22158_v14  ;;  %v1527_v49 = vsel %vm1521_vm8, %v1516_v53, %v1518_v26 }
  0xd6   : > { %3267 = vrot.lane.b32.xlu0 %v18068_v13, %s22141_s13  ;;  %v1730_v37 = vpop.permute.xlu1 %1729  ;;  %1567 = vmatprep.subr.bf16.mxu0 %v1536_v20  ;;  %v1548_v50 = vand.u32 %v1527_v49, %v18202_v21  ;;  %v1524_v20 = vsel %vm1521_vm8, %v1510_v27, %v1512_v40 }
  0xd7   : > { %v1539_v7 = vand.u32 %v1524_v20, %v18202_v21 }
  0xd8   : > { %v1728_v57 = vpop.permute.xlu0 %1727  ;;  %3271 = vrot.lane.b32.xlu1 %v18077_v15, %s22141_s13 }
  0xd9   : > { %15172 = vmatmul.mubr.msk.bf16.vlgmr.msra.gmra.mxu1 %vm464_vm3, %v15170_v63  ;;  %v1743_v40 = vsel %vm1741_vm9, %v1728_v57, %v1730_v37 }
  0xda   : > { %16717 = vmatpush3.bf16.msra.mxu1 %v18522_v30  ;;  %3265 = vrot.lane.b32.xlu0 %v18058_v8, %s22141_s13  ;;  %v1732_v34 = vpop.permute.xlu1 %1731  ;;  %v1756_v62 = vand.u32 %v1743_v40, %v18202_v21 }
  0xdb   : > { %16718 = vmatprep.mubr.msk.bf16.mxu1 %vm17964_vm5, %v22139_v46  ;;  %1608 = vmatprep.subr.bf16.mxu1 %v1542_v41  ;;  %v1545_v41 = vand.u32 %v1526_v24, %v18202_v21 }
  0xdc   : > { %v1726_v22 = vpop.permute.xlu0 %1725  ;;  %3275 = vrot.lane.b32.xlu1 %v18087_v17, %s22141_s13  ;;  %15173 = vmatmul.mubr.msk.bf16.vlgmr.msra.gmra.mxu0 %vm464_vm3, %v15170_v63 }
  0xdd   : > { %1568 = vmatpush1.bf16.msra.mxu0 %v1533_v0  ;;  %1585 = vmatprep.mubr.bf16.mxu0 %v22158_v14  ;;  %v15175_v0 = vld [vmem:[%s22127_s1 + $0x14] sm:$0x7] }
  0xde   : > { %3273 = vrot.lane.b32.xlu0 %v18060_v11, %s22141_s13  ;;  %v1736_v27 = vpop.permute.xlu1 %1735  ;;  %1649 = vmatprep.subr.bf16.mxu0 %v1548_v50  ;;  %v1528_v50 = vsel %vm1521_vm8, %v1518_v26, %v1520_v2  ;;  %v1742_v2 = vsel %vm1741_vm9, %v1726_v22, %v1728_v57 }
  0xe0   : > { %v1734_v49 = vpop.permute.xlu0 %1733  ;;  %3279 = vrot.lane.b32.xlu1 %v18095_v18, %s22141_s13 }
  0xe1   : > { %16719 = vmatmul.mubr.msk.bf16.vlgmr.msra.gmra.mxu1 %vm464_vm3, %v15170_v63  ;;  %v1745_v20 = vsel %vm1741_vm9, %v1732_v34, %v1734_v49 }
  0xe2   : > { %1609 = vmatpush1.bf16.msra.mxu1 %v1539_v7  ;;  %3277 = vrot.lane.b32.xlu0 %v18081_v16, %s22141_s13  ;;  %v1740_v53 = vpop.permute.xlu1 %1739  ;;  %v1551_v7 = vand.u32 %v1528_v50, %v18202_v21  ;;  %v1762_v40 = vand.u32 %v1745_v20, %v18202_v21  ;;  %v22197_v50 = vmov 0.0   ;;  %s22186_s13 = smov 32  }
  0xe3   : > { %1626 = vmatprep.mubr.bf16.mxu1 %v22158_v14  ;;  %16722 = vmatprep.subr.bf16.mxu1 %v22139_v46 }
  0xe4   : > { %v1738_v63 = vpop.permute.xlu0 %1737  ;;  %3489 = vrot.lane.b32.xlu1 %v18064_v12, %s22145_s21  ;;  %15176 = vmatmul.mubr.msk.bf16.vlgmr.msra.gmra.mxu0 %vm464_vm3, %v15175_v0 }
  0xe5   : > { %1650 = vmatpush1.bf16.msra.mxu0 %v1545_v41  ;;  %1667 = vmatprep.mubr.bf16.mxu0 %v22158_v14  ;;  %v1747_v24 = vsel %vm1741_vm9, %v1736_v27, %v1738_v63  ;;  %v1753_v41 = vand.u32 %v1742_v2, %v18202_v21  ;;  %v1746_v2 = vsel %vm1741_vm9, %v1734_v49, %v1736_v27 }
  0xe6   : > { %3487 = vrot.lane.b32.xlu0 %v18068_v13, %s22145_s21  ;;  %v1950_v26 = vpop.permute.xlu1 %1949  ;;  %1787 = vmatprep.subr.bf16.mxu0 %v1756_v62  ;;  %v1768_v22 = vand.u32 %v1747_v24, %v18202_v21  ;;  %v1744_v62 = vsel %vm1741_vm9, %v1730_v37, %v1732_v34 }
  0xe8   : > { %v1948_v46 = vpop.permute.xlu0 %1947  ;;  %3491 = vrot.lane.b32.xlu1 %v18077_v15, %s22145_s21 }
  0xe9   : > { %15177 = vmatmul.mubr.msk.bf16.vlgmr.msra.gmra.mxu1 %vm464_vm3, %v15175_v0  ;;  %v1963_v34 = vsel %vm1961_vm10, %v1948_v46, %v1950_v26 }
  0xea   : > { %16723 = vmatpush3.bf16.msra.mxu1 %v1551_v7  ;;  %3485 = vrot.lane.b32.xlu0 %v18058_v8, %s22145_s21  ;;  %v1952_v57 = vpop.permute.xlu1 %1951  ;;  %v1759_v7 = vand.u32 %v1744_v62, %v18202_v21  ;;  %v1976_v49 = vand.u32 %v1963_v34, %v18202_v21 }
  0xeb   : > { %16724 = vmatprep.mubr.msk.bf16.mxu1 %vm17964_vm5, %v22197_v50  ;;  %1828 = vmatprep.subr.bf16.mxu1 %v1762_v40  ;;  %v1765_v40 = vand.u32 %v1746_v2, %v18202_v21 }
  0xec   : > { %v1946_v20 = vpop.permute.xlu0 %1945  ;;  %3495 = vrot.lane.b32.xlu1 %v18087_v17, %s22145_s21  ;;  %15178 = vmatmul.mubr.msk.bf16.vlgmr.msra.gmra.mxu0 %vm464_vm3, %v15175_v0 }
  0xed   : > { %1788 = vmatpush1.bf16.msra.mxu0 %v1753_v41  ;;  %1805 = vmatprep.mubr.bf16.mxu0 %v22158_v14  ;;  %v15180_v41 = vld [vmem:[%s22127_s1 + $0x18] sm:$0x7] }
  0xee   : > { %3493 = vrot.lane.b32.xlu0 %v18060_v11, %s22145_s21  ;;  %v1956_v37 = vpop.permute.xlu1 %1955  ;;  %1869 = vmatprep.subr.bf16.mxu0 %v1768_v22  ;;  %v1748_v22 = vsel %vm1741_vm9, %v1738_v63, %v1740_v53  ;;  %v1962_v53 = vsel %vm1961_vm10, %v1946_v20, %v1948_v46 }
  0xf0   : > { %v1954_v24 = vpop.permute.xlu0 %1953  ;;  %3499 = vrot.lane.b32.xlu1 %v18095_v18, %s22145_s21 }
  0xf1   : > { %16725 = vmatmul.mubr.msk.bf16.vlgmr.msra.gmra.mxu1 %vm464_vm3, %v15175_v0  ;;  %v1965_v62 = vsel %vm1961_vm10, %v1952_v57, %v1954_v24 }
  0xf2   : > { %1829 = vmatpush1.bf16.msra.mxu1 %v1759_v7  ;;  %3497 = vrot.lane.b32.xlu0 %v18081_v16, %s22145_s21  ;;  %v1960_v27 = vpop.permute.xlu1 %1959  ;;  %v1771_v7 = vand.u32 %v1748_v22, %v18202_v21  ;;  %v1982_v34 = vand.u32 %v1965_v62, %v18202_v21  ;;  %s22149_s21 = smov 31  }
  0xf3   : > { %1846 = vmatprep.mubr.bf16.mxu1 %v22158_v14  ;;  %16728 = vmatprep.subr.bf16.mxu1 %v22197_v50 }
  0xf4   : > { %v1958_v0 = vpop.permute.xlu0 %1957  ;;  %3709 = vrot.lane.b32.xlu1 %v18064_v12, %s22186_s13  ;;  %15181 = vmatmul.mubr.msk.bf16.vlgmr.msra.gmra.mxu0 %vm464_vm3, %v15180_v41 }
  0xf5   : > { %1870 = vmatpush1.bf16.msra.mxu0 %v1765_v40  ;;  %1887 = vmatprep.mubr.bf16.mxu0 %v22158_v14  ;;  %v1967_v2 = vsel %vm1961_vm10, %v1956_v37, %v1958_v0  ;;  %v1973_v40 = vand.u32 %v1962_v53, %v18202_v21 }
  0xf6   : > { %3707 = vrot.lane.b32.xlu0 %v18068_v13, %s22186_s13  ;;  %v2170_v63 = vpop.permute.xlu1 %2169  ;;  %2007 = vmatprep.subr.bf16.mxu0 %v1976_v49  ;;  %v1988_v20 = vand.u32 %v1967_v2, %v18202_v21  ;;  %v1964_v49 = vsel %vm1961_vm10, %v1950_v26, %v1952_v57 }
  0xf7   : > { %v1979_v62 = vand.u32 %v1964_v49, %v18202_v21 }
  0xf8   : > { %v2168_v3 = vpop.permute.xlu0 %2167  ;;  %3711 = vrot.lane.b32.xlu1 %v18077_v15, %s22186_s13 }
  0xf9   : > { %15182 = vmatmul.mubr.msk.bf16.vlgmr.msra.gmra.mxu1 %vm464_vm3, %v15180_v41  ;;  %v2183_v57 = vsel %vm2181_vm11, %v2168_v3, %v2170_v63 }
  0xfa   : > { %16729 = vmatpush3.bf16.msra.mxu1 %v1771_v7  ;;  %3705 = vrot.lane.b32.xlu0 %v18058_v8, %s22186_s13  ;;  %v2172_v46 = vpop.permute.xlu1 %2171  ;;  %v1966_v7 = vsel %vm1961_vm10, %v1954_v24, %v1956_v37  ;;  %v2196_v24 = vand.u32 %v2183_v57, %v18202_v21 }
  0xfb   : > { %16730 = vmatprep.mubr.msk.bf16.mxu1 %vm17964_vm5, %v22197_v50  ;;  %2048 = vmatprep.subr.bf16.mxu1 %v1982_v34  ;;  %v1985_v2 = vand.u32 %v1966_v7, %v18202_v21  ;;  %v15185_v34 = vld [vmem:[%s22127_s1 + $0x1c] sm:$0x7] }
  0xfc   : > { %v2166_v22 = vpop.permute.xlu0 %2165  ;;  %3715 = vrot.lane.b32.xlu1 %v18087_v17, %s22186_s13  ;;  %15183 = vmatmul.mubr.msk.bf16.vlgmr.msra.gmra.mxu0 %vm464_vm3, %v15180_v41 }
  0xfd   : > { %2008 = vmatpush1.bf16.msra.mxu0 %v1973_v40  ;;  %2025 = vmatprep.mubr.bf16.mxu0 %v22158_v14  ;;  %v1968_v40 = vsel %vm1961_vm10, %v1958_v0, %v1960_v27  ;;  %v2182_v27 = vsel %vm2181_vm11, %v2166_v22, %v2168_v3 }
  0xfe   : > { %3713 = vrot.lane.b32.xlu0 %v18060_v11, %s22186_s13  ;;  %v2176_v26 = vpop.permute.xlu1 %2175  ;;  %2089 = vmatprep.subr.bf16.mxu0 %v1988_v20  ;;  %v1991_v49 = vand.u32 %v1968_v40, %v18202_v21 }
 0x100   : > { %v2174_v53 = vpop.permute.xlu0 %2173  ;;  %3719 = vrot.lane.b32.xlu1 %v18095_v18, %s22186_s13 }
 0x101   : > { %16731 = vmatmul.mubr.msk.bf16.vlgmr.msra.gmra.mxu1 %vm464_vm3, %v15180_v41  ;;  %v2185_v20 = vsel %vm2181_vm11, %v2172_v46, %v2174_v53 }
 0x102   : > { %2049 = vmatpush1.bf16.msra.mxu1 %v1979_v62  ;;  %3717 = vrot.lane.b32.xlu0 %v18081_v16, %s22186_s13  ;;  %v2180_v37 = vpop.permute.xlu1 %2179  ;;  %v2202_v7 = vand.u32 %v2185_v20, %v18202_v21 }
 0x103   : > { %2066 = vmatprep.mubr.bf16.mxu1 %v22158_v14  ;;  %16734 = vmatprep.subr.bf16.mxu1 %v22197_v50 }
 0x104   : > { %v2178_v41 = vpop.permute.xlu0 %2177  ;;  %3929 = vrot.lane.b32.xlu1 %v18064_v12, %s22149_s21  ;;  %15186 = vmatmul.mubr.msk.bf16.vlgmr.msra.gmra.mxu0 %vm464_vm3, %v15185_v34 }
 0x105   : > { %2090 = vmatpush1.bf16.msra.mxu0 %v1985_v2  ;;  %2107 = vmatprep.mubr.bf16.mxu0 %v22158_v14  ;;  %v2187_v62 = vsel %vm2181_vm11, %v2176_v26, %v2178_v41  ;;  %v2193_v2 = vand.u32 %v2182_v27, %v18202_v21 }
 0x106   : > { %3927 = vrot.lane.b32.xlu0 %v18068_v13, %s22149_s21  ;;  %v2390_v0 = vpop.permute.xlu1 %2389  ;;  %2227 = vmatprep.subr.bf16.mxu0 %v2196_v24  ;;  %v2208_v22 = vand.u32 %v2187_v62, %v18202_v21  ;;  %v2184_v24 = vsel %vm2181_vm11, %v2170_v63, %v2172_v46 }
 0x107   : > { %v2199_v20 = vand.u32 %v2184_v24, %v18202_v21 }
 0x108   : > { %v2388_v57 = vpop.permute.xlu0 %2387  ;;  %3931 = vrot.lane.b32.xlu1 %v18077_v15, %s22149_s21 }
 0x109   : > { %15187 = vmatmul.mubr.msk.bf16.vlgmr.msra.gmra.mxu1 %vm464_vm3, %v15185_v34  ;;  %v2403_v46 = vsel %vm2401_vm12, %v2388_v57, %v2390_v0 }
 0x10a   : > { %16735 = vmatpush3.bf16.msra.mxu1 %v1991_v49  ;;  %3925 = vrot.lane.b32.xlu0 %v18058_v8, %s22149_s21  ;;  %v2392_v3 = vpop.permute.xlu1 %2391  ;;  %v2186_v49 = vsel %vm2181_vm11, %v2174_v53, %v2176_v26  ;;  %v2416_v53 = vand.u32 %v2403_v46, %v18202_v21 }
 0x10b   : > { %16736 = vmatprep.mubr.msk.bf16.mxu1 %vm17964_vm5, %v22197_v50  ;;  %2268 = vmatprep.subr.bf16.mxu1 %v2202_v7  ;;  %v2205_v62 = vand.u32 %v2186_v49, %v18202_v21  ;;  %v15190_v7 = vld [vmem:[%s22127_s1 + $0x20] sm:$0x7] }
 0x10c   : > { %v2386_v40 = vpop.permute.xlu0 %2385  ;;  %3935 = vrot.lane.b32.xlu1 %v18087_v17, %s22149_s21  ;;  %15188 = vmatmul.mubr.msk.bf16.vlgmr.msra.gmra.mxu0 %vm464_vm3, %v15185_v34 }
 0x10d   : > { %2228 = vmatpush1.bf16.msra.mxu0 %v2193_v2  ;;  %2245 = vmatprep.mubr.bf16.mxu0 %v22158_v14  ;;  %v2188_v2 = vsel %vm2181_vm11, %v2178_v41, %v2180_v37  ;;  %v2402_v37 = vsel %vm2401_vm12, %v2386_v40, %v2388_v57 }
 0x10e   : > { %3933 = vrot.lane.b32.xlu0 %v18060_v11, %s22149_s21  ;;  %v2396_v63 = vpop.permute.xlu1 %2395  ;;  %2309 = vmatprep.subr.bf16.mxu0 %v2208_v22  ;;  %v2211_v24 = vand.u32 %v2188_v2, %v18202_v21 }
 0x110   : > { %v2394_v27 = vpop.permute.xlu0 %2393  ;;  %3939 = vrot.lane.b32.xlu1 %v18095_v18, %s22149_s21 }
 0x111   : > { %16737 = vmatmul.mubr.msk.bf16.vlgmr.msra.gmra.mxu1 %vm464_vm3, %v15185_v34  ;;  %v2405_v22 = vsel %vm2401_vm12, %v2392_v3, %v2394_v27 }
 0x112   : > { %2269 = vmatpush1.bf16.msra.mxu1 %v2199_v20  ;;  %3937 = vrot.lane.b32.xlu0 %v18081_v16, %s22149_s21  ;;  %v2400_v26 = vpop.permute.xlu1 %2399  ;;  %v2422_v49 = vand.u32 %v2405_v22, %v18202_v21  ;;  %s22177_s21 = smov 29  }
 0x113   : > { %2286 = vmatprep.mubr.bf16.mxu1 %v22158_v14  ;;  %16740 = vmatprep.subr.bf16.mxu1 %v22197_v50 }
 0x114   : > { %v2398_v34 = vpop.permute.xlu0 %2397  ;;  %4149 = vrot.lane.b32.xlu1 %v18064_v12, %s22151_s16  ;;  %15191 = vmatmul.mubr.msk.bf16.vlgmr.msra.gmra.mxu0 %vm464_vm3, %v15190_v7 }
 0x115   : > { %2310 = vmatpush1.bf16.msra.mxu0 %v2205_v62  ;;  %2327 = vmatprep.mubr.bf16.mxu0 %v22158_v14  ;;  %v2407_v20 = vsel %vm2401_vm12, %v2396_v63, %v2398_v34  ;;  %v2413_v62 = vand.u32 %v2402_v37, %v18202_v21 }
 0x116   : > { %4147 = vrot.lane.b32.xlu0 %v18068_v13, %s22151_s16  ;;  %v2610_v41 = vpop.permute.xlu1 %2609  ;;  %2447 = vmatprep.subr.bf16.mxu0 %v2416_v53  ;;  %v2428_v40 = vand.u32 %v2407_v20, %v18202_v21  ;;  %v2404_v53 = vsel %vm2401_vm12, %v2390_v0, %v2392_v3 }
 0x117   : > { %v2419_v22 = vand.u32 %v2404_v53, %v18202_v21 }
 0x118   : > { %v2608_v46 = vpop.permute.xlu0 %2607  ;;  %4151 = vrot.lane.b32.xlu1 %v18077_v15, %s22151_s16 }
 0x119   : > { %15192 = vmatmul.mubr.msk.bf16.vlgmr.msra.gmra.mxu1 %vm464_vm3, %v15190_v7  ;;  %v2623_v3 = vsel %vm2621_vm13, %v2608_v46, %v2610_v41 }
 0x11a   : > { %16741 = vmatpush3.bf16.msra.mxu1 %v2211_v24  ;;  %4145 = vrot.lane.b32.xlu0 %v18058_v8, %s22151_s16  ;;  %v2612_v57 = vpop.permute.xlu1 %2611  ;;  %v2406_v24 = vsel %vm2401_vm12, %v2394_v27, %v2396_v63  ;;  %v2636_v27 = vand.u32 %v2623_v3, %v18202_v21 }
 0x11b   : > { %16742 = vmatprep.mubr.msk.bf16.mxu1 %vm17964_vm5, %v22197_v50  ;;  %2488 = vmatprep.subr.bf16.mxu1 %v2422_v49  ;;  %v2425_v20 = vand.u32 %v2406_v24, %v18202_v21  ;;  %v15195_v49 = vld [vmem:[%s22127_s1 + $0x24] sm:$0x7] }
 0x11c   : > { %v2606_v2 = vpop.permute.xlu0 %2605  ;;  %4155 = vrot.lane.b32.xlu1 %v18087_v17, %s22151_s16  ;;  %15193 = vmatmul.mubr.msk.bf16.vlgmr.msra.gmra.mxu0 %vm464_vm3, %v15190_v7 }
 0x11d   : > { %2448 = vmatpush1.bf16.msra.mxu0 %v2413_v62  ;;  %2465 = vmatprep.mubr.bf16.mxu0 %v22158_v14  ;;  %v2408_v62 = vsel %vm2401_vm12, %v2398_v34, %v2400_v26  ;;  %v2622_v26 = vsel %vm2621_vm13, %v2606_v2, %v2608_v46 }
 0x11e   : > { %4153 = vrot.lane.b32.xlu0 %v18060_v11, %s22151_s16  ;;  %v2616_v0 = vpop.permute.xlu1 %2615  ;;  %2529 = vmatprep.subr.bf16.mxu0 %v2428_v40  ;;  %v2431_v53 = vand.u32 %v2408_v62, %v18202_v21 }
 0x120   : > { %v2614_v37 = vpop.permute.xlu0 %2613  ;;  %4159 = vrot.lane.b32.xlu1 %v18095_v18, %s22151_s16 }
 0x121   : > { %16743 = vmatmul.mubr.msk.bf16.vlgmr.msra.gmra.mxu1 %vm464_vm3, %v15190_v7  ;;  %v2625_v40 = vsel %vm2621_vm13, %v2612_v57, %v2614_v37 }
 0x122   : > { %2489 = vmatpush1.bf16.msra.mxu1 %v2419_v22  ;;  %4157 = vrot.lane.b32.xlu0 %v18081_v16, %s22151_s16  ;;  %v2620_v63 = vpop.permute.xlu1 %2619  ;;  %v2642_v24 = vand.u32 %v2625_v40, %v18202_v21  ;;  %s22166_s16 = smov 28  }
 0x123   : > { %2506 = vmatprep.mubr.bf16.mxu1 %v22158_v14  ;;  %16746 = vmatprep.subr.bf16.mxu1 %v22197_v50 }
 0x124   : > { %v2618_v7 = vpop.permute.xlu0 %2617  ;;  %4369 = vrot.lane.b32.xlu1 %v18064_v12, %s22177_s21  ;;  %15196 = vmatmul.mubr.msk.bf16.vlgmr.msra.gmra.mxu0 %vm464_vm3, %v15195_v49 }
 0x125   : > { %2530 = vmatpush1.bf16.msra.mxu0 %v2425_v20  ;;  %2547 = vmatprep.mubr.bf16.mxu0 %v22158_v14  ;;  %v2627_v22 = vsel %vm2621_vm13, %v2616_v0, %v2618_v7  ;;  %v2633_v20 = vand.u32 %v2622_v26, %v18202_v21 }
 0x126   : > { %4367 = vrot.lane.b32.xlu0 %v18068_v13, %s22177_s21  ;;  %v2830_v34 = vpop.permute.xlu1 %2829  ;;  %2667 = vmatprep.subr.bf16.mxu0 %v2636_v27  ;;  %v2648_v2 = vand.u32 %v2627_v22, %v18202_v21  ;;  %v2624_v27 = vsel %vm2621_vm13, %v2610_v41, %v2612_v57 }
 0x127   : > { %v2639_v40 = vand.u32 %v2624_v27, %v18202_v21 }
 0x128   : > { %v2828_v3 = vpop.permute.xlu0 %2827  ;;  %4371 = vrot.lane.b32.xlu1 %v18077_v15, %s22177_s21 }
 0x129   : > { %15197 = vmatmul.mubr.msk.bf16.vlgmr.msra.gmra.mxu1 %vm464_vm3, %v15195_v49  ;;  %v2843_v57 = vsel %vm22172_vm14, %v2828_v3, %v2830_v34 }
 0x12a   : > { %16747 = vmatpush3.bf16.msra.mxu1 %v2431_v53  ;;  %4365 = vrot.lane.b32.xlu0 %v18058_v8, %s22177_s21  ;;  %v2832_v46 = vpop.permute.xlu1 %2831  ;;  %v2626_v53 = vsel %vm2621_vm13, %v2614_v37, %v2616_v0  ;;  %v2856_v37 = vand.u32 %v2843_v57, %v18202_v21 }
 0x12b   : > { %16748 = vmatprep.mubr.msk.bf16.mxu1 %vm17964_vm5, %v22197_v50  ;;  %2708 = vmatprep.subr.bf16.mxu1 %v2642_v24  ;;  %v2645_v22 = vand.u32 %v2626_v53, %v18202_v21  ;;  %v15200_v24 = vld [vmem:[%s22127_s1 + $0x28] sm:$0x7] }
 0x12c   : > { %v2826_v62 = vpop.permute.xlu0 %2825  ;;  %4375 = vrot.lane.b32.xlu1 %v18087_v17, %s22177_s21  ;;  %15198 = vmatmul.mubr.msk.bf16.vlgmr.msra.gmra.mxu0 %vm464_vm3, %v15195_v49 }
 0x12d   : > { %2668 = vmatpush1.bf16.msra.mxu0 %v2633_v20  ;;  %2685 = vmatprep.mubr.bf16.mxu0 %v22158_v14  ;;  %v2628_v20 = vsel %vm2621_vm13, %v2618_v7, %v2620_v63  ;;  %v2842_v63 = vsel %vm22172_vm14, %v2826_v62, %v2828_v3  ;;  %v2844_v62 = vsel %vm22172_vm14, %v2830_v34, %v2832_v46 }
 0x12e   : > { %4373 = vrot.lane.b32.xlu0 %v18060_v11, %s22177_s21  ;;  %v2836_v41 = vpop.permute.xlu1 %2835  ;;  %2749 = vmatprep.subr.bf16.mxu0 %v2648_v2  ;;  %v2651_v27 = vand.u32 %v2628_v20, %v18202_v21  ;;  %v15256_v20 = vld.sshfl [vmem:[%s18054_s22 + $0x10] sm:$0x3 pattern:$0x76325410]  ;;  %s22213_s22 = smov 31  }
 0x130   : > { %v2834_v26 = vpop.permute.xlu0 %2833  ;;  %4379 = vrot.lane.b32.xlu1 %v18095_v18, %s22177_s21 }
 0x131   : > { %16749 = vmatmul.mubr.msk.bf16.vlgmr.msra.gmra.mxu1 %vm464_vm3, %v15195_v49  ;;  %v2845_v2 = vsel %vm22172_vm14, %v2832_v46, %v2834_v26 }
 0x132   : > { %2709 = vmatpush1.bf16.msra.mxu1 %v2639_v40  ;;  %4377 = vrot.lane.b32.xlu0 %v18081_v16, %s22177_s21  ;;  %v2840_v0 = vpop.permute.xlu1 %2839  ;;  %v2862_v53 = vand.u32 %v2845_v2, %v18202_v21 }
 0x133   : > { %2726 = vmatprep.mubr.bf16.mxu1 %v22158_v14  ;;  %16752 = vmatprep.subr.bf16.mxu1 %v22197_v50 }
 0x134   : > { %v2838_v49 = vpop.permute.xlu0 %2837  ;;  %4589 = vrot.lane.b32.xlu1 %v18064_v12, %s22166_s16  ;;  %15201 = vmatmul.mubr.msk.bf16.vlgmr.msra.gmra.mxu0 %vm464_vm3, %v15200_v24  ;;  %v2853_v12 = vand.u32 %v2842_v63, %v18202_v21 }
 0x135   : > { %2750 = vmatpush1.bf16.msra.mxu0 %v2645_v22  ;;  %2767 = vmatprep.mubr.bf16.mxu0 %v22158_v14  ;;  %v2847_v40 = vsel %vm22172_vm14, %v2836_v41, %v2838_v49  ;;  %v2846_v22 = vsel %vm22172_vm14, %v2834_v26, %v2836_v41  ;;  %v15205_v41 = vld [vmem:[%s22127_s1 + $0x2c] sm:$0x7]  ;;  %v2848_v2 = vsel %vm22172_vm14, %v2838_v49, %v2840_v0 }
 0x136   : > { %4587 = vrot.lane.b32.xlu0 %v18068_v13, %s22166_s16  ;;  %v3050_v7 = vpop.permute.xlu1 %3049  ;;  %2887 = vmatprep.subr.bf16.mxu0 %v2856_v37  ;;  %v2868_v13 = vand.u32 %v2847_v40, %v18202_v21 }
 0x138   : > { %v3048_v57 = vpop.permute.xlu0 %3047  ;;  %4591 = vrot.lane.b32.xlu1 %v18077_v15, %s22166_s16 }
 0x139   : > { %15202 = vmatmul.mubr.msk.bf16.vlgmr.msra.gmra.mxu1 %vm464_vm3, %v15200_v24  ;;  %v3063_v46 = vsel %vm22169_vm15, %v3048_v57, %v3050_v7 }
 0x13a   : > { %16753 = vmatpush3.bf16.msra.mxu1 %v2651_v27  ;;  %4585 = vrot.lane.b32.xlu0 %v18058_v8, %s22166_s16  ;;  %v3052_v3 = vpop.permute.xlu1 %3051  ;;  %v2859_v8 = vand.u32 %v2844_v62, %v18202_v21  ;;  %v3076_v26 = vand.u32 %v3063_v46, %v18202_v21 }
 0x13b   : > { %16754 = vmatprep.mubr.msk.bf16.mxu1 %vm17964_vm5, %v22197_v50  ;;  %2928 = vmatprep.subr.bf16.mxu1 %v2862_v53  ;;  %v3064_v62 = vsel %vm22169_vm15, %v3050_v7, %v3052_v3 }
 0x13c   : > { %v3046_v15 = vpop.permute.xlu0 %3045  ;;  %4595 = vrot.lane.b32.xlu1 %v18087_v17, %s22166_s16  ;;  %15203 = vmatmul.mubr.msk.bf16.vlgmr.msra.gmra.mxu0 %vm464_vm3, %v15200_v24  ;;  %v2865_v17 = vand.u32 %v2846_v22, %v18202_v21 }
 0x13d   : > { %2888 = vmatpush1.bf16.msra.mxu0 %v2853_v12  ;;  %2905 = vmatprep.mubr.bf16.mxu0 %v22158_v14  ;;  %v3062_v63 = vsel %vm22169_vm15, %v3046_v15, %v3048_v57 }
 0x13e   : > { %4593 = vrot.lane.b32.xlu0 %v18060_v11, %s22166_s16  ;;  %v3056_v34 = vpop.permute.xlu1 %3055  ;;  %2969 = vmatprep.subr.bf16.mxu0 %v2868_v13  ;;  %v3073_v12 = vand.u32 %v3062_v63, %v18202_v21 }
 0x140   : > { %v3054_v37 = vpop.permute.xlu0 %3053  ;;  %4599 = vrot.lane.b32.xlu1 %v18095_v18, %s22166_s16 }
 0x141   : > { %16755 = vmatmul.mubr.msk.bf16.vlgmr.msra.gmra.mxu1 %vm464_vm3, %v15200_v24  ;;  %v3065_v24 = vsel %vm22169_vm15, %v3052_v3, %v3054_v37  ;;  %v3066_v22 = vsel %vm22169_vm15, %v3054_v37, %v3056_v34 }
 0x142   : > { %2929 = vmatpush1.bf16.msra.mxu1 %v2859_v8  ;;  %4597 = vrot.lane.b32.xlu0 %v18081_v16, %s22166_s16  ;;  %v3060_v11 = vpop.permute.xlu1 %3059  ;;  %v2871_v16 = vand.u32 %v2848_v2, %v18202_v21  ;;  %v3082_v40 = vand.u32 %v3065_v24, %v18202_v21  ;;  %v3079_v8 = vand.u32 %v3064_v62, %v18202_v21  ;;  %s22212_s16 = smov 60  }
 0x143   : > { %2946 = vmatprep.mubr.bf16.mxu1 %v22158_v14  ;;  %16758 = vmatprep.subr.bf16.mxu1 %v22197_v50  ;;  %v3085_v3 = vand.u32 %v3066_v22, %v18202_v21 }
 0x144   : > { %v3058_v27 = vpop.permute.xlu0 %3057  ;;  %5172 = vrot.lane.b32.xlu1 %v15256_v20, %s22188_s24  ;;  %15206 = vmatmul.mubr.msk.bf16.vlgmr.msra.gmra.mxu0 %vm464_vm3, %v15205_v41 }
 0x145   : > { %2970 = vmatpush1.bf16.msra.mxu0 %v2865_v17  ;;  %2987 = vmatprep.mubr.bf16.mxu0 %v22158_v14  ;;  %v3067_v49 = vsel %vm22169_vm15, %v3056_v34, %v3058_v27  ;;  %v3068_v34 = vsel %vm22169_vm15, %v3058_v27, %v3060_v11  ;;  %vm5840_vm15 = vcmask 1045504  }
 0x146   : > { %4991 = vrot.lane.b32.xlu0 %v15256_v20, %s17952_s23  ;;  %v3270_v0 = vpop.permute.xlu1 %3269  ;;  %3107 = vmatprep.subr.bf16.mxu0 %v3076_v26  ;;  %v3088_v57 = vand.u32 %v3067_v49, %v18202_v21 }
 0x148   : > { %v3268_v53 = vpop.permute.xlu0 %3267  ;;  %5534 = vrot.lane.b32.xlu1 %v15256_v20, %s22189_s26 }
 0x149   : > { %15207 = vmatmul.mubr.msk.bf16.vlgmr.msra.gmra.mxu1 %vm464_vm3, %v15205_v41  ;;  %v3283_v17 = vsel %vm22160_vm0, %v3268_v53, %v3270_v0 }
 0x14a   : > { %16759 = vmatpush3.bf16.msra.mxu1 %v2871_v16  ;;  %5353 = vrot.lane.b32.xlu0 %v15256_v20, %s22190_s25  ;;  %v3272_v13 = vpop.permute.xlu1 %3271  ;;  %v15210_v20 = vld [vmem:[%s22127_s1 + $0x30] sm:$0x7]  ;;  %v3296_v2 = vand.u32 %v3283_v17, %v18202_v21 }
 0x14b   : > { %16760 = vmatprep.mubr.msk.bf16.mxu1 %vm17964_vm5, %v22197_v50  ;;  %3148 = vmatprep.subr.bf16.mxu1 %v3082_v40 }
 0x14c   : > { %v3266_v15 = vpop.permute.xlu0 %3265  ;;  %15208 = vmatmul.mubr.msk.bf16.vlgmr.msra.gmra.mxu0 %vm464_vm3, %v15205_v41 }
 0x14d   : > { %3108 = vmatpush1.bf16.msra.mxu0 %v3073_v12  ;;  %3125 = vmatprep.mubr.bf16.mxu0 %v22158_v14  ;;  %v3282_v63 = vsel %vm22160_vm0, %v3266_v15, %v3268_v53  ;;  %v3284_v15 = vsel %vm22160_vm0, %v3270_v0, %v3272_v13 }
 0x14e   : > { %v3276_v46 = vpop.permute.xlu1 %3275  ;;  %3189 = vmatprep.subr.bf16.mxu0 %v3088_v57  ;;  %v3293_v62 = vand.u32 %v3282_v63, %v18202_v21 }
 0x150   : > { %v3274_v7 = vpop.permute.xlu0 %3273 }
 0x151   : > { %16761 = vmatmul.mubr.msk.bf16.vlgmr.msra.gmra.mxu1 %vm464_vm3, %v15205_v41  ;;  %v3285_v37 = vsel %vm22160_vm0, %v3272_v13, %v3274_v7  ;;  %v3091_v41 = vand.u32 %v3068_v34, %v18202_v21  ;;  %v3286_v63 = vsel %vm22160_vm0, %v3274_v7, %v3276_v46 }
 0x152   : > { %3149 = vmatpush1.bf16.msra.mxu1 %v3079_v8  ;;  %v3280_v26 = vpop.permute.xlu1 %3279  ;;  %3166 = vmatprep.mubr.bf16.mxu1 %v22158_v14  ;;  %v3302_v27 = vand.u32 %v3285_v37, %v18202_v21  ;;  %v3305_v43 = vand.u32 %v3286_v63, %v18202_v21 }
 0x153   : > { %16764 = vmatprep.subr.bf16.mxu1 %v22197_v50 }
 0x154   : > { %v527_v24 = vpop.f32.mrf.mxu0  ;;  %v3278_v16 = vpop.permute.xlu0 %3277  ;;  %15211 = vmatmul.mubr.msk.bf16.vlgmr.msra.gmra.mxu0 %vm464_vm3, %v15210_v20 }
 0x155   : > { %3190 = vmatpush1.bf16.msra.mxu0 %v3085_v3  ;;  %3207 = vmatprep.mubr.bf16.mxu0 %v22158_v14  ;;  %v3287_v11 = vsel %vm22160_vm0, %v3276_v46, %v3278_v16  ;;  %v15215_v46 = vld [vmem:[%s22127_s1 + $0x34] sm:$0x7] }
 0x156   : > { %v529_v49 = vpop.f32.mrf.mxu0  ;;  %v18857_v40 = vpop.permute.xlu1 %3489  ;;  %3327 = vmatprep.subr.bf16.mxu0 %v3296_v2  ;;  %v3308_v53 = vand.u32 %v3287_v11, %v18202_v21 }
 0x158   : > { %v531_v12 = vpop.f32.mrf.mxu0  ;;  %v3488_v57 = vpop.permute.xlu0 %3487 }
 0x159   : > { %v568_v8 = vpop.f32.mrf.mxu1  ;;  %15212 = vmatmul.mubr.msk.bf16.vlgmr.msra.gmra.mxu1 %vm464_vm3, %v15210_v20  ;;  %v3503_v0 = vsel %vm22162_vm1, %v3488_v57, %v18857_v40 }
 0x15a   : > { %16765 = vmatpush3.bf16.msra.mxu1 %v3091_v41  ;;  %v532_v22 = vpop.f32.mrf.mxu0  ;;  %v18863_v17 = vpop.permute.xlu1 %3491  ;;  %16766 = vmatprep.mubr.msk.bf16.mxu1 %vm17964_vm5, %v22197_v50  ;;  %v3299_v41 = vand.u32 %v3284_v15, %v18202_v21  ;;  %v3288_v15 = vsel %vm22160_vm0, %v3278_v16, %v3280_v26  ;;  %vm22163_vm0 = vcmask 261120  }
 0x15b   : > { %v570_v3 = vpop.f32.mrf.mxu1  ;;  %3368 = vmatprep.subr.bf16.mxu1 %v3302_v27 }
 0x15c   : > { %v3486_v2 = vpop.permute.xlu0 %3485  ;;  %v18869_v34 = vpop.f32.mrf.mxu0  ;;  %15213 = vmatmul.mubr.msk.bf16.vlgmr.msra.gmra.mxu0 %vm464_vm3, %v15210_v20 }
 0x15d   : > { %v572_v37 = vpop.f32.mrf.mxu1  ;;  %3328 = vmatpush1.bf16.msra.mxu0 %v3293_v62  ;;  %3345 = vmatprep.mubr.bf16.mxu0 %v22158_v14  ;;  %v3502_v26 = vsel %vm22162_vm1, %v3486_v2, %v3488_v57 }
 0x15e   : > { %v18875_v12 = vpop.f32.mrf.mxu0  ;;  %v3496_v11 = vpop.permute.xlu1 %3495  ;;  %3409 = vmatprep.subr.bf16.mxu0 %v3308_v53  ;;  %v3516_v53 = vand.u32 %v3503_v0, %v18202_v21  ;;  %v3311_v0 = vand.u32 %v3288_v15, %v18202_v21 }
 0x15f   : > { %v573_v13 = vpop.f32.mrf.mxu1 }
 0x160   : > { %v3494_v27 = vpop.permute.xlu0 %3493  ;;  %v613_v22 = vpop.f32.mrf.mxu0 }
 0x161   : > { %v18880_v37 = vpop.f32.mrf.mxu1  ;;  %16767 = vmatmul.mubr.msk.bf16.vlgmr.msra.gmra.mxu1 %vm464_vm3, %v15210_v20  ;;  %v3505_v20 = vsel %vm22162_vm1, %v18863_v17, %v3494_v27 }
 0x162   : > { %3369 = vmatpush1.bf16.msra.mxu1 %v3299_v41  ;;  %v614_v7 = vpop.f32.mrf.mxu0  ;;  %v18886_v62 = vpop.permute.xlu1 %3499  ;;  %3386 = vmatprep.mubr.bf16.mxu1 %v22158_v14 }
 0x163   : > { %v16696_v13 = vpop.f32.mrf.mxu1  ;;  %16770 = vmatprep.subr.bf16.mxu1 %v22197_v50 }
 0x164   : > { %v3498_v63 = vpop.permute.xlu0 %3497  ;;  %v714_v22 = vpop.f32.mrf.mxu0  ;;  %15216 = vmatmul.mubr.msk.bf16.vlgmr.msra.gmra.mxu0 %vm464_vm3, %v15215_v46 }
 0x165   : > { %v653_v41 = vpop.f32.mrf.mxu1  ;;  %v18895_v7 = vadd.f32 %v714_v22, %v527_v24  ;;  %3410 = vmatpush1.bf16.msra.mxu0 %v3305_v43  ;;  %3427 = vmatprep.mubr.bf16.mxu0 %v22158_v14  ;;  %v3507_v9 = vsel %vm22162_vm1, %v3496_v11, %v3498_v63  ;;  %v3513_v43 = vand.u32 %v3502_v26, %v18202_v21 }
 0x166   : > { %v716_v16 = vpop.f32.mrf.mxu0  ;;  %v18900_v13 = vpop.permute.xlu1 %3709  ;;  %3547 = vmatprep.subr.bf16.mxu0 %v3516_v53  ;;  %v3522_v41 = vand.u32 %v3505_v20, %v18202_v21 }
 0x167   : > { %v16697_v33 = vpop.f32.mrf.mxu1  ;;  %v18903_v30 = vadd.f32 %v716_v16, %v529_v49  ;;  %v3504_v49 = vsel %vm22162_vm1, %v18857_v40, %v18863_v17  ;;  %v22198_v16 = vmov 0   ;;  %v3506_v40 = vsel %vm22162_vm1, %v3494_v27, %v3496_v11  ;;  %v15220_v11 = vld [vmem:[%s22127_s1 + $0x38] sm:$0x7] }
 0x168   : > { %v3708_v24 = vpop.permute.xlu0 %3707  ;;  %v718_v22 = vpop.f32.mrf.mxu0  ;;  %v3528_v33 = vand.u32 %v3507_v9, %v18202_v21  ;;  %v3519_v9 = vand.u32 %v3504_v49, %v18202_v21 }
 0x169   : > { %v755_v14 = vpop.f32.mrf.mxu1  ;;  %15217 = vmatmul.mubr.msk.bf16.vlgmr.msra.gmra.mxu1 %vm464_vm3, %v15215_v46 }
 0x16a   : > { %v18908_v15 = vadd.f32 %v755_v14, %v568_v8  ;;  %16771 = vmatpush3.bf16.msra.mxu1 %v3311_v0  ;;  %v719_v57 = vpop.f32.mrf.mxu0  ;;  %v18910_v2 = vpop.permute.xlu1 %3711  ;;  %16772 = vmatprep.mubr.msk.bf16.mxu1 %vm17964_vm5, %v22197_v50 }
 0x16b   : > { %v757_v53 = vpop.f32.mrf.mxu1  ;;  %3588 = vmatprep.subr.bf16.mxu1 %v3522_v41 }
 0x16c   : > { %v18918_v20 = vadd.f32 %v757_v53, %v570_v3  ;;  %v3706_v14 = vpop.permute.xlu0 %3705  ;;  %v796_v8 = vpop.f32.mrf.mxu0  ;;  %15218 = vmatmul.mubr.msk.bf16.vlgmr.msra.gmra.mxu0 %vm464_vm3, %v15215_v46  ;;  %v3723_v3 = vsel %vm22163_vm0, %v3708_v24, %v18900_v13 }
 0x16d   : > { %v759_v0 = vpop.f32.mrf.mxu1  ;;  %v18922_v26 = vadd.f32 %v796_v8, %v18869_v34  ;;  %3548 = vmatpush1.bf16.msra.mxu0 %v3513_v43  ;;  %3565 = vmatprep.mubr.bf16.mxu0 %v22198_v16  ;;  %v3525_v43 = vand.u32 %v3506_v40, %v18202_v21 }
 0x16e   : > { %v798_v17 = vpop.f32.mrf.mxu0  ;;  %v3716_v41 = vpop.permute.xlu1 %3715  ;;  %3629 = vmatprep.subr.bf16.mxu0 %v3528_v33  ;;  %v3508_v0 = vsel %vm22162_vm1, %v3498_v63, %v18886_v62  ;;  %v3722_v62 = vsel %vm22163_vm0, %v3706_v14, %v3708_v24  ;;  %vm22164_vm1 = vcmask 252928  }
 0x16f   : > { %v18930_v22 = vadd.f32 %v798_v17, %v18875_v12  ;;  %v760_v57 = vpop.f32.mrf.mxu1  ;;  %v3736_v12 = vand.u32 %v3723_v3, %v18202_v21  ;;  %v3531_v3 = vand.u32 %v3508_v0, %v18202_v21  ;;  %v3724_v0 = vsel %vm22163_vm0, %v18900_v13, %v18910_v2 }
 0x170   : > { %v3714_v53 = vpop.permute.xlu0 %3713  ;;  %v800_v34 = vpop.f32.mrf.mxu0 }
 0x171   : > { %v837_v8 = vpop.f32.mrf.mxu1  ;;  %16773 = vmatmul.mubr.msk.bf16.vlgmr.msra.gmra.mxu1 %vm464_vm3, %v15215_v46  ;;  %v3725_v46 = vsel %vm22163_vm0, %v18910_v2, %v3714_v53  ;;  %v3726_v13 = vsel %vm22163_vm0, %v3714_v53, %v3716_v41 }
 0x172   : > { %v18938_v27 = vadd.f32 %v837_v8, %v18880_v37  ;;  %3589 = vmatpush1.bf16.msra.mxu1 %v3519_v9  ;;  %v801_v33 = vpop.f32.mrf.mxu0  ;;  %v18940_v49 = vpop.permute.xlu1 %3719  ;;  %3606 = vmatprep.mubr.bf16.mxu1 %v22198_v16 }
 0x173   : > { %v16702_v40 = vpop.f32.mrf.mxu1  ;;  %16776 = vmatprep.subr.bf16.mxu1 %v22197_v50 }
 0x174   : > { %v3718_v17 = vpop.permute.xlu0 %3717  ;;  %v927_v37 = vpop.f32.mrf.mxu0  ;;  %15221 = vmatmul.mubr.msk.bf16.vlgmr.msra.gmra.mxu0 %vm464_vm3, %v15220_v11 }
 0x175   : > { %v840_v9 = vpop.f32.mrf.mxu1  ;;  %v18951_v57 = vadd.f32 %v927_v37, %v18895_v7  ;;  %3630 = vmatpush1.bf16.msra.mxu0 %v3525_v43  ;;  %3647 = vmatprep.mubr.bf16.mxu0 %v22198_v16  ;;  %v3727_v8 = vsel %vm22163_vm0, %v3716_v41, %v3718_v17  ;;  %v3742_v7 = vand.u32 %v3725_v46, %v18202_v21  ;;  %v15225_v41 = vld [vmem:[%s22127_s1 + $0x3c] sm:$0x7] }
 0x176   : > { %v929_v63 = vpop.f32.mrf.mxu0  ;;  %v18956_v34 = vpop.permute.xlu1 %3929  ;;  %3767 = vmatprep.subr.bf16.mxu0 %v3736_v12  ;;  %v3733_v9 = vand.u32 %v3722_v62, %v18202_v21 }
 0x177   : > { %v18960_v33 = vadd.f32 %v929_v63, %v18903_v30  ;;  %v16703_v40 = vpop.f32.mrf.mxu1  ;;  %v3748_v30 = vand.u32 %v3727_v8, %v18202_v21  ;;  %v3739_v8 = vand.u32 %v3724_v0, %v18202_v21 }
 0x178   : > { %v3928_v37 = vpop.permute.xlu0 %3927  ;;  %v931_v43 = vpop.f32.mrf.mxu0 }
 0x179   : > { %v968_v10 = vpop.f32.mrf.mxu1  ;;  %15222 = vmatmul.mubr.msk.bf16.vlgmr.msra.gmra.mxu1 %vm464_vm3, %v15220_v11 }
 0x17a   : > { %v18966_v24 = vadd.f32 %v968_v10, %v18908_v15  ;;  %16777 = vmatpush3.bf16.msra.mxu1 %v3531_v3  ;;  %v932_v14 = vpop.f32.mrf.mxu0  ;;  %v18968_v12 = vpop.permute.xlu1 %3931  ;;  %16778 = vmatprep.mubr.msk.bf16.mxu1 %vm17964_vm5, %v22197_v50 }
 0x17b   : > { %v970_v46 = vpop.f32.mrf.mxu1  ;;  %3808 = vmatprep.subr.bf16.mxu1 %v3742_v7 }
 0x17c   : > { %v18977_v62 = vadd.f32 %v970_v46, %v18918_v20  ;;  %v3926_v10 = vpop.permute.xlu0 %3925  ;;  %v1009_v15 = vpop.f32.mrf.mxu0  ;;  %15223 = vmatmul.mubr.msk.bf16.vlgmr.msra.gmra.mxu0 %vm464_vm3, %v15220_v11  ;;  %v3943_v20 = vsel %vm22164_vm1, %v3928_v37, %v18956_v34 }
 0x17d   : > { %v972_v3 = vpop.f32.mrf.mxu1  ;;  %v18981_v63 = vadd.f32 %v1009_v15, %v18922_v26  ;;  %3768 = vmatpush1.bf16.msra.mxu0 %v3733_v9  ;;  %3785 = vmatprep.mubr.bf16.mxu0 %v22198_v16  ;;  %v3745_v9 = vand.u32 %v3726_v13, %v18202_v21  ;;  %v3728_v15 = vsel %vm22163_vm0, %v3718_v17, %v18940_v49  ;;  %vm22165_vm0 = vcmask 244736  }
 0x17e   : > { %v1011_v2 = vpop.f32.mrf.mxu0  ;;  %v3936_v40 = vpop.permute.xlu1 %3935  ;;  %3849 = vmatprep.subr.bf16.mxu0 %v3748_v30  ;;  %v3942_v49 = vsel %vm22164_vm1, %v3926_v10, %v3928_v37 }
 0x17f   : > { %v18989_v7 = vadd.f32 %v1011_v2, %v18930_v22  ;;  %v973_v43 = vpop.f32.mrf.mxu1  ;;  %v3956_v22 = vand.u32 %v3943_v20, %v18202_v21  ;;  %v3751_v20 = vand.u32 %v3728_v15, %v18202_v21  ;;  %v3944_v15 = vsel %vm22164_vm1, %v18956_v34, %v18968_v12 }
 0x180   : > { %v3934_v14 = vpop.permute.xlu0 %3933  ;;  %v1013_v26 = vpop.f32.mrf.mxu0 }
 0x181   : > { %v1050_v46 = vpop.f32.mrf.mxu1  ;;  %16779 = vmatmul.mubr.msk.bf16.vlgmr.msra.gmra.mxu1 %vm464_vm3, %v15220_v11  ;;  %v3945_v11 = vsel %vm22164_vm1, %v18968_v12, %v3934_v14  ;;  %v3946_v34 = vsel %vm22164_vm1, %v3934_v14, %v3936_v40 }
 0x182   : > { %v18997_v53 = vadd.f32 %v1050_v46, %v18938_v27  ;;  %3809 = vmatpush1.bf16.msra.mxu1 %v3739_v8  ;;  %v1014_v30 = vpop.f32.mrf.mxu0  ;;  %v18999_v0 = vpop.permute.xlu1 %3939  ;;  %3826 = vmatprep.mubr.bf16.mxu1 %v22198_v16 }
 0x183   : > { %v16708_v3 = vpop.f32.mrf.mxu1  ;;  %16782 = vmatprep.subr.bf16.mxu1 %v22197_v50 }
 0x184   : > { %v3938_v13 = vpop.permute.xlu0 %3937  ;;  %v1147_v27 = vpop.f32.mrf.mxu0  ;;  %15226 = vmatmul.mubr.msk.bf16.vlgmr.msra.gmra.mxu0 %vm464_vm3, %v15225_v41 }
 0x185   : > { %v1053_v8 = vpop.f32.mrf.mxu1  ;;  %v19010_v2 = vadd.f32 %v1147_v27, %v18951_v57  ;;  %3850 = vmatpush1.bf16.msra.mxu0 %v3745_v9  ;;  %3867 = vmatprep.mubr.bf16.mxu0 %v22198_v16  ;;  %v3947_v26 = vsel %vm22164_vm1, %v3936_v40, %v3938_v13  ;;  %v3962_v57 = vand.u32 %v3945_v11, %v18202_v21  ;;  %v15230_v40 = vld [vmem:[%s22127_s1 + $0x40] sm:$0x7] }
 0x186   : > { %v1149_v17 = vpop.f32.mrf.mxu0  ;;  %v19015_v43 = vpop.permute.xlu1 %4149  ;;  %3987 = vmatprep.subr.bf16.mxu0 %v3956_v22  ;;  %v3953_v27 = vand.u32 %v3942_v49, %v18202_v21 }
 0x187   : > { %v19019_v46 = vadd.f32 %v1149_v17, %v18960_v33  ;;  %v16709_v30 = vpop.f32.mrf.mxu1  ;;  %v3968_v33 = vand.u32 %v3947_v26, %v18202_v21  ;;  %v3959_v26 = vand.u32 %v3944_v15, %v18202_v21 }
 0x188   : > { %v4148_v3 = vpop.permute.xlu0 %4147  ;;  %v1151_v9 = vpop.f32.mrf.mxu0 }
 0x189   : > { %v1188_v8 = vpop.f32.mrf.mxu1  ;;  %15227 = vmatmul.mubr.msk.bf16.vlgmr.msra.gmra.mxu1 %vm464_vm3, %v15225_v41 }
 0x18a   : > { %v19025_v37 = vadd.f32 %v1188_v8, %v18966_v24  ;;  %16783 = vmatpush3.bf16.msra.mxu1 %v3751_v20  ;;  %v1152_v10 = vpop.f32.mrf.mxu0  ;;  %v19027_v22 = vpop.permute.xlu1 %4151  ;;  %16784 = vmatprep.mubr.msk.bf16.mxu1 %vm17964_vm5, %v22197_v50 }
 0x18b   : > { %v1190_v11 = vpop.f32.mrf.mxu1  ;;  %4028 = vmatprep.subr.bf16.mxu1 %v3962_v57 }
 0x18c   : > { %v19036_v49 = vadd.f32 %v1190_v11, %v18977_v62  ;;  %v4146_v24 = vpop.permute.xlu0 %4145  ;;  %v1229_v20 = vpop.f32.mrf.mxu0  ;;  %15228 = vmatmul.mubr.msk.bf16.vlgmr.msra.gmra.mxu0 %vm464_vm3, %v15225_v41  ;;  %v4163_v62 = vsel %vm22165_vm0, %v4148_v3, %v19015_v43 }
 0x18d   : > { %v1192_v17 = vpop.f32.mrf.mxu1  ;;  %v19040_v30 = vadd.f32 %v1229_v20, %v18981_v63  ;;  %3988 = vmatpush1.bf16.msra.mxu0 %v3953_v27  ;;  %4005 = vmatprep.mubr.bf16.mxu0 %v22198_v16  ;;  %v3965_v27 = vand.u32 %v3946_v34, %v18202_v21  ;;  %v3948_v20 = vsel %vm22164_vm1, %v3938_v13, %v18999_v0  ;;  %vm22168_vm1 = vcmask 236544  }
 0x18e   : > { %v1231_v12 = vpop.f32.mrf.mxu0  ;;  %v4156_v57 = vpop.permute.xlu1 %4155  ;;  %4069 = vmatprep.subr.bf16.mxu0 %v3968_v33  ;;  %v4162_v0 = vsel %vm22165_vm0, %v4146_v24, %v4148_v3 }
 0x18f   : > { %v19048_v9 = vadd.f32 %v1231_v12, %v18989_v7  ;;  %v1193_v8 = vpop.f32.mrf.mxu1  ;;  %v4176_v7 = vand.u32 %v4163_v62, %v18202_v21  ;;  %v3971_v62 = vand.u32 %v3948_v20, %v18202_v21  ;;  %v4164_v20 = vsel %vm22165_vm0, %v19015_v43, %v19027_v22 }
 0x190   : > { %v4154_v10 = vpop.permute.xlu0 %4153  ;;  %v1233_v63 = vpop.f32.mrf.mxu0 }
 0x191   : > { %v1270_v11 = vpop.f32.mrf.mxu1  ;;  %16785 = vmatmul.mubr.msk.bf16.vlgmr.msra.gmra.mxu1 %vm464_vm3, %v15225_v41  ;;  %v4165_v41 = vsel %vm22165_vm0, %v19027_v22, %v4154_v10 }
 0x192   : > { %v19056_v14 = vadd.f32 %v1270_v11, %v18997_v53  ;;  %4029 = vmatpush1.bf16.msra.mxu1 %v3959_v26  ;;  %v1234_v33 = vpop.f32.mrf.mxu0  ;;  %v19058_v15 = vpop.permute.xlu1 %4159  ;;  %4046 = vmatprep.mubr.bf16.mxu1 %v22198_v16 }
 0x193   : > { %v16714_v17 = vpop.f32.mrf.mxu1  ;;  %16788 = vmatprep.subr.bf16.mxu1 %v22197_v50 }
 0x194   : > { %v4158_v34 = vpop.permute.xlu0 %4157  ;;  %v1367_v53 = vpop.f32.mrf.mxu0  ;;  %15231 = vmatmul.mubr.msk.bf16.vlgmr.msra.gmra.mxu0 %vm464_vm3, %v15230_v40 }
 0x195   : > { %v1273_v26 = vpop.f32.mrf.mxu1  ;;  %v19069_v12 = vadd.f32 %v1367_v53, %v19010_v2  ;;  %4070 = vmatpush1.bf16.msra.mxu0 %v3965_v27  ;;  %4087 = vmatprep.mubr.bf16.mxu0 %v22198_v16  ;;  %v4167_v63 = vsel %vm22165_vm0, %v4156_v57, %v4158_v34  ;;  %v4182_v2 = vand.u32 %v4165_v41, %v18202_v21 }
 0x196   : > { %v1369_v13 = vpop.f32.mrf.mxu0  ;;  %v19074_v8 = vpop.permute.xlu1 %4369  ;;  %4207 = vmatprep.subr.bf16.mxu0 %v4176_v7  ;;  %v4173_v53 = vand.u32 %v4162_v0, %v18202_v21 }
 0x197   : > { %v19078_v11 = vadd.f32 %v1369_v13, %v19019_v46  ;;  %v16715_v33 = vpop.f32.mrf.mxu1  ;;  %v4188_v46 = vand.u32 %v4167_v63, %v18202_v21  ;;  %v4179_v63 = vand.u32 %v4164_v20, %v18202_v21  ;;  %v4168_v20 = vsel %vm22165_vm0, %v4158_v34, %v19058_v15 }
 0x198   : > { %v4368_v17 = vpop.permute.xlu0 %4367  ;;  %v1371_v27 = vpop.f32.mrf.mxu0 }
 0x199   : > { %v1408_v26 = vpop.f32.mrf.mxu1  ;;  %15232 = vmatmul.mubr.msk.bf16.vlgmr.msra.gmra.mxu1 %vm464_vm3, %v15230_v40  ;;  %v4166_v27 = vsel %vm22165_vm0, %v4154_v10, %v4156_v57  ;;  %v15235_v57 = vld [vmem:[%s22127_s1 + $0x44] sm:$0x7]  ;;  %vm4601_vm0 = vcmask 228352  }
 0x19a   : > { %v19084_v3 = vadd.f32 %v1408_v26, %v19025_v37  ;;  %16789 = vmatpush3.bf16.msra.mxu1 %v3971_v62  ;;  %v1372_v24 = vpop.f32.mrf.mxu0  ;;  %v19086_v7 = vpop.permute.xlu1 %4371  ;;  %16790 = vmatprep.mubr.msk.bf16.mxu1 %vm17964_vm5, %v22197_v50 }
 0x19b   : > { %v1410_v41 = vpop.f32.mrf.mxu1  ;;  %4248 = vmatprep.subr.bf16.mxu1 %v4182_v2 }
 0x19c   : > { %v1499_v0 = vadd.f32 %v1410_v41, %v19036_v49  ;;  %v4366_v37 = vpop.permute.xlu0 %4365  ;;  %v1449_v13 = vpop.f32.mrf.mxu0  ;;  %15233 = vmatmul.mubr.msk.bf16.vlgmr.msra.gmra.mxu0 %vm464_vm3, %v15230_v40  ;;  %v4383_v49 = vsel %vm22168_vm1, %v4368_v17, %v19074_v8 }
 0x19d   : > { %v1412_v62 = vpop.f32.mrf.mxu1  ;;  %v1500_v33 = vadd.f32 %v1449_v13, %v19040_v30  ;;  %4208 = vmatpush1.bf16.msra.mxu0 %v4173_v53  ;;  %4225 = vmatprep.mubr.bf16.mxu0 %v22198_v16  ;;  %v4185_v30 = vand.u32 %v4166_v27, %v18202_v21  ;;  %v4382_v15 = vsel %vm22168_vm1, %v4366_v37, %v4368_v17 }
 0x19e   : > { %v1451_v43 = vpop.f32.mrf.mxu0  ;;  %v4376_v22 = vpop.permute.xlu1 %4375  ;;  %4289 = vmatprep.subr.bf16.mxu0 %v4188_v46 }
 0x19f   : > { %v1501_v2 = vadd.f32 %v1451_v43, %v19048_v9  ;;  %v1413_v26 = vpop.f32.mrf.mxu1  ;;  %v4396_v9 = vand.u32 %v4383_v49, %v18202_v21  ;;  %v4191_v49 = vand.u32 %v4168_v20, %v18202_v21 }
 0x1a0   : > { %v4374_v24 = vpop.permute.xlu0 %4373  ;;  %v1453_v41 = vpop.f32.mrf.mxu0 }
 0x1a1   : > { %v1490_v53 = vpop.f32.mrf.mxu1  ;;  %16791 = vmatmul.mubr.msk.bf16.vlgmr.msra.gmra.mxu1 %vm464_vm3, %v15230_v40  ;;  %v4385_v40 = vsel %vm22168_vm1, %v19086_v7, %v4374_v24 }
 0x1a2   : > { %v1502_v10 = vadd.f32 %v1490_v53, %v19056_v14  ;;  %4249 = vmatpush1.bf16.msra.mxu1 %v4179_v63  ;;  %v1454_v46 = vpop.f32.mrf.mxu0  ;;  %4266 = vmatprep.mubr.bf16.mxu1 %v22198_v16  ;;  %v4380_v13 = vpop.permute.xlu1 %4379 }
 0x1a3   : > { %v16720_v62 = vpop.f32.mrf.mxu1  ;;  %16794 = vmatprep.subr.bf16.mxu1 %v22197_v50  ;;  %v4402_v46 = vand.u32 %v4385_v40, %v18202_v21 }
 0x1a4   : > { %v4378_v27 = vpop.permute.xlu0 %4377  ;;  %v1587_v43 = vpop.f32.mrf.mxu0  ;;  %15236 = vmatmul.mubr.msk.bf16.vlgmr.msra.gmra.mxu0 %vm464_vm3, %v15235_v57 }
 0x1a5   : > { %v1493_v14 = vpop.f32.mrf.mxu1  ;;  %v1716_v63 = vadd.f32 %v1587_v43, %v19069_v12  ;;  %4290 = vmatpush1.bf16.msra.mxu0 %v4185_v30  ;;  %4307 = vmatprep.mubr.bf16.mxu0 %v22198_v16  ;;  %v4387_v26 = vsel %vm22168_vm1, %v4376_v22, %v4378_v27  ;;  %v4393_v12 = vand.u32 %v4382_v15, %v18202_v21 }
 0x1a6   : > { %v1589_v34 = vpop.f32.mrf.mxu0  ;;  %4427 = vmatprep.subr.bf16.mxu0 %v4396_v9  ;;  %v19127_v30 = vpop.permute.xlu1 %4589  ;;  %v4384_v9 = vsel %vm22168_vm1, %v19074_v8, %v19086_v7 }
 0x1a7   : > { %v19123_v41 = vadd.f32 %v1589_v34, %v19078_v11  ;;  %v16721_v53 = vpop.f32.mrf.mxu1  ;;  %v4408_v11 = vand.u32 %v4387_v26, %v18202_v21  ;;  %v4386_v26 = vsel %vm22168_vm1, %v4374_v24, %v4376_v22 }
 0x1a8   : > { %v4588_v62 = vpop.permute.xlu0 %4587  ;;  %v1591_v14 = vpop.f32.mrf.mxu0  ;;  %v4399_v53 = vand.u32 %v4384_v9, %v18202_v21 }
 0x1a9   : > { %v1628_v43 = vpop.f32.mrf.mxu1  ;;  %15237 = vmatmul.mubr.msk.bf16.vlgmr.msra.gmra.mxu1 %vm464_vm3, %v15235_v57  ;;  %v4603_v8 = vsel %vm4601_vm0, %v4588_v62, %v19127_v30 }
 0x1aa   : > { %v1718_v17 = vadd.f32 %v1628_v43, %v19084_v3  ;;  %16795 = vmatpush3.bf16.msra.mxu1 %v4191_v49  ;;  %v1592_v37 = vpop.f32.mrf.mxu0  ;;  %16796 = vmatprep.mubr.msk.bf16.mxu1 %vm17964_vm5, %v22197_v50  ;;  %v4592_v7 = vpop.permute.xlu1 %4591 }
 0x1ab   : > { %v1630_v20 = vpop.f32.mrf.mxu1  ;;  %4468 = vmatprep.subr.bf16.mxu1 %v4402_v46 }
 0x1ac   : > { %v1719_v40 = vadd.f32 %v1630_v20, %v1499_v0  ;;  %v4586_v15 = vpop.permute.xlu0 %4585  ;;  %v1669_v34 = vpop.f32.mrf.mxu0  ;;  %15238 = vmatmul.mubr.msk.bf16.vlgmr.msra.gmra.mxu0 %vm464_vm3, %v15235_v57  ;;  %v4405_v20 = vand.u32 %v4386_v26, %v18202_v21 }
 0x1ad   : > { %v1632_v3 = vpop.f32.mrf.mxu1  ;;  %v1720_v49 = vadd.f32 %v1669_v34, %v1500_v33  ;;  %4428 = vmatpush1.bf16.msra.mxu0 %v4393_v12  ;;  %4445 = vmatprep.mubr.bf16.mxu0 %v22198_v16  ;;  %v15240_v12 = vld [vmem:[%s22127_s1 + $0x48] sm:$0x7] }
 0x1ae   : > { %v1671_v14 = vpop.f32.mrf.mxu0  ;;  %4509 = vmatprep.subr.bf16.mxu0 %v4408_v11  ;;  %v4616_v11 = vand.u32 %v4603_v8, %v18202_v21 }
 0x1af   : > { %v1721_v0 = vadd.f32 %v1671_v14, %v1501_v2  ;;  %v1633_v46 = vpop.f32.mrf.mxu1  ;;  %v4388_v2 = vsel %vm22168_vm1, %v4378_v27, %v4380_v13 }
 0x1b0   : > { %v4594_v43 = vpop.permute.xlu0 %4593  ;;  %v1673_v37 = vpop.f32.mrf.mxu0 }
 0x1b1   : > { %v1710_v33 = vpop.f32.mrf.mxu1  ;;  %16797 = vmatmul.mubr.msk.bf16.vlgmr.msra.gmra.mxu1 %vm464_vm3, %v15235_v57  ;;  %v4605_v34 = vsel %vm4601_vm0, %v4592_v7, %v4594_v43  ;;  %v4596_v57 = vpop.permute.xlu1 %4595 }
 0x1b2   : > { %v1722_v22 = vadd.f32 %v1710_v33, %v1502_v10  ;;  %4469 = vmatpush1.bf16.msra.mxu1 %v4399_v53  ;;  %v1674_v24 = vpop.f32.mrf.mxu0  ;;  %4486 = vmatprep.mubr.bf16.mxu1 %v22198_v16  ;;  %v4411_v10 = vand.u32 %v4388_v2, %v18202_v21  ;;  %v4602_v53 = vsel %vm4601_vm0, %v4586_v15, %v4588_v62 }
 0x1b3   : > { %v16726_v9 = vpop.f32.mrf.mxu1  ;;  %16800 = vmatprep.subr.bf16.mxu1 %v22197_v50  ;;  %v4622_v33 = vand.u32 %v4605_v34, %v18202_v21 }
 0x1b4   : > { %v1807_v3 = vpop.f32.mrf.mxu0  ;;  %15241 = vmatmul.mubr.msk.bf16.vlgmr.msra.gmra.mxu0 %vm464_vm3, %v15240_v12  ;;  %v4598_v8 = vpop.permute.xlu0 %4597 }
 0x1b5   : > { %v1713_v26 = vpop.f32.mrf.mxu1  ;;  %v1936_v14 = vadd.f32 %v1807_v3, %v1716_v63  ;;  %4510 = vmatpush1.bf16.msra.mxu0 %v4405_v20  ;;  %4527 = vmatprep.mubr.bf16.mxu0 %v22198_v16  ;;  %v4607_v27 = vsel %vm4601_vm0, %v4596_v57, %v4598_v8  ;;  %v4613_v63 = vand.u32 %v4602_v53, %v18202_v21 }
 0x1b6   : > { %v1809_v13 = vpop.f32.mrf.mxu0  ;;  %4647 = vmatprep.subr.bf16.mxu0 %v4616_v11  ;;  %v4628_v62 = vand.u32 %v4607_v27, %v18202_v21 }
 0x1b7   : > { %v1937_v46 = vadd.f32 %v1809_v13, %v19123_v41  ;;  %v16727_v37 = vpop.f32.mrf.mxu1  ;;  %v4604_v41 = vsel %vm4601_vm0, %v19127_v30, %v4592_v7 }
 0x1b8   : > { %v1811_v24 = vpop.f32.mrf.mxu0  ;;  %v4600_v37 = vpop.permute.xlu1 %4599 }
 0x1b9   : > { %v1848_v20 = vpop.f32.mrf.mxu1  ;;  %15242 = vmatmul.mubr.msk.bf16.vlgmr.msra.gmra.mxu1 %vm464_vm3, %v15240_v12 }
 0x1ba   : > { %v1938_v9 = vadd.f32 %v1848_v20, %v1718_v17  ;;  %16801 = vmatpush3.bf16.msra.mxu1 %v4411_v10  ;;  %v1812_v2 = vpop.f32.mrf.mxu0  ;;  %16802 = vmatprep.mubr.msk.bf16.mxu1 %vm17964_vm5, %v22197_v50  ;;  %v4619_v17 = vand.u32 %v4604_v41, %v18202_v21  ;;  %v4606_v10 = vsel %vm4601_vm0, %v4594_v43, %v4596_v57 }
 0x1bb   : > { %v1850_v15 = vpop.f32.mrf.mxu1  ;;  %4688 = vmatprep.subr.bf16.mxu1 %v4622_v33  ;;  %v4625_v7 = vand.u32 %v4606_v10, %v18202_v21  ;;  %v4608_v43 = vsel %vm4601_vm0, %v4598_v8, %v4600_v37 }
 0x1bc   : > { %v1939_v11 = vadd.f32 %v1850_v15, %v1719_v40  ;;  %v1889_v34 = vpop.f32.mrf.mxu0  ;;  %15243 = vmatmul.mubr.msk.bf16.vlgmr.msra.gmra.mxu0 %vm464_vm3, %v15240_v12  ;;  %v4631_v20 = vand.u32 %v4608_v43, %v18202_v21 }
 0x1bd   : > { %v1852_v3 = vpop.f32.mrf.mxu1  ;;  %v1940_v26 = vadd.f32 %v1889_v34, %v1720_v49  ;;  %4648 = vmatpush1.bf16.msra.mxu0 %v4613_v63  ;;  %4665 = vmatprep.mubr.bf16.mxu0 %v22198_v16  ;;  %v15245_v49 = vld [vmem:[%s22127_s1 + $0x4c] sm:$0x7] }
 0x1be   : > { %v1891_v53 = vpop.f32.mrf.mxu0  ;;  %4729 = vmatprep.subr.bf16.mxu0 %v4628_v62 }
 0x1bf   : > { %v1853_v13 = vpop.f32.mrf.mxu1  ;;  %v1941_v27 = vadd.f32 %v1891_v53, %v1721_v0 }
 0x1c0   : > { %v1893_v30 = vpop.f32.mrf.mxu0 }
 0x1c1   : > { %v1930_v40 = vpop.f32.mrf.mxu1  ;;  %16803 = vmatmul.mubr.msk.bf16.vlgmr.msra.gmra.mxu1 %vm464_vm3, %v15240_v12 }
 0x1c2   : > { %v1942_v33 = vadd.f32 %v1930_v40, %v1722_v22  ;;  %4689 = vmatpush1.bf16.msra.mxu1 %v4619_v17  ;;  %v1894_v24 = vpop.f32.mrf.mxu0  ;;  %4706 = vmatprep.mubr.bf16.mxu1 %v22198_v16 }
 0x1c3   : > { %v16732_v57 = vpop.f32.mrf.mxu1  ;;  %16806 = vmatprep.subr.bf16.mxu1 %v22197_v50 }
 0x1c4   : > { %v2027_v0 = vpop.f32.mrf.mxu0  ;;  %15246 = vmatmul.mubr.msk.bf16.vlgmr.msra.gmra.mxu0 %vm464_vm3, %v15245_v49 }
 0x1c5   : > { %v1933_v63 = vpop.f32.mrf.mxu1  ;;  %v2156_v12 = vadd.f32 %v2027_v0, %v1936_v14  ;;  %4730 = vmatpush1.bf16.msra.mxu0 %v4625_v7  ;;  %4747 = vmatprep.mubr.bf16.mxu0 %v22198_v16 }
 0x1c6   : > { %v2029_v22 = vpop.f32.mrf.mxu0  ;;  %4825 = vmatprep.subr.bf16.mxu0 %v18296_v55 }
 0x1c7   : > { %v16733_v2 = vpop.f32.mrf.mxu1  ;;  %v2157_v62 = vadd.f32 %v2029_v22, %v1937_v46 }
 0x1c8   : > { %v2031_v41 = vpop.f32.mrf.mxu0 }
 0x1c9   : > { %v2068_v8 = vpop.f32.mrf.mxu1  ;;  %15247 = vmatmul.mubr.msk.bf16.vlgmr.msra.gmra.mxu1 %vm464_vm3, %v15245_v49  ;;  %v15255_v41 = vld [vmem:[%s22127_s1 + $0x54] sm:$0x7] }
 0x1ca   : > { %v2158_v15 = vadd.f32 %v2068_v8, %v1938_v9  ;;  %16807 = vmatpush3.bf16.msra.mxu1 %v4631_v20  ;;  %v2032_v34 = vpop.f32.mrf.mxu0  ;;  %16808 = vmatprep.mubr.msk.bf16.mxu1 %vm17964_vm5, %v22197_v50  ;;  %v4992_v8 = vpop.permute.xlu0 %4991 }
 0x1cb   : > { %v2070_v14 = vpop.f32.mrf.mxu1  ;;  %4866 = vmatprep.subr.bf16.mxu1 %v18309_v59  ;;  %v15250_v59 = vld [vmem:[%s22127_s1 + $0x50] sm:$0x7] }
 0x1cc   : > { %v2159_v3 = vadd.f32 %v2070_v14, %v1939_v11  ;;  %v2109_v17 = vpop.f32.mrf.mxu0  ;;  %15248 = vmatmul.mubr.msk.bf16.vlgmr.msra.gmra.mxu0 %vm464_vm3, %v15245_v49  ;;  %v4993_v14 = vsel %vm456_vm2, %v18230_v35, %v4992_v8 }
 0x1cd   : > { %v2072_v55 = vpop.f32.mrf.mxu1  ;;  %v2160_v10 = vadd.f32 %v2109_v17, %v1940_v26  ;;  %4826 = vmatpush1.bf16.msra.mxu0 %v18264_v47  ;;  %4843 = vmatprep.mubr.bf16.mxu0 %v22198_v16 }
 0x1ce   : > { %v2111_v46 = vpop.f32.mrf.mxu0  ;;  %4907 = vmatprep.subr.bf16.mxu0 %v18335_v4  ;;  %v5354_v8 = vpop.permute.xlu0 %5353 }
 0x1cf   : > { %v2073_v9 = vpop.f32.mrf.mxu1  ;;  %v2161_v53 = vadd.f32 %v2111_v46, %v1941_v27  ;;  %v4998_v46 = vand.u32 %v4993_v14, %v18202_v21 }
 0x1d0   : > { %v2113_v13 = vpop.f32.mrf.mxu0 }
 0x1d1   : > { %v2150_v30 = vpop.f32.mrf.mxu1  ;;  %16809 = vmatmul.mubr.msk.bf16.vlgmr.msra.gmra.mxu1 %vm464_vm3, %v15245_v49 }
 0x1d2   : > { %v2162_v11 = vadd.f32 %v2150_v30, %v1942_v33  ;;  %v2114_v7 = vpop.f32.mrf.mxu0  ;;  %4867 = vmatpush1.bf16.msra.mxu1 %v18278_v51  ;;  %4884 = vmatprep.mubr.bf16.mxu1 %v22198_v16  ;;  %v4809_v51 = vand.u32 %v18202_v21, %v18095_v18  ;;  %v5713_v18 = vld [vmem:[%s22128_s2] sm:$0x3f] }
 0x1d3   : > { %v16738_v47 = vpop.f32.mrf.mxu1  ;;  %16812 = vmatprep.subr.bf16.mxu1 %v22197_v50  ;;  %5716 = vperm.xlu0 %17663, %v5713_v18  }
 0x1d4   : > { %v2247_v4 = vpop.f32.mrf.mxu0  ;;  %15251 = vmatmul.mubr.msk.bf16.vlgmr.msra.gmra.mxu0 %vm464_vm3, %v15250_v59 }
 0x1d5   : > { %v2153_v26 = vpop.f32.mrf.mxu1  ;;  %v2376_v27 = vadd.f32 %v2247_v4, %v2156_v12  ;;  %4908 = vmatpush1.bf16.msra.mxu0 %v18285_v52  ;;  %4925 = vmatprep.mubr.bf16.mxu0 %v22198_v16 }
 0x1d6   : > { %5014 = vmatprep.subr.bf16.mxu0 %v18240_v39  ;;  %v2249_v40 = vpop.f32.mrf.mxu0 }
 0x1d7   : > { %v16739_v49 = vpop.f32.mrf.mxu1  ;;  %v2377_v37 = vadd.f32 %v2249_v40, %v2157_v62  ;;  %v5173_v40 = vpop.permute.xlu1 %5172 }
 0x1d8   : > { %v2251_v33 = vpop.f32.mrf.mxu0 }
 0x1d9   : > { %v2288_v24 = vpop.f32.mrf.mxu1  ;;  %15252 = vmatmul.mubr.msk.bf16.vlgmr.msra.gmra.mxu1 %vm464_vm3, %v15250_v59 }
 0x1da   : > { %v2378_v43 = vadd.f32 %v2288_v24, %v2158_v15  ;;  %16813 = vmatpush3.bf16.msra.mxu1 %v4809_v51  ;;  %v2252_v57 = vpop.f32.mrf.mxu0  ;;  %16814 = vmatprep.mubr.msk.bf16.mxu1 %vm17964_vm5, %v22197_v50 }
 0x1db   : > { %5055 = vmatprep.subr.bf16.mxu1 %v18259_v45  ;;  %v2290_v52 = vpop.f32.mrf.mxu1 }
 0x1dc   : > { %v2379_v39 = vadd.f32 %v2290_v52, %v2159_v3  ;;  %v2329_v0 = vpop.f32.mrf.mxu0  ;;  %15253 = vmatmul.mubr.msk.bf16.vlgmr.msra.gmra.mxu0 %vm464_vm3, %v15250_v59 }
 0x1dd   : > { %v2292_v63 = vpop.f32.mrf.mxu1  ;;  %v2380_v12 = vadd.f32 %v2329_v0, %v2160_v10  ;;  %5015 = vmatpush1.bf16.msra.mxu0 %v18217_v29  ;;  %5032 = vmatprep.mubr.bf16.mxu0 %v22198_v16 }
 0x1de   : > { %5096 = vmatprep.subr.bf16.mxu0 %v18248_v42  ;;  %v2331_v20 = vpop.f32.mrf.mxu0 }
 0x1df   : > { %v2293_v45 = vpop.f32.mrf.mxu1  ;;  %v2381_v22 = vadd.f32 %v2331_v20, %v2161_v53 }
 0x1e0   : > { %v2333_v2 = vpop.f32.mrf.mxu0 }
 0x1e1   : > { %v2370_v62 = vpop.f32.mrf.mxu1  ;;  %16815 = vmatmul.mubr.msk.bf16.vlgmr.msra.gmra.mxu1 %vm464_vm3, %v15250_v59 }
 0x1e2   : > { %v2382_v15 = vadd.f32 %v2370_v62, %v2162_v11  ;;  %5056 = vmatpush1.bf16.msra.mxu1 %v18233_v36  ;;  %v2334_v29 = vpop.f32.mrf.mxu0  ;;  %5073 = vmatprep.mubr.bf16.mxu1 %v22198_v16 }
 0x1e3   : > { %v16744_v42 = vpop.f32.mrf.mxu1  ;;  %16818 = vmatprep.subr.bf16.mxu1 %v22197_v50 }
 0x1e4   : > { %v2467_v34 = vpop.f32.mrf.mxu0  ;;  %15257 = vmatmul.mubr.msk.bf16.vlgmr.msra.gmra.mxu0 %vm464_vm3, %v15255_v41  ;;  %v5355_v42 = vsel %vm1081_vm6, %v18381_v31, %v5354_v8 }
 0x1e5   : > { %v2373_v3 = vpop.f32.mrf.mxu1  ;;  %v2596_v17 = vadd.f32 %v2467_v34, %v2376_v27  ;;  %5097 = vmatpush1.bf16.msra.mxu0 %v18256_v44  ;;  %5114 = vmatprep.mubr.bf16.mxu0 %v22198_v16 }
 0x1e6   : > { %5195 = vmatprep.subr.bf16.mxu0 %v18361_v23  ;;  %v2469_v36 = vpop.f32.mrf.mxu0 }
 0x1e7   : > { %v16745_v55 = vpop.f32.mrf.mxu1  ;;  %v2597_v10 = vadd.f32 %v2469_v36, %v2377_v37  ;;  %v5174_v37 = vsel %vm861_vm4, %v18313_v60, %v5173_v40  ;;  %v5360_v36 = vand.u32 %v5355_v42, %v18202_v21 }
 0x1e8   : > { %v2471_v9 = vpop.f32.mrf.mxu0  ;;  %v5179_v52 = vand.u32 %v5174_v37, %v18202_v21  ;;  %v22203_v37 = vld [vmem:[#allocation8_spill] sm:$0xff] }
 0x1e9   : > { %v2508_v53 = vpop.f32.mrf.mxu1  ;;  %15258 = vmatmul.mubr.msk.bf16.vlgmr.msra.gmra.mxu1 %vm464_vm3, %v15255_v41 }
 0x1ea   : > { %v2598_v13 = vadd.f32 %v2508_v53, %v2378_v43  ;;  %16819 = vmatpush3.bf16.msra.mxu1 %v4998_v46  ;;  %v2472_v35 = vpop.f32.mrf.mxu0  ;;  %16820 = vmatprep.mubr.msk.bf16.mxu1 %vm17964_vm5, %v22197_v50 }
 0x1eb   : > { %5236 = vmatprep.subr.bf16.mxu1 %v18372_v28  ;;  %v2510_v44 = vpop.f32.mrf.mxu1  ;;  %v15261_v28 = vld [vmem:[%s22127_s1 + $0x58] sm:$0x7]  ;;  %v22199_v35 = vld [vmem:[#allocation6_spill] sm:$0xff] }
 0x1ec   : > { %v2599_v30 = vadd.f32 %v2510_v44, %v2379_v39  ;;  %v2549_v23 = vpop.f32.mrf.mxu0  ;;  %15259 = vmatmul.mubr.msk.bf16.vlgmr.msra.gmra.mxu0 %vm464_vm3, %v15255_v41  ;;  %v22200_v44 = vld [vmem:[#allocation9_spill] sm:$0xff] }
 0x1ed   : > { %v2512_v59 = vpop.f32.mrf.mxu1  ;;  %v2600_v11 = vadd.f32 %v2549_v23, %v2380_v12  ;;  %5196 = vmatpush1.bf16.msra.mxu0 %v18317_v61  ;;  %5213 = vmatprep.mubr.bf16.mxu0 %v22198_v16 }
 0x1ee   : > { %5277 = vmatprep.subr.bf16.mxu0 %v18397_v38  ;;  %v2551_v7 = vpop.f32.mrf.mxu0 }
 0x1ef   : > { %v2513_v47 = vpop.f32.mrf.mxu1  ;;  %v2601_v4 = vadd.f32 %v2551_v7, %v2381_v22 }
 0x1f0   : > { %v2553_v26 = vpop.f32.mrf.mxu0  ;;  %v5535_v47 = vpop.permute.xlu1 %5534 }
 0x1f1   : > { %v2590_v27 = vpop.f32.mrf.mxu1  ;;  %16821 = vmatmul.mubr.msk.bf16.vlgmr.msra.gmra.mxu1 %vm464_vm3, %v15255_v41  ;;  %v22201_v26 = vld [vmem:[#allocation7_spill] sm:$0xff] }
 0x1f2   : > { %v2602_v51 = vadd.f32 %v2590_v27, %v2382_v15  ;;  %5237 = vmatpush1.bf16.msra.mxu1 %v18339_v6  ;;  %v2554_v61 = vpop.f32.mrf.mxu0  ;;  %5254 = vmatprep.mubr.bf16.mxu1 %v22198_v16 }
 0x1f3   : > { %v16750_v49 = vpop.f32.mrf.mxu1  ;;  %16824 = vmatprep.subr.bf16.mxu1 %v22197_v50 }
 0x1f4   : > { %v2687_v38 = vpop.f32.mrf.mxu0  ;;  %15262 = vmatmul.mubr.msk.bf16.vlgmr.msra.gmra.mxu0 %vm464_vm3, %v15261_v28 }
 0x1f5   : > { %v2593_v33 = vpop.f32.mrf.mxu1  ;;  %v2816_v24 = vadd.f32 %v2687_v38, %v2596_v17  ;;  %5278 = vmatpush1.bf16.msra.mxu0 %v18349_v19  ;;  %5295 = vmatprep.mubr.bf16.mxu0 %v22198_v16 }
 0x1f6   : > { %5376 = vmatprep.subr.bf16.mxu0 %v18427_v58  ;;  %v2689_v6 = vpop.f32.mrf.mxu0 }
 0x1f7   : > { %v16751_v43 = vpop.f32.mrf.mxu1  ;;  %v2817_v57 = vadd.f32 %v2689_v6, %v2597_v10 }
 0x1f8   : > { %v2691_v39 = vpop.f32.mrf.mxu0 }
 0x1f9   : > { %v2728_v0 = vpop.f32.mrf.mxu1  ;;  %15263 = vmatmul.mubr.msk.bf16.vlgmr.msra.gmra.mxu1 %vm464_vm3, %v15261_v28 }
 0x1fa   : > { %v2818_v18 = vadd.f32 %v2728_v0, %v2598_v13  ;;  %16825 = vmatpush3.bf16.msra.mxu1 %v5179_v52  ;;  %v2692_v60 = vpop.f32.mrf.mxu0  ;;  %16826 = vmatprep.mubr.msk.bf16.mxu1 %vm17964_vm5, %v22197_v50 }
 0x1fb   : > { %5417 = vmatprep.subr.bf16.mxu1 %v18437_v5  ;;  %v2730_v19 = vpop.f32.mrf.mxu1  ;;  %v15266_v5 = vld [vmem:[%s22127_s1 + $0x5c] sm:$0x7] }
 0x1fc   : > { %v2819_v63 = vadd.f32 %v2730_v19, %v2599_v30  ;;  %v2769_v58 = vpop.f32.mrf.mxu0  ;;  %15264 = vmatmul.mubr.msk.bf16.vlgmr.msra.gmra.mxu0 %vm464_vm3, %v15261_v28 }
 0x1fd   : > { %v2732_v12 = vpop.f32.mrf.mxu1  ;;  %v2820_v20 = vadd.f32 %v2769_v58, %v2600_v11  ;;  %5377 = vmatpush1.bf16.msra.mxu0 %v18384_v32  ;;  %5394 = vmatprep.mubr.bf16.mxu0 %v22198_v16 }
 0x1fe   : > { %5458 = vmatprep.subr.bf16.mxu0 %v18462_v25  ;;  %v2771_v45 = vpop.f32.mrf.mxu0 }
 0x1ff   : > { %v2733_v22 = vpop.f32.mrf.mxu1  ;;  %v2821_v2 = vadd.f32 %v2771_v45, %v2601_v4 }
 0x200   : > { %v2773_v62 = vpop.f32.mrf.mxu0 }
 0x201   : > { %v2810_v41 = vpop.f32.mrf.mxu1  ;;  %16827 = vmatmul.mubr.msk.bf16.vlgmr.msra.gmra.mxu1 %vm464_vm3, %v15261_v28 }
 0x202   : > { %v2822_v15 = vadd.f32 %v2810_v41, %v2602_v51  ;;  %5418 = vmatpush1.bf16.msra.mxu1 %v18405_v48  ;;  %v2774_v32 = vpop.f32.mrf.mxu0  ;;  %5435 = vmatprep.mubr.bf16.mxu1 %v22198_v16  ;;  %v22202_v51 = vld [vmem:[#allocation5_spill] sm:$0xff] }
 0x203   : > { %v16756_v29 = vpop.f32.mrf.mxu1  ;;  %16830 = vmatprep.subr.bf16.mxu1 %v22197_v50  ;;  %v5536_v61 = vsel %vm1301_vm7, %v22202_v51, %v5535_v47 }
 0x204   : > { %v2907_v25 = vpop.f32.mrf.mxu0  ;;  %15267 = vmatmul.mubr.msk.bf16.vlgmr.msra.gmra.mxu0 %vm464_vm3, %v15266_v5  ;;  %v5541_v43 = vand.u32 %v5536_v61, %v18202_v21 }
 0x205   : > { %v2813_v34 = vpop.f32.mrf.mxu1  ;;  %v3036_v14 = vadd.f32 %v2907_v25, %v2816_v24  ;;  %5459 = vmatpush1.bf16.msra.mxu0 %v18415_v54  ;;  %5476 = vmatprep.mubr.bf16.mxu0 %v22198_v16 }
 0x206   : > { %5557 = vmatprep.subr.bf16.mxu0 %v18491_v56  ;;  %v2909_v48 = vpop.f32.mrf.mxu0 }
 0x207   : > { %v16757_v3 = vpop.f32.mrf.mxu1  ;;  %v3037_v17 = vadd.f32 %v2909_v48, %v2817_v57 }
 0x208   : > { %v2911_v55 = vpop.f32.mrf.mxu0 }
 0x209   : > { %v2948_v10 = vpop.f32.mrf.mxu1  ;;  %15268 = vmatmul.mubr.msk.bf16.vlgmr.msra.gmra.mxu1 %vm464_vm3, %v15266_v5 }
 0x20a   : > { %v3038_v46 = vadd.f32 %v2948_v10, %v2818_v18  ;;  %16831 = vmatpush3.bf16.msra.mxu1 %v5360_v36  ;;  %v2912_v31 = vpop.f32.mrf.mxu0  ;;  %16832 = vmatprep.mubr.msk.bf16.mxu1 %vm17964_vm5, %v22197_v50 }
 0x20b   : > { %5598 = vmatprep.subr.bf16.mxu1 %v18501_v1  ;;  %v2950_v54 = vpop.f32.mrf.mxu1  ;;  %v15271_v1 = vld [vmem:[%s22127_s1 + $0x60] sm:$0x7] }
 0x20c   : > { %v3039_v9 = vadd.f32 %v2950_v54, %v2819_v63  ;;  %v2989_v56 = vpop.f32.mrf.mxu0  ;;  %15269 = vmatmul.mubr.msk.bf16.vlgmr.msra.gmra.mxu0 %vm464_vm3, %v15266_v5 }
 0x20d   : > { %v2952_v53 = vpop.f32.mrf.mxu1  ;;  %v3040_v13 = vadd.f32 %v2989_v56, %v2820_v20  ;;  %5558 = vmatpush1.bf16.msra.mxu0 %v22199_v35  ;;  %5575 = vmatprep.mubr.bf16.mxu0 %v22198_v16 }
 0x20e   : > { %5639 = vmatprep.subr.bf16.mxu0 %v22200_v44  ;;  %v2991_v30 = vpop.f32.mrf.mxu0 }
 0x20f   : > { %v2953_v23 = vpop.f32.mrf.mxu1  ;;  %v3041_v59 = vadd.f32 %v2991_v30, %v2821_v2 }
 0x210   : > { %v2993_v11 = vpop.f32.mrf.mxu0 }
 0x211   : > { %v3030_v7 = vpop.f32.mrf.mxu1  ;;  %16833 = vmatmul.mubr.msk.bf16.vlgmr.msra.gmra.mxu1 %vm464_vm3, %v15266_v5 }
 0x212   : > { %v3042_v4 = vadd.f32 %v3030_v7, %v2822_v15  ;;  %5599 = vmatpush1.bf16.msra.mxu1 %v22201_v26  ;;  %v2994_v27 = vpop.f32.mrf.mxu0  ;;  %5616 = vmatprep.mubr.bf16.mxu1 %v22198_v16 }
 0x213   : > { %v16762_v28 = vpop.f32.mrf.mxu1  ;;  %16836 = vmatprep.subr.bf16.mxu1 %v22197_v50 }
 0x214   : > { %v3127_v40 = vpop.f32.mrf.mxu0  ;;  %15272 = vmatmul.mubr.msk.bf16.vlgmr.msra.gmra.mxu0 %vm464_vm3, %v15271_v1 }
 0x215   : > { %v3033_v49 = vpop.f32.mrf.mxu1  ;;  %v3256_v38 = vadd.f32 %v3127_v40, %v3036_v14  ;;  %5640 = vmatpush1.bf16.msra.mxu0 %v22203_v37  ;;  %5657 = vmatprep.mubr.bf16.mxu0 %v22198_v16 }
 0x216   : > { %v3129_v33 = vpop.f32.mrf.mxu0  ;;  %16842 = vmatprep.subr.bf16.mxu0 %v22197_v50 }
 0x217   : > { %v16763_v24 = vpop.f32.mrf.mxu1  ;;  %v3257_v6 = vadd.f32 %v3129_v33, %v3037_v17 }
 0x218   : > { %v3131_v57 = vpop.f32.mrf.mxu0 }
 0x219   : > { %v3168_v52 = vpop.f32.mrf.mxu1  ;;  %15273 = vmatmul.mubr.msk.bf16.vlgmr.msra.gmra.mxu1 %vm464_vm3, %v15271_v1 }
 0x21a   : > { %v3258_v39 = vadd.f32 %v3168_v52, %v3038_v46  ;;  %16837 = vmatpush3.bf16.msra.mxu1 %v5541_v43  ;;  %v3132_v0 = vpop.f32.mrf.mxu0  ;;  %16838 = vmatprep.mubr.msk.bf16.mxu1 %vm17964_vm5, %v22197_v50 }
 0x21b   : > { %v3170_v18 = vpop.f32.mrf.mxu1  ;;  %16850 = vmatprep.subr.bf16.mxu1 %v22197_v50 }
 0x21c   : > { %v3259_v60 = vadd.f32 %v3170_v18, %v3039_v9  ;;  %v3209_v19 = vpop.f32.mrf.mxu0  ;;  %15274 = vmatmul.mubr.msk.bf16.vlgmr.msra.gmra.mxu0 %vm464_vm3, %v15271_v1 }
 0x21d   : > { %v3172_v63 = vpop.f32.mrf.mxu1  ;;  %v3260_v58 = vadd.f32 %v3209_v19, %v3040_v13  ;;  %16846 = vmatprep.mubr.msk.bf16.mxu0 %vm17964_vm5, %v22197_v50 }
 0x21e   : > { %v3211_v21 = vpop.f32.mrf.mxu0 }
 0x21f   : > { %v3173_v12 = vpop.f32.mrf.mxu1  ;;  %v3261_v20 = vadd.f32 %v3211_v21, %v3041_v59 }
 0x220   : > { %v3213_v45 = vpop.f32.mrf.mxu0 }
 0x221   : > { %v3250_v22 = vpop.f32.mrf.mxu1  ;;  %16839 = vmatmul.mubr.msk.bf16.vlgmr.msra.gmra.mxu1 %vm464_vm3, %v15271_v1 }
 0x222   : > { %v3262_v2 = vadd.f32 %v3250_v22, %v3042_v4  ;;  %v3214_v62 = vpop.f32.mrf.mxu0  ;;  %16854 = vmatprep.mubr.msk.bf16.mxu1 %vm17964_vm5, %v22197_v50 }
 0x223   : > { %v16768_v41 = vpop.f32.mrf.mxu1 }
 0x224   : > { %v3347_v5 = vpop.f32.mrf.mxu0 }
 0x225   : > { %v3253_v8 = vpop.f32.mrf.mxu1  ;;  %v3476_v15 = vadd.f32 %v3347_v5, %v3256_v38 }
 0x226   : > { %v3349_v32 = vpop.f32.mrf.mxu0 }
 0x227   : > { %v16769_v29 = vpop.f32.mrf.mxu1  ;;  %v3477_v25 = vadd.f32 %v3349_v32, %v3257_v6 }
 0x228   : > { %v3351_v42 = vpop.f32.mrf.mxu0 }
 0x229   : > { %v3388_v34 = vpop.f32.mrf.mxu1 }
 0x22a   : > { %v3478_v14 = vadd.f32 %v3388_v34, %v3258_v39  ;;  %v3352_v48 = vpop.f32.mrf.mxu0 }
 0x22b   : > { %v3390_v3 = vpop.f32.mrf.mxu1 }
 0x22c   : > { %v3479_v17 = vadd.f32 %v3390_v3, %v3259_v60  ;;  %v3429_v36 = vpop.f32.mrf.mxu0 }
 0x22d   : > { %v3392_v55 = vpop.f32.mrf.mxu1  ;;  %v3480_v10 = vadd.f32 %v3429_v36, %v3260_v58 }
 0x22e   : > { %v3431_v46 = vpop.f32.mrf.mxu0 }
 0x22f   : > { %v3393_v31 = vpop.f32.mrf.mxu1  ;;  %v3481_v54 = vadd.f32 %v3431_v46, %v3261_v20 }
 0x230   : > { %v3433_v9 = vpop.f32.mrf.mxu0 }
 0x231   : > { %v3470_v56 = vpop.f32.mrf.mxu1 }
 0x232   : > { %v3482_v53 = vadd.f32 %v3470_v56, %v3262_v2  ;;  %v3434_v13 = vpop.f32.mrf.mxu0 }
 0x233   : > { %v16774_v35 = vpop.f32.mrf.mxu1 }
 0x234   : > { %v3567_v44 = vpop.f32.mrf.mxu0 }
 0x235   : > { %v3473_v30 = vpop.f32.mrf.mxu1  ;;  %v3696_v23 = vadd.f32 %v3567_v44, %v3476_v15 }
 0x236   : > { %v3569_v59 = vpop.f32.mrf.mxu0 }
 0x237   : > { %v16775_v11 = vpop.f32.mrf.mxu1  ;;  %v3697_v7 = vadd.f32 %v3569_v59, %v3477_v25 }
 0x238   : > { %v3571_v1 = vpop.f32.mrf.mxu0 }
 0x239   : > { %v3608_v47 = vpop.f32.mrf.mxu1 }
 0x23a   : > { %v3698_v4 = vadd.f32 %v3608_v47, %v3478_v14  ;;  %v3572_v26 = vpop.f32.mrf.mxu0 }
 0x23b   : > { %v3610_v27 = vpop.f32.mrf.mxu1 }
 0x23c   : > { %v3699_v28 = vadd.f32 %v3610_v27, %v3479_v17  ;;  %v3649_v40 = vpop.f32.mrf.mxu0 }
 0x23d   : > { %v3612_v51 = vpop.f32.mrf.mxu1  ;;  %v3700_v61 = vadd.f32 %v3649_v40, %v3480_v10 }
 0x23e   : > { %v3651_v49 = vpop.f32.mrf.mxu0 }
 0x23f   : > { %v3613_v38 = vpop.f32.mrf.mxu1  ;;  %v3701_v37 = vadd.f32 %v3651_v49, %v3481_v54 }
 0x240   : > { %v3653_v33 = vpop.f32.mrf.mxu0 }
 0x241   : > { %v3690_v24 = vpop.f32.mrf.mxu1 }
 0x242   : > { %v3702_v6 = vadd.f32 %v3690_v24, %v3482_v53  ;;  %v3654_v43 = vpop.f32.mrf.mxu0 }
 0x243   : > { %v16780_v57 = vpop.f32.mrf.mxu1 }
 0x244   : > { %v3787_v52 = vpop.f32.mrf.mxu0 }
 0x245   : > { %v3693_v39 = vpop.f32.mrf.mxu1  ;;  %v3916_v0 = vadd.f32 %v3787_v52, %v3696_v23 }
 0x246   : > { %v3789_v18 = vpop.f32.mrf.mxu0 }
 0x247   : > { %v16781_v60 = vpop.f32.mrf.mxu1  ;;  %v3917_v19 = vadd.f32 %v3789_v18, %v3697_v7 }
 0x248   : > { %v3791_v63 = vpop.f32.mrf.mxu0 }
 0x249   : > { %v3828_v58 = vpop.f32.mrf.mxu1 }
 0x24a   : > { %v3918_v21 = vadd.f32 %v3828_v58, %v3698_v4  ;;  %v3792_v12 = vpop.f32.mrf.mxu0 }
 0x24b   : > { %v3830_v20 = vpop.f32.mrf.mxu1 }
 0x24c   : > { %v3919_v45 = vadd.f32 %v3830_v20, %v3699_v28  ;;  %v3869_v22 = vpop.f32.mrf.mxu0 }
 0x24d   : > { %v3832_v2 = vpop.f32.mrf.mxu1  ;;  %v3920_v62 = vadd.f32 %v3869_v22, %v3700_v61 }
 0x24e   : > { %v3871_v41 = vpop.f32.mrf.mxu0 }
 0x24f   : > { %v3833_v5 = vpop.f32.mrf.mxu1  ;;  %v3921_v8 = vadd.f32 %v3871_v41, %v3701_v37 }
 0x250   : > { %v3873_v15 = vpop.f32.mrf.mxu0 }
 0x251   : > { %v3910_v32 = vpop.f32.mrf.mxu1 }
 0x252   : > { %v3922_v29 = vadd.f32 %v3910_v32, %v3702_v6  ;;  %v3874_v25 = vpop.f32.mrf.mxu0 }
 0x253   : > { %v16786_v42 = vpop.f32.mrf.mxu1 }
 0x254   : > { %v4007_v34 = vpop.f32.mrf.mxu0 }
 0x255   : > { %v3913_v14 = vpop.f32.mrf.mxu1  ;;  %v4136_v48 = vadd.f32 %v4007_v34, %v3916_v0 }
 0x256   : > { %v4009_v3 = vpop.f32.mrf.mxu0 }
 0x257   : > { %v16787_v17 = vpop.f32.mrf.mxu1  ;;  %v4137_v36 = vadd.f32 %v4009_v3, %v3917_v19 }
 0x258   : > { %v4011_v55 = vpop.f32.mrf.mxu0 }
 0x259   : > { %v4048_v10 = vpop.f32.mrf.mxu1 }
 0x25a   : > { %v4138_v46 = vadd.f32 %v4048_v10, %v3918_v21  ;;  %v4012_v31 = vpop.f32.mrf.mxu0 }
 0x25b   : > { %v4050_v54 = vpop.f32.mrf.mxu1 }
 0x25c   : > { %v4139_v9 = vadd.f32 %v4050_v54, %v3919_v45  ;;  %v4089_v56 = vpop.f32.mrf.mxu0 }
 0x25d   : > { %v4052_v53 = vpop.f32.mrf.mxu1  ;;  %v4140_v13 = vadd.f32 %v4089_v56, %v3920_v62 }
 0x25e   : > { %v4091_v35 = vpop.f32.mrf.mxu0 }
 0x25f   : > { %v4053_v44 = vpop.f32.mrf.mxu1  ;;  %v4141_v30 = vadd.f32 %v4091_v35, %v3921_v8 }
 0x260   : > { %v4093_v23 = vpop.f32.mrf.mxu0 }
 0x261   : > { %v4130_v59 = vpop.f32.mrf.mxu1 }
 0x262   : > { %v4142_v11 = vadd.f32 %v4130_v59, %v3922_v29  ;;  %v4094_v7 = vpop.f32.mrf.mxu0 }
 0x263   : > { %v16792_v1 = vpop.f32.mrf.mxu1 }
 0x264   : > { %v4227_v47 = vpop.f32.mrf.mxu0 }
 0x265   : > { %v4133_v4 = vpop.f32.mrf.mxu1  ;;  %v4356_v26 = vadd.f32 %v4227_v47, %v4136_v48 }
 0x266   : > { %v4229_v27 = vpop.f32.mrf.mxu0 }
 0x267   : > { %v16793_v28 = vpop.f32.mrf.mxu1  ;;  %v4357_v40 = vadd.f32 %v4229_v27, %v4137_v36 }
 0x268   : > { %v4231_v51 = vpop.f32.mrf.mxu0 }
 0x269   : > { %v4268_v61 = vpop.f32.mrf.mxu1 }
 0x26a   : > { %v4358_v49 = vadd.f32 %v4268_v61, %v4138_v46  ;;  %v4232_v38 = vpop.f32.mrf.mxu0 }
 0x26b   : > { %v4270_v37 = vpop.f32.mrf.mxu1 }
 0x26c   : > { %v4359_v33 = vadd.f32 %v4270_v37, %v4139_v9  ;;  %v4309_v24 = vpop.f32.mrf.mxu0 }
 0x26d   : > { %v4272_v6 = vpop.f32.mrf.mxu1  ;;  %v4360_v43 = vadd.f32 %v4309_v24, %v4140_v13 }
 0x26e   : > { %v4311_v57 = vpop.f32.mrf.mxu0 }
 0x26f   : > { %v4273_v52 = vpop.f32.mrf.mxu1  ;;  %v4361_v39 = vadd.f32 %v4311_v57, %v4141_v30 }
 0x270   : > { %v4313_v0 = vpop.f32.mrf.mxu0 }
 0x271   : > { %v4350_v18 = vpop.f32.mrf.mxu1 }
 0x272   : > { %v4362_v60 = vadd.f32 %v4350_v18, %v4142_v11  ;;  %v4314_v19 = vpop.f32.mrf.mxu0 }
 0x273   : > { %v16798_v63 = vpop.f32.mrf.mxu1 }
 0x274   : > { %v4447_v58 = vpop.f32.mrf.mxu0 }
 0x275   : > { %v4353_v21 = vpop.f32.mrf.mxu1  ;;  %v4576_v12 = vadd.f32 %v4447_v58, %v4356_v26 }
 0x276   : > { %v4449_v20 = vpop.f32.mrf.mxu0 }
 0x277   : > { %v16799_v45 = vpop.f32.mrf.mxu1  ;;  %v4577_v22 = vadd.f32 %v4449_v20, %v4357_v40 }
 0x278   : > { %v4451_v2 = vpop.f32.mrf.mxu0 }
 0x279   : > { %v4488_v62 = vpop.f32.mrf.mxu1 }
 0x27a   : > { %v4578_v41 = vadd.f32 %v4488_v62, %v4358_v49  ;;  %v4452_v5 = vpop.f32.mrf.mxu0 }
 0x27b   : > { %v4490_v8 = vpop.f32.mrf.mxu1 }
 0x27c   : > { %v4579_v15 = vadd.f32 %v4490_v8, %v4359_v33  ;;  %v4529_v32 = vpop.f32.mrf.mxu0 }
 0x27d   : > { %v4492_v29 = vpop.f32.mrf.mxu1  ;;  %v4580_v25 = vadd.f32 %v4529_v32, %v4360_v43 }
 0x27e   : > { %v4531_v42 = vpop.f32.mrf.mxu0 }
 0x27f   : > { %v4493_v34 = vpop.f32.mrf.mxu1  ;;  %v4581_v14 = vadd.f32 %v4531_v42, %v4361_v39 }
 0x280   : > { %v4533_v48 = vpop.f32.mrf.mxu0 }
 0x281   : > { %v4570_v3 = vpop.f32.mrf.mxu1 }
 0x282   : > { %v4582_v17 = vadd.f32 %v4570_v3, %v4362_v60  ;;  %v4534_v36 = vpop.f32.mrf.mxu0 }
 0x283   : > { %v16804_v55 = vpop.f32.mrf.mxu1 }
 0x284   : > { %v4667_v10 = vpop.f32.mrf.mxu0 }
 0x285   : > { %v4573_v46 = vpop.f32.mrf.mxu1  ;;  %v19305_v31 = vadd.f32 %v4667_v10, %v4576_v12 }
 0x286   : > { %v4669_v54 = vpop.f32.mrf.mxu0 }
 0x287   : > { %v16805_v9 = vpop.f32.mrf.mxu1  ;;  %v19307_v56 = vadd.f32 %v4669_v54, %v4577_v22 }
 0x288   : > { %v4671_v53 = vpop.f32.mrf.mxu0 }
 0x289   : > { %v4708_v13 = vpop.f32.mrf.mxu1 }
 0x28a   : > { %v19309_v35 = vadd.f32 %v4708_v13, %v4578_v41  ;;  %v4672_v44 = vpop.f32.mrf.mxu0 }
 0x28b   : > { %v4710_v30 = vpop.f32.mrf.mxu1 }
 0x28c   : > { %v19311_v23 = vadd.f32 %v4710_v30, %v4579_v15  ;;  %v4749_v59 = vpop.f32.mrf.mxu0 }
 0x28d   : > { %v4712_v11 = vpop.f32.mrf.mxu1  ;;  %v19313_v7 = vadd.f32 %v4749_v59, %v4580_v25 }
 0x28e   : > { %v4751_v1 = vpop.f32.mrf.mxu0 }
 0x28f   : > { %v4713_v47 = vpop.f32.mrf.mxu1  ;;  %v19315_v4 = vadd.f32 %v4751_v1, %v4581_v14 }
 0x290   : > { %v4753_v26 = vpop.f32.mrf.mxu0 }
 0x291   : > { %v4790_v27 = vpop.f32.mrf.mxu1 }
 0x292   : > { %v19317_v28 = vadd.f32 %v4790_v27, %v4582_v17  ;;  %v4754_v40 = vpop.f32.mrf.mxu0 }
 0x293   : > { %v16810_v51 = vpop.f32.mrf.mxu1 }
 0x294   : > { %v4845_v61 = vpop.f32.mrf.mxu0 }
 0x295   : > { %v4793_v49 = vpop.f32.mrf.mxu1 }
 0x296   : > { %v4847_v38 = vpop.f32.mrf.mxu0 }
 0x297   : > { %v16811_v37 = vpop.f32.mrf.mxu1 }
 0x298   : > { %v4849_v33 = vpop.f32.mrf.mxu0 }
 0x299   : > { %v4886_v24 = vpop.f32.mrf.mxu1  ;;  %v4974_v33 = vadd.f32 %v4845_v61, %v19305_v31 }
 0x29a   : > { %v4850_v6 = vpop.f32.mrf.mxu0 }
 0x29b   : > { %v19319_v43 = vpop.f32.mrf.mxu1 }
 0x29c   : > { %v19321_v57 = vpop.f32.mrf.mxu0 }
 0x29d   : > { %v4890_v52 = vpop.f32.mrf.mxu1 }
 0x29e   : > { %v19323_v39 = vpop.f32.mrf.mxu0 }
 0x29f   : > { %v4891_v0 = vpop.f32.mrf.mxu1 }
 0x2a0   : > { %v4931_v18 = vpop.f32.mrf.mxu0  ;;  %v4975_v0 = vadd.f32 %v4847_v38, %v19307_v56  ;;  %v4978_v56 = vadd.f32 %v19321_v57, %v19313_v7 }
 0x2a1   : > { %v19325_v60 = vpop.f32.mrf.mxu1 }
 0x2a2   : > { %v4932_v19 = vpop.f32.mrf.mxu0 }
 0x2a3   : > { %v16816_v63 = vpop.f32.mrf.mxu1 }
 0x2a4   : > { %v5034_v58 = vpop.f32.mrf.mxu0 }
 0x2a5   : > { %v4971_v21 = vpop.f32.mrf.mxu1  ;;  %v5163_v18 = vadd.f32 %v5034_v58, %v4974_v33 }
 0x2a6   : > { %v5036_v12 = vpop.f32.mrf.mxu0 }
 0x2a7   : > { %v16817_v20 = vpop.f32.mrf.mxu1  ;;  %v5164_v21 = vadd.f32 %v5036_v12, %v4975_v0 }
 0x2a8   : > { %v5038_v45 = vpop.f32.mrf.mxu0 }
 0x2a9   : > { %v5075_v22 = vpop.f32.mrf.mxu1 }
 0x2aa   : > { %v5039_v2 = vpop.f32.mrf.mxu0 }
 0x2ab   : > { %v5077_v62 = vpop.f32.mrf.mxu1  ;;  %v4976_v2 = vadd.f32 %v4886_v24, %v19309_v35  ;;  %v4979_v35 = vadd.f32 %v19323_v39, %v19315_v4 }
 0x2ac   : > { %v5116_v41 = vpop.f32.mrf.mxu0 }
 0x2ad   : > { %v5079_v5 = vpop.f32.mrf.mxu1  ;;  %v5165_v31 = vadd.f32 %v5075_v22, %v4976_v2  ;;  %v5167_v24 = vadd.f32 %v5116_v41, %v4978_v56 }
 0x2ae   : > { %v19327_v8 = vpop.f32.mrf.mxu0 }
 0x2af   : > { %v5080_v15 = vpop.f32.mrf.mxu1 }
 0x2b0   : > { %v5120_v32 = vpop.f32.mrf.mxu0 }
 0x2b1   : > { %v19329_v29 = vpop.f32.mrf.mxu1 }
 0x2b2   : > { %v5121_v25 = vpop.f32.mrf.mxu0 }
 0x2b3   : > { %v16822_v42 = vpop.f32.mrf.mxu1 }
 0x2b4   : > { %v5215_v34 = vpop.f32.mrf.mxu0  ;;  %v4977_v42 = vadd.f32 %v19319_v43, %v19311_v23 }
 0x2b5   : > { %v5160_v14 = vpop.f32.mrf.mxu1  ;;  %v5344_v20 = vadd.f32 %v5215_v34, %v5163_v18 }
 0x2b6   : > { %v5217_v48 = vpop.f32.mrf.mxu0  ;;  %v5717_v14 = vpop.permute.xlu0 %5716  ;;  %v5166_v34 = vadd.f32 %v5077_v62, %v4977_v42  ;;  %v4980_v62 = vadd.f32 %v19325_v60, %v19317_v28 }
 0x2b7   : > { %v16823_v3 = vpop.f32.mrf.mxu1  ;;  %v5345_v15 = vadd.f32 %v5217_v48, %v5164_v21 }
 0x2b8   : > { %v5219_v17 = vpop.f32.mrf.mxu0 }
 0x2b9   : > { %v5256_v36 = vpop.f32.mrf.mxu1 }
 0x2ba   : > { %v5220_v55 = vpop.f32.mrf.mxu0  ;;  %v5346_v3 = vadd.f32 %v5256_v36, %v5165_v31  ;;  %v22205_v31 = vld [vmem:[#allocation4_spill] sm:$0xff] }
 0x2bb   : > { %v5258_v10 = vpop.f32.mrf.mxu1  ;;  %v5737_v56 = vadd.s32 24, %v22205_v31 }
 0x2bc   : > { %v5297_v46 = vpop.f32.mrf.mxu0  ;;  %v5347_v23 = vadd.f32 %v5258_v10, %v5166_v34 }
 0x2bd   : > { %v5260_v54 = vpop.f32.mrf.mxu1  ;;  %v5348_v7 = vadd.f32 %v5297_v46, %v5167_v24 }
 0x2be   : > { %v5299_v9 = vpop.f32.mrf.mxu0 }
 0x2bf   : > { %v5261_v53 = vpop.f32.mrf.mxu1 }
 0x2c0   : > { %v5301_v13 = vpop.f32.mrf.mxu0  ;;  %v5168_v53 = vadd.f32 %v19327_v8, %v4979_v35 }
 0x2c1   : > { %v19331_v44 = vpop.f32.mrf.mxu1 }
 0x2c2   : > { %v5302_v30 = vpop.f32.mrf.mxu0  ;;  %v5349_v39 = vadd.f32 %v5299_v9, %v5168_v53 }
 0x2c3   : > { %v16828_v59 = vpop.f32.mrf.mxu1 }
 0x2c4   : > { %v5396_v11 = vpop.f32.mrf.mxu0 }
 0x2c5   : > { %v5341_v1 = vpop.f32.mrf.mxu1  ;;  %v5525_v32 = vadd.f32 %v5396_v11, %v5344_v20 }
 0x2c6   : > { %v5398_v47 = vpop.f32.mrf.mxu0  ;;  %v5169_v1 = vadd.f32 %v19329_v29, %v4980_v62 }
 0x2c7   : > { %v16829_v26 = vpop.f32.mrf.mxu1  ;;  %v5526_v38 = vadd.f32 %v5398_v47, %v5345_v15 }
 0x2c8   : > { %v5400_v27 = vpop.f32.mrf.mxu0 }
 0x2c9   : > { %v5437_v40 = vpop.f32.mrf.mxu1  ;;  %v5350_v27 = vadd.f32 %v19331_v44, %v5169_v1 }
 0x2ca   : > { %v5401_v51 = vpop.f32.mrf.mxu0  ;;  %v5527_v43 = vadd.f32 %v5437_v40, %v5346_v3  ;;  %v19387_v3 = vadd.s32 8, %v22205_v31 }
 0x2cb   : > { %v5439_v49 = vpop.f32.mrf.mxu1 }
 0x2cc   : > { %v5478_v37 = vpop.f32.mrf.mxu0  ;;  %v5528_v36 = vadd.f32 %v5439_v49, %v5347_v23  ;;  %22207 = vst [vmem:[#allocation9_spill] sm:$0xff] %v19387_v3 }
 0x2cd   : > { %v5441_v6 = vpop.f32.mrf.mxu1  ;;  %v5529_v41 = vadd.f32 %v5478_v37, %v5348_v7 }
 0x2ce   : > { %v5480_v52 = vpop.f32.mrf.mxu0 }
 0x2cf   : > { %v5442_v19 = vpop.f32.mrf.mxu1  ;;  %v5530_v47 = vadd.f32 %v5480_v52, %v5349_v39 }
 0x2d0   : > { %v5482_v63 = vpop.f32.mrf.mxu0 }
 0x2d1   : > { %v5519_v45 = vpop.f32.mrf.mxu1 }
 0x2d2   : > { %v5483_v5 = vpop.f32.mrf.mxu0  ;;  %v5531_v29 = vadd.f32 %v5519_v45, %v5350_v27 }
 0x2d3   : > { %v16834_v25 = vpop.f32.mrf.mxu1 }
 0x2d4   : > { %v5577_v61 = vpop.f32.mrf.mxu0  ;;  %v22204_v25 = vlaneseq }
 0x2d5   : > { %v5522_v58 = vpop.f32.mrf.mxu1  ;;  %v5706_v12 = vadd.f32 %v5577_v61, %v5525_v32  ;;  %v5736_v61 = vadd.s32 16, %v22205_v31 }
 0x2d6   : > { %v5579_v17 = vpop.f32.mrf.mxu0  ;;  %v5739_v42 = vand.u32 127, %v22204_v25 }
 0x2d7   : > { %v16835_v48 = vpop.f32.mrf.mxu1  ;;  %v5707_v55 = vadd.f32 %v5579_v17, %v5526_v38  ;;  %v19342_v54 = vadd.f32 %v5717_v14, %v5706_v12 }
 0x2d8   : > { %v5581_v22 = vpop.f32.mrf.mxu0  ;;  %v19377_v38 = vmul.u32 2, %v5739_v42 }
 0x2d9   : > { %v19345_v57 = vadd.f32 %v5717_v14, %v5707_v55  ;;  %v5618_v13 = vpop.f32.mrf.mxu1  ;;  %v5726_v59 = vmax.f32 %v19342_v54, 0.0 }
 0x2da   : > { %v5708_v30 = vadd.f32 %v5618_v13, %v5527_v43  ;;  %v5582_v4 = vpop.f32.mrf.mxu0  ;;  %22206 = vst [vmem:[#allocation6_spill] sm:$0xff] %v19377_v38  ;;  %vm5743_vm3 = vcmp.eq.s32.totalorder %v5736_v61, %v19377_v38  ;;  %vm5744_vm1 = vcmp.eq.s32.totalorder %v5737_v56, %v19377_v38  ;;  %v17975_v43 = vmov 1.0|1.0  }
 0x2db   : > { %v5727_v10 = vmax.f32 %v19345_v57, 0.0  ;;  %v5620_v11 = vpop.f32.mrf.mxu1  ;;  %v5748_v58 = vsel %vm5744_vm1, 1.0, %v22197_v50  ;;  %vm22171_vm1 = vcmp.eq.s32.totalorder %v22205_v31, %v19377_v38 }
 0x2dc   : > { %v5709_v8 = vadd.f32 %v5620_v11, %v5528_v36  ;;  %v5659_v46 = vpop.f32.mrf.mxu0  ;;  %v19356_v60 = vadd.f32 %v5717_v14, %v5708_v30 }
 0x2dd   : > { %v17664_v28 = vpack.i.bf16 %v5727_v10, %v5726_v59  ;;  %v5622_v26 = vpop.f32.mrf.mxu1  ;;  %v5710_v9 = vadd.f32 %v5659_v46, %v5529_v41 }
 0x2de   : > { %v19359_v40 = vadd.f32 %v5717_v14, %v5709_v8  ;;  %v5661_v51 = vpop.f32.mrf.mxu0  ;;  %v5728_v52 = vmax.f32 %v19356_v60, 0.0 }
 0x2df   : > { %v5623_v49 = vpop.f32.mrf.mxu1  ;;  %v5711_v37 = vadd.f32 %v5661_v51, %v5530_v47  ;;  %17665 = vrot.lane.b32.xlu1 %v17664_v28, %s17952_s23  ;;  %v5723_v0 = vadd.f32 %v5717_v14, %v5710_v9 }
 0x2e0   : > { %v5729_v33 = vmax.f32 %v19359_v40, 0.0  ;;  %v5663_v6 = vpop.f32.mrf.mxu0 }
 0x2e1   : > { %v19364_v18 = vadd.f32 %v5717_v14, %v5711_v37  ;;  %v5700_v19 = vpop.f32.mrf.mxu1  ;;  %v5730_v45 = vmax.f32 %v5723_v0, 0.0 }
 0x2e2   : > { %v5712_v63 = vadd.f32 %v5700_v19, %v5531_v29  ;;  %5764 = vrot.lane.b32.xlu0 %v5729_v33, %s17952_s23  ;;  %v5664_v44 = vpop.f32.mrf.mxu0 }
 0x2e3   : > { %v5731_v21 = vmax.f32 %v19364_v18, 0.0  ;;  %5762 = vrot.lane.b32.xlu1 %v5728_v52, %s17952_s23  ;;  %v16840_v20 = vpop.f32.mrf.mxu1 }
 0x2e4   : > { %v5725_v2 = vadd.f32 %v5717_v14, %v5712_v63  ;;  %v5747_v14 = vsel %vm5743_vm3, 1.0, %v22197_v50 }
 0x2e5   : > { %v5703_v5 = vpop.f32.mrf.mxu1  ;;  %v5750_v12 = vpack.c.bf16 %v5748_v58, %v5747_v14 }
 0x2e6   : > { %5768 = vrot.lane.b32.xlu0 %v5731_v21, %s17952_s23  ;;  %v5732_v32 = vmax.f32 %v5725_v2, 0.0 }
 0x2e7   : > { %5766 = vrot.lane.b32.xlu1 %v5730_v45, %s17952_s23  ;;  %v16841_v15 = vpop.f32.mrf.mxu1  ;;  %v19383_v34 = vsel %vm5840_vm15, %v5750_v12, 0  ;;  %vm22170_vm15 = vcmp.eq.s32.totalorder %v19387_v3, %v19377_v38 }
 0x2e8   : > { %16843 = vmatpush3.bf16.msra.mxu0 %v19383_v34  ;;  %16851 = vmatpush3.bf16.msra.mxu1 %v19383_v34  ;;  %vm19402_vm3 = vmpackc.low %vm22170_vm15, %vm22171_vm1  ;;  %vm389_vm15 = vcmask 1042432   ;;  %vm390_vm1 = vcmask 784388  }
 0x2e9   : > { %16844 = vmatprep.subr.bf16.mxu0 %v22197_v50  ;;  %16852 = vmatprep.subr.bf16.mxu1 %v22197_v50  ;;  %vm391_vm14 = vmor %vm390_vm1, %vm389_vm15  ;;  %vm5940_vm1 = vcmask 370944  }
 0x2ea   : > { %392 = vst.msk [vmem:[#allocation2 + $0x8] sm:$0x77] %vm391_vm14, %v22198_v16  ;;  %vm5885_vm14 = vcmask 108544  }
 0x2eb   : > { %5770 = vrot.lane.b32.xlu1 %v5732_v32, %s17952_s23 }
 0x2ec   : > { %16845 = vmatpush3.bf16.msk.msra.mxu0 %vm19402_vm3, %v17975_v43  ;;  %16853 = vmatpush3.bf16.msk.msra.mxu1 %vm19402_vm3, %v17975_v43 }
 0x2ed   : > { %16858 = vmatprep.subr.bf16.mxu0 %v22197_v50  ;;  %16866 = vmatprep.subr.bf16.mxu1 %v22197_v50 }
 0x351   : > { %v17666_v17 = vpop.permute.xlu1 %17665 }
 0x352   : > { %v17668_v35 = vunpack.i.h.bf16 %v17666_v17  ;;  %v17667_v24 = vunpack.i.l.bf16 %v17666_v17 }
 0x354   : > { %v5773_v55 = vsel %vm456_vm2, %v17667_v24, %v17668_v35  ;;  %v5765_v23 = vpop.permute.xlu0 %5764 }
 0x355   : > { %v5763_v22 = vpop.permute.xlu1 %5762  ;;  %v5786_v13 = vmax.f32 %v5726_v59, %v5773_v55 }
 0x356   : > { %v5774_v53 = vsel %vm456_vm2, %v17668_v35, %v5763_v22  ;;  %v5775_v7 = vsel %vm456_vm2, %v5763_v22, %v5765_v23 }
 0x357   : > { %v5787_v62 = vmax.f32 %v5727_v10, %v5774_v53  ;;  %v5788_v36 = vmax.f32 %v5728_v52, %v5775_v7 }
 0x358   : > { %v5769_v4 = vpop.permute.xlu0 %5768 }
 0x359   : > { %v17669_v30 = vpack.i.bf16 %v5787_v62, %v5786_v13  ;;  %5804 = vrot.lane.b32.xlu1 %v5788_v36, %s17957_s27  ;;  %v5767_v39 = vpop.permute.xlu1 %5766 }
 0x35a   : > { %v5776_v41 = vsel %vm456_vm2, %v5765_v23, %v5767_v39  ;;  %v5777_v11 = vsel %vm456_vm2, %v5767_v39, %v5769_v4 }
 0x35b   : > { %v5790_v1 = vmax.f32 %v5730_v45, %v5777_v11  ;;  %17670 = vrot.lane.b32.xlu0 %v17669_v30, %s17957_s27  ;;  %v5789_v54 = vmax.f32 %v5729_v33, %v5776_v41 }
 0x35d   : > { %5808 = vrot.lane.b32.xlu1 %v5790_v1, %s17957_s27  ;;  %v5771_v57 = vpop.permute.xlu1 %5770 }
 0x35e   : > { %v5778_v59 = vsel %vm456_vm2, %v5769_v4, %v5771_v57  ;;  %v5792_v10 = vmax.f32 %v5732_v32, %v5771_v57 }
 0x35f   : > { %5806 = vrot.lane.b32.xlu0 %v5789_v54, %s17957_s27  ;;  %v5791_v8 = vmax.f32 %v5731_v21, %v5778_v59 }
 0x361   : > { %5812 = vrot.lane.b32.xlu1 %v5792_v10, %s17957_s27 }
 0x363   : > { %5810 = vrot.lane.b32.xlu0 %v5791_v8, %s17957_s27 }
 0x3cb   : > { %v5805_v46 = vpop.permute.xlu1 %5804 }
 0x3cd   : > { %v17671_v47 = vpop.permute.xlu0 %17670 }
 0x3ce   : > { %v17673_v28 = vunpack.i.h.bf16 %v17671_v47  ;;  %v17672_v60 = vunpack.i.l.bf16 %v17671_v47 }
 0x3cf   : > { %v5809_v26 = vpop.permute.xlu1 %5808 }
 0x3d0   : > { %v5815_v9 = vsel %vm1521_vm8, %v17672_v60, %v17673_v28  ;;  %v5816_v27 = vsel %vm1521_vm8, %v17673_v28, %v5805_v46 }
 0x3d1   : > { %v5828_v40 = vmax.f32 %v5786_v13, %v5815_v9  ;;  %v5807_v51 = vpop.permute.xlu0 %5806  ;;  %v5829_v49 = vmax.f32 %v5787_v62, %v5816_v27 }
 0x3d2   : > { %v5817_v37 = vsel %vm1521_vm8, %v5805_v46, %v5807_v51  ;;  %v5818_v29 = vsel %vm1521_vm8, %v5807_v51, %v5809_v26 }
 0x3d3   : > { %v5835_v33 = vpack.c.bf16 %v5828_v40, %v5828_v40  ;;  %v5830_v6 = vmax.f32 %v5788_v36, %v5817_v37  ;;  %v5942_v52 = vpack.c.bf16 %v5829_v49, %v5829_v49  ;;  %v5831_v0 = vmax.f32 %v5789_v54, %v5818_v29  ;;  %v5813_v18 = vpop.permute.xlu1 %5812 }
 0x3d4   : > { %v5834_v5 = vmax.f32 %v5792_v10, %v5813_v18 }
 0x3d5   : > { %16847 = vmatmul.mubr.msk.bf16.vlgmr.msra.gmra.mxu0 %vm4601_vm0, %v5835_v33  ;;  %5888 = vrot.lane.b32.xlu0 %v5835_v33, %s22187_s19  ;;  %v5811_v19 = vpop.permute.xlu0 %5810  ;;  %v6050_v21 = vpack.c.bf16 %v5830_v6, %v5830_v6  ;;  %v6150_v45 = vpack.c.bf16 %v5831_v0, %v5831_v0 }
 0x3d6   : > { %v5819_v63 = vsel %vm1521_vm8, %v5809_v26, %v5811_v19  ;;  %v5820_v44 = vsel %vm1521_vm8, %v5811_v19, %v5813_v18  ;;  %5996 = vrot.lane.b32.xlu1 %v5942_v52, %s22187_s19  ;;  %16859 = vmatpush3.bf16.msra.mxu0 %v19383_v34  ;;  %v6462_v25 = vpack.c.bf16 %v5834_v5, %v5834_v5 }
 0x3d7   : > { %v5832_v20 = vmax.f32 %v5790_v1, %v5819_v63  ;;  %16860 = vmatprep.subr.bf16.mxu0 %v22197_v50  ;;  %16862 = vmatprep.mubr.msk.bf16.mxu0 %vm17964_vm5, %v22197_v50  ;;  %v5833_v2 = vmax.f32 %v5791_v8, %v5820_v44 }
 0x3d9   : > { %6097 = vrot.lane.b32.xlu0 %v6050_v21, %s22187_s19  ;;  %v6256_v15 = vpack.c.bf16 %v5832_v20, %v5832_v20  ;;  %v6356_v32 = vpack.c.bf16 %v5833_v2, %v5833_v2 }
 0x3da   : > { %6203 = vrot.lane.b32.xlu1 %v6150_v45, %s22187_s19  ;;  %16861 = vmatpush3.bf16.msk.msra.mxu0 %vm19402_vm3, %v17975_v43 }
 0x3db   : > { %16874 = vmatprep.subr.bf16.mxu0 %v22197_v50 }
 0x3dd   : > { %16863 = vmatmul.mubr.msk.bf16.vlgmr.msra.gmra.mxu0 %vm4601_vm0, %v5942_v52  ;;  %6303 = vrot.lane.b32.xlu0 %v6256_v15, %s22187_s19 }
 0x3de   : > { %6409 = vrot.lane.b32.xlu1 %v6356_v32, %s22187_s19  ;;  %16875 = vmatpush3.bf16.msra.mxu0 %v19383_v34 }
 0x3df   : > { %16876 = vmatprep.subr.bf16.mxu0 %v22197_v50  ;;  %16878 = vmatprep.mubr.msk.bf16.mxu0 %vm17964_vm5, %v22197_v50 }
 0x3e1   : > { %6509 = vrot.lane.b32.xlu0 %v6462_v25, %s22187_s19 }
 0x3e2   : > { %16877 = vmatpush3.bf16.msk.msra.mxu0 %vm19402_vm3, %v17975_v43 }
 0x3e3   : > { %16890 = vmatprep.subr.bf16.mxu0 %v22197_v50 }
 0x3e5   : > { %16879 = vmatmul.mubr.msk.bf16.vlgmr.msra.gmra.mxu0 %vm4601_vm0, %v6050_v21 }
 0x3e6   : > { %16891 = vmatpush3.bf16.msra.mxu0 %v19383_v34  ;;  %16894 = vmatprep.mubr.msk.bf16.mxu0 %vm17964_vm5, %v22197_v50 }
 0x3e7   : > { %16892 = vmatprep.subr.bf16.mxu0 %v22197_v50 }
 0x3ea   : > { %16893 = vmatpush3.bf16.msk.msra.mxu0 %vm19402_vm3, %v17975_v43 }
 0x3eb   : > { %16906 = vmatprep.subr.bf16.mxu0 %v22197_v50 }
 0x3ed   : > { %16895 = vmatmul.mubr.msk.bf16.vlgmr.msra.gmra.mxu0 %vm4601_vm0, %v6150_v45 }
 0x3ee   : > { %16907 = vmatpush3.bf16.msra.mxu0 %v19383_v34  ;;  %16910 = vmatprep.mubr.msk.bf16.mxu0 %vm17964_vm5, %v22197_v50 }
 0x3ef   : > { %16908 = vmatprep.subr.bf16.mxu0 %v22197_v50 }
 0x3f2   : > { %16909 = vmatpush3.bf16.msk.msra.mxu0 %vm19402_vm3, %v17975_v43 }
 0x3f3   : > { %16922 = vmatprep.subr.bf16.mxu0 %v22197_v50 }
 0x3f5   : > { %16911 = vmatmul.mubr.msk.bf16.vlgmr.msra.gmra.mxu0 %vm4601_vm0, %v6256_v15 }
 0x3f6   : > { %16923 = vmatpush3.bf16.msra.mxu0 %v19383_v34  ;;  %16926 = vmatprep.mubr.msk.bf16.mxu0 %vm17964_vm5, %v22197_v50 }
 0x3f7   : > { %16924 = vmatprep.subr.bf16.mxu0 %v22197_v50 }
 0x3fa   : > { %16925 = vmatpush3.bf16.msk.msra.mxu0 %vm19402_vm3, %v17975_v43 }
 0x3fb   : > { %16938 = vmatprep.subr.bf16.mxu0 %v22197_v50 }
 0x3fd   : > { %16927 = vmatmul.mubr.msk.bf16.vlgmr.msra.gmra.mxu0 %vm4601_vm0, %v6356_v32 }
 0x3fe   : > { %16939 = vmatpush3.bf16.msra.mxu0 %v19383_v34  ;;  %16942 = vmatprep.mubr.msk.bf16.mxu0 %vm17964_vm5, %v22197_v50 }
 0x3ff   : > { %16940 = vmatprep.subr.bf16.mxu0 %v22197_v50 }
 0x402   : > { %16941 = vmatpush3.bf16.msk.msra.mxu0 %vm19402_vm3, %v17975_v43 }
 0x405   : > { %16943 = vmatmul.mubr.msk.bf16.vlgmr.msra.gmra.mxu0 %vm4601_vm0, %v6462_v25 }
 0x406   : > { %6635 = vmatprep.mubr.bf16.mxu0 %v22198_v16 }
 0x447   : > { %v5889_v42 = vpop.permute.xlu0 %5888 }
 0x448   : > { %16855 = vmatmul.mubr.msk.bf16.vlgmr.msra.gmra.mxu1 %vm4601_vm0, %v5889_v42  ;;  %v5997_v61 = vpop.permute.xlu1 %5996 }
 0x449   : > { %16867 = vmatpush3.bf16.msra.mxu1 %v19383_v34  ;;  %16870 = vmatprep.mubr.msk.bf16.mxu1 %vm17964_vm5, %v22197_v50 }
 0x44a   : > { %16868 = vmatprep.subr.bf16.mxu1 %v22197_v50 }
 0x44b   : > { %v6098_v56 = vpop.permute.xlu0 %6097 }
 0x44c   : > { %v6204_v14 = vpop.permute.xlu1 %6203 }
 0x44d   : > { %16869 = vmatpush3.bf16.msk.msra.mxu1 %vm19402_vm3, %v17975_v43 }
 0x44e   : > { %16882 = vmatprep.subr.bf16.mxu1 %v22197_v50 }
 0x44f   : > { %v6304_v58 = vpop.permute.xlu0 %6303 }
 0x450   : > { %16871 = vmatmul.mubr.msk.bf16.vlgmr.msra.gmra.mxu1 %vm4601_vm0, %v5997_v61  ;;  %v6410_v12 = vpop.permute.xlu1 %6409 }
 0x451   : > { %16883 = vmatpush3.bf16.msra.mxu1 %v19383_v34  ;;  %16886 = vmatprep.mubr.msk.bf16.mxu1 %vm17964_vm5, %v22197_v50 }
 0x452   : > { %16884 = vmatprep.subr.bf16.mxu1 %v22197_v50 }
 0x453   : > { %v6510_v17 = vpop.permute.xlu0 %6509 }
 0x455   : > { %16885 = vmatpush3.bf16.msk.msra.mxu1 %vm19402_vm3, %v17975_v43 }
 0x456   : > { %16898 = vmatprep.subr.bf16.mxu1 %v22197_v50 }
 0x458   : > { %16887 = vmatmul.mubr.msk.bf16.vlgmr.msra.gmra.mxu1 %vm4601_vm0, %v6098_v56 }
 0x459   : > { %16899 = vmatpush3.bf16.msra.mxu1 %v19383_v34  ;;  %16902 = vmatprep.mubr.msk.bf16.mxu1 %vm17964_vm5, %v22197_v50 }
 0x45a   : > { %16900 = vmatprep.subr.bf16.mxu1 %v22197_v50 }
 0x45d   : > { %16901 = vmatpush3.bf16.msk.msra.mxu1 %vm19402_vm3, %v17975_v43 }
 0x45e   : > { %16914 = vmatprep.subr.bf16.mxu1 %v22197_v50 }
 0x460   : > { %16903 = vmatmul.mubr.msk.bf16.vlgmr.msra.gmra.mxu1 %vm4601_vm0, %v6204_v14 }
 0x461   : > { %16915 = vmatpush3.bf16.msra.mxu1 %v19383_v34  ;;  %16918 = vmatprep.mubr.msk.bf16.mxu1 %vm17964_vm5, %v22197_v50 }
 0x462   : > { %16916 = vmatprep.subr.bf16.mxu1 %v22197_v50 }
 0x465   : > { %16917 = vmatpush3.bf16.msk.msra.mxu1 %vm19402_vm3, %v17975_v43 }
 0x466   : > { %16930 = vmatprep.subr.bf16.mxu1 %v22197_v50 }
 0x468   : > { %16919 = vmatmul.mubr.msk.bf16.vlgmr.msra.gmra.mxu1 %vm4601_vm0, %v6304_v58 }
 0x469   : > { %16931 = vmatpush3.bf16.msra.mxu1 %v19383_v34  ;;  %16934 = vmatprep.mubr.msk.bf16.mxu1 %vm17964_vm5, %v22197_v50 }
 0x46a   : > { %16932 = vmatprep.subr.bf16.mxu1 %v22197_v50 }
 0x46d   : > { %16933 = vmatpush3.bf16.msk.msra.mxu1 %vm19402_vm3, %v17975_v43 }
 0x46e   : > { %16946 = vmatprep.subr.bf16.mxu1 %v22197_v50 }
 0x470   : > { %16935 = vmatmul.mubr.msk.bf16.vlgmr.msra.gmra.mxu1 %vm4601_vm0, %v6410_v12 }
 0x471   : > { %16947 = vmatpush3.bf16.msra.mxu1 %v19383_v34  ;;  %16950 = vmatprep.mubr.msk.bf16.mxu1 %vm17964_vm5, %v22197_v50 }
 0x472   : > { %16948 = vmatprep.subr.bf16.mxu1 %v22197_v50 }
 0x475   : > { %16949 = vmatpush3.bf16.msk.msra.mxu1 %vm19402_vm3, %v17975_v43  ;;  %vm5993_vm3 = vcmask 633344  }
 0x476   : > { %16954 = vmatprep.subr.bf16.mxu1 %v22197_v50 }
 0x478   : > { %16951 = vmatmul.mubr.msk.bf16.vlgmr.msra.gmra.mxu1 %vm4601_vm0, %v6510_v17 }
 0x479   : > { %16956 = vmatprep.mubr.msk.bf16.mxu1 %vm17964_vm5, %v22197_v50 }
 0x495   : > { %v5878_v35 = vpop.f32.mrf.mxu0 }
 0x496   : > { %v5884_v34 = vpack.c.bf16 %v5878_v35, %v5878_v35 }
 0x497   : > { %v16848_v24 = vpop.f32.mrf.mxu0 }
 0x498   : > { %5886 = vst.msk [vmem:[#allocation2] sm:$0x7] %vm5885_vm14, %v5884_v34 }
 0x499   : > { %v5881_v55 = vpop.f32.mrf.mxu0 }
 0x49b   : > { %v16849_v23 = vpop.f32.mrf.mxu0 }
 0x49d   : > { %v5980_v22 = vpop.f32.mrf.mxu0 }
 0x49e   : > { %v16275_v53 = vpack.c.bf16 %v5980_v22, %v5980_v22 }
 0x49f   : > { %v16864_v48 = vpop.f32.mrf.mxu0 }
 0x4a0   : > { %5990 = vrot.lane.b32.xlu0 %v16275_v53, %s22187_s19 }
 0x4a1   : > { %v5983_v43 = vpop.f32.mrf.mxu0 }
 0x4a3   : > { %v16865_v7 = vpop.f32.mrf.mxu0 }
 0x4a5   : > { %v6088_v13 = vpop.f32.mrf.mxu0 }
 0x4a6   : > { %v6094_v62 = vpack.c.bf16 %v6088_v13, %v6088_v13 }
 0x4a7   : > { %v16880_v36 = vpop.f32.mrf.mxu0 }
 0x4a8   : > { %6095 = vst.msk [vmem:[#allocation2 + $0x4] sm:$0x7] %vm5885_vm14, %v6094_v62 }
 0x4a9   : > { %v6091_v30 = vpop.f32.mrf.mxu0 }
 0x4ab   : > { %v16881_v4 = vpop.f32.mrf.mxu0 }
 0x4ad   : > { %v6188_v39 = vpop.f32.mrf.mxu0 }
 0x4ae   : > { %v16278_v41 = vpack.c.bf16 %v6188_v39, %v6188_v39 }
 0x4af   : > { %v16896_v11 = vpop.f32.mrf.mxu0 }
 0x4b0   : > { %6198 = vrot.lane.b32.xlu1 %v16278_v41, %s22187_s19 }
 0x4b1   : > { %v6191_v1 = vpop.f32.mrf.mxu0 }
 0x4b3   : > { %v16897_v54 = vpop.f32.mrf.mxu0 }
 0x4b5   : > { %v6294_v57 = vpop.f32.mrf.mxu0 }
 0x4b6   : > { %v6300_v59 = vpack.c.bf16 %v6294_v57, %v6294_v57 }
 0x4b7   : > { %v16912_v10 = vpop.f32.mrf.mxu0 }
 0x4b8   : > { %6301 = vst.msk [vmem:[#allocation2 + $0x8] sm:$0x7] %vm5885_vm14, %v6300_v59 }
 0x4b9   : > { %v6297_v8 = vpop.f32.mrf.mxu0 }
 0x4bb   : > { %v16913_v46 = vpop.f32.mrf.mxu0 }
 0x4bd   : > { %v6394_v47 = vpop.f32.mrf.mxu0 }
 0x4be   : > { %v16281_v28 = vpack.c.bf16 %v6394_v47, %v6394_v47 }
 0x4bf   : > { %v16928_v60 = vpop.f32.mrf.mxu0 }
 0x4c0   : > { %6404 = vrot.lane.b32.xlu0 %v16281_v28, %s22187_s19 }
 0x4c1   : > { %v6397_v26 = vpop.f32.mrf.mxu0 }
 0x4c3   : > { %v16929_v9 = vpop.f32.mrf.mxu0 }
 0x4c5   : > { %v6500_v27 = vpop.f32.mrf.mxu0 }
 0x4c6   : > { %v6506_v40 = vpack.c.bf16 %v6500_v27, %v6500_v27 }
 0x4c7   : > { %v16944_v51 = vpop.f32.mrf.mxu0 }
 0x4c8   : > { %6507 = vst.msk [vmem:[#allocation2 + $0xc] sm:$0x7] %vm5885_vm14, %v6506_v40  ;;  %vm6048_vm14 = vcmask 895744  }
 0x4c9   : > { %v6503_v49 = vpop.f32.mrf.mxu0 }
 0x4cb   : > { %v16945_v37 = vpop.f32.mrf.mxu0 }
 0x508   : > { %v5927_v29 = vpop.f32.mrf.mxu1 }
 0x509   : > { %v16274_v33 = vpack.c.bf16 %v5927_v29, %v5927_v29  ;;  %v17711_v29 = vld [vmem:[%s22129_s3 + $0x8] sm:$0xff]  }
 0x50a   : > { %v16856_v6 = vpop.f32.mrf.mxu1 }
 0x50b   : > { %5937 = vrot.lane.b32.xlu1 %v16274_v33, %s22186_s13 }
 0x50c   : > { %v5930_v52 = vpop.f32.mrf.mxu1 }
 0x50e   : > { %v16857_v0 = vpop.f32.mrf.mxu1 }
 0x510   : > { %v6035_v18 = vpop.f32.mrf.mxu1 }
 0x511   : > { %v16276_v19 = vpack.c.bf16 %v6035_v18, %v6035_v18 }
 0x512   : > { %v16872_v63 = vpop.f32.mrf.mxu1  ;;  %v5991_v30 = vpop.permute.xlu0 %5990 }
 0x513   : > { %6045 = vrot.lane.b32.xlu1 %v16276_v19, %s17957_s27 }
 0x514   : > { %v6038_v44 = vpop.f32.mrf.mxu1 }
 0x516   : > { %v16873_v21 = vpop.f32.mrf.mxu1 }
 0x517   : > { %v17712_v21 = vld [vmem:[%s22129_s3] sm:$0xff]  }
 0x518   : > { %v6136_v20 = vpop.f32.mrf.mxu1 }
 0x519   : > { %v16277_v45 = vpack.c.bf16 %v6136_v20, %v6136_v20 }
 0x51a   : > { %v16888_v2 = vpop.f32.mrf.mxu1 }
 0x51b   : > { %6146 = vrot.lane.b32.xlu0 %v16277_v45, %s22186_s13 }
 0x51c   : > { %v6139_v5 = vpop.f32.mrf.mxu1 }
 0x51e   : > { %v16889_v15 = vpop.f32.mrf.mxu1 }
 0x520   : > { %v6242_v32 = vpop.f32.mrf.mxu1 }
 0x521   : > { %v16279_v25 = vpack.c.bf16 %v6242_v32, %v6242_v32  ;;  %v9486_v32 = vld [vmem:[%s22130_s4 + $0x8] sm:$0xff] }
 0x522   : > { %v16904_v42 = vpop.f32.mrf.mxu1  ;;  %v6199_v62 = vpop.permute.xlu1 %6198 }
 0x523   : > { %6252 = vrot.lane.b32.xlu0 %v16279_v25, %s17957_s27 }
 0x524   : > { %v6245_v61 = vpop.f32.mrf.mxu1 }
 0x526   : > { %v16905_v56 = vpop.f32.mrf.mxu1 }
 0x527   : > { %v17713_v56 = vld [vmem:[%s22129_s3 + $0x10] sm:$0xff]  }
 0x528   : > { %v6342_v14 = vpop.f32.mrf.mxu1 }
 0x529   : > { %v16280_v58 = vpack.c.bf16 %v6342_v14, %v6342_v14 }
 0x52a   : > { %v16920_v12 = vpop.f32.mrf.mxu1 }
 0x52b   : > { %6352 = vrot.lane.b32.xlu1 %v16280_v58, %s22186_s13 }
 0x52c   : > { %v6345_v17 = vpop.f32.mrf.mxu1 }
 0x52e   : > { %v16921_v35 = vpop.f32.mrf.mxu1 }
 0x530   : > { %v6448_v34 = vpop.f32.mrf.mxu1 }
 0x531   : > { %v16282_v24 = vpack.c.bf16 %v6448_v34, %v6448_v34 }
 0x532   : > { %v16936_v55 = vpop.f32.mrf.mxu1  ;;  %v6405_v39 = vpop.permute.xlu0 %6404 }
 0x533   : > { %6458 = vrot.lane.b32.xlu1 %v16282_v24, %s17957_s27 }
 0x534   : > { %v6451_v23 = vpop.f32.mrf.mxu1 }
 0x535   : > { %v17714_v23 = vld [vmem:[%s22129_s3 + $0x18] sm:$0xff]  }
 0x536   : > { %v16937_v22 = vpop.f32.mrf.mxu1 }
 0x538   : > { %v6548_v53 = vpop.f32.mrf.mxu1 }
 0x539   : > { %v16283_v48 = vpack.c.bf16 %v6548_v53, %v6548_v53 }
 0x53a   : > { %v16952_v43 = vpop.f32.mrf.mxu1 }
 0x53b   : > { %6558 = vrot.lane.b32.xlu0 %v16283_v48, %s22186_s13 }
 0x53c   : > { %v6551_v7 = vpop.f32.mrf.mxu1 }
 0x53e   : > { %v16953_v13 = vpop.f32.mrf.mxu1 }
 0x57d   : > { %v5938_v36 = vpop.permute.xlu1 %5937 }
 0x57e   : > { %5941 = vst.msk [vmem:[#allocation2] sm:$0x7] %vm5940_vm1, %v5938_v36 }
 0x57f   : > { %5994 = vst.msk [vmem:[#allocation2] sm:$0x7] %vm5993_vm3, %v5991_v30  ;;  %v17715_v30 = vld [vmem:[%s22129_s3 + $0x20] sm:$0xff]  }
 0x585   : > { %v6046_v4 = vpop.permute.xlu1 %6045 }
 0x586   : > { %6049 = vst.msk [vmem:[#allocation2] sm:$0x7] %vm6048_vm14, %v6046_v4 }
 0x58d   : > { %v6147_v41 = vpop.permute.xlu0 %6146 }
 0x58e   : > { %6149 = vst.msk [vmem:[#allocation2 + $0x4] sm:$0x7] %vm5940_vm1, %v6147_v41 }
 0x58f   : > { %6201 = vst.msk [vmem:[#allocation2 + $0x4] sm:$0x7] %vm5993_vm3, %v6199_v62 }
 0x595   : > { %v6253_v11 = vpop.permute.xlu0 %6252 }
 0x596   : > { %6255 = vst.msk [vmem:[#allocation2 + $0x4] sm:$0x7] %vm6048_vm14, %v6253_v11 }
 0x59d   : > { %v6562_v1 = vld [vmem:[#allocation2] sm:$0x77]  ;;  %v6353_v54 = vpop.permute.xlu1 %6352 }
 0x59e   : > { %v19579_v57 = vcombine.low %v6562_v1, %v6562_v1  ;;  %v19581_v59 = vcombine.high %v6562_v1, %v6562_v1  ;;  %6355 = vst.msk [vmem:[#allocation2 + $0x8] sm:$0x7] %vm5940_vm1, %v6353_v54 }
 0x59f   : > { %6407 = vst.msk [vmem:[#allocation2 + $0x8] sm:$0x7] %vm5993_vm3, %v6405_v39 }
 0x5a0   : > { %6584 = vrot.lane.b32.xlu0 %v19581_v59, %s17952_s23  ;;  %6582 = vrot.lane.b32.xlu1 %v19579_v57, %s17952_s23  ;;  %v6696_v18 = vsel %vm389_vm15, %v19579_v57, 0 }
 0x5a4   : > { %6796 = vrot.lane.b32.xlu0 %v19579_v57, %s22188_s24 }
 0x5a5   : > { %v6459_v10 = vpop.permute.xlu1 %6458 }
 0x5a6   : > { %6461 = vst.msk [vmem:[#allocation2 + $0x8] sm:$0x7] %vm6048_vm14, %v6459_v10  ;;  %vm22222_vm14 = vcmask 498688  }
 0x5ad   : > { %v6559_v8 = vpop.permute.xlu0 %6558 }
 0x5ae   : > { %6561 = vst.msk [vmem:[#allocation2 + $0xc] sm:$0x7] %vm5940_vm1, %v6559_v8  ;;  %vm6590_vm1 = vcmask 48128   ;;  %v17716_v8 = vld [vmem:[%s22129_s3 + $0x28] sm:$0xff]  }
 0x5b5   : > { %v6563_v46 = vld [vmem:[#allocation2 + $0x8] sm:$0x77] }
 0x5b6   : > { %v19593_v47 = vcombine.low %v6563_v46, %v6563_v46  ;;  %v19651_v28 = vcombine.high %v6563_v46, %v6563_v46 }
 0x5b8   : > { %6800 = vrot.lane.b32.xlu0 %v19593_v47, %s22188_s24  ;;  %6586 = vrot.lane.b32.xlu1 %v19593_v47, %s17952_s23  ;;  %v6702_v0 = vsel %vm389_vm15, %v19593_v47, 0 }
 0x5bc   : > { %6916 = vrot.lane.b32.xlu0 %v19581_v59, %s22190_s25  ;;  %6798 = vrot.lane.b32.xlu1 %v19581_v59, %s22188_s24 }
 0x5c0   : > { %7032 = vrot.lane.b32.xlu0 %v19579_v57, %s22189_s26  ;;  %6914 = vrot.lane.b32.xlu1 %v19579_v57, %s22190_s25 }
 0x5c4   : > { %7036 = vrot.lane.b32.xlu0 %v19593_v47, %s22189_s26  ;;  %6918 = vrot.lane.b32.xlu1 %v19593_v47, %s22190_s25 }
 0x5c8   : > { %7152 = vrot.lane.b32.xlu0 %v19581_v59, %s17957_s27  ;;  %7034 = vrot.lane.b32.xlu1 %v19581_v59, %s22189_s26 }
 0x5cc   : > { %7268 = vrot.lane.b32.xlu0 %v19579_v57, %s22179_s28  ;;  %7150 = vrot.lane.b32.xlu1 %v19579_v57, %s17957_s27 }
 0x5d0   : > { %7272 = vrot.lane.b32.xlu0 %v19593_v47, %s22179_s28  ;;  %7154 = vrot.lane.b32.xlu1 %v19593_v47, %s17957_s27 }
 0x5d4   : > { %7388 = vrot.lane.b32.xlu0 %v19581_v59, %s22175_s29  ;;  %7270 = vrot.lane.b32.xlu1 %v19581_v59, %s22179_s28  ;;  %s22247_s28 = smov 95  }
 0x5d8   : > { %7504 = vrot.lane.b32.xlu0 %v19579_v57, %s22176_s30  ;;  %7386 = vrot.lane.b32.xlu1 %v19579_v57, %s22175_s29 }
 0x5dc   : > { %7508 = vrot.lane.b32.xlu0 %v19593_v47, %s22176_s30  ;;  %7390 = vrot.lane.b32.xlu1 %v19593_v47, %s22175_s29 }
 0x5e0   : > { %7624 = vrot.lane.b32.xlu0 %v19581_v59, %s22174_s14  ;;  %7506 = vrot.lane.b32.xlu1 %v19581_v59, %s22176_s30 }
 0x5e4   : > { %7740 = vrot.lane.b32.xlu0 %v19579_v57, %s22187_s19  ;;  %7622 = vrot.lane.b32.xlu1 %v19579_v57, %s22174_s14 }
 0x5e8   : > { %7744 = vrot.lane.b32.xlu0 %v19593_v47, %s22187_s19  ;;  %7626 = vrot.lane.b32.xlu1 %v19593_v47, %s22174_s14  ;;  %s22215_s14 = smov 28  }
 0x5ec   : > { %7862 = vrot.lane.b32.xlu0 %v19581_v59, %s22173_s12  ;;  %7742 = vrot.lane.b32.xlu1 %v19581_v59, %s22187_s19 }
 0x5f0   : > { %7866 = vrot.lane.b32.xlu0 %v19651_v28, %s22173_s12  ;;  %7860 = vrot.lane.b32.xlu1 %v19579_v57, %s22173_s12 }
 0x5f4   : > { %7983 = vrot.lane.b32.xlu0 %v19581_v59, %s22210_s15  ;;  %7864 = vrot.lane.b32.xlu1 %v19593_v47, %s22173_s12  ;;  %s22214_s12 = smov 30  }
 0x5f8   : > { %7987 = vrot.lane.b32.xlu0 %v19651_v28, %s22210_s15  ;;  %7981 = vrot.lane.b32.xlu1 %v19579_v57, %s22210_s15 }
 0x5fc   : > { %8104 = vrot.lane.b32.xlu0 %v19581_v59, %s22211_s20  ;;  %7985 = vrot.lane.b32.xlu1 %v19593_v47, %s22210_s15 }
 0x600   : > { %8108 = vrot.lane.b32.xlu0 %v19651_v28, %s22211_s20  ;;  %8102 = vrot.lane.b32.xlu1 %v19579_v57, %s22211_s20 }
 0x604   : > { %8225 = vrot.lane.b32.xlu0 %v19581_v59, %s22212_s16  ;;  %8106 = vrot.lane.b32.xlu1 %v19593_v47, %s22211_s20 }
 0x608   : > { %8229 = vrot.lane.b32.xlu0 %v19651_v28, %s22212_s16  ;;  %8223 = vrot.lane.b32.xlu1 %v19579_v57, %s22212_s16 }
 0x60c   : > { %8346 = vrot.lane.b32.xlu0 %v19581_v59, %s22186_s13  ;;  %8227 = vrot.lane.b32.xlu1 %v19593_v47, %s22212_s16 }
 0x610   : > { %8350 = vrot.lane.b32.xlu0 %v19651_v28, %s22186_s13  ;;  %8344 = vrot.lane.b32.xlu1 %v19579_v57, %s22186_s13 }
 0x612   : > { %v6585_v60 = vpop.permute.xlu0 %6584  ;;  %v6583_v26 = vpop.permute.xlu1 %6582 }
 0x613   : > { %v6588_v27 = vsel %vm456_vm2, %v6583_v26, %v6585_v60 }
 0x614   : > { %8467 = vrot.lane.b32.xlu0 %v19581_v59, %s22213_s22  ;;  %8348 = vrot.lane.b32.xlu1 %v19593_v47, %s22186_s13  ;;  %v6595_v33 = vsel %vm389_vm15, %v6588_v27, 0 }
 0x616   : > { %v6797_v9 = vpop.permute.xlu0 %6796 }
 0x618   : > { %8471 = vrot.lane.b32.xlu0 %v19651_v28, %s22213_s22  ;;  %8465 = vrot.lane.b32.xlu1 %v19579_v57, %s22213_s22 }
 0x61c   : > { %8588 = vrot.lane.b32.xlu0 %v19581_v59, %s22214_s12  ;;  %8469 = vrot.lane.b32.xlu1 %v19593_v47, %s22213_s22 }
 0x620   : > { %8592 = vrot.lane.b32.xlu0 %v19651_v28, %s22214_s12  ;;  %8586 = vrot.lane.b32.xlu1 %v19579_v57, %s22214_s12 }
 0x624   : > { %8709 = vrot.lane.b32.xlu0 %v19581_v59, %s22177_s21  ;;  %8590 = vrot.lane.b32.xlu1 %v19593_v47, %s22214_s12 }
 0x628   : > { %8713 = vrot.lane.b32.xlu0 %v19651_v28, %s22177_s21  ;;  %8707 = vrot.lane.b32.xlu1 %v19579_v57, %s22177_s21 }
 0x62a   : > { %v19714_v40 = vpop.permute.xlu0 %6800  ;;  %v19716_v51 = vpop.permute.xlu1 %6586 }
 0x62b   : > { %v19720_v49 = vsel %vm456_vm2, %v6585_v60, %v19716_v51  ;;  %v6601_v37 = vsel %vm389_vm15, %v19716_v51, 0  ;;  %v6814_v5 = vsel %vm389_vm15, %v19714_v40, 0 }
 0x62c   : > { %8830 = vrot.lane.b32.xlu0 %v19581_v59, %s22215_s14  ;;  %8711 = vrot.lane.b32.xlu1 %v19593_v47, %s22177_s21 }
 0x62d   : > { %15334 = vmatprep.subr.msk.bf16.mxu0 %vm389_vm15, %v19720_v49  ;;  %16955 = vmatpush3.bf16.msra.mxu1 %v6601_v37 }
 0x62e   : > { %6618 = vmatpush1.bf16.msra.mxu0 %v6595_v33  ;;  %v6917_v6 = vpop.permute.xlu0 %6916  ;;  %v6799_v52 = vpop.permute.xlu1 %6798  ;;  %16960 = vmatprep.subr.bf16.mxu1 %v22197_v50 }
 0x62f   : > { %15338 = vmatprep.subr.msk.bf16.mxu0 %vm389_vm15, %v19581_v59  ;;  %v19749_v63 = vsel %vm861_vm4, %v6799_v52, %v19714_v40  ;;  %v6802_v2 = vsel %vm861_vm4, %v6797_v9, %v6799_v52 }
 0x630   : > { %16957 = vmatmul.mubr.msk.bf16.vlgmr.msra.gmra.mxu1 %vm6590_vm1, %v17711_v29  ;;  %8834 = vrot.lane.b32.xlu0 %v19651_v28, %s22215_s14  ;;  %v6808_v25 = vsel %vm389_vm15, %v6802_v2, 0 }
 0x631   : > { %8828 = vrot.lane.b32.xlu1 %v19579_v57, %s22215_s14  ;;  %15335 = vmatmul.mubr.msk.bf16.vlgmr.msra.gmra.mxu0 %vm6590_vm1, %v17711_v29 }
 0x632   : > { %16961 = vmatpush3.bf16.msra.mxu1 %v6702_v0  ;;  %6719 = vmatpush1.bf16.msra.mxu0 %v6696_v18  ;;  %v7033_v19 = vpop.permute.xlu0 %7032  ;;  %v6915_v44 = vpop.permute.xlu1 %6914 }
 0x633   : > { %15344 = vmatprep.subr.msk.bf16.mxu0 %vm389_vm15, %v19749_v63  ;;  %16962 = vmatprep.mubr.msk.bf16.mxu1 %vm17964_vm5, %v22197_v50  ;;  %v6920_v12 = vsel %vm1081_vm6, %v6915_v44, %v6917_v6 }
 0x634   : > { %9163 = vrot.lane.b32.xlu0 %v19651_v28, %s22188_s24  ;;  %16966 = vmatprep.subr.bf16.mxu1 %v22197_v50  ;;  %v6926_v35 = vsel %vm389_vm15, %v6920_v12, 0 }
 0x635   : > { %8832 = vrot.lane.b32.xlu1 %v19593_v47, %s22215_s14  ;;  %6736 = vmatprep.mubr.bf16.mxu0 %v22198_v16 }
 0x636   : > { %v19764_v20 = vpop.permute.xlu0 %7036  ;;  %v19766_v45 = vpop.permute.xlu1 %6918 }
 0x637   : > { %v19778_v15 = vsel %vm1081_vm6, %v6917_v6, %v19766_v45  ;;  %v6932_v17 = vsel %vm389_vm15, %v19766_v45, 0  ;;  %v7050_v43 = vsel %vm389_vm15, %v19764_v20, 0  ;;  %v17717_v6 = vld [vmem:[%s22129_s3 + $0x30] sm:$0xff]  }
 0x638   : > { %16963 = vmatmul.mubr.msk.bf16.vlgmr.msra.gmra.mxu1 %vm6590_vm1, %v17712_v21  ;;  %9383 = vrot.lane.b32.xlu0 %v19651_v28, %s22189_s26 }
 0x639   : > { %16967 = vmatpush3.bf16.msra.mxu1 %v6814_v5  ;;  %9053 = vrot.lane.b32.xlu1 %v19651_v28, %s17952_s23 }
 0x63a   : > { %15339 = vmatmul.mubr.msk.bf16.vlgmr.msra.gmra.mxu0 %vm6590_vm1, %v17712_v21  ;;  %v7153_v42 = vpop.permute.xlu0 %7152  ;;  %v7035_v61 = vpop.permute.xlu1 %7034  ;;  %16968 = vmatprep.mubr.msk.bf16.mxu1 %vm17964_vm5, %v22197_v50 }
 0x63b   : > { %6831 = vmatpush1.bf16.msra.mxu0 %v6808_v25  ;;  %16972 = vmatprep.subr.bf16.mxu1 %v22197_v50  ;;  %v19807_v55 = vsel %vm1301_vm7, %v7035_v61, %v19764_v20  ;;  %v7038_v48 = vsel %vm1301_vm7, %v7033_v19, %v7035_v61 }
 0x63c   : > { %15350 = vmatprep.subr.msk.bf16.mxu0 %vm389_vm15, %v19778_v15  ;;  %9494 = vperm.xlu0 %17663, %v9486_v32   ;;  %v7044_v7 = vsel %vm389_vm15, %v7038_v48, 0  ;;  %v17718_v32 = vld [vmem:[%s22129_s3 + $0x38] sm:$0xff]  }
 0x63d   : > { %9273 = vrot.lane.b32.xlu1 %v19651_v28, %s22190_s25  ;;  %6848 = vmatprep.mubr.bf16.mxu0 %v22198_v16 }
 0x63e   : > { %v7269_v14 = vpop.permute.xlu0 %7268  ;;  %v7151_v58 = vpop.permute.xlu1 %7150 }
 0x63f   : > { %v7156_v41 = vsel %vm1521_vm8, %v7151_v58, %v7153_v42 }
 0x640   : > { %16969 = vmatmul.mubr.msk.bf16.vlgmr.msra.gmra.mxu1 %vm6590_vm1, %v17713_v56  ;;  %v7162_v1 = vsel %vm389_vm15, %v7156_v41, 0 }
 0x641   : > { %16973 = vmatpush3.bf16.msra.mxu1 %v6932_v17  ;;  %16974 = vmatprep.mubr.msk.bf16.mxu1 %vm17964_vm5, %v22197_v50 }
 0x642   : > { %15345 = vmatmul.mubr.msk.bf16.vlgmr.msra.gmra.mxu0 %vm6590_vm1, %v17713_v56  ;;  %v7273_v34 = vpop.permute.xlu0 %7272  ;;  %v7155_v24 = vpop.permute.xlu1 %7154  ;;  %16978 = vmatprep.subr.bf16.mxu1 %v22197_v50 }
 0x643   : > { %6949 = vmatpush1.bf16.msra.mxu0 %v6926_v35  ;;  %6966 = vmatprep.mubr.bf16.mxu0 %v22198_v16  ;;  %v7157_v36 = vsel %vm1521_vm8, %v7153_v42, %v7155_v24  ;;  %v7168_v11 = vsel %vm389_vm15, %v7155_v24, 0  ;;  %v7286_v9 = vsel %vm389_vm15, %v7273_v34, 0  ;;  %v17719_v35 = vld [vmem:[%s22129_s3 + $0x40] sm:$0xff]  }
 0x644   : > { %15356 = vmatprep.subr.msk.bf16.mxu0 %vm389_vm15, %v19807_v55 }
 0x646   : > { %v7389_v22 = vpop.permute.xlu0 %7388  ;;  %v7271_v53 = vpop.permute.xlu1 %7270 }
 0x647   : > { %v7275_v10 = vsel %vm1741_vm9, %v7271_v53, %v7273_v34  ;;  %v7274_v26 = vsel %vm1741_vm9, %v7269_v14, %v7271_v53  ;;  %vm22216_vm9 = vcmask 515072  }
 0x648   : > { %16975 = vmatmul.mubr.msk.bf16.vlgmr.msra.gmra.mxu1 %vm6590_vm1, %v17714_v23  ;;  %v7280_v27 = vsel %vm389_vm15, %v7274_v26, 0 }
 0x649   : > { %16979 = vmatpush3.bf16.msra.mxu1 %v7050_v43  ;;  %16980 = vmatprep.mubr.msk.bf16.mxu1 %vm17964_vm5, %v22197_v50 }
 0x64a   : > { %15351 = vmatmul.mubr.msk.bf16.vlgmr.msra.gmra.mxu0 %vm6590_vm1, %v17714_v23  ;;  %v7505_v13 = vpop.permute.xlu0 %7504  ;;  %v7387_v62 = vpop.permute.xlu1 %7386  ;;  %16984 = vmatprep.subr.bf16.mxu1 %v22197_v50 }
 0x64b   : > { %7067 = vmatpush1.bf16.msra.mxu0 %v7044_v7  ;;  %7084 = vmatprep.mubr.bf16.mxu0 %v22198_v16  ;;  %v7392_v18 = vsel %vm1961_vm10, %v7387_v62, %v7389_v22 }
 0x64c   : > { %15362 = vmatprep.subr.msk.bf16.mxu0 %vm389_vm15, %v7157_v36  ;;  %v7398_v44 = vsel %vm389_vm15, %v7392_v18, 0 }
 0x64e   : > { %v7509_v4 = vpop.permute.xlu0 %7508  ;;  %v7391_v39 = vpop.permute.xlu1 %7390 }
 0x64f   : > { %v7393_v33 = vsel %vm1961_vm10, %v7389_v22, %v7391_v39  ;;  %v7404_v19 = vsel %vm389_vm15, %v7391_v39, 0  ;;  %v7522_v56 = vsel %vm389_vm15, %v7509_v4, 0  ;;  %vm22217_vm10 = vmmov %vm22216_vm9 }
 0x650   : > { %16981 = vmatmul.mubr.msk.bf16.vlgmr.msra.gmra.mxu1 %vm6590_vm1, %v17715_v30 }
 0x651   : > { %16985 = vmatpush3.bf16.msra.mxu1 %v7168_v11  ;;  %16986 = vmatprep.mubr.msk.bf16.mxu1 %vm17964_vm5, %v22197_v50 }
 0x652   : > { %15357 = vmatmul.mubr.msk.bf16.vlgmr.msra.gmra.mxu0 %vm6590_vm1, %v17715_v30  ;;  %v7625_v54 = vpop.permute.xlu0 %7624  ;;  %v7507_v57 = vpop.permute.xlu1 %7506  ;;  %16990 = vmatprep.subr.bf16.mxu1 %v22197_v50 }
 0x653   : > { %7185 = vmatpush1.bf16.msra.mxu0 %v7162_v1  ;;  %7202 = vmatprep.mubr.bf16.mxu0 %v22198_v16  ;;  %v7511_v5 = vsel %vm2181_vm11, %v7507_v57, %v7509_v4  ;;  %v7510_v61 = vsel %vm2181_vm11, %v7505_v13, %v7507_v57  ;;  %v17720_v13 = vld [vmem:[%s22129_s3 + $0x48] sm:$0xff]   ;;  %v17721_v1 = vld [vmem:[%s22129_s3 + $0x50] sm:$0xff]   ;;  %vm22218_vm11 = vmmov %vm22216_vm9 }
 0x654   : > { %15368 = vmatprep.subr.msk.bf16.mxu0 %vm389_vm15, %v7275_v10  ;;  %v7516_v14 = vsel %vm389_vm15, %v7510_v61, 0 }
 0x656   : > { %v19844_v46 = vpop.permute.xlu0 %7740  ;;  %v7623_v60 = vpop.permute.xlu1 %7622 }
 0x657   : > { %v7628_v23 = vsel %vm2401_vm12, %v7623_v60, %v7625_v54 }
 0x658   : > { %16987 = vmatmul.mubr.msk.bf16.vlgmr.msra.gmra.mxu1 %vm6590_vm1, %v17716_v8  ;;  %v7634_v53 = vsel %vm389_vm15, %v7628_v23, 0 }
 0x659   : > { %16991 = vmatpush3.bf16.msra.mxu1 %v7286_v9  ;;  %16992 = vmatprep.mubr.msk.bf16.mxu1 %vm17964_vm5, %v22197_v50 }
 0x65a   : > { %15363 = vmatmul.mubr.msk.bf16.vlgmr.msra.gmra.mxu0 %vm6590_vm1, %v17716_v8  ;;  %v7745_v37 = vpop.permute.xlu0 %7744  ;;  %v7627_v29 = vpop.permute.xlu1 %7626  ;;  %16996 = vmatprep.subr.bf16.mxu1 %v22197_v50 }
 0x65b   : > { %7303 = vmatpush1.bf16.msra.mxu0 %v7280_v27  ;;  %7320 = vmatprep.mubr.bf16.mxu0 %v22198_v16  ;;  %v7629_v17 = vsel %vm2401_vm12, %v7625_v54, %v7627_v29  ;;  %v7640_v22 = vsel %vm389_vm15, %v7627_v29, 0  ;;  %v7758_v30 = vsel %vm389_vm15, %v7745_v37, 0  ;;  %vm22219_vm12 = vcmask 506880   ;;  %v17722_v27 = vld [vmem:[%s22129_s3 + $0x58] sm:$0xff]  }
 0x65c   : > { %15374 = vmatprep.subr.msk.bf16.mxu0 %vm389_vm15, %v7393_v33  ;;  %vm22221_vm3 = vmmov %vm22219_vm12 }
 0x65e   : > { %v19860_v52 = vpop.permute.xlu0 %7862  ;;  %v7743_v0 = vpop.permute.xlu1 %7742 }
 0x65f   : > { %v7747_v43 = vsel %vm2621_vm13, %v7743_v0, %v7745_v37  ;;  %v7746_v36 = vsel %vm2621_vm13, %v19844_v46, %v7743_v0  ;;  %vm22220_vm13 = vmmov %vm22219_vm12 }
 0x660   : > { %16993 = vmatmul.mubr.msk.bf16.vlgmr.msra.gmra.mxu1 %vm6590_vm1, %v17717_v6  ;;  %v7752_v39 = vsel %vm389_vm15, %v7746_v36, 0 }
 0x661   : > { %16997 = vmatpush3.bf16.msra.mxu1 %v7404_v19  ;;  %16998 = vmatprep.mubr.msk.bf16.mxu1 %vm17964_vm5, %v22197_v50 }
 0x662   : > { %15369 = vmatmul.mubr.msk.bf16.vlgmr.msra.gmra.mxu0 %vm6590_vm1, %v17717_v6  ;;  %v7867_v21 = vpop.permute.xlu0 %7866  ;;  %v7861_v2 = vpop.permute.xlu1 %7860  ;;  %17002 = vmatprep.subr.bf16.mxu1 %v22197_v50 }
 0x663   : > { %7421 = vmatpush1.bf16.msra.mxu0 %v7398_v44  ;;  %7438 = vmatprep.mubr.bf16.mxu0 %v22198_v16  ;;  %v7868_v10 = vsel %vm22218_vm11, %v7861_v2, %v19860_v52  ;;  %v17723_v44 = vld [vmem:[%s22129_s3 + $0x60] sm:$0xff]   ;;  %vm22225_vm11 = vcmask 490496  }
 0x664   : > { %15380 = vmatprep.subr.msk.bf16.mxu0 %vm389_vm15, %v7511_v5  ;;  %v7875_v60 = vsel %vm389_vm15, %v7868_v10, 0 }
 0x666   : > { %v19876_v25 = vpop.permute.xlu0 %7983  ;;  %v7865_v42 = vpop.permute.xlu1 %7864 }
 0x667   : > { %v7869_v11 = vsel %vm22216_vm9, %v19860_v52, %v7865_v42  ;;  %v7870_v54 = vsel %vm22217_vm10, %v7865_v42, %v7867_v21  ;;  %vm22223_vm9 = vmmov %vm22222_vm14 }
 0x668   : > { %16999 = vmatmul.mubr.msk.bf16.vlgmr.msra.gmra.mxu1 %vm6590_vm1, %v17718_v32  ;;  %v7881_v46 = vsel %vm389_vm15, %v7870_v54, 0  ;;  %vm22224_vm10 = vmmov %vm22223_vm9 }
 0x669   : > { %17003 = vmatpush3.bf16.msra.mxu1 %v7522_v56  ;;  %17004 = vmatprep.mubr.msk.bf16.mxu1 %vm17964_vm5, %v22197_v50 }
 0x66a   : > { %15375 = vmatmul.mubr.msk.bf16.vlgmr.msra.gmra.mxu0 %vm6590_vm1, %v17718_v32  ;;  %v7988_v58 = vpop.permute.xlu0 %7987  ;;  %v7982_v12 = vpop.permute.xlu1 %7981  ;;  %17008 = vmatprep.subr.bf16.mxu1 %v22197_v50 }
 0x66b   : > { %7539 = vmatpush1.bf16.msra.mxu0 %v7516_v14  ;;  %7556 = vmatprep.mubr.bf16.mxu0 %v22198_v16  ;;  %v7989_v33 = vsel %vm22221_vm3, %v7982_v12, %v19876_v25  ;;  %v17724_v14 = vld [vmem:[%s22129_s3 + $0x68] sm:$0xff]   ;;  %vm22228_vm3 = vcmask 261120  }
 0x66c   : > { %15386 = vmatprep.subr.msk.bf16.mxu0 %vm389_vm15, %v7629_v17  ;;  %v7996_v0 = vsel %vm389_vm15, %v7989_v33, 0 }
 0x66e   : > { %v19892_v34 = vpop.permute.xlu0 %8104  ;;  %v7986_v24 = vpop.permute.xlu1 %7985 }
 0x66f   : > { %v7990_v9 = vsel %vm22219_vm12, %v19876_v25, %v7986_v24  ;;  %v7991_v37 = vsel %vm22220_vm13, %v7986_v24, %v7988_v58  ;;  %vm22226_vm12 = vmmov %vm22225_vm11 }
 0x670   : > { %17005 = vmatmul.mubr.msk.bf16.vlgmr.msra.gmra.mxu1 %vm6590_vm1, %v17719_v35  ;;  %v8002_v52 = vsel %vm389_vm15, %v7991_v37, 0  ;;  %vm22227_vm13 = vmmov %vm22225_vm11 }
 0x671   : > { %17009 = vmatpush3.bf16.msra.mxu1 %v7640_v22  ;;  %17010 = vmatprep.mubr.msk.bf16.mxu1 %vm17964_vm5, %v22197_v50  ;;  %v17725_v22 = vld [vmem:[%s22129_s3 + $0x70] sm:$0xff]  }
 0x672   : > { %15381 = vmatmul.mubr.msk.bf16.vlgmr.msra.gmra.mxu0 %vm6590_vm1, %v17719_v35  ;;  %v8103_v48 = vpop.permute.xlu1 %8102  ;;  %17014 = vmatprep.subr.bf16.mxu1 %v22197_v50  ;;  %v8109_v7 = vpop.permute.xlu0 %8108 }
 0x673   : > { %7657 = vmatpush1.bf16.msra.mxu0 %v7634_v53  ;;  %7674 = vmatprep.mubr.bf16.mxu0 %v22198_v16  ;;  %v8110_v5 = vsel %vm22224_vm10, %v8103_v48, %v19892_v34  ;;  %vm22231_vm10 = vcmask 252928  }
 0x674   : > { %15392 = vmatprep.subr.msk.bf16.mxu0 %vm389_vm15, %v7747_v43  ;;  %v8117_v25 = vsel %vm389_vm15, %v8110_v5, 0 }
 0x676   : > { %v8107_v62 = vpop.permute.xlu1 %8106  ;;  %v19914_v4 = vpop.permute.xlu0 %8225 }
 0x677   : > { %v8111_v18 = vsel %vm22222_vm14, %v19892_v34, %v8107_v62  ;;  %v8112_v21 = vsel %vm22223_vm9, %v8107_v62, %v8109_v7  ;;  %vm22229_vm14 = vmmov %vm22228_vm3 }
 0x678   : > { %17011 = vmatmul.mubr.msk.bf16.vlgmr.msra.gmra.mxu1 %vm6590_vm1, %v17720_v13  ;;  %v8123_v32 = vsel %vm389_vm15, %v8112_v21, 0  ;;  %vm22230_vm9 = vmmov %vm22228_vm3 }
 0x679   : > { %17015 = vmatpush3.bf16.msra.mxu1 %v7758_v30  ;;  %17016 = vmatprep.mubr.msk.bf16.mxu1 %vm17964_vm5, %v22197_v50 }
 0x67a   : > { %15387 = vmatmul.mubr.msk.bf16.vlgmr.msra.gmra.mxu0 %vm6590_vm1, %v17720_v13  ;;  %v8224_v41 = vpop.permute.xlu1 %8223  ;;  %17020 = vmatprep.subr.bf16.mxu1 %v22197_v50  ;;  %v8230_v8 = vpop.permute.xlu0 %8229 }
 0x67b   : > { %7775 = vmatpush1.bf16.msra.mxu0 %v7752_v39  ;;  %7792 = vmatprep.mubr.bf16.mxu0 %v22198_v16  ;;  %v8231_v12 = vsel %vm22227_vm13, %v8224_v41, %v19914_v4  ;;  %vm22234_vm13 = vcmask 244736  }
 0x67c   : > { %15399 = vmatprep.subr.msk.bf16.mxu0 %vm389_vm15, %v7869_v11  ;;  %v8238_v34 = vsel %vm389_vm15, %v8231_v12, 0 }
 0x67e   : > { %v8228_v57 = vpop.permute.xlu1 %8227  ;;  %v8347_v29 = vpop.permute.xlu0 %8346 }
 0x67f   : > { %v8232_v61 = vsel %vm22225_vm11, %v19914_v4, %v8228_v57  ;;  %v8233_v58 = vsel %vm22226_vm12, %v8228_v57, %v8230_v8  ;;  %v17726_v4 = vld [vmem:[%s22129_s3 + $0x78] sm:$0xff]   ;;  %vm22232_vm11 = vmmov %vm22231_vm10 }
 0x680   : > { %17017 = vmatmul.mubr.msk.bf16.vlgmr.msra.gmra.mxu1 %vm6590_vm1, %v17721_v1  ;;  %v8244_v17 = vsel %vm389_vm15, %v8233_v58, 0  ;;  %vm22233_vm12 = vmmov %vm22231_vm10  ;;  %v17730_v58 = vld [vmem:[%s22129_s3 + $0x98] sm:$0xff]  }
 0x681   : > { %17021 = vmatpush3.bf16.msra.mxu1 %v7881_v46  ;;  %17022 = vmatprep.mubr.msk.bf16.mxu1 %vm17964_vm5, %v22197_v50  ;;  %v17727_v46 = vld [vmem:[%s22129_s3 + $0x80] sm:$0xff]  }
 0x682   : > { %15393 = vmatmul.mubr.msk.bf16.vlgmr.msra.gmra.mxu0 %vm6590_vm1, %v17721_v1  ;;  %v8345_v26 = vpop.permute.xlu1 %8344  ;;  %17026 = vmatprep.subr.bf16.mxu1 %v22197_v50  ;;  %v8351_v19 = vpop.permute.xlu0 %8350 }
 0x683   : > { %7898 = vmatpush1.bf16.msra.mxu0 %v7875_v60  ;;  %7915 = vmatprep.mubr.bf16.mxu0 %v22198_v16  ;;  %v8352_v43 = vsel %vm22230_vm9, %v8345_v26, %v8347_v29  ;;  %vm22237_vm9 = vcmask 236544  }
 0x684   : > { %15405 = vmatprep.subr.msk.bf16.mxu0 %vm389_vm15, %v7990_v9  ;;  %v8359_v62 = vsel %vm389_vm15, %v8352_v43, 0 }
 0x686   : > { %v8349_v6 = vpop.permute.xlu1 %8348  ;;  %v8468_v42 = vpop.permute.xlu0 %8467 }
 0x687   : > { %v8353_v23 = vsel %vm22228_vm3, %v8347_v29, %v8349_v6  ;;  %v8354_v53 = vsel %vm22229_vm14, %v8349_v6, %v8351_v19  ;;  %vm22235_vm3 = vmmov %vm22234_vm13  ;;  %v17728_v6 = vld [vmem:[%s22129_s3 + $0x88] sm:$0xff]   ;;  %v9485_v19 = vld [vmem:[%s22130_s4] sm:$0xff] }
 0x688   : > { %17023 = vmatmul.mubr.msk.bf16.vlgmr.msra.gmra.mxu1 %vm6590_vm1, %v17722_v27  ;;  %v8365_v7 = vsel %vm389_vm15, %v8354_v53, 0  ;;  %vm22236_vm14 = vmmov %vm22235_vm3  ;;  %9489 = vperm.xlu1 %17674, %v9485_v19  }
 0x689   : > { %17027 = vmatpush3.bf16.msra.mxu1 %v8002_v52  ;;  %17028 = vmatprep.mubr.msk.bf16.mxu1 %vm17964_vm5, %v22197_v50 }
 0x68a   : > { %15400 = vmatmul.mubr.msk.bf16.vlgmr.msra.gmra.mxu0 %vm6590_vm1, %v17722_v27  ;;  %17032 = vmatprep.subr.bf16.mxu1 %v22197_v50  ;;  %v8466_v2 = vpop.permute.xlu1 %8465  ;;  %v8472_v35 = vpop.permute.xlu0 %8471 }
 0x68b   : > { %8019 = vmatpush1.bf16.msra.mxu0 %v7996_v0  ;;  %8036 = vmatprep.mubr.bf16.mxu0 %v22198_v16  ;;  %v8473_v11 = vsel %vm22233_vm12, %v8466_v2, %v8468_v42  ;;  %vm9635_vm12 = vcmask 35840  }
 0x68c   : > { %15411 = vmatprep.subr.msk.bf16.mxu0 %vm389_vm15, %v8111_v18  ;;  %v8480_v54 = vsel %vm389_vm15, %v8473_v11, 0 }
 0x68e   : > { %v8470_v56 = vpop.permute.xlu1 %8469  ;;  %v8589_v48 = vpop.permute.xlu0 %8588 }
 0x68f   : > { %v8474_v36 = vsel %vm22231_vm10, %v8468_v42, %v8470_v56  ;;  %v8475_v39 = vsel %vm22232_vm11, %v8470_v56, %v8472_v35  ;;  %vm22238_vm10 = vmmov %vm22237_vm9  ;;  %v6699_v35 = vsel %vm389_vm15, %v19581_v59, 0  ;;  %v6598_v59 = vsel %vm389_vm15, %v19720_v49, 0 }
 0x690   : > { %17029 = vmatmul.mubr.msk.bf16.vlgmr.msra.gmra.mxu1 %vm6590_vm1, %v17723_v44  ;;  %v8486_v1 = vsel %vm389_vm15, %v8475_v39, 0  ;;  %vm22239_vm11 = vmmov %vm22237_vm9 }
 0x691   : > { %17033 = vmatpush3.bf16.msra.mxu1 %v8123_v32  ;;  %17034 = vmatprep.mubr.msk.bf16.mxu1 %vm17964_vm5, %v22197_v50 }
 0x692   : > { %15406 = vmatmul.mubr.msk.bf16.vlgmr.msra.gmra.mxu0 %vm6590_vm1, %v17723_v44  ;;  %17038 = vmatprep.subr.bf16.mxu1 %v22197_v50  ;;  %v8587_v24 = vpop.permute.xlu1 %8586  ;;  %v8593_v30 = vpop.permute.xlu0 %8592 }
 0x693   : > { %8140 = vmatpush1.bf16.msra.mxu0 %v8117_v25  ;;  %8157 = vmatprep.mubr.bf16.mxu0 %v22198_v16  ;;  %v8594_v26 = vsel %vm22236_vm14, %v8587_v24, %v8589_v48  ;;  %v17729_v25 = vld [vmem:[%s22129_s3 + $0x90] sm:$0xff]   ;;  %vm9757_vm14 = vcmask 560640  }
 0x694   : > { %15417 = vmatprep.subr.msk.bf16.mxu0 %vm389_vm15, %v8232_v61  ;;  %v8601_v37 = vsel %vm389_vm15, %v8594_v26, 0 }
 0x696   : > { %v8591_v13 = vpop.permute.xlu1 %8590  ;;  %v8710_v57 = vpop.permute.xlu0 %8709 }
 0x697   : > { %v8595_v10 = vsel %vm22234_vm13, %v8589_v48, %v8591_v13  ;;  %v8596_v60 = vsel %vm22235_vm3, %v8591_v13, %v8593_v30  ;;  %v17733_v48 = vld [vmem:[%s22129_s3 + $0xb0] sm:$0xff]   ;;  %v17734_v13 = vld [vmem:[%s22129_s3 + $0xb8] sm:$0xff]   ;;  %vm9956_vm13 = vcmask 130048   ;;  %vm9697_vm3 = vcmask 298240  }
 0x698   : > { %17035 = vmatmul.mubr.msk.bf16.vlgmr.msra.gmra.mxu1 %vm6590_vm1, %v17724_v14  ;;  %v8607_v9 = vsel %vm389_vm15, %v8596_v60, 0 }
 0x699   : > { %17039 = vmatpush3.bf16.msra.mxu1 %v8244_v17  ;;  %17040 = vmatprep.mubr.msk.bf16.mxu1 %vm17964_vm5, %v22197_v50  ;;  %v8953_v17 = vsel %vm389_vm15, %v19651_v28, 0  ;;  %v17731_v28 = vld [vmem:[%s22129_s3 + $0xa0] sm:$0xff]  }
 0x69a   : > { %15412 = vmatmul.mubr.msk.bf16.vlgmr.msra.gmra.mxu0 %vm6590_vm1, %v17724_v14  ;;  %17044 = vmatprep.subr.bf16.mxu1 %v22197_v50  ;;  %v8708_v41 = vpop.permute.xlu1 %8707  ;;  %v8714_v27 = vpop.permute.xlu0 %8713 }
 0x69b   : > { %8261 = vmatpush1.bf16.msra.mxu0 %v8238_v34  ;;  %8278 = vmatprep.mubr.bf16.mxu0 %v22198_v16  ;;  %v8715_v18 = vsel %vm22239_vm11, %v8708_v41, %v8710_v57  ;;  %vm22259_vm11 = vcmask 252928  }
 0x69c   : > { %15423 = vmatprep.subr.msk.bf16.mxu0 %vm389_vm15, %v8353_v23  ;;  %v8722_v2 = vsel %vm389_vm15, %v8715_v18, 0  ;;  %v17732_v23 = vld [vmem:[%s22129_s3 + $0xa8] sm:$0xff]  }
 0x69e   : > { %v8712_v8 = vpop.permute.xlu1 %8711  ;;  %v8831_v0 = vpop.permute.xlu0 %8830 }
 0x69f   : > { %v8716_v33 = vsel %vm22237_vm9, %v8710_v57, %v8712_v8  ;;  %v8717_v52 = vsel %vm22238_vm10, %v8712_v8, %v8714_v27  ;;  %vm9819_vm9 = vcmask 823040   ;;  %vm22258_vm10 = vcmask 244736  }
 0x6a0   : > { %17041 = vmatmul.mubr.msk.bf16.vlgmr.msra.gmra.mxu1 %vm6590_vm1, %v17725_v22  ;;  %v8728_v44 = vsel %vm389_vm15, %v8717_v52, 0 }
 0x6a1   : > { %17045 = vmatpush3.bf16.msra.mxu1 %v8365_v7  ;;  %17046 = vmatprep.mubr.msk.bf16.mxu1 %vm17964_vm5, %v22197_v50 }
 0x6a2   : > { %15418 = vmatmul.mubr.msk.bf16.vlgmr.msra.gmra.mxu0 %vm6590_vm1, %v17725_v22  ;;  %17050 = vmatprep.subr.bf16.mxu1 %v22197_v50  ;;  %v8835_v32 = vpop.permute.xlu0 %8834 }
 0x6a3   : > { %8382 = vmatpush1.bf16.msra.mxu0 %v8359_v62  ;;  %8399 = vmatprep.mubr.bf16.mxu0 %v22198_v16  ;;  %v8829_v29 = vpop.permute.xlu1 %8828 }
 0x6a4   : > { %15429 = vmatprep.subr.msk.bf16.mxu0 %vm389_vm15, %v8474_v36  ;;  %v8836_v61 = vsel %vm4601_vm0, %v8829_v29, %v8831_v0 }
 0x6a5   : > { %v8843_v14 = vsel %vm389_vm15, %v8836_v61, 0 }
 0x6a6   : > { %v9164_v34 = vpop.permute.xlu0 %9163 }
 0x6a7   : > { %v8833_v21 = vpop.permute.xlu1 %8832  ;;  %v9173_v22 = vsel %vm389_vm15, %v9164_v34, 0 }
 0x6a8   : > { %17047 = vmatmul.mubr.msk.bf16.vlgmr.msra.gmra.mxu1 %vm6590_vm1, %v17726_v4  ;;  %v8837_v5 = vsel %vm4601_vm0, %v8831_v0, %v8833_v21  ;;  %v8838_v42 = vsel %vm4601_vm0, %v8833_v21, %v8835_v32 }
 0x6a9   : > { %17051 = vmatpush3.bf16.msra.mxu1 %v8486_v1  ;;  %17052 = vmatprep.mubr.msk.bf16.mxu1 %vm17964_vm5, %v22197_v50  ;;  %v8849_v56 = vsel %vm389_vm15, %v8838_v42, 0 }
 0x6aa   : > { %15424 = vmatmul.mubr.msk.bf16.vlgmr.msra.gmra.mxu0 %vm6590_vm1, %v17726_v4  ;;  %17056 = vmatprep.subr.bf16.mxu1 %v22197_v50  ;;  %v9384_v43 = vpop.permute.xlu0 %9383 }
 0x6ab   : > { %8503 = vmatpush1.bf16.msra.mxu0 %v8480_v54  ;;  %8520 = vmatprep.mubr.bf16.mxu0 %v22198_v16  ;;  %v9054_v12 = vpop.permute.xlu1 %9053  ;;  %v9393_v62 = vsel %vm389_vm15, %v9384_v43, 0 }
 0x6ac   : > { %15435 = vmatprep.subr.msk.bf16.mxu0 %vm389_vm15, %v8595_v10  ;;  %v9063_v24 = vsel %vm389_vm15, %v9054_v12, 0 }
 0x6af   : > { %v9274_v53 = vpop.permute.xlu1 %9273 }
 0x6b0   : > { %17053 = vmatmul.mubr.msk.bf16.vlgmr.msra.gmra.mxu1 %vm6590_vm1, %v17727_v46  ;;  %v9275_v49 = vsel %vm1081_vm6, %v19766_v45, %v9274_v53  ;;  %v9283_v7 = vsel %vm389_vm15, %v9274_v53, 0  ;;  %v9385_v45 = vsel %vm1301_vm7, %v19764_v20, %v9384_v43  ;;  %v7047_v20 = vsel %vm389_vm15, %v19807_v55, 0 }
 0x6b1   : > { %17057 = vmatpush3.bf16.msra.mxu1 %v8607_v9  ;;  %17058 = vmatprep.mubr.msk.bf16.mxu1 %vm17964_vm5, %v22197_v50  ;;  %vm9582_vm7 = vcmask 1044480  }
 0x6b2   : > { %15430 = vmatmul.mubr.msk.bf16.vlgmr.msra.gmra.mxu0 %vm6590_vm1, %v17727_v46  ;;  %17062 = vmatprep.subr.bf16.mxu1 %v22197_v50 }
 0x6b3   : > { %8624 = vmatpush1.bf16.msra.mxu0 %v8601_v37  ;;  %8641 = vmatprep.mubr.bf16.mxu0 %v22198_v16 }
 0x6b4   : > { %15441 = vmatprep.subr.msk.bf16.mxu0 %vm389_vm15, %v8716_v33 }
 0x6b8   : > { %17059 = vmatmul.mubr.msk.bf16.vlgmr.msra.gmra.mxu1 %vm6590_vm1, %v17728_v6 }
 0x6b9   : > { %17063 = vmatpush3.bf16.msra.mxu1 %v8728_v44  ;;  %17064 = vmatprep.mubr.msk.bf16.mxu1 %vm17964_vm5, %v22197_v50 }
 0x6ba   : > { %15436 = vmatmul.mubr.msk.bf16.vlgmr.msra.gmra.mxu0 %vm6590_vm1, %v17728_v6  ;;  %17068 = vmatprep.subr.bf16.mxu1 %v22197_v50 }
 0x6bb   : > { %8745 = vmatpush1.bf16.msra.mxu0 %v8722_v2  ;;  %8762 = vmatprep.mubr.bf16.mxu0 %v22198_v16 }
 0x6bc   : > { %15447 = vmatprep.subr.msk.bf16.mxu0 %vm389_vm15, %v8837_v5 }
 0x6c0   : > { %17065 = vmatmul.mubr.msk.bf16.vlgmr.msra.gmra.mxu1 %vm6590_vm1, %v17729_v25 }
 0x6c1   : > { %17069 = vmatpush3.bf16.msra.mxu1 %v8849_v56  ;;  %17070 = vmatprep.mubr.msk.bf16.mxu1 %vm17964_vm5, %v22197_v50 }
 0x6c2   : > { %15442 = vmatmul.mubr.msk.bf16.vlgmr.msra.gmra.mxu0 %vm6590_vm1, %v17729_v25  ;;  %17074 = vmatprep.subr.bf16.mxu1 %v22197_v50 }
 0x6c3   : > { %8866 = vmatpush1.bf16.msra.mxu0 %v8843_v14  ;;  %8883 = vmatprep.mubr.bf16.mxu0 %v22198_v16 }
 0x6c4   : > { %15453 = vmatprep.subr.msk.bf16.mxu0 %vm389_vm15, %v19593_v47  ;;  %v9055_v47 = vsel %vm456_vm2, %v19716_v51, %v9054_v12  ;;  %v9165_v51 = vsel %vm861_vm4, %v19714_v40, %v9164_v34  ;;  %v6811_v40 = vsel %vm389_vm15, %v19749_v63, 0  ;;  %v6929_v63 = vsel %vm389_vm15, %v19778_v15, 0  ;;  %v17735_v15 = vld [vmem:[%s22129_s3 + $0xc0] sm:$0xff]  }
 0x6c8   : > { %17071 = vmatmul.mubr.msk.bf16.vlgmr.msra.gmra.mxu1 %vm6590_vm1, %v17730_v58 }
 0x6c9   : > { %17075 = vmatpush3.bf16.msra.mxu1 %v8953_v17  ;;  %17076 = vmatprep.mubr.msk.bf16.mxu1 %vm17964_vm5, %v22197_v50 }
 0x6ca   : > { %15448 = vmatmul.mubr.msk.bf16.vlgmr.msra.gmra.mxu0 %vm6590_vm1, %v17730_v58  ;;  %17080 = vmatprep.subr.bf16.mxu1 %v22197_v50 }
 0x6cb   : > { %8970 = vmatpush1.bf16.msra.mxu0 %v6699_v35  ;;  %8987 = vmatprep.mubr.bf16.mxu0 %v22198_v16 }
 0x6cc   : > { %15459 = vmatprep.subr.msk.bf16.mxu0 %vm389_vm15, %v9055_v47 }
 0x6d0   : > { %17077 = vmatmul.mubr.msk.bf16.vlgmr.msra.gmra.mxu1 %vm6590_vm1, %v17731_v28 }
 0x6d1   : > { %17081 = vmatpush3.bf16.msra.mxu1 %v9063_v24  ;;  %17082 = vmatprep.mubr.msk.bf16.mxu1 %vm17964_vm5, %v22197_v50 }
 0x6d2   : > { %15454 = vmatmul.mubr.msk.bf16.vlgmr.msra.gmra.mxu0 %vm6590_vm1, %v17731_v28  ;;  %17086 = vmatprep.subr.bf16.mxu1 %v22197_v50 }
 0x6d3   : > { %9080 = vmatpush1.bf16.msra.mxu0 %v6598_v59  ;;  %9097 = vmatprep.mubr.bf16.mxu0 %v22198_v16 }
 0x6d4   : > { %15465 = vmatprep.subr.msk.bf16.mxu0 %vm389_vm15, %v9165_v51 }
 0x6d8   : > { %17083 = vmatmul.mubr.msk.bf16.vlgmr.msra.gmra.mxu1 %vm6590_vm1, %v17732_v23 }
 0x6d9   : > { %17087 = vmatpush3.bf16.msra.mxu1 %v9173_v22  ;;  %17088 = vmatprep.mubr.msk.bf16.mxu1 %vm17964_vm5, %v22197_v50 }
 0x6da   : > { %15460 = vmatmul.mubr.msk.bf16.vlgmr.msra.gmra.mxu0 %vm6590_vm1, %v17732_v23  ;;  %17092 = vmatprep.subr.bf16.mxu1 %v22197_v50 }
 0x6db   : > { %9190 = vmatpush1.bf16.msra.mxu0 %v6811_v40  ;;  %9207 = vmatprep.mubr.bf16.mxu0 %v22198_v16 }
 0x6dc   : > { %15471 = vmatprep.subr.msk.bf16.mxu0 %vm389_vm15, %v9275_v49 }
 0x6e0   : > { %17089 = vmatmul.mubr.msk.bf16.vlgmr.msra.gmra.mxu1 %vm6590_vm1, %v17733_v48 }
 0x6e1   : > { %17093 = vmatpush3.bf16.msra.mxu1 %v9283_v7  ;;  %17094 = vmatprep.mubr.msk.bf16.mxu1 %vm17964_vm5, %v22197_v50 }
 0x6e2   : > { %15466 = vmatmul.mubr.msk.bf16.vlgmr.msra.gmra.mxu0 %vm6590_vm1, %v17733_v48  ;;  %17098 = vmatprep.subr.bf16.mxu1 %v22197_v50 }
 0x6e3   : > { %9300 = vmatpush1.bf16.msra.mxu0 %v6929_v63  ;;  %9317 = vmatprep.mubr.bf16.mxu0 %v22198_v16 }
 0x6e4   : > { %15477 = vmatprep.subr.msk.bf16.mxu0 %vm389_vm15, %v9385_v45  ;;  %vm394_vm15 = vcmask 523268  }
 0x6e8   : > { %17095 = vmatmul.mubr.msk.bf16.vlgmr.msra.gmra.mxu1 %vm6590_vm1, %v17734_v13 }
 0x6e9   : > { %17099 = vmatpush3.bf16.msra.mxu1 %v9393_v62  ;;  %17100 = vmatprep.mubr.msk.bf16.mxu1 %vm17964_vm5, %v22197_v50 }
 0x6ea   : > { %15472 = vmatmul.mubr.msk.bf16.vlgmr.msra.gmra.mxu0 %vm6590_vm1, %v17734_v13  ;;  %17110 = vmatprep.subr.bf16.mxu1 %v22197_v50 }
 0x6eb   : > { %9410 = vmatpush1.bf16.msra.mxu0 %v7047_v20  ;;  %9427 = vmatprep.mubr.bf16.mxu0 %v22198_v16 }
 0x6ec   : > { %17104 = vmatprep.subr.bf16.mxu0 %v22197_v50 }
 0x6f0   : > { %v6680_v36 = vpop.f32.mrf.mxu1  ;;  %17101 = vmatmul.mubr.msk.bf16.vlgmr.msra.gmra.mxu1 %vm6590_vm1, %v17735_v15 }
 0x6f1   : > { %v6637_v30 = vpop.f32.mrf.mxu0  ;;  %17112 = vmatprep.mubr.msk.bf16.mxu1 %vm17964_vm5, %v22197_v50 }
 0x6f2   : > { %15478 = vmatmul.mubr.msk.bf16.vlgmr.msra.gmra.mxu0 %vm6590_vm1, %v17735_v15  ;;  %v16958_v55 = vpop.f32.mrf.mxu1 }
 0x6f3   : > { %v6639_v4 = vpop.f32.mrf.mxu0  ;;  %17106 = vmatprep.mubr.msk.bf16.mxu0 %vm17964_vm5, %v22197_v50 }
 0x6f4   : > { %v6683_v39 = vpop.f32.mrf.mxu1 }
 0x6f5   : > { %v6641_v41 = vpop.f32.mrf.mxu0 }
 0x6f6   : > { %v16959_v11 = vpop.f32.mrf.mxu1 }
 0x6f7   : > { %v20151_v1 = vpop.f32.mrf.mxu0 }
 0x6f8   : > { %v6781_v54 = vpop.f32.mrf.mxu1 }
 0x6f9   : > { %v6782_v57 = vadd.f32 %v6781_v54, %v6680_v36 }
 0x6fa   : > { %v6738_v10 = vpop.f32.mrf.mxu0  ;;  %v16964_v8 = vpop.f32.mrf.mxu1 }
 0x6fb   : > { %v6739_v46 = vadd.f32 %v6738_v10, %v6637_v30 }
 0x6fc   : > { %v6740_v60 = vpop.f32.mrf.mxu0  ;;  %v6784_v26 = vpop.f32.mrf.mxu1 }
 0x6fd   : > { %v6741_v9 = vadd.f32 %v6740_v60, %v6639_v4  ;;  %v6785_v27 = vadd.f32 %v6784_v26, %v6683_v39 }
 0x6fe   : > { %v6742_v37 = vpop.f32.mrf.mxu0  ;;  %v16965_v29 = vpop.f32.mrf.mxu1 }
 0x6ff   : > { %v6743_v33 = vadd.f32 %v6742_v37, %v6641_v41 }
 0x700   : > { %v20153_v6 = vpop.f32.mrf.mxu0  ;;  %v6893_v52 = vpop.f32.mrf.mxu1 }
 0x701   : > { %v6902_v0 = vadd.f32 %v6893_v52, %v6782_v57 }
 0x702   : > { %v6850_v18 = vpop.f32.mrf.mxu0  ;;  %v16970_v19 = vpop.f32.mrf.mxu1 }
 0x703   : > { %v6900_v44 = vadd.f32 %v6850_v18, %v6739_v46 }
 0x704   : > { %v6852_v21 = vpop.f32.mrf.mxu0  ;;  %v6896_v2 = vpop.f32.mrf.mxu1 }
 0x705   : > { %v6901_v5 = vadd.f32 %v6852_v21, %v6741_v9  ;;  %v6905_v32 = vadd.f32 %v6896_v2, %v6785_v27 }
 0x706   : > { %v6854_v25 = vpop.f32.mrf.mxu0  ;;  %v16971_v42 = vpop.f32.mrf.mxu1 }
 0x707   : > { %v6903_v61 = vadd.f32 %v6854_v25, %v6743_v33 }
 0x708   : > { %v20155_v56 = vpop.f32.mrf.mxu0  ;;  %v7011_v14 = vpop.f32.mrf.mxu1 }
 0x709   : > { %v7020_v58 = vadd.f32 %v7011_v14, %v6902_v0 }
 0x70a   : > { %v6968_v12 = vpop.f32.mrf.mxu0  ;;  %v16976_v17 = vpop.f32.mrf.mxu1 }
 0x70b   : > { %v7018_v35 = vadd.f32 %v6968_v12, %v6900_v44 }
 0x70c   : > { %v6970_v47 = vpop.f32.mrf.mxu0  ;;  %v7014_v28 = vpop.f32.mrf.mxu1 }
 0x70d   : > { %v7019_v34 = vadd.f32 %v6970_v47, %v6901_v5  ;;  %v7023_v24 = vadd.f32 %v7014_v28, %v6905_v32 }
 0x70e   : > { %v6972_v59 = vpop.f32.mrf.mxu0  ;;  %v16977_v51 = vpop.f32.mrf.mxu1 }
 0x70f   : > { %v7021_v23 = vadd.f32 %v6972_v59, %v6903_v61 }
 0x710   : > { %v20157_v22 = vpop.f32.mrf.mxu0  ;;  %v7129_v53 = vpop.f32.mrf.mxu1 }
 0x711   : > { %v7138_v40 = vadd.f32 %v7129_v53, %v7020_v58 }
 0x712   : > { %v7086_v49 = vpop.f32.mrf.mxu0  ;;  %v16982_v48 = vpop.f32.mrf.mxu1 }
 0x713   : > { %v7136_v43 = vadd.f32 %v7086_v49, %v7018_v35 }
 0x714   : > { %v7088_v7 = vpop.f32.mrf.mxu0  ;;  %v7132_v63 = vpop.f32.mrf.mxu1 }
 0x715   : > { %v7137_v45 = vadd.f32 %v7088_v7, %v7019_v34  ;;  %v7141_v13 = vadd.f32 %v7132_v63, %v7023_v24 }
 0x716   : > { %v7090_v62 = vpop.f32.mrf.mxu0  ;;  %v16983_v20 = vpop.f32.mrf.mxu1 }
 0x717   : > { %v7139_v15 = vadd.f32 %v7090_v62, %v7021_v23 }
 0x718   : > { %v20159_v36 = vpop.f32.mrf.mxu0  ;;  %v7247_v30 = vpop.f32.mrf.mxu1 }
 0x719   : > { %v7256_v55 = vadd.f32 %v7247_v30, %v7138_v40 }
 0x71a   : > { %v7204_v4 = vpop.f32.mrf.mxu0  ;;  %v16988_v39 = vpop.f32.mrf.mxu1 }
 0x71b   : > { %v7254_v41 = vadd.f32 %v7204_v4, %v7136_v43 }
 0x71c   : > { %v7206_v11 = vpop.f32.mrf.mxu0  ;;  %v7250_v54 = vpop.f32.mrf.mxu1 }
 0x71d   : > { %v7255_v57 = vadd.f32 %v7206_v11, %v7137_v45  ;;  %v7259_v10 = vadd.f32 %v7250_v54, %v7141_v13 }
 0x71e   : > { %v7208_v8 = vpop.f32.mrf.mxu0  ;;  %v16989_v46 = vpop.f32.mrf.mxu1 }
 0x71f   : > { %v7257_v60 = vadd.f32 %v7208_v8, %v7139_v15 }
 0x720   : > { %v20161_v26 = vpop.f32.mrf.mxu0  ;;  %v7365_v9 = vpop.f32.mrf.mxu1 }
 0x721   : > { %v7374_v27 = vadd.f32 %v7365_v9, %v7256_v55 }
 0x722   : > { %v7322_v37 = vpop.f32.mrf.mxu0  ;;  %v16994_v29 = vpop.f32.mrf.mxu1 }
 0x723   : > { %v7372_v33 = vadd.f32 %v7322_v37, %v7254_v41 }
 0x724   : > { %v7324_v52 = vpop.f32.mrf.mxu0  ;;  %v7368_v0 = vpop.f32.mrf.mxu1 }
 0x725   : > { %v7373_v18 = vadd.f32 %v7324_v52, %v7255_v57  ;;  %v7377_v19 = vadd.f32 %v7368_v0, %v7259_v10 }
 0x726   : > { %v7326_v44 = vpop.f32.mrf.mxu0  ;;  %v16995_v21 = vpop.f32.mrf.mxu1 }
 0x727   : > { %v7375_v2 = vadd.f32 %v7326_v44, %v7257_v60 }
 0x728   : > { %v20163_v5 = vpop.f32.mrf.mxu0  ;;  %v7483_v32 = vpop.f32.mrf.mxu1 }
 0x729   : > { %v7492_v25 = vadd.f32 %v7483_v32, %v7374_v27 }
 0x72a   : > { %v7440_v42 = vpop.f32.mrf.mxu0  ;;  %v17000_v61 = vpop.f32.mrf.mxu1 }
 0x72b   : > { %v7490_v14 = vadd.f32 %v7440_v42, %v7372_v33 }
 0x72c   : > { %v7442_v58 = vpop.f32.mrf.mxu0  ;;  %v7486_v12 = vpop.f32.mrf.mxu1 }
 0x72d   : > { %v7491_v17 = vadd.f32 %v7442_v58, %v7373_v18  ;;  %v7495_v35 = vadd.f32 %v7486_v12, %v7377_v19 }
 0x72e   : > { %v7444_v47 = vpop.f32.mrf.mxu0  ;;  %v17001_v28 = vpop.f32.mrf.mxu1 }
 0x72f   : > { %v7493_v34 = vadd.f32 %v7444_v47, %v7375_v2 }
 0x730   : > { %v20165_v24 = vpop.f32.mrf.mxu0  ;;  %v7601_v59 = vpop.f32.mrf.mxu1 }
 0x731   : > { %v7610_v51 = vadd.f32 %v7601_v59, %v7492_v25 }
 0x732   : > { %v7558_v23 = vpop.f32.mrf.mxu0  ;;  %v17006_v53 = vpop.f32.mrf.mxu1 }
 0x733   : > { %v7608_v40 = vadd.f32 %v7558_v23, %v7490_v14 }
 0x734   : > { %v7560_v49 = vpop.f32.mrf.mxu0  ;;  %v7604_v48 = vpop.f32.mrf.mxu1 }
 0x735   : > { %v7609_v43 = vadd.f32 %v7560_v49, %v7491_v17  ;;  %v7613_v7 = vadd.f32 %v7604_v48, %v7495_v35 }
 0x736   : > { %v7562_v63 = vpop.f32.mrf.mxu0  ;;  %v17007_v45 = vpop.f32.mrf.mxu1 }
 0x737   : > { %v7611_v13 = vadd.f32 %v7562_v63, %v7493_v34 }
 0x738   : > { %v20167_v62 = vpop.f32.mrf.mxu0  ;;  %v7719_v20 = vpop.f32.mrf.mxu1 }
 0x739   : > { %v7728_v15 = vadd.f32 %v7719_v20, %v7610_v51 }
 0x73a   : > { %v7676_v30 = vpop.f32.mrf.mxu0  ;;  %v17012_v55 = vpop.f32.mrf.mxu1 }
 0x73b   : > { %v7726_v4 = vadd.f32 %v7676_v30, %v7608_v40 }
 0x73c   : > { %v7678_v39 = vpop.f32.mrf.mxu0  ;;  %v7722_v41 = vpop.f32.mrf.mxu1 }
 0x73d   : > { %v7727_v11 = vadd.f32 %v7678_v39, %v7609_v43  ;;  %v7731_v54 = vadd.f32 %v7722_v41, %v7613_v7 }
 0x73e   : > { %v7680_v57 = vpop.f32.mrf.mxu0  ;;  %v17013_v10 = vpop.f32.mrf.mxu1 }
 0x73f   : > { %v7729_v8 = vadd.f32 %v7680_v57, %v7611_v13 }
 0x740   : > { %v20169_v46 = vpop.f32.mrf.mxu0  ;;  %v7837_v60 = vpop.f32.mrf.mxu1 }
 0x741   : > { %v7846_v9 = vadd.f32 %v7837_v60, %v7728_v15 }
 0x742   : > { %v7794_v27 = vpop.f32.mrf.mxu0  ;;  %v17018_v37 = vpop.f32.mrf.mxu1 }
 0x743   : > { %v7844_v29 = vadd.f32 %v7794_v27, %v7726_v4 }
 0x744   : > { %v7796_v33 = vpop.f32.mrf.mxu0  ;;  %v7840_v52 = vpop.f32.mrf.mxu1 }
 0x745   : > { %v7845_v0 = vadd.f32 %v7796_v33, %v7727_v11  ;;  %v7849_v18 = vadd.f32 %v7840_v52, %v7731_v54 }
 0x746   : > { %v7798_v19 = vpop.f32.mrf.mxu0  ;;  %v17019_v44 = vpop.f32.mrf.mxu1 }
 0x747   : > { %v7847_v21 = vadd.f32 %v7798_v19, %v7729_v8 }
 0x748   : > { %v20171_v2 = vpop.f32.mrf.mxu0  ;;  %v7960_v32 = vpop.f32.mrf.mxu1 }
 0x749   : > { %v7969_v25 = vadd.f32 %v7960_v32, %v7846_v9 }
 0x74a   : > { %v7917_v42 = vpop.f32.mrf.mxu0  ;;  %v17024_v61 = vpop.f32.mrf.mxu1 }
 0x74b   : > { %v7967_v14 = vadd.f32 %v7917_v42, %v7844_v29 }
 0x74c   : > { %v7919_v58 = vpop.f32.mrf.mxu0  ;;  %v7963_v12 = vpop.f32.mrf.mxu1 }
 0x74d   : > { %v7968_v17 = vadd.f32 %v7919_v58, %v7845_v0  ;;  %v7972_v35 = vadd.f32 %v7963_v12, %v7849_v18 }
 0x74e   : > { %v7921_v47 = vpop.f32.mrf.mxu0  ;;  %v17025_v28 = vpop.f32.mrf.mxu1 }
 0x74f   : > { %v7970_v34 = vadd.f32 %v7921_v47, %v7847_v21 }
 0x750   : > { %v20173_v59 = vpop.f32.mrf.mxu0  ;;  %v8081_v51 = vpop.f32.mrf.mxu1 }
 0x751   : > { %v8090_v23 = vadd.f32 %v8081_v51, %v7969_v25 }
 0x752   : > { %v8038_v53 = vpop.f32.mrf.mxu0  ;;  %v17030_v40 = vpop.f32.mrf.mxu1 }
 0x753   : > { %v8088_v49 = vadd.f32 %v8038_v53, %v7967_v14 }
 0x754   : > { %v8040_v48 = vpop.f32.mrf.mxu0  ;;  %v8084_v43 = vpop.f32.mrf.mxu1 }
 0x755   : > { %v8089_v7 = vadd.f32 %v8040_v48, %v7968_v17  ;;  %v8093_v63 = vadd.f32 %v8084_v43, %v7972_v35 }
 0x756   : > { %v8042_v45 = vpop.f32.mrf.mxu0  ;;  %v17031_v13 = vpop.f32.mrf.mxu1 }
 0x757   : > { %v8091_v20 = vadd.f32 %v8042_v45, %v7970_v34 }
 0x758   : > { %v20175_v15 = vpop.f32.mrf.mxu0  ;;  %v8202_v30 = vpop.f32.mrf.mxu1 }
 0x759   : > { %v8211_v55 = vadd.f32 %v8202_v30, %v8090_v23 }
 0x75a   : > { %v8159_v4 = vpop.f32.mrf.mxu0  ;;  %v17036_v39 = vpop.f32.mrf.mxu1 }
 0x75b   : > { %v20177_v41 = vadd.f32 %v8159_v4, %v8088_v49 }
 0x75c   : > { %v8161_v11 = vpop.f32.mrf.mxu0  ;;  %v8205_v54 = vpop.f32.mrf.mxu1 }
 0x75d   : > { %v20179_v57 = vadd.f32 %v8161_v11, %v8089_v7  ;;  %v8214_v10 = vadd.f32 %v8205_v54, %v8093_v63 }
 0x75e   : > { %v8163_v8 = vpop.f32.mrf.mxu0  ;;  %v17037_v60 = vpop.f32.mrf.mxu1 }
 0x75f   : > { %v20181_v9 = vadd.f32 %v8163_v8, %v8091_v20 }
 0x760   : > { %v20183_v27 = vpop.f32.mrf.mxu0  ;;  %v8323_v37 = vpop.f32.mrf.mxu1 }
 0x761   : > { %v20185_v29 = vadd.f32 %v8323_v37, %v8211_v55 }
 0x762   : > { %v20187_v33 = vpop.f32.mrf.mxu0  ;;  %v17042_v52 = vpop.f32.mrf.mxu1 }
 0x763   : > { %v6745_v52 = vadd.f32 %v20153_v6, %v20151_v1 }
 0x764   : > { %v20189_v0 = vpop.f32.mrf.mxu0  ;;  %v8326_v18 = vpop.f32.mrf.mxu1 }
 0x765   : > { %v20191_v19 = vadd.f32 %v8326_v18, %v8214_v10 }
 0x766   : > { %v20193_v44 = vpop.f32.mrf.mxu0  ;;  %v17043_v21 = vpop.f32.mrf.mxu1 }
 0x768   : > { %v20195_v32 = vpop.f32.mrf.mxu0  ;;  %v20197_v25 = vpop.f32.mrf.mxu1 }
 0x76a   : > { %v20199_v42 = vpop.f32.mrf.mxu0  ;;  %v17048_v61 = vpop.f32.mrf.mxu1 }
 0x76b   : > { %v6904_v61 = vadd.f32 %v20155_v56, %v6745_v52 }
 0x76c   : > { %v20201_v14 = vpop.f32.mrf.mxu0  ;;  %v20203_v58 = vpop.f32.mrf.mxu1 }
 0x76e   : > { %v20205_v12 = vpop.f32.mrf.mxu0  ;;  %v17049_v17 = vpop.f32.mrf.mxu1 }
 0x770   : > { %v20207_v35 = vpop.f32.mrf.mxu0  ;;  %v20209_v47 = vpop.f32.mrf.mxu1 }
 0x772   : > { %v20211_v28 = vpop.f32.mrf.mxu0  ;;  %v17054_v34 = vpop.f32.mrf.mxu1 }
 0x774   : > { %v20213_v51 = vpop.f32.mrf.mxu0  ;;  %v20215_v23 = vpop.f32.mrf.mxu1 }
 0x776   : > { %v20217_v53 = vpop.f32.mrf.mxu0  ;;  %v17055_v40 = vpop.f32.mrf.mxu1 }
 0x777   : > { %v7022_v40 = vadd.f32 %v20157_v22, %v6904_v61 }
 0x778   : > { %v20219_v49 = vpop.f32.mrf.mxu0  ;;  %v20221_v48 = vpop.f32.mrf.mxu1 }
 0x77a   : > { %v20223_v43 = vpop.f32.mrf.mxu0  ;;  %v17060_v7 = vpop.f32.mrf.mxu1 }
 0x77c   : > { %v20225_v63 = vpop.f32.mrf.mxu0  ;;  %v20227_v45 = vpop.f32.mrf.mxu1 }
 0x77e   : > { %v20229_v13 = vpop.f32.mrf.mxu0  ;;  %v17061_v20 = vpop.f32.mrf.mxu1 }
 0x780   : > { %v20231_v30 = vpop.f32.mrf.mxu0  ;;  %v20233_v55 = vpop.f32.mrf.mxu1 }
 0x782   : > { %v20235_v4 = vpop.f32.mrf.mxu0  ;;  %v17066_v39 = vpop.f32.mrf.mxu1 }
 0x783   : > { %v7140_v39 = vadd.f32 %v20159_v36, %v7022_v40 }
 0x784   : > { %v20237_v11 = vpop.f32.mrf.mxu0  ;;  %v20239_v54 = vpop.f32.mrf.mxu1 }
 0x785   : > { %v7258_v1 = vadd.f32 %v20161_v26, %v7140_v39 }
 0x786   : > { %v20241_v10 = vpop.f32.mrf.mxu0  ;;  %v17067_v8 = vpop.f32.mrf.mxu1 }
 0x787   : > { %v7376_v52 = vadd.f32 %v20163_v5, %v7258_v1 }
 0x788   : > { %v20243_v60 = vpop.f32.mrf.mxu0  ;;  %v20245_v37 = vpop.f32.mrf.mxu1 }
 0x789   : > { %v7494_v22 = vadd.f32 %v20165_v24, %v7376_v52 }
 0x78a   : > { %v20249_v18 = vpop.f32.mrf.mxu0  ;;  %v17072_v21 = vpop.f32.mrf.mxu1 }
 0x78b   : > { %v7612_v40 = vadd.f32 %v20167_v62, %v7494_v22  ;;  %v8330_v62 = vadd.f32 %v20187_v33, %v20177_v41  ;;  %v8456_v33 = vadd.f32 %v20203_v58, %v20191_v19 }
 0x78c   : > { %v20252_v17 = vpop.f32.mrf.mxu0  ;;  %v20254_v34 = vpop.f32.mrf.mxu1 }
 0x78d   : > { %v7730_v26 = vadd.f32 %v20169_v46, %v7612_v40  ;;  %v8453_v40 = vadd.f32 %v20197_v25, %v20185_v29 }
 0x78e   : > { %v20257_v7 = vpop.f32.mrf.mxu0  ;;  %v17073_v20 = vpop.f32.mrf.mxu1 }
 0x78f   : > { %v7848_v5 = vadd.f32 %v20171_v2, %v7730_v26  ;;  %v8331_v2 = vadd.f32 %v20189_v0, %v20179_v57  ;;  %v8451_v26 = vadd.f32 %v20199_v42, %v8330_v62 }
 0x790   : > { %v20260_v8 = vpop.f32.mrf.mxu0  ;;  %v20262_v16 = vpop.f32.mrf.mxu1 }
 0x791   : > { %v7971_v24 = vadd.f32 %v20173_v59, %v7848_v5  ;;  %v8572_v57 = vadd.f32 %v20211_v28, %v8451_v26 }
 0x792   : > { %v20265_v6 = vpop.f32.mrf.mxu0  ;;  %v17078_v56 = vpop.f32.mrf.mxu1 }
 0x793   : > { %v8092_v22 = vadd.f32 %v20175_v15, %v7971_v24  ;;  %v8452_v15 = vadd.f32 %v20201_v14, %v8331_v2  ;;  %v8574_v24 = vadd.f32 %v20209_v47, %v8453_v40  ;;  %v8693_v14 = vadd.f32 %v20223_v43, %v8572_v57 }
 0x794   : > { %v20268_v21 = vpop.f32.mrf.mxu0  ;;  %v20270_v3 = vpop.f32.mrf.mxu1 }
 0x795   : > { %v8213_v59 = vadd.f32 %v20183_v27, %v8092_v22  ;;  %v8573_v42 = vadd.f32 %v20213_v51, %v8452_v15  ;;  %v8814_v51 = vadd.f32 %v20235_v4, %v8693_v14 }
 0x796   : > { %v20273_v61 = vpop.f32.mrf.mxu0  ;;  %v17079_v36 = vpop.f32.mrf.mxu1 }
 0x797   : > { %v8334_v29 = vadd.f32 %v20195_v32, %v8213_v59  ;;  %v8694_v32 = vadd.f32 %v20225_v63, %v8573_v42  ;;  %v8935_v63 = vadd.f32 %v20249_v18, %v8814_v51 }
 0x798   : > { %v20276_v20 = vpop.f32.mrf.mxu0  ;;  %v20278_v38 = vpop.f32.mrf.mxu1 }
 0x799   : > { %v8455_v19 = vadd.f32 %v20207_v35, %v8334_v29  ;;  %v8815_v35 = vadd.f32 %v20237_v11, %v8694_v32  ;;  %v9039_v11 = vadd.f32 %v20265_v6, %v8935_v63  ;;  %v9490_v29 = vpop.permute.xlu1 %9489 }
 0x79a   : > { %v9099_v39 = vpop.f32.mrf.mxu0  ;;  %v17084_v56 = vpop.f32.mrf.mxu1 }
 0x79b   : > { %v8333_v56 = vadd.f32 %v20193_v44, %v20181_v9  ;;  %v8577_v9 = vadd.f32 %v20215_v23, %v8456_v33  ;;  %v8695_v44 = vadd.f32 %v20221_v48, %v8574_v24  ;;  %v8576_v23 = vadd.f32 %v20219_v49, %v8455_v19 }
 0x79c   : > { %v20282_v1 = vpop.f32.mrf.mxu0  ;;  %v20284_v31 = vpop.f32.mrf.mxu1  ;;  %v8936_v49 = vadd.f32 %v20252_v17, %v8815_v35 }
 0x79d   : > { %v8454_v0 = vadd.f32 %v20205_v12, %v8333_v56  ;;  %v8698_v12 = vadd.f32 %v20227_v45, %v8577_v9  ;;  %v8697_v45 = vadd.f32 %v20231_v30, %v8576_v23  ;;  %v9149_v56 = vadd.f32 %v9099_v39, %v9039_v11  ;;  %v22241_v11 = vld [vmem:[#allocation4_spill] sm:$0xff] }
 0x79e   : > { %v20287_v52 = vpop.f32.mrf.mxu0  ;;  %v17085_v36 = vpop.f32.mrf.mxu1  ;;  %v9040_v30 = vadd.f32 %v20268_v21, %v8936_v49 }
 0x79f   : > { %v8575_v58 = vadd.f32 %v20217_v53, %v8454_v0  ;;  %v8816_v36 = vadd.f32 %v20233_v55, %v8695_v44  ;;  %v8819_v53 = vadd.f32 %v20239_v54, %v8698_v12  ;;  %v8818_v54 = vadd.f32 %v20243_v60, %v8697_v45 }
 0x7a0   : > { %v20292_v50 = vpop.f32.mrf.mxu0  ;;  %v9252_v46 = vpop.f32.mrf.mxu1  ;;  %v9150_v6 = vadd.f32 %v20282_v1, %v9040_v30 }
 0x7a1   : > { %v8696_v48 = vadd.f32 %v20229_v13, %v8575_v58  ;;  %v8937_v22 = vadd.f32 %v20245_v37, %v8816_v36  ;;  %v8940_v13 = vadd.f32 %v20254_v34, %v8819_v53  ;;  %v8939_v17 = vadd.f32 %v20260_v8, %v8818_v54  ;;  %v22242_v54 = vld [vmem:[#allocation6_spill] sm:$0xff] }
 0x7a2   : > { %v9209_v5 = vpop.f32.mrf.mxu0  ;;  %v17090_v41 = vpop.f32.mrf.mxu1  ;;  %vm22243_vm4 = vcmp.eq.s32.totalorder %v22241_v11, %v22242_v54 }
 0x7a3   : > { %v8817_v55 = vadd.f32 %v20241_v10, %v8696_v48  ;;  %v9041_v40 = vadd.f32 %v20262_v16, %v8937_v22  ;;  %v9044_v10 = vadd.f32 %v20270_v3, %v8940_v13  ;;  %v9259_v15 = vadd.f32 %v9209_v5, %v9149_v56 }
 0x7a4   : > { %v9211_v25 = vpop.f32.mrf.mxu0  ;;  %v9255_v27 = vpop.f32.mrf.mxu1  ;;  %v9043_v33 = vadd.f32 %v20276_v20, %v8939_v17 }
 0x7a5   : > { %v8938_v37 = vadd.f32 %v20257_v7, %v8817_v55  ;;  %v9151_v59 = vadd.f32 %v20278_v38, %v9041_v40  ;;  %v9154_v60 = vadd.f32 %v20284_v31, %v9044_v10  ;;  %v9260_v38 = vadd.f32 %v9211_v25, %v9150_v6 }
 0x7a6   : > { %v9213_v47 = vpop.f32.mrf.mxu0  ;;  %v17091_v28 = vpop.f32.mrf.mxu1  ;;  %v22240_v40 = vmov 0.0  }
 0x7a7   : > { %v9042_v34 = vadd.f32 %v20273_v61, %v8938_v37  ;;  %v9261_v7 = vadd.f32 %v9252_v46, %v9151_v59  ;;  %v9264_v39 = vadd.f32 %v9255_v27, %v9154_v60  ;;  %v9153_v61 = vadd.f32 %v20292_v50, %v9043_v33 }
 0x7a8   : > { %v9215_v62 = vpop.f32.mrf.mxu0  ;;  %v9362_v43 = vpop.f32.mrf.mxu1  ;;  %v5745_v37 = vsel %vm22243_vm4, 1.0, %v22240_v40  ;;  %vm14898_vm4 = vcmask 982016  }
 0x7a9   : > { %v9152_v21 = vadd.f32 %v20287_v52, %v9042_v34  ;;  %v9371_v57 = vadd.f32 %v9362_v43, %v9261_v7  ;;  %v9263_v44 = vadd.f32 %v9215_v62, %v9153_v61 }
 0x7aa   : > { %v9319_v2 = vpop.f32.mrf.mxu0  ;;  %v17096_v4 = vpop.f32.mrf.mxu1 }
 0x7ab   : > { %v9369_v8 = vadd.f32 %v9319_v2, %v9259_v15  ;;  %v9262_v0 = vadd.f32 %v9213_v47, %v9152_v21  ;;  %v9495_v47 = vpop.permute.xlu0 %9494 }
 0x7ac   : > { %v9321_v26 = vpop.f32.mrf.mxu0  ;;  %v9365_v18 = vpop.f32.mrf.mxu1 }
 0x7ad   : > { %v9370_v9 = vadd.f32 %v9321_v26, %v9260_v38  ;;  %v9374_v31 = vadd.f32 %v9365_v18, %v9264_v39  ;;  %v22244_v26 = vld [vmem:[#allocation9_spill] sm:$0xff] }
 0x7ae   : > { %v9323_v16 = vpop.f32.mrf.mxu0  ;;  %v17097_v41 = vpop.f32.mrf.mxu1  ;;  %vm22245_vm6 = vcmp.eq.s32.totalorder %v22244_v26, %v22242_v54 }
 0x7af   : > { %v9372_v52 = vadd.f32 %v9323_v16, %v9262_v0  ;;  %v5746_v18 = vsel %vm22245_vm6, 1.0, %v22240_v40  ;;  %vm15036_vm6 = vcmask 687104  }
 0x7b0   : > { %v9325_v3 = vpop.f32.mrf.mxu0  ;;  %v9472_v24 = vpop.f32.mrf.mxu1  ;;  %v5749_v59 = vpack.c.bf16 %v5746_v18, %v5745_v37 }
 0x7b1   : > { %v9481_v46 = vadd.f32 %v9472_v24, %v9371_v57  ;;  %v9373_v32 = vadd.f32 %v9325_v3, %v9263_v44 }
 0x7b2   : > { %v9429_v42 = vpop.f32.mrf.mxu0  ;;  %v17102_v1 = vpop.f32.mrf.mxu1  ;;  %v20355_v16 = vsel %vm9582_vm7, %v5749_v59, 0  ;;  %vm15084_vm7 = vcmask 7168  }
 0x7b3   : > { %v9479_v5 = vadd.f32 %v9429_v42, %v9369_v8  ;;  %v9499_v12 = vadd.f32 %v9490_v29, %v9481_v46  ;;  %17105 = vmatpush3.bf16.msra.mxu0 %v20355_v16  ;;  %17111 = vmatpush3.bf16.msra.mxu1 %v20355_v16 }
 0x7b4   : > { %v9431_v20 = vpop.f32.mrf.mxu0  ;;  %v9475_v14 = vpop.f32.mrf.mxu1  ;;  %17116 = vmatprep.subr.bf16.mxu0 %v22240_v40  ;;  %17122 = vmatprep.subr.bf16.mxu1 %v22240_v40 }
 0x7b5   : > { %v9497_v19 = vadd.f32 %v9490_v29, %v9479_v5  ;;  %v9480_v58 = vadd.f32 %v9431_v20, %v9370_v9  ;;  %v9484_v25 = vadd.f32 %v9475_v14, %v9374_v31  ;;  %v9505_v62 = vmax.f32 %v9499_v12, 0.0 }
 0x7b6   : > { %v9433_v27 = vpop.f32.mrf.mxu0  ;;  %v17103_v28 = vpop.f32.mrf.mxu1 }
 0x7b7   : > { %v9498_v36 = vadd.f32 %v9490_v29, %v9480_v58  ;;  %v9482_v50 = vadd.f32 %v9433_v27, %v9372_v52  ;;  %v9503_v51 = vmax.f32 %v9497_v19, 0.0  ;;  %v9502_v43 = vadd.f32 %v9495_v47, %v9484_v25 }
 0x7b8   : > { %v9435_v23 = vpop.f32.mrf.mxu0 }
 0x7b9   : > { %v9504_v48 = vmax.f32 %v9498_v36, 0.0  ;;  %v9500_v35 = vadd.f32 %v9495_v47, %v9482_v50  ;;  %v9483_v53 = vadd.f32 %v9435_v23, %v9373_v32  ;;  %v9508_v55 = vmax.f32 %v9502_v43, 0.0 }
 0x7bb   : > { %v17675_v22 = vpack.i.bf16 %v9504_v48, %v9503_v51  ;;  %v9506_v63 = vmax.f32 %v9500_v35, 0.0  ;;  %v9501_v45 = vadd.f32 %v9495_v47, %v9483_v53 }
 0x7bd   : > { %v17680_v2 = vpack.i.bf16 %v9506_v63, %v9505_v62  ;;  %v9507_v4 = vmax.f32 %v9501_v45, 0.0  ;;  %17676 = vrot.lane.b32.xlu1 %v17675_v22, %s17952_s23 }
 0x7bf   : > { %v17685_v49 = vpack.i.bf16 %v9508_v55, %v9507_v4  ;;  %17681 = vrot.lane.b32.xlu0 %v17680_v2, %s17952_s23 }
 0x7c1   : > { %17686 = vrot.lane.b32.xlu1 %v17685_v49, %s17952_s23 }
 0x82f   : > { %v17677_v13 = vpop.permute.xlu1 %17676 }
 0x830   : > { %v17679_v30 = vunpack.i.h.bf16 %v17677_v13  ;;  %v17678_v10 = vunpack.i.l.bf16 %v17677_v13 }
 0x831   : > { %v17682_v56 = vpop.permute.xlu0 %17681 }
 0x832   : > { %v9527_v17 = vsel %vm456_vm2, %v17678_v10, %v17679_v30  ;;  %v17683_v34 = vunpack.i.l.bf16 %v17682_v56  ;;  %v17684_v6 = vunpack.i.h.bf16 %v17682_v56 }
 0x833   : > { %v17687_v41 = vpop.permute.xlu1 %17686  ;;  %v9537_v33 = vmax.f32 %v9503_v51, %v9527_v17 }
 0x834   : > { %v9528_v60 = vsel %vm456_vm2, %v17679_v30, %v17683_v34  ;;  %v17689_v7 = vunpack.i.h.bf16 %v17687_v41  ;;  %v17688_v15 = vunpack.i.l.bf16 %v17687_v41  ;;  %v9539_v29 = vmax.f32 %v9505_v62, %v17683_v34 }
 0x835   : > { %v9538_v21 = vmax.f32 %v9504_v48, %v9528_v60  ;;  %v22246_v48 = vmov 0  }
 0x836   : > { %v9529_v3 = vsel %vm456_vm2, %v17684_v6, %v17688_v15  ;;  %v9530_v24 = vsel %vm456_vm2, %v17688_v15, %v17689_v7  ;;  %v9542_v38 = vmax.f32 %v9508_v55, %v17689_v7  ;;  %vm9578_vm2 = vcmask 80896  }
 0x837   : > { %v9540_v39 = vmax.f32 %v9506_v63, %v9529_v3  ;;  %v9541_v57 = vmax.f32 %v9507_v4, %v9530_v24  ;;  %v17690_v8 = vpack.i.bf16 %v9538_v21, %v9537_v33  ;;  %v17736_v24 = vld [vmem:[%s22131_s5] sm:$0xff]  }
 0x838   : > { %v17700_v0 = vpack.i.bf16 %v9542_v38, %v9539_v29 }
 0x839   : > { %17691 = vrot.lane.b32.xlu0 %v17690_v8, %s17957_s27  ;;  %v17695_v61 = vpack.i.bf16 %v9541_v57, %v9540_v39 }
 0x83b   : > { %17696 = vrot.lane.b32.xlu1 %v17695_v61, %s17957_s27 }
 0x83d   : > { %17701 = vrot.lane.b32.xlu0 %v17700_v0, %s17957_s27  ;;  %v17744_v0 = vld [vmem:[%s22131_s5 + $0x3c] sm:$0xff]  }
 0x8ab   : > { %v17692_v42 = vpop.permute.xlu0 %17691 }
 0x8ac   : > { %v17694_v1 = vunpack.i.h.bf16 %v17692_v42  ;;  %v17693_v9 = vunpack.i.l.bf16 %v17692_v42 }
 0x8ad   : > { %v17697_v31 = vpop.permute.xlu1 %17696 }
 0x8ae   : > { %v9561_v46 = vsel %vm1521_vm8, %v17693_v9, %v17694_v1  ;;  %v17699_v5 = vunpack.i.h.bf16 %v17697_v31  ;;  %v17698_v44 = vunpack.i.l.bf16 %v17697_v31  ;;  %v17737_v31 = vld [vmem:[%s22131_s5 + $0x8] sm:$0xff]  }
 0x8af   : > { %v17702_v20 = vpop.permute.xlu0 %17701  ;;  %v9571_v58 = vmax.f32 %v9537_v33, %v9561_v46  ;;  %v17738_v46 = vld [vmem:[%s22131_s5 + $0x10] sm:$0xff]  }
 0x8b0   : > { %v9563_v14 = vsel %vm1521_vm8, %v17698_v44, %v17699_v5  ;;  %v17704_v52 = vunpack.i.h.bf16 %v17702_v20  ;;  %v17703_v19 = vunpack.i.l.bf16 %v17702_v20  ;;  %v17740_v44 = vld [vmem:[%s22131_s5 + $0x20] sm:$0xff]   ;;  %v17741_v20 = vld [vmem:[%s22131_s5 + $0x28] sm:$0xff]  }
 0x8b1   : > { %v9574_v25 = vmax.f32 %v9540_v39, %v9563_v14  ;;  %v17742_v14 = vld [vmem:[%s22131_s5 + $0x30] sm:$0xff]  }
 0x8b2   : > { %v9564_v27 = vsel %vm1521_vm8, %v17699_v5, %v17704_v52  ;;  %v9562_v28 = vsel %vm1521_vm8, %v17694_v1, %v17703_v19  ;;  %v9576_v47 = vmax.f32 %v9542_v38, %v17704_v52  ;;  %v9573_v51 = vmax.f32 %v9539_v29, %v17703_v19  ;;  %v17739_v5 = vld [vmem:[%s22131_s5 + $0x18] sm:$0xff]  }
 0x8b3   : > { %v9575_v32 = vmax.f32 %v9541_v57, %v9564_v27  ;;  %v9572_v12 = vmax.f32 %v9538_v21, %v9562_v28  ;;  %v9577_v36 = vpack.c.bf16 %v9574_v25, %v9571_v58  ;;  %vm393_vm8 = vcmask 1043456   ;;  %v17743_v52 = vld [vmem:[%s22131_s5 + $0x38] ss:$0 sps:$4 sm:$0xff]   ;;  %v14679_v25 = vld [vmem:[%s22132_s6 + $0x70] sm:$0xff]  ;;  %v14678_v27 = vld [vmem:[%s22132_s6 + $0x68] sm:$0xff] }
 0x8b4   : > { %v9822_v23 = vpack.c.bf16 %v9576_v47, %v9573_v51  ;;  %vm395_vm1 = vmor %vm394_vm15, %vm393_vm8  ;;  %v17746_v19 = vld [vmem:[%s22131_s5 + $0xb4] sm:$0xff]   ;;  %v14677_v28 = vld [vmem:[%s22132_s6 + $0x60] sm:$0xff] }
 0x8b5   : > { %9639 = vrot.lane.b32.xlu1 %v9577_v36, %s22187_s19  ;;  %17107 = vmatmul.mubr.msk.bf16.vlgmr.msra.gmra.mxu0 %vm9578_vm2, %v9577_v36  ;;  %v9700_v50 = vpack.c.bf16 %v9575_v32, %v9572_v12  ;;  %396 = vst.msk [vmem:[#allocation3] sm:$0xff] %vm395_vm1, %v22246_v48  ;;  %397 = vst.msk [vmem:[#allocation3 + $0x8] sm:$0xff] %vm395_vm1, %v22246_v48  ;;  %v14676_v32 = vld [vmem:[%s22132_s6 + $0x58] sm:$0xff]  ;;  %v14675_v12 = vld [vmem:[%s22132_s6 + $0x50] sm:$0xff] }
 0x8b6   : > { %17117 = vmatpush3.bf16.msra.mxu0 %v20355_v16  ;;  %17118 = vmatprep.mubr.msk.bf16.mxu0 %vm17964_vm5, %v22240_v40  ;;  %v14674_v36 = vld [vmem:[%s22132_s6 + $0x48] sm:$0xff]  ;;  %v14672_v47 = vld [vmem:[%s22132_s6 + $0x38] sm:$0xff]  ;;  %v14671_v51 = vld [vmem:[%s22132_s6 + $0x30] sm:$0xff] }
 0x8b7   : > { %9761 = vrot.lane.b32.xlu0 %v9700_v50, %s22187_s19  ;;  %17128 = vmatprep.subr.bf16.mxu0 %v22240_v40  ;;  %v14669_v48 = vld [vmem:[%s22132_s6 + $0x20] sm:$0xff] }
 0x8bd   : > { %17119 = vmatmul.mubr.msk.bf16.vlgmr.msra.gmra.mxu0 %vm9578_vm2, %v9700_v50  ;;  %v14673_v50 = vld [vmem:[%s22132_s6 + $0x40] sm:$0xff] }
 0x8be   : > { %17129 = vmatpush3.bf16.msra.mxu0 %v20355_v16  ;;  %17130 = vmatprep.mubr.msk.bf16.mxu0 %vm17964_vm5, %v22240_v40 }
 0x8c5   : > { %17131 = vmatmul.mubr.msk.bf16.vlgmr.msra.gmra.mxu0 %vm9578_vm2, %v9822_v23  ;;  %v14670_v23 = vld [vmem:[%s22132_s6 + $0x28] sm:$0xff] }
 0x8c6   : > { %17154 = vmatprep.mubr.msk.bf16.mxu0 %vm9956_vm13, %v17736_v24  ;;  %v17756_v24 = vld [vmem:[%s22131_s5 + $0x6c] sm:$0xff]  }
 0x927   : > { %v9640_v43 = vpop.permute.xlu1 %9639 }
 0x928   : > { %17113 = vmatmul.mubr.msk.bf16.vlgmr.msra.gmra.mxu1 %vm9578_vm2, %v9640_v43  ;;  %v14668_v43 = vld [vmem:[%s22132_s6 + $0x18] sm:$0xff] }
 0x929   : > { %17123 = vmatpush3.bf16.msra.mxu1 %v20355_v16  ;;  %17124 = vmatprep.mubr.msk.bf16.mxu1 %vm17964_vm5, %v22240_v40  ;;  %v9762_v35 = vpop.permute.xlu0 %9761 }
 0x930   : > { %17125 = vmatmul.mubr.msk.bf16.vlgmr.msra.gmra.mxu1 %vm9578_vm2, %v9762_v35  ;;  %v14667_v35 = vld [vmem:[%s22132_s6 + $0x10] sm:$0xff]  ;;  %vm15086_vm2 = vcmask 1024  }
 0x931   : > { %17136 = vmatprep.mubr.msk.bf16.mxu1 %vm9956_vm13, %v17744_v0  ;;  %v17761_v0 = vld [vmem:[%s22131_s5 + $0x80] sm:$0xff]  }
 0x975   : > { %v9620_v53 = vpop.f32.mrf.mxu0 }
 0x976   : > { %v16284_v62 = vpack.c.bf16 %v9620_v53, %v9620_v53  ;;  %v14666_v53 = vld [vmem:[%s22132_s6 + $0x8] sm:$0xff] }
 0x977   : > { %v17108_v22 = vpop.f32.mrf.mxu0 }
 0x978   : > { %9636 = vst.msk [vmem:[#allocation3] sm:$0xf] %vm9635_vm12, %v16284_v62  ;;  %v14665_v62 = vld [vmem:[%s22132_s6] sm:$0xff] }
 0x979   : > { %v9623_v63 = vpop.f32.mrf.mxu0  ;;  %v14812_v22 = vld [vmem:[%s22134_s8 + $0x40] sm:$0xff] }
 0x97a   : > { %v16285_v45 = vpack.c.bf16 %v9623_v63, %v9623_v63  ;;  %v14814_v63 = vld [vmem:[%s22134_s8 + $0x50] sm:$0xf] }
 0x97b   : > { %v17109_v55 = vpop.f32.mrf.mxu0 }
 0x97c   : > { %9637 = vst.msk [vmem:[#allocation3 + $0x8] sm:$0xf] %vm9635_vm12, %v16285_v45  ;;  %v14810_v45 = vld [vmem:[%s22134_s8 + $0x30] sm:$0xff]  ;;  %v14813_v55 = vld [vmem:[%s22134_s8 + $0x48] sm:$0xff] }
 0x97d   : > { %v9738_v2 = vpop.f32.mrf.mxu0 }
 0x97e   : > { %v16288_v4 = vpack.c.bf16 %v9738_v2, %v9738_v2  ;;  %v14808_v2 = vld [vmem:[%s22134_s8 + $0x20] sm:$0xff] }
 0x97f   : > { %v17120_v49 = vpop.f32.mrf.mxu0 }
 0x980   : > { %9751 = vrot.lane.b32.xlu1 %v16288_v4, %s22187_s19  ;;  %v14811_v4 = vld [vmem:[%s22134_s8 + $0x38] sm:$0xff]  ;;  %v14806_v49 = vld [vmem:[%s22134_s8 + $0x10] sm:$0xff] }
 0x981   : > { %v9741_v13 = vpop.f32.mrf.mxu0 }
 0x982   : > { %v16289_v11 = vpack.c.bf16 %v9741_v13, %v9741_v13  ;;  %v14809_v13 = vld [vmem:[%s22134_s8 + $0x28] sm:$0xff] }
 0x983   : > { %v17121_v54 = vpop.f32.mrf.mxu0 }
 0x984   : > { %9753 = vrot.lane.b32.xlu0 %v16289_v11, %s22187_s19  ;;  %s22248_s19 = smov 93   ;;  %v14804_v11 = vld [vmem:[%s22134_s8] sm:$0xff]  ;;  %v14807_v54 = vld [vmem:[%s22134_s8 + $0x18] sm:$0xff] }
 0x985   : > { %v9860_v37 = vpop.f32.mrf.mxu0 }
 0x986   : > { %v16292_v26 = vpack.c.bf16 %v9860_v37, %v9860_v37  ;;  %v15019_v37 = vld [vmem:[%s22136_s10] sm:$0xff] }
 0x987   : > { %v17132_v18 = vpop.f32.mrf.mxu0 }
 0x988   : > { %9875 = vst.msk [vmem:[#allocation3 + $0x4] sm:$0xf] %vm9635_vm12, %v16292_v26  ;;  %v14805_v26 = vld [vmem:[%s22134_s8 + $0x8] sm:$0xff] }
 0x989   : > { %v9863_v30 = vpop.f32.mrf.mxu0  ;;  %v15020_v18 = vld [vmem:[%s22136_s10 + $0x8] sm:$0x3] }
 0x98a   : > { %v16293_v10 = vpack.c.bf16 %v9863_v30, %v9863_v30 }
 0x98b   : > { %v17133_v59 = vpop.f32.mrf.mxu0 }
 0x98c   : > { %9876 = vst.msk [vmem:[#allocation3 + $0xc] sm:$0xf] %vm9635_vm12, %v16293_v10  ;;  %v17745_v59 = vld [vmem:[%s22131_s5 + $0x44] sm:$0xff]  }
 0x9e8   : > { %v9678_v56 = vpop.f32.mrf.mxu1 }
 0x9e9   : > { %v16286_v17 = vpack.c.bf16 %v9678_v56, %v9678_v56  ;;  %v17748_v56 = vld [vmem:[%s22131_s5 + $0x4c] sm:$0xff]  }
 0x9ea   : > { %v17114_v34 = vpop.f32.mrf.mxu1 }
 0x9eb   : > { %9691 = vrot.lane.b32.xlu1 %v16286_v17, %s22186_s13  ;;  %v17747_v34 = vld [vmem:[%s22131_s5 + $0xbc] sm:$0xff]  }
 0x9ec   : > { %v9681_v16 = vpop.f32.mrf.mxu1 }
 0x9ed   : > { %v16287_v41 = vpack.c.bf16 %v9681_v16, %v9681_v16 }
 0x9ee   : > { %v17115_v6 = vpop.f32.mrf.mxu1 }
 0x9ef   : > { %9693 = vrot.lane.b32.xlu0 %v16287_v41, %s22186_s13  ;;  %s22249_s13 = smov 94   ;;  %v17750_v41 = vld [vmem:[%s22131_s5 + $0xc4] sm:$0xff]  }
 0x9f0   : > { %v9800_v60 = vpop.f32.mrf.mxu1 }
 0x9f1   : > { %v16290_v7 = vpack.c.bf16 %v9800_v60, %v9800_v60  ;;  %v17749_v60 = vld [vmem:[%s22131_s5 + $0x54] sm:$0xff]  }
 0x9f2   : > { %v17126_v15 = vpop.f32.mrf.mxu1  ;;  %v9752_v38 = vpop.permute.xlu1 %9751 }
 0x9f3   : > { %9813 = vrot.lane.b32.xlu1 %v16290_v7, %s17957_s27  ;;  %v17752_v7 = vld [vmem:[%s22131_s5 + $0x5c] sm:$0xff]  }
 0x9f4   : > { %v9803_v33 = vpop.f32.mrf.mxu1 }
 0x9f5   : > { %v16291_v21 = vpack.c.bf16 %v9803_v33, %v9803_v33  ;;  %v17751_v33 = vld [vmem:[%s22131_s5 + $0xcc] sm:$0xff]  }
 0x9f6   : > { %v17127_v3 = vpop.f32.mrf.mxu1  ;;  %v9754_v39 = vpop.permute.xlu0 %9753 }
 0x9f7   : > { %9815 = vrot.lane.b32.xlu0 %v16291_v21, %s17957_s27  ;;  %v17754_v21 = vld [vmem:[%s22131_s5 + $0xd4] sm:$0xff]   ;;  %v17753_v3 = vld [vmem:[%s22131_s5 + $0x64] sm:$0xff]  }
 0xa5d   : > { %v9692_v57 = vpop.permute.xlu1 %9691 }
 0xa5e   : > { %9698 = vst.msk [vmem:[#allocation3] sm:$0xf] %vm9697_vm3, %v9692_v57  ;;  %v17757_v57 = vld [vmem:[%s22131_s5 + $0x74] ss:$0 sps:$4 sm:$0xff]  }
 0xa5f   : > { %9758 = vst.msk [vmem:[#allocation3] sm:$0xf] %vm9757_vm14, %v9752_v38  ;;  %v17755_v38 = vld [vmem:[%s22131_s5 + $0xdc] sm:$0xff]  }
 0xa61   : > { %v9694_v8 = vpop.permute.xlu0 %9693 }
 0xa62   : > { %9699 = vst.msk [vmem:[#allocation3 + $0x8] sm:$0xf] %vm9697_vm3, %v9694_v8  ;;  %v17760_v8 = vld [vmem:[%s22131_s5 + $0x78] sm:$0xff]  }
 0xa63   : > { %9759 = vst.msk [vmem:[#allocation3 + $0x8] sm:$0xf] %vm9757_vm14, %v9754_v39  ;;  %v17758_v39 = vld [vmem:[%s22131_s5 + $0xe4] sm:$0xff]  }
 0xa65   : > { %v9814_v29 = vpop.permute.xlu1 %9813 }
 0xa66   : > { %9820 = vst.msk [vmem:[#allocation3] sm:$0xf] %vm9819_vm9, %v9814_v29  ;;  %v17759_v29 = vld [vmem:[%s22131_s5 + $0xec] ss:$0 sps:$4 sm:$0xff]  }
 0xa69   : > { %v9816_v61 = vpop.permute.xlu0 %9815 }
 0xa6a   : > { %9821 = vst.msk [vmem:[#allocation3 + $0x8] sm:$0xf] %vm9819_vm9, %v9816_v61  ;;  %v17762_v61 = vld [vmem:[%s22131_s5 + $0x12c] sm:$0xff]  }
 0xa6d   : > { %v9877_v42 = vld [vmem:[#allocation3] sm:$0xff] }
 0xa71   : > { %v9878_v1 = vld [vmem:[#allocation3 + $0x8] sm:$0xff] }
 0xa72   : > { %v15518_v9 = vcombine.low %v9877_v42, %v9878_v1  ;;  %v20456_v58 = vcombine.high %v9877_v42, %v9878_v1  ;;  %v17764_v42 = vld [vmem:[%s22131_s5 + $0x88] sm:$0xff]   ;;  %v17763_v1 = vld [vmem:[%s22131_s5 + $0x134] sm:$0xff]  }
 0xa74   : > { %10290 = vrot.lane.b32.xlu0 %v15518_v9, %s22188_s24  ;;  %9953 = vrot.lane.b32.xlu1 %v15518_v9, %s17952_s23  ;;  %s22252_s24 = smov 63  }
 0xa75   : > { %17152 = vmatprep.subr.bf16.mxu0 %v15518_v9 }
 0xa76   : > { %17153 = vmatpush3.bf16.msra.mxu0 %v15518_v9 }
 0xa78   : > { %10674 = vrot.lane.b32.xlu0 %v15518_v9, %s22189_s26  ;;  %10482 = vrot.lane.b32.xlu1 %v15518_v9, %s22190_s25  ;;  %s22250_s26 = smov 64  }
 0xa79   : > { %17155 = vmatmul.mubr.msk.bf16.vlgmr.msra.gmra.mxu0 %vm9956_vm13, %v17737_v31  ;;  %v17766_v31 = vld [vmem:[%s22131_s5 + $0x13c] sm:$0xff]  }
 0xa7a   : > { %17158 = vmatprep.mubr.msk.bf16.mxu0 %vm9956_vm13, %v17738_v46  ;;  %v17765_v46 = vld [vmem:[%s22131_s5 + $0x90] sm:$0xff]  }
 0xa7c   : > { %11058 = vrot.lane.b32.xlu0 %v15518_v9, %s22247_s28  ;;  %10866 = vrot.lane.b32.xlu1 %v15518_v9, %s17957_s27  ;;  %s22251_s28 = smov 92  }
 0xa80   : > { %11442 = vrot.lane.b32.xlu0 %v15518_v9, %s22248_s19  ;;  %11250 = vrot.lane.b32.xlu1 %v15518_v9, %s22249_s13 }
 0xa81   : > { %17159 = vmatmul.mubr.msk.bf16.gmra.mxu0 %vm9956_vm13, %v17739_v5 }
 0xa82   : > { %17162 = vmatprep.mubr.msk.bf16.mxu0 %vm9956_vm13, %v17740_v44  ;;  %v17768_v44 = vld [vmem:[%s22131_s5 + $0x98] sm:$0xff]  }
 0xa84   : > { %11826 = vrot.lane.b32.xlu0 %v15518_v9, %s22250_s26  ;;  %11634 = vrot.lane.b32.xlu1 %v15518_v9, %s22251_s28  ;;  %s16273_s26 = sshll.u32 %s22263_s18, 4 }
 0xa85   : > { %s386_s19 = scalar_lea.vmem %s22137_s11, %s16273_s26 }
 0xa88   : > { %12210 = vrot.lane.b32.xlu0 %v15518_v9, %s22210_s15  ;;  %12018 = vrot.lane.b32.xlu1 %v15518_v9, %s22252_s24  ;;  %s22253_s15 = smov 32  }
 0xa89   : > { %17163 = vmatmul.mubr.msk.bf16.gmra.mxu0 %vm9956_vm13, %v17741_v20  ;;  %v17767_v20 = vld [vmem:[%s22131_s5 + $0x144] sm:$0xff]  }
 0xa8a   : > { %17166 = vmatprep.mubr.msk.bf16.mxu0 %vm9956_vm13, %v17742_v14  ;;  %v17770_v14 = vld [vmem:[%s22131_s5 + $0x14c] sm:$0xff]  }
 0xa8c   : > { %12594 = vrot.lane.b32.xlu0 %v15518_v9, %s22212_s16  ;;  %12402 = vrot.lane.b32.xlu1 %v15518_v9, %s22211_s20  ;;  %s22254_s20 = smov 29   ;;  %s22255_s16 = smov 125  }
 0xa90   : > { %12981 = vrot.lane.b32.xlu0 %v15518_v9, %s22213_s22  ;;  %12786 = vrot.lane.b32.xlu1 %v15518_v9, %s22253_s15 }
 0xa91   : > { %17167 = vmatmul.mubr.msk.bf16.gmra.mxu0 %vm9956_vm13, %v17743_v52  ;;  %v17769_v52 = vld [vmem:[%s22131_s5 + $0xa0] sm:$0xff]  }
 0xa92   : > { %17190 = vmatprep.mubr.msk.bf16.mxu0 %vm9956_vm13, %v17746_v19  ;;  %v17772_v19 = vld [vmem:[%s22131_s5 + $0xa8] sm:$0xff]  }
 0xa94   : > { %13176 = vrot.lane.b32.xlu0 %v15518_v9, %s22214_s12  ;;  %12983 = vrot.lane.b32.xlu1 %v20456_v58, %s22213_s22  ;;  %s22256_s22 = smov 126  }
 0xa98   : > { %13371 = vrot.lane.b32.xlu0 %v15518_v9, %s22254_s20  ;;  %13178 = vrot.lane.b32.xlu1 %v20456_v58, %s22214_s12  ;;  %s22257_s12 = smov 124  }
 0xa9c   : > { %13566 = vrot.lane.b32.xlu0 %v15518_v9, %s22215_s14  ;;  %13373 = vrot.lane.b32.xlu1 %v20456_v58, %s22254_s20 }
 0xaa0   : > { %13951 = vrot.lane.b32.xlu0 %v20456_v58, %s17952_s23  ;;  %13568 = vrot.lane.b32.xlu1 %v20456_v58, %s22215_s14 }
 0xaa4   : > { %14335 = vrot.lane.b32.xlu0 %v20456_v58, %s22255_s16  ;;  %14143 = vrot.lane.b32.xlu1 %v20456_v58, %s22256_s22 }
 0xaa8   : > { %14752 = vperm.xlu0 %17663, %v14679_v25   ;;  %14527 = vrot.lane.b32.xlu1 %v20456_v58, %s22257_s12  ;;  %v17771_v25 = vld [vmem:[%s22131_s5 + $0x154] sm:$0xff]  }
 0xaac   : > { %14747 = vperm.xlu0 %17663, %v14678_v27   ;;  %14742 = vperm.xlu1 %17674, %v14677_v28   ;;  %v17774_v27 = vld [vmem:[%s22131_s5 + $0x15c] sm:$0xff]   ;;  %v17773_v28 = vld [vmem:[%s22131_s5 + $0xb0] ss:$0 sps:$4 sm:$0xff]  }
 0xab0   : > { %14737 = vperm.xlu0 %17663, %v14676_v32   ;;  %14732 = vperm.xlu1 %17674, %v14675_v12   ;;  %v17776_v32 = vld [vmem:[%s22131_s5 + $0xf0] sm:$0xff]   ;;  %v17775_v12 = vld [vmem:[%s22131_s5 + $0x164] ss:$0 sps:$4 sm:$0xff]  }
 0xab4   : > { %14727 = vperm.xlu0 %17663, %v14674_v36   ;;  %14722 = vperm.xlu1 %17674, %v14673_v50   ;;  %v17778_v36 = vld [vmem:[%s22131_s5 + $0x1a4] sm:$0xff]   ;;  %v17777_v50 = vld [vmem:[%s22131_s5 + $0xf8] sm:$0xff]  }
 0xab8   : > { %14717 = vperm.xlu0 %17663, %v14672_v47   ;;  %14712 = vperm.xlu1 %17674, %v14671_v51   ;;  %v17780_v47 = vld [vmem:[%s22131_s5 + $0x100] sm:$0xff]   ;;  %v17779_v51 = vld [vmem:[%s22131_s5 + $0x1ac] sm:$0xff]  }
 0xabc   : > { %14707 = vperm.xlu0 %17663, %v14670_v23   ;;  %14702 = vperm.xlu1 %17674, %v14669_v48   ;;  %v17782_v48 = vld [vmem:[%s22131_s5 + $0x1b4] sm:$0xff]  }
 0xac0   : > { %14697 = vperm.xlu0 %17663, %v14668_v43   ;;  %14692 = vperm.xlu1 %17674, %v14667_v35   ;;  %v17781_v43 = vld [vmem:[%s22131_s5 + $0x108] sm:$0xff]  }
 0xac4   : > { %14687 = vperm.xlu0 %17663, %v14666_v53   ;;  %14682 = vperm.xlu1 %17674, %v14665_v62   ;;  %v17784_v53 = vld [vmem:[%s22131_s5 + $0x110] sm:$0xff]   ;;  %v17783_v62 = vld [vmem:[%s22131_s5 + $0x1bc] sm:$0xff]  }
 0xac8   : > { %14857 = vperm.xlu0 %17663, %v14812_v22   ;;  %14867 = vperm.xlu1 %17674, %v14814_v63   ;;  %v17786_v22 = vld [vmem:[%s22131_s5 + $0x1c4] sm:$0xff]   ;;  %v17785_v63 = vld [vmem:[%s22131_s5 + $0x118] sm:$0xff]  }
 0xacc   : > { %14847 = vperm.xlu0 %17663, %v14810_v45   ;;  %14862 = vperm.xlu1 %17674, %v14813_v55   ;;  %v17788_v45 = vld [vmem:[%s22131_s5 + $0x120] sm:$0xff]  }
 0xad0   : > { %14837 = vperm.xlu0 %17663, %v14808_v2   ;;  %14852 = vperm.xlu1 %17674, %v14811_v4   ;;  %v17787_v2 = vld [vmem:[%s22131_s5 + $0x1cc] sm:$0xff]   ;;  %v17790_v4 = vld [vmem:[%s22131_s5 + $0x1d4] sm:$0xff]  }
 0xad4   : > { %14827 = vperm.xlu0 %17663, %v14806_v49   ;;  %14842 = vperm.xlu1 %17674, %v14809_v13  }
 0xad8   : > { %14817 = vperm.xlu0 %17663, %v14804_v11   ;;  %14832 = vperm.xlu1 %17674, %v14807_v54   ;;  %v17789_v11 = vld [vmem:[%s22131_s5 + $0x128] ss:$0 sps:$4 sm:$0xff]  }
 0xad9   : > { %v17792_v54 = vld [vmem:[%s22131_s5 + $0x168] sm:$0xff]  }
 0xadc   : > { %15023 = vperm.xlu0 %17663, %v15019_v37   ;;  %14822 = vperm.xlu1 %17674, %v14805_v26  }
 0xae0   : > { %15028 = vperm.xlu1 %17674, %v15020_v18   ;;  %v17791_v18 = vld [vmem:[%s22131_s5 + $0x1dc] ss:$0 sps:$4 sm:$0xff]  }
 0xae6   : > { %v10291_v30 = vpop.permute.xlu0 %10290  ;;  %v9954_v10 = vpop.permute.xlu1 %9953 }
 0xae7   : > { %17134 = vmatprep.subr.bf16.mxu1 %v9954_v10 }
 0xae8   : > { %17135 = vmatpush3.bf16.msra.mxu1 %v9954_v10 }
 0xae9   : > { %17170 = vmatprep.subr.bf16.mxu1 %v10291_v30 }
 0xaea   : > { %v10483_v17 = vpop.permute.xlu1 %10482  ;;  %v10675_v16 = vpop.permute.xlu0 %10674 }
 0xaeb   : > { %17137 = vmatmul.mubr.msk.bf16.vlgmr.msra.gmra.mxu1 %vm9956_vm13, %v17745_v59  ;;  %17188 = vmatprep.subr.bf16.mxu0 %v10483_v17 }
 0xaec   : > { %17171 = vmatpush3.bf16.msra.mxu1 %v10291_v30  ;;  %17189 = vmatpush3.bf16.msra.mxu0 %v10483_v17  ;;  %v17794_v30 = vld [vmem:[%s22131_s5 + $0x21c] sm:$0xff]  }
 0xaed   : > { %17206 = vmatprep.subr.bf16.mxu1 %v10675_v16  ;;  %17140 = vmatprep.mubr.msk.bf16.mxu1 %vm9956_vm13, %v17748_v56  ;;  %v17793_v56 = vld [vmem:[%s22131_s5 + $0x170] sm:$0xff]   ;;  %v17796_v17 = vld [vmem:[%s22131_s5 + $0x178] sm:$0xff]  }
 0xaee   : > { %v10867_v6 = vpop.permute.xlu1 %10866  ;;  %v11059_v9 = vpop.permute.xlu0 %11058 }
 0xaef   : > { %17191 = vmatmul.mubr.msk.bf16.vlgmr.msra.gmra.mxu0 %vm9956_vm13, %v17747_v34  ;;  %17224 = vmatprep.subr.bf16.mxu0 %v10867_v6 }
 0xaf0   : > { %17225 = vmatpush3.bf16.msra.mxu0 %v10867_v6  ;;  %17194 = vmatprep.mubr.msk.bf16.mxu0 %vm9956_vm13, %v17750_v41  ;;  %v17795_v41 = vld [vmem:[%s22131_s5 + $0x224] sm:$0xff]  }
 0xaf2   : > { %v11251_v15 = vpop.permute.xlu1 %11250  ;;  %v11443_v23 = vpop.permute.xlu0 %11442 }
 0xaf3   : > { %17141 = vmatmul.mubr.msk.bf16.gmra.mxu1 %vm9956_vm13, %v17749_v60  ;;  %17260 = vmatprep.subr.bf16.mxu0 %v11251_v15  ;;  %v17798_v60 = vld [vmem:[%s22131_s5 + $0x22c] sm:$0xff]  }
 0xaf4   : > { %17144 = vmatprep.mubr.msk.bf16.mxu1 %vm9956_vm13, %v17752_v7 }
 0xaf6   : > { %v11635_v5 = vpop.permute.xlu1 %11634  ;;  %v11827_v6 = vpop.permute.xlu0 %11826 }
 0xaf7   : > { %17195 = vmatmul.mubr.msk.bf16.gmra.mxu0 %vm9956_vm13, %v17751_v33  ;;  %v17797_v33 = vld [vmem:[%s22131_s5 + $0x180] sm:$0xff]  }
 0xaf8   : > { %17198 = vmatprep.mubr.msk.bf16.mxu0 %vm9956_vm13, %v17754_v21 }
 0xafa   : > { %v12019_v35 = vpop.permute.xlu1 %12018 }
 0xafb   : > { %17145 = vmatmul.mubr.msk.bf16.gmra.mxu1 %vm9956_vm13, %v17753_v3  ;;  %v17800_v3 = vld [vmem:[%s22131_s5 + $0x188] sm:$0xff]  }
 0xafc   : > { %17148 = vmatprep.mubr.msk.bf16.mxu1 %vm9956_vm13, %v17756_v24 }
 0xafe   : > { %v12403_v21 = vpop.permute.xlu1 %12402 }
 0xaff   : > { %17199 = vmatmul.mubr.msk.bf16.gmra.mxu0 %vm9956_vm13, %v17755_v38 }
 0xb00   : > { %17202 = vmatprep.mubr.msk.bf16.mxu0 %vm9956_vm13, %v17758_v39  ;;  %v17799_v39 = vld [vmem:[%s22131_s5 + $0x234] sm:$0xff]  }
 0xb03   : > { %17149 = vmatmul.mubr.msk.bf16.gmra.mxu1 %vm9956_vm13, %v17757_v57  ;;  %v17802_v57 = vld [vmem:[%s22131_s5 + $0x23c] sm:$0xff]  }
 0xb04   : > { %17172 = vmatprep.mubr.msk.bf16.mxu1 %vm9956_vm13, %v17760_v8 }
 0xb07   : > { %17203 = vmatmul.mubr.msk.bf16.gmra.mxu0 %vm9956_vm13, %v17759_v29 }
 0xb08   : > { %17226 = vmatprep.mubr.msk.bf16.mxu0 %vm9956_vm13, %v17762_v61  ;;  %v17801_v61 = vld [vmem:[%s22131_s5 + $0x190] sm:$0xff]  }
 0xb0b   : > { %17173 = vmatmul.mubr.msk.bf16.vlgmr.msra.gmra.mxu1 %vm9956_vm13, %v17761_v0  ;;  %v17804_v0 = vld [vmem:[%s22131_s5 + $0x198] sm:$0xff]  }
 0xb0c   : > { %17207 = vmatpush3.bf16.msra.mxu1 %v10675_v16  ;;  %17176 = vmatprep.mubr.msk.bf16.mxu1 %vm9956_vm13, %v17764_v42  ;;  %v17803_v42 = vld [vmem:[%s22131_s5 + $0x244] sm:$0xff]  }
 0xb0d   : > { %17242 = vmatprep.subr.bf16.mxu1 %v11059_v9 }
 0xb0f   : > { %17227 = vmatmul.mubr.msk.bf16.vlgmr.msra.gmra.mxu0 %vm9956_vm13, %v17763_v1  ;;  %v17806_v1 = vld [vmem:[%s22131_s5 + $0x24c] sm:$0xff]  }
 0xb10   : > { %17261 = vmatpush3.bf16.msra.mxu0 %v11251_v15  ;;  %17230 = vmatprep.mubr.msk.bf16.mxu0 %vm9956_vm13, %v17766_v31  ;;  %v17808_v31 = vld [vmem:[%s22131_s5 + $0x1e0] sm:$0xff]  }
 0xb11   : > { %17296 = vmatprep.subr.bf16.mxu0 %v11635_v5 }
 0xb13   : > { %17177 = vmatmul.mubr.msk.bf16.gmra.mxu1 %vm9956_vm13, %v17765_v46  ;;  %v17807_v46 = vld [vmem:[%s22131_s5 + $0x254] ss:$0 sps:$4 sm:$0xff]  }
 0xb14   : > { %17180 = vmatprep.mubr.msk.bf16.mxu1 %vm9956_vm13, %v17768_v44  ;;  %v17809_v44 = vld [vmem:[%s22131_s5 + $0x1e8] sm:$0xff]  }
 0xb17   : > { %17231 = vmatmul.mubr.msk.bf16.gmra.mxu0 %vm9956_vm13, %v17767_v20  ;;  %v17812_v20 = vld [vmem:[%s22131_s5 + $0x1f0] sm:$0xff]  }
 0xb18   : > { %17234 = vmatprep.mubr.msk.bf16.mxu0 %vm9956_vm13, %v17770_v14  ;;  %v17811_v14 = vld [vmem:[%s22131_s5 + $0x29c] sm:$0xff]  }
 0xb1b   : > { %17181 = vmatmul.mubr.msk.bf16.gmra.mxu1 %vm9956_vm13, %v17769_v52  ;;  %v12211_v52 = vpop.permute.xlu0 %12210 }
 0xb1c   : > { %17184 = vmatprep.mubr.msk.bf16.mxu1 %vm9956_vm13, %v17772_v19  ;;  %v17814_v19 = vld [vmem:[%s22131_s5 + $0x2a4] sm:$0xff]  }
 0xb1f   : > { %17235 = vmatmul.mubr.msk.bf16.gmra.mxu0 %vm9956_vm13, %v17771_v25  ;;  %v17813_v25 = vld [vmem:[%s22131_s5 + $0x1f8] sm:$0xff]  }
 0xb20   : > { %17238 = vmatprep.mubr.msk.bf16.mxu0 %vm9956_vm13, %v17774_v27  ;;  %v12787_v27 = vpop.permute.xlu1 %12786 }
 0xb23   : > { %17185 = vmatmul.mubr.msk.bf16.gmra.mxu1 %vm9956_vm13, %v17773_v28  ;;  %v17816_v28 = vld [vmem:[%s22131_s5 + $0x200] sm:$0xff]  }
 0xb24   : > { %17208 = vmatprep.mubr.msk.bf16.mxu1 %vm9956_vm13, %v17776_v32  ;;  %v17815_v32 = vld [vmem:[%s22131_s5 + $0x2ac] sm:$0xff]  }
 0xb27   : > { %17239 = vmatmul.mubr.msk.bf16.gmra.mxu0 %vm9956_vm13, %v17775_v12  ;;  %v17818_v12 = vld [vmem:[%s22131_s5 + $0x2b4] sm:$0xff]  }
 0xb28   : > { %17262 = vmatprep.mubr.msk.bf16.mxu0 %vm9956_vm13, %v17778_v36  ;;  %v17817_v36 = vld [vmem:[%s22131_s5 + $0x208] sm:$0xff]  }
 0xb2b   : > { %17209 = vmatmul.mubr.msk.bf16.vlgmr.msra.gmra.mxu1 %vm9956_vm13, %v17777_v50  ;;  %v17820_v50 = vld [vmem:[%s22131_s5 + $0x210] sm:$0xff]  }
 0xb2c   : > { %17243 = vmatpush3.bf16.msra.mxu1 %v11059_v9  ;;  %17212 = vmatprep.mubr.msk.bf16.mxu1 %vm9956_vm13, %v17780_v47  ;;  %v17805_v9 = vld [vmem:[%s22131_s5 + $0x1a0] ss:$0 sps:$4 sm:$0xff]  }
 0xb2d   : > { %17278 = vmatprep.subr.bf16.mxu1 %v11443_v23  ;;  %v17819_v47 = vld [vmem:[%s22131_s5 + $0x2bc] sm:$0xff]  }
 0xb2f   : > { %17263 = vmatmul.mubr.msk.bf16.vlgmr.msra.gmra.mxu0 %vm9956_vm13, %v17779_v51  ;;  %v17822_v51 = vld [vmem:[%s22131_s5 + $0x2c4] sm:$0xff]  }
 0xb30   : > { %17297 = vmatpush3.bf16.msra.mxu0 %v11635_v5  ;;  %17266 = vmatprep.mubr.msk.bf16.mxu0 %vm9956_vm13, %v17782_v48  ;;  %v17810_v5 = vld [vmem:[%s22131_s5 + $0x294] sm:$0xff]  }
 0xb31   : > { %17332 = vmatprep.subr.bf16.mxu0 %v12019_v35  ;;  %v17824_v48 = vld [vmem:[%s22131_s5 + $0x258] sm:$0xff]  }
 0xb33   : > { %17213 = vmatmul.mubr.msk.bf16.gmra.mxu1 %vm9956_vm13, %v17781_v43  ;;  %v12595_v43 = vpop.permute.xlu0 %12594 }
 0xb34   : > { %17216 = vmatprep.mubr.msk.bf16.mxu1 %vm9956_vm13, %v17784_v53  ;;  %v17826_v53 = vld [vmem:[%s22131_s5 + $0x30c] sm:$0xff]  }
 0xb37   : > { %17267 = vmatmul.mubr.msk.bf16.gmra.mxu0 %vm9956_vm13, %v17783_v62  ;;  %v12984_v62 = vpop.permute.xlu1 %12983 }
 0xb38   : > { %17270 = vmatprep.mubr.msk.bf16.mxu0 %vm9956_vm13, %v17786_v22  ;;  %v17825_v22 = vld [vmem:[%s22131_s5 + $0x260] sm:$0xff]  }
 0xb39   : > { %v20728_v55 = vpop.f32.mrf.mxu0 }
 0xb3b   : > { %17217 = vmatmul.mubr.msk.bf16.gmra.mxu1 %vm9956_vm13, %v17785_v63  ;;  %v20738_v49 = vpop.f32.mrf.mxu0  ;;  %v17828_v63 = vld [vmem:[%s22131_s5 + $0x268] sm:$0xff]  }
 0xb3c   : > { %17220 = vmatprep.mubr.msk.bf16.mxu1 %vm9956_vm13, %v17788_v45  ;;  %v12982_v45 = vpop.permute.xlu0 %12981 }
 0xb3d   : > { %v20740_v13 = vpop.f32.mrf.mxu0 }
 0xb3f   : > { %17271 = vmatmul.mubr.msk.bf16.gmra.mxu0 %vm9956_vm13, %v17787_v2  ;;  %v20750_v37 = vpop.f32.mrf.mxu0  ;;  %v17827_v2 = vld [vmem:[%s22131_s5 + $0x314] sm:$0xff]  }
 0xb40   : > { %17274 = vmatprep.mubr.msk.bf16.mxu0 %vm9956_vm13, %v17790_v4  ;;  %v17830_v4 = vld [vmem:[%s22131_s5 + $0x31c] sm:$0xff]  }
 0xb41   : > { %v20752_v26 = vpop.f32.mrf.mxu0 }
 0xb43   : > { %17221 = vmatmul.mubr.msk.bf16.gmra.mxu1 %vm9956_vm13, %v17789_v11  ;;  %v20762_v10 = vpop.f32.mrf.mxu0  ;;  %v13179_v11 = vpop.permute.xlu1 %13178 }
 0xb44   : > { %17244 = vmatprep.mubr.msk.bf16.mxu1 %vm9956_vm13, %v17792_v54  ;;  %v13177_v54 = vpop.permute.xlu0 %13176 }
 0xb45   : > { %v20764_v59 = vpop.f32.mrf.mxu0 }
 0xb47   : > { %17275 = vmatmul.mubr.msk.bf16.gmra.mxu0 %vm9956_vm13, %v17791_v18  ;;  %v20774_v34 = vpop.f32.mrf.mxu0  ;;  %v17829_v18 = vld [vmem:[%s22131_s5 + $0x270] sm:$0xff]  }
 0xb48   : > { %17298 = vmatprep.mubr.msk.bf16.mxu0 %vm9956_vm13, %v17794_v30  ;;  %v13180_v30 = vsel %vm22258_vm10, %v13177_v54, %v13179_v11  ;;  %v17854_v54 = vld [vmem:[%s22131_s5 + $0x3b4] sm:$0xff]  }
 0xb49   : > { %v20776_v16 = vpop.f32.mrf.mxu0 }
 0xb4b   : > { %17245 = vmatmul.mubr.msk.bf16.vlgmr.msra.gmra.mxu1 %vm9956_vm13, %v17793_v56  ;;  %v20786_v7 = vpop.f32.mrf.mxu0  ;;  %v17832_v56 = vld [vmem:[%s22131_s5 + $0x278] sm:$0xff]  }
 0xb4c   : > { %17279 = vmatpush3.bf16.msra.mxu1 %v11443_v23  ;;  %17248 = vmatprep.mubr.msk.bf16.mxu1 %vm9956_vm13, %v17796_v17  ;;  %v17821_v23 = vld [vmem:[%s22131_s5 + $0x218] ss:$0 sps:$4 sm:$0xff]   ;;  %v17831_v17 = vld [vmem:[%s22131_s5 + $0x324] sm:$0xff]  }
 0xb4d   : > { %17314 = vmatprep.subr.bf16.mxu1 %v11827_v6  ;;  %v20788_v15 = vpop.f32.mrf.mxu0 }
 0xb4f   : > { %17299 = vmatmul.mubr.msk.bf16.vlgmr.msra.gmra.mxu0 %vm9956_vm13, %v17795_v41  ;;  %v20798_v24 = vpop.f32.mrf.mxu0  ;;  %v17834_v41 = vld [vmem:[%s22131_s5 + $0x32c] sm:$0xff]  }
 0xb50   : > { %17333 = vmatpush3.bf16.msra.mxu0 %v12019_v35  ;;  %17302 = vmatprep.mubr.msk.bf16.mxu0 %vm9956_vm13, %v17798_v60  ;;  %v17823_v35 = vld [vmem:[%s22131_s5 + $0x2cc] ss:$0 sps:$4 sm:$0xff]  }
 0xb51   : > { %17368 = vmatprep.subr.bf16.mxu0 %v12403_v21  ;;  %v20800_v38 = vpop.f32.mrf.mxu0  ;;  %v17836_v60 = vld [vmem:[%s22131_s5 + $0x288] sm:$0xff]  }
 0xb53   : > { %17249 = vmatmul.mubr.msk.bf16.gmra.mxu1 %vm9956_vm13, %v17797_v33  ;;  %v20810_v8 = vpop.f32.mrf.mxu0  ;;  %v17835_v33 = vld [vmem:[%s22131_s5 + $0x334] sm:$0xff]  }
 0xb54   : > { %17252 = vmatprep.mubr.msk.bf16.mxu1 %vm9956_vm13, %v17800_v3  ;;  %v17837_v3 = vld [vmem:[%s22131_s5 + $0x290] ss:$0 sps:$4 sm:$0xff]  }
 0xb55   : > { %v17169_v29 = vpop.f32.mrf.mxu0 }
 0xb56   : > { %v17842_v29 = vld [vmem:[%s22131_s5 + $0x384] sm:$0xff]  }
 0xb57   : > { %17303 = vmatmul.mubr.msk.bf16.gmra.mxu0 %vm9956_vm13, %v17799_v39  ;;  %v17840_v39 = vld [vmem:[%s22131_s5 + $0x2d0] sm:$0xff]  }
 0xb58   : > { %17306 = vmatprep.mubr.msk.bf16.mxu0 %vm9956_vm13, %v17802_v57  ;;  %v17839_v57 = vld [vmem:[%s22131_s5 + $0x344] ss:$0 sps:$4 sm:$0xff]  }
 0xb5b   : > { %17253 = vmatmul.mubr.msk.bf16.gmra.mxu1 %vm9956_vm13, %v17801_v61  ;;  %v20973_v61 = vpop.permute.xlu1 %13373 }
 0xb5c   : > { %17256 = vmatprep.mubr.msk.bf16.mxu1 %vm9956_vm13, %v17804_v0  ;;  %v17841_v0 = vld [vmem:[%s22131_s5 + $0x2d8] sm:$0xff]  }
 0xb5f   : > { %17307 = vmatmul.mubr.msk.bf16.gmra.mxu0 %vm9956_vm13, %v17803_v42  ;;  %v20979_v42 = vpop.permute.xlu0 %13371 }
 0xb60   : > { %17310 = vmatprep.mubr.msk.bf16.mxu0 %vm9956_vm13, %v17806_v1  ;;  %v17844_v1 = vld [vmem:[%s22131_s5 + $0x2e0] sm:$0xff]  }
 0xb63   : > { %17257 = vmatmul.mubr.msk.bf16.gmra.mxu1 %vm9956_vm13, %v17805_v9 }
 0xb64   : > { %17280 = vmatprep.mubr.msk.bf16.mxu1 %vm9956_vm13, %v17808_v31  ;;  %v17843_v31 = vld [vmem:[%s22131_s5 + $0x38c] sm:$0xff]  }
 0xb67   : > { %17311 = vmatmul.mubr.msk.bf16.gmra.mxu0 %vm9956_vm13, %v17807_v46  ;;  %v20991_v46 = vpop.f32.mrf.mxu0 }
 0xb68   : > { %17334 = vmatprep.mubr.msk.bf16.mxu0 %vm9956_vm13, %v17810_v5  ;;  %v20994_v5 = vsel %vm22259_vm11, %v12982_v45, %v12984_v62 }
 0xb6b   : > { %17281 = vmatmul.mubr.msk.bf16.vlgmr.msra.gmra.mxu1 %vm9956_vm13, %v17809_v44  ;;  %v17846_v44 = vld [vmem:[%s22131_s5 + $0x394] sm:$0xff]  }
 0xb6c   : > { %17315 = vmatpush3.bf16.msra.mxu1 %v11827_v6  ;;  %17284 = vmatprep.mubr.msk.bf16.mxu1 %vm9956_vm13, %v17812_v20  ;;  %v17833_v6 = vld [vmem:[%s22131_s5 + $0x280] sm:$0xff]   ;;  %v13569_v20 = vpop.permute.xlu1 %13568 }
 0xb6d   : > { %17350 = vmatprep.subr.bf16.mxu1 %v12211_v52 }
 0xb6f   : > { %17335 = vmatmul.mubr.msk.bf16.vlgmr.msra.gmra.mxu0 %vm9956_vm13, %v17811_v14 }
 0xb70   : > { %17369 = vmatpush3.bf16.msra.mxu0 %v12403_v21  ;;  %17338 = vmatprep.mubr.msk.bf16.mxu0 %vm9956_vm13, %v17814_v19  ;;  %v17838_v21 = vld [vmem:[%s22131_s5 + $0x33c] sm:$0xff]  }
 0xb71   : > { %17404 = vmatprep.subr.bf16.mxu0 %v12787_v27 }
 0xb73   : > { %17285 = vmatmul.mubr.msk.bf16.gmra.mxu1 %vm9956_vm13, %v17813_v25  ;;  %v17845_v25 = vld [vmem:[%s22131_s5 + $0x2e8] sm:$0xff]  }
 0xb74   : > { %17288 = vmatprep.mubr.msk.bf16.mxu1 %vm9956_vm13, %v17816_v28 }
 0xb77   : > { %17339 = vmatmul.mubr.msk.bf16.gmra.mxu0 %vm9956_vm13, %v17815_v32  ;;  %v17848_v32 = vld [vmem:[%s22131_s5 + $0x2f0] sm:$0xff]  }
 0xb78   : > { %17342 = vmatprep.mubr.msk.bf16.mxu0 %vm9956_vm13, %v17818_v12 }
 0xb7b   : > { %17289 = vmatmul.mubr.msk.bf16.gmra.mxu1 %vm9956_vm13, %v17817_v36 }
 0xb7c   : > { %17292 = vmatprep.mubr.msk.bf16.mxu1 %vm9956_vm13, %v17820_v50 }
 0xb7f   : > { %17343 = vmatmul.mubr.msk.bf16.gmra.mxu0 %vm9956_vm13, %v17819_v47  ;;  %v17847_v47 = vld [vmem:[%s22131_s5 + $0x39c] sm:$0xff]  }
 0xb80   : > { %17346 = vmatprep.mubr.msk.bf16.mxu0 %vm9956_vm13, %v17822_v51 }
 0xb83   : > { %17293 = vmatmul.mubr.msk.bf16.gmra.mxu1 %vm9956_vm13, %v17821_v23  ;;  %v17850_v23 = vld [vmem:[%s22131_s5 + $0x3a4] sm:$0xff]  }
 0xb84   : > { %17316 = vmatprep.mubr.msk.bf16.mxu1 %vm9956_vm13, %v17824_v48 }
 0xb87   : > { %17347 = vmatmul.mubr.msk.bf16.gmra.mxu0 %vm9956_vm13, %v17823_v35 }
 0xb88   : > { %17370 = vmatprep.mubr.msk.bf16.mxu0 %vm9956_vm13, %v17826_v53  ;;  %v17849_v53 = vld [vmem:[%s22131_s5 + $0x2f8] sm:$0xff]  }
 0xb8b   : > { %17317 = vmatmul.mubr.msk.bf16.vlgmr.msra.gmra.mxu1 %vm9956_vm13, %v17825_v22  ;;  %v17852_v22 = vld [vmem:[%s22131_s5 + $0x300] sm:$0xff]  }
 0xb8c   : > { %17351 = vmatpush3.bf16.msra.mxu1 %v12211_v52  ;;  %17320 = vmatprep.mubr.msk.bf16.mxu1 %vm9956_vm13, %v17828_v63  ;;  %v13567_v52 = vpop.permute.xlu0 %13566 }
 0xb8d   : > { %17386 = vmatprep.subr.bf16.mxu1 %v12595_v43  ;;  %v21012_v28 = vsel %vm4601_vm0, %v13567_v52, %v13569_v20  ;;  %v17860_v20 = vld [vmem:[%s22131_s5 + $0x358] sm:$0xff]   ;;  %vm22260_vm0 = vcmask 236544  }
 0xb8f   : > { %17371 = vmatmul.mubr.msk.bf16.vlgmr.msra.gmra.mxu0 %vm9956_vm13, %v17827_v2 }
 0xb90   : > { %17405 = vmatpush3.bf16.msra.mxu0 %v12787_v27  ;;  %17374 = vmatprep.mubr.msk.bf16.mxu0 %vm9956_vm13, %v17830_v4  ;;  %v17851_v4 = vld [vmem:[%s22131_s5 + $0x3ac] sm:$0xff]  }
 0xb91   : > { %17440 = vmatprep.subr.bf16.mxu0 %v13180_v30 }
 0xb93   : > { %17321 = vmatmul.mubr.msk.bf16.gmra.mxu1 %vm9956_vm13, %v17829_v18 }
 0xb94   : > { %17324 = vmatprep.mubr.msk.bf16.mxu1 %vm9956_vm13, %v17832_v56 }
 0xb97   : > { %17375 = vmatmul.mubr.msk.bf16.gmra.mxu0 %vm9956_vm13, %v17831_v17  ;;  %v17853_v17 = vld [vmem:[%s22131_s5 + $0x308] ss:$0 sps:$4 sm:$0xff]  }
 0xb98   : > { %17378 = vmatprep.mubr.msk.bf16.mxu0 %vm9956_vm13, %v17834_v41 }
 0xb9b   : > { %17325 = vmatmul.mubr.msk.bf16.gmra.mxu1 %vm9956_vm13, %v17833_v6  ;;  %v17856_v6 = vld [vmem:[%s22131_s5 + $0x348] sm:$0xff]  }
 0xb9c   : > { %17328 = vmatprep.mubr.msk.bf16.mxu1 %vm9956_vm13, %v17836_v60 }
 0xb9f   : > { %17379 = vmatmul.mubr.msk.bf16.gmra.mxu0 %vm9956_vm13, %v17835_v33 }
 0xba0   : > { %17382 = vmatprep.mubr.msk.bf16.mxu0 %vm9956_vm13, %v17838_v21 }
 0xba3   : > { %17329 = vmatmul.mubr.msk.bf16.gmra.mxu1 %vm9956_vm13, %v17837_v3  ;;  %v17855_v3 = vld [vmem:[%s22131_s5 + $0x3bc] ss:$0 sps:$4 sm:$0xff]  }
 0xba4   : > { %17352 = vmatprep.mubr.msk.bf16.mxu1 %vm9956_vm13, %v17840_v39 }
 0xba7   : > { %17383 = vmatmul.mubr.msk.bf16.gmra.mxu0 %vm9956_vm13, %v17839_v57  ;;  %v17858_v57 = vld [vmem:[%s22131_s5 + $0x3fc] sm:$0xff]  }
 0xba8   : > { %17406 = vmatprep.mubr.msk.bf16.mxu0 %vm9956_vm13, %v17842_v29 }
 0xbab   : > { %v20985_v9 = vpop.f32.mrf.mxu1  ;;  %17353 = vmatmul.mubr.msk.bf16.vlgmr.msra.gmra.mxu1 %vm9956_vm13, %v17841_v0 }
 0xbac   : > { %17387 = vmatpush3.bf16.msra.mxu1 %v12595_v43  ;;  %17356 = vmatprep.mubr.msk.bf16.mxu1 %vm9956_vm13, %v17844_v1 }
 0xbad   : > { %17422 = vmatprep.subr.bf16.mxu1 %v20994_v5  ;;  %v21001_v14 = vpop.f32.mrf.mxu1 }
 0xbaf   : > { %v21003_v19 = vpop.f32.mrf.mxu1  ;;  %17407 = vmatmul.mubr.msk.bf16.vlgmr.msra.gmra.mxu0 %vm9956_vm13, %v17843_v31  ;;  %v21009_v27 = vpop.f32.mrf.mxu0  ;;  %v17857_v31 = vld [vmem:[%s22131_s5 + $0x350] sm:$0xff]  }
 0xbb0   : > { %17441 = vmatpush3.bf16.msra.mxu0 %v13180_v30  ;;  %17410 = vmatprep.mubr.msk.bf16.mxu0 %vm9956_vm13, %v17846_v44 }
 0xbb1   : > { %17476 = vmatprep.subr.bf16.mxu0 %v21012_v28  ;;  %v21019_v12 = vpop.f32.mrf.mxu1  ;;  %v21021_v36 = vpop.f32.mrf.mxu0 }
 0xbb3   : > { %v21023_v50 = vpop.f32.mrf.mxu1  ;;  %17357 = vmatmul.mubr.msk.bf16.gmra.mxu1 %vm9956_vm13, %v17845_v25  ;;  %v21029_v51 = vpop.f32.mrf.mxu0 }
 0xbb4   : > { %17360 = vmatprep.mubr.msk.bf16.mxu1 %vm9956_vm13, %v17848_v32  ;;  %v10183_v32 = vadd.f32 %v20728_v55, %v20985_v9  ;;  %v21130_v55 = vsel %vm22260_vm0, %v20979_v42, %v20973_v61  ;;  %v17862_v9 = vld [vmem:[%s22131_s5 + $0x40c] sm:$0xff]   ;;  %v17861_v42 = vld [vmem:[%s22131_s5 + $0x360] sm:$0xff]  }
 0xbb5   : > { %v21035_v48 = vpop.f32.mrf.mxu1  ;;  %v21037_v43 = vpop.f32.mrf.mxu0 }
 0xbb7   : > { %v21039_v35 = vpop.f32.mrf.mxu1  ;;  %17411 = vmatmul.mubr.msk.bf16.gmra.mxu0 %vm9956_vm13, %v17847_v47  ;;  %v21045_v62 = vpop.f32.mrf.mxu0 }
 0xbb8   : > { %17414 = vmatprep.mubr.msk.bf16.mxu0 %vm9956_vm13, %v17850_v23 }
 0xbb9   : > { %v21051_v63 = vpop.f32.mrf.mxu1  ;;  %v21053_v45 = vpop.f32.mrf.mxu0 }
 0xbbb   : > { %v21055_v2 = vpop.f32.mrf.mxu1  ;;  %17361 = vmatmul.mubr.msk.bf16.gmra.mxu1 %vm9956_vm13, %v17849_v53  ;;  %v21061_v11 = vpop.f32.mrf.mxu0  ;;  %v17859_v53 = vld [vmem:[%s22131_s5 + $0x404] sm:$0xff]  }
 0xbbc   : > { %17364 = vmatprep.mubr.msk.bf16.mxu1 %vm9956_vm13, %v17852_v22 }
 0xbbd   : > { %v21067_v18 = vpop.f32.mrf.mxu1  ;;  %v21069_v30 = vpop.f32.mrf.mxu0 }
 0xbbf   : > { %v21071_v56 = vpop.f32.mrf.mxu1  ;;  %17415 = vmatmul.mubr.msk.bf16.gmra.mxu0 %vm9956_vm13, %v17851_v4  ;;  %v21077_v41 = vpop.f32.mrf.mxu0  ;;  %v10175_v4 = vadd.f32 %v20738_v49, %v21001_v14  ;;  %v10186_v49 = vadd.f32 %v20740_v13, %v21003_v19  ;;  %v17864_v13 = vld [vmem:[%s22131_s5 + $0x368] sm:$0xff]  }
 0xbc0   : > { %17418 = vmatprep.mubr.msk.bf16.mxu0 %vm9956_vm13, %v17854_v54 }
 0xbc1   : > { %v21083_v60 = vpop.f32.mrf.mxu1  ;;  %v21085_v33 = vpop.f32.mrf.mxu0 }
 0xbc3   : > { %v21087_v21 = vpop.f32.mrf.mxu1  ;;  %17365 = vmatmul.mubr.msk.bf16.gmra.mxu1 %vm9956_vm13, %v17853_v17  ;;  %v21093_v39 = vpop.f32.mrf.mxu0 }
 0xbc4   : > { %17388 = vmatprep.mubr.msk.bf16.mxu1 %vm9956_vm13, %v17856_v6 }
 0xbc5   : > { %v21099_v29 = vpop.f32.mrf.mxu1  ;;  %v21101_v0 = vpop.f32.mrf.mxu0 }
 0xbc7   : > { %v17151_v1 = vpop.f32.mrf.mxu1  ;;  %17419 = vmatmul.mubr.msk.bf16.gmra.mxu0 %vm9956_vm13, %v17855_v3  ;;  %v21107_v44 = vpop.f32.mrf.mxu0 }
 0xbc8   : > { %17442 = vmatprep.mubr.msk.bf16.mxu0 %vm9956_vm13, %v17858_v57  ;;  %v21150_v3 = vpop.permute.xlu0 %13951  ;;  %v10178_v57 = vadd.f32 %v20750_v37, %v21019_v12  ;;  %v10199_v37 = vadd.f32 %v20752_v26, %v21023_v50  ;;  %v17866_v26 = vld [vmem:[%s22131_s5 + $0x41c] sm:$0xff]  }
 0xbc9   : > { %v10066_v52 = vpop.f32.mrf.mxu1  ;;  %v21113_v25 = vpop.f32.mrf.mxu0 }
 0xbca   : > { %v21118_v47 = vadd.f32 %v20991_v46, %v10066_v52 }
 0xbcb   : > { %v17174_v23 = vpop.f32.mrf.mxu1  ;;  %17389 = vmatmul.mubr.msk.bf16.vlgmr.msra.gmra.mxu1 %vm9956_vm13, %v17857_v31  ;;  %v17205_v22 = vpop.f32.mrf.mxu0 }
 0xbcc   : > { %v10415_v54 = vadd.f32 %v17174_v23, %v10183_v32  ;;  %17423 = vmatpush3.bf16.msra.mxu1 %v20994_v5  ;;  %17392 = vmatprep.mubr.msk.bf16.mxu1 %vm9956_vm13, %v17860_v20  ;;  %v10191_v32 = vadd.f32 %v20762_v10, %v21035_v48  ;;  %v10202_v22 = vadd.f32 %v20764_v59, %v21039_v35  ;;  %v17865_v48 = vld [vmem:[%s22131_s5 + $0x370] sm:$0xff]   ;;  %v17868_v59 = vld [vmem:[%s22131_s5 + $0x378] sm:$0xff]  }
 0xbcd   : > { %17458 = vmatprep.subr.bf16.mxu1 %v21130_v55  ;;  %v10351_v46 = vpop.f32.mrf.mxu1  ;;  %v21137_v17 = vpop.f32.mrf.mxu0 }
 0xbce   : > { %v10413_v5 = vadd.f32 %v10351_v46, %v10175_v4  ;;  %v21142_v14 = vadd.f32 %v21009_v27, %v10415_v54 }
 0xbcf   : > { %v17175_v61 = vpop.f32.mrf.mxu1  ;;  %17443 = vmatmul.mubr.msk.bf16.vlgmr.msra.gmra.mxu0 %vm9956_vm13, %v17859_v53  ;;  %v21148_v6 = vpop.f32.mrf.mxu0 }
 0xbd0   : > { %v10416_v1 = vadd.f32 %v17175_v61, %v10186_v49  ;;  %17477 = vmatpush3.bf16.msra.mxu0 %v21012_v28  ;;  %17446 = vmatprep.mubr.msk.bf16.mxu0 %vm9956_vm13, %v17862_v9  ;;  %v21160_v19 = vadd.f32 %v21021_v36, %v10413_v5  ;;  %v17863_v36 = vld [vmem:[%s22131_s5 + $0x414] sm:$0xff]   ;;  %v10215_v5 = vadd.f32 %v20776_v16, %v21055_v2  ;;  %v17870_v16 = vld [vmem:[%s22131_s5 + $0x42c] sm:$0xff]  }
 0xbd1   : > { %17512 = vmatprep.subr.bf16.mxu0 %v21150_v3  ;;  %v10354_v27 = vpop.f32.mrf.mxu1  ;;  %v21163_v31 = vpop.f32.mrf.mxu0 }
 0xbd2   : > { %v10414_v12 = vadd.f32 %v10354_v27, %v10178_v57  ;;  %v21168_v28 = vadd.f32 %v21029_v51, %v10416_v1  ;;  %v10218_v27 = vadd.f32 %v20788_v15, %v21071_v56  ;;  %v17872_v15 = vld [vmem:[%s22131_s5 + $0x3c0] sm:$0xff]  }
 0xbd3   : > { %v17178_v20 = vpop.f32.mrf.mxu1  ;;  %17393 = vmatmul.mubr.msk.bf16.gmra.mxu1 %vm9956_vm13, %v17861_v42  ;;  %v21174_v52 = vpop.f32.mrf.mxu0 }
 0xbd4   : > { %v10419_v23 = vadd.f32 %v17178_v20, %v10199_v37  ;;  %17396 = vmatprep.mubr.msk.bf16.mxu1 %vm9956_vm13, %v17864_v13  ;;  %v21183_v50 = vadd.f32 %v21037_v43, %v10414_v12  ;;  %v10194_v43 = vadd.f32 %v20774_v34, %v21051_v63  ;;  %v17867_v63 = vld [vmem:[%s22131_s5 + $0x424] sm:$0xff]  }
 0xbd5   : > { %v10367_v51 = vpop.f32.mrf.mxu1  ;;  %v21185_v53 = vpop.f32.mrf.mxu0 }
 0xbd6   : > { %v10417_v4 = vadd.f32 %v10367_v51, %v10191_v32  ;;  %v21190_v54 = vadd.f32 %v21045_v62, %v10419_v23  ;;  %v10231_v23 = vadd.f32 %v20800_v38, %v21087_v21  ;;  %v17874_v38 = vld [vmem:[%s22131_s5 + $0x474] sm:$0xff]  }
 0xbd7   : > { %v17179_v10 = vpop.f32.mrf.mxu1  ;;  %17447 = vmatmul.mubr.msk.bf16.gmra.mxu0 %vm9956_vm13, %v17863_v36  ;;  %v21196_v9 = vpop.f32.mrf.mxu0 }
 0xbd8   : > { %v10420_v46 = vadd.f32 %v17179_v10, %v10202_v22  ;;  %17450 = vmatprep.mubr.msk.bf16.mxu0 %vm9956_vm13, %v17866_v26  ;;  %v21205_v35 = vadd.f32 %v21053_v45, %v10417_v4  ;;  %v10207_v45 = vadd.f32 %v20786_v7, %v21067_v18  ;;  %v17869_v18 = vld [vmem:[%s22131_s5 + $0x380] ss:$0 sps:$4 sm:$0xff]  }
 0xbd9   : > { %v10370_v62 = vpop.f32.mrf.mxu1  ;;  %v21207_v49 = vpop.f32.mrf.mxu0 }
 0xbda   : > { %v10418_v61 = vadd.f32 %v10370_v62, %v10194_v43  ;;  %v21212_v42 = vadd.f32 %v21061_v11, %v10420_v46 }
 0xbdb   : > { %v17182_v34 = vpop.f32.mrf.mxu1  ;;  %17397 = vmatmul.mubr.msk.bf16.gmra.mxu1 %vm9956_vm13, %v17865_v48  ;;  %v21218_v57 = vpop.f32.mrf.mxu0 }
 0xbdc   : > { %v10423_v1 = vadd.f32 %v17182_v34, %v10215_v5  ;;  %17400 = vmatprep.mubr.msk.bf16.mxu1 %vm9956_vm13, %v17868_v59  ;;  %v21227_v2 = vadd.f32 %v21069_v30, %v10418_v61  ;;  %v10210_v30 = vadd.f32 %v20798_v24, %v21083_v60  ;;  %v17871_v60 = vld [vmem:[%s22131_s5 + $0x434] ss:$0 sps:$4 sm:$0xff]   ;;  %v17875_v34 = vld [vmem:[%s22131_s5 + $0x47c] sm:$0xff]  }
 0xbdd   : > { %v10383_v11 = vpop.f32.mrf.mxu1  ;;  %v21229_v13 = vpop.f32.mrf.mxu0 }
 0xbde   : > { %v10421_v37 = vadd.f32 %v10383_v11, %v10207_v45  ;;  %v21234_v12 = vadd.f32 %v21077_v41, %v10423_v1 }
 0xbdf   : > { %v17183_v7 = vpop.f32.mrf.mxu1  ;;  %17451 = vmatmul.mubr.msk.bf16.gmra.mxu0 %vm9956_vm13, %v17867_v63  ;;  %v21240_v20 = vpop.f32.mrf.mxu0 }
 0xbe0   : > { %v10424_v36 = vadd.f32 %v17183_v7, %v10218_v27  ;;  %17454 = vmatprep.mubr.msk.bf16.mxu0 %vm9956_vm13, %v17870_v16  ;;  %v21249_v56 = vadd.f32 %v21085_v33, %v10421_v37  ;;  %v10223_v33 = vadd.f32 %v20810_v8, %v21099_v29  ;;  %v17873_v8 = vld [vmem:[%s22131_s5 + $0x3c8] sm:$0xff]   ;;  %v17877_v27 = vld [vmem:[%s22131_s5 + $0x3d8] sm:$0xff]  }
 0xbe1   : > { %v10386_v41 = vpop.f32.mrf.mxu1  ;;  %v21251_v32 = vpop.f32.mrf.mxu0 }
 0xbe2   : > { %v10422_v26 = vadd.f32 %v10386_v41, %v10210_v30  ;;  %v21256_v51 = vadd.f32 %v21093_v39, %v10424_v36 }
 0xbe3   : > { %v17186_v24 = vpop.f32.mrf.mxu1  ;;  %17401 = vmatmul.mubr.msk.bf16.gmra.mxu1 %vm9956_vm13, %v17869_v18  ;;  %v21262_v22 = vpop.f32.mrf.mxu0 }
 0xbe4   : > { %v10427_v4 = vadd.f32 %v17186_v24, %v10231_v23  ;;  %17424 = vmatprep.mubr.msk.bf16.mxu1 %vm9956_vm13, %v17872_v15  ;;  %v21271_v21 = vadd.f32 %v21101_v0, %v10422_v26  ;;  %v17876_v0 = vld [vmem:[%s22131_s5 + $0x3d0] sm:$0xff]  }
 0xbe5   : > { %v10399_v39 = vpop.f32.mrf.mxu1  ;;  %v21273_v10 = vpop.f32.mrf.mxu0  ;;  %v17879_v15 = vld [vmem:[%s22131_s5 + $0x48c] sm:$0xff]  }
 0xbe6   : > { %v10425_v48 = vadd.f32 %v10399_v39, %v10223_v33  ;;  %v21276_v43 = vadd.f32 %v21107_v44, %v10427_v4 }
 0xbe7   : > { %v17187_v46 = vpop.f32.mrf.mxu1  ;;  %17455 = vmatmul.mubr.msk.bf16.gmra.mxu0 %vm9956_vm13, %v17871_v60  ;;  %v21282_v29 = vpop.f32.mrf.mxu0 }
 0xbe8   : > { %17478 = vmatprep.mubr.msk.bf16.mxu0 %vm9956_vm13, %v17874_v38  ;;  %v21289_v59 = vadd.f32 %v21113_v25, %v10425_v48  ;;  %v17878_v25 = vld [vmem:[%s22131_s5 + $0x484] sm:$0xff]  }
 0xbe9   : > { %v10402_v44 = vpop.f32.mrf.mxu1  ;;  %v21291_v62 = vpop.f32.mrf.mxu0 }
 0xbea   : > { %v10426_v5 = vadd.f32 %v10402_v44, %v21118_v47 }
 0xbeb   : > { %v17210_v61 = vpop.f32.mrf.mxu1  ;;  %17425 = vmatmul.mubr.msk.bf16.vlgmr.msra.gmra.mxu1 %vm9956_vm13, %v17873_v8  ;;  %v17241_v63 = vpop.f32.mrf.mxu0 }
 0xbec   : > { %v10799_v45 = vadd.f32 %v17210_v61, %v21142_v14  ;;  %17459 = vmatpush3.bf16.msra.mxu1 %v21130_v55  ;;  %17428 = vmatprep.mubr.msk.bf16.mxu1 %vm9956_vm13, %v17876_v0  ;;  %v21305_v47 = vadd.f32 %v21137_v17, %v10426_v5  ;;  %v21320_v17 = vpop.permute.xlu0 %14335 }
 0xbed   : > { %17494 = vmatprep.subr.bf16.mxu1 %v20456_v58  ;;  %v10735_v1 = vpop.f32.mrf.mxu1  ;;  %v21308_v16 = vpop.f32.mrf.mxu0 }
 0xbee   : > { %v10797_v11 = vadd.f32 %v10735_v1, %v21160_v19  ;;  %v21312_v14 = vadd.f32 %v21148_v6, %v10799_v45  ;;  %v17880_v6 = vld [vmem:[%s22131_s5 + $0x3e0] sm:$0xff]  }
 0xbef   : > { %v17211_v55 = vpop.f32.mrf.mxu1  ;;  %17479 = vmatmul.mubr.msk.bf16.vlgmr.msra.gmra.mxu0 %vm9956_vm13, %v17875_v34  ;;  %v21318_v37 = vpop.f32.mrf.mxu0 }
 0xbf0   : > { %v10800_v7 = vadd.f32 %v17211_v55, %v21168_v28  ;;  %17513 = vmatpush3.bf16.msra.mxu0 %v21150_v3  ;;  %17482 = vmatprep.mubr.msk.bf16.mxu0 %vm9956_vm13, %v17878_v25  ;;  %v21329_v19 = vadd.f32 %v21163_v31, %v10797_v11 }
 0xbf1   : > { %17548 = vmatprep.subr.bf16.mxu0 %v21320_v17  ;;  %v10738_v18 = vpop.f32.mrf.mxu1  ;;  %v21332_v30 = vpop.f32.mrf.mxu0 }
 0xbf2   : > { %v10798_v36 = vadd.f32 %v10738_v18, %v21183_v50  ;;  %v21336_v28 = vadd.f32 %v21174_v52, %v10800_v7  ;;  %v17882_v50 = vld [vmem:[%s22131_s5 + $0x494] sm:$0xff]  }
 0xbf3   : > { %v17214_v3 = vpop.f32.mrf.mxu1  ;;  %17429 = vmatmul.mubr.msk.bf16.gmra.mxu1 %vm9956_vm13, %v17877_v27  ;;  %v21342_v41 = vpop.f32.mrf.mxu0 }
 0xbf4   : > { %v10803_v31 = vadd.f32 %v17214_v3, %v21190_v54  ;;  %17432 = vmatprep.mubr.msk.bf16.mxu1 %vm9956_vm13, %v17880_v6  ;;  %v21350_v52 = vadd.f32 %v21185_v53, %v10798_v36  ;;  %v17881_v54 = vld [vmem:[%s22131_s5 + $0x3e8] sm:$0xff]  }
 0xbf5   : > { %v10751_v23 = vpop.f32.mrf.mxu1  ;;  %v21352_v26 = vpop.f32.mrf.mxu0 }
 0xbf6   : > { %v10801_v24 = vadd.f32 %v10751_v23, %v21205_v35  ;;  %v21356_v60 = vadd.f32 %v21196_v9, %v10803_v31  ;;  %v17884_v35 = vld [vmem:[%s22131_s5 + $0x3f0] sm:$0xff]  }
 0xbf7   : > { %v17215_v33 = vpop.f32.mrf.mxu1  ;;  %17483 = vmatmul.mubr.msk.bf16.gmra.mxu0 %vm9956_vm13, %v17879_v15  ;;  %v21362_v4 = vpop.f32.mrf.mxu0 }
 0xbf8   : > { %v10804_v53 = vadd.f32 %v17215_v33, %v21212_v42  ;;  %17486 = vmatprep.mubr.msk.bf16.mxu0 %vm9956_vm13, %v17882_v50  ;;  %v21370_v9 = vadd.f32 %v21207_v49, %v10801_v24  ;;  %v17883_v42 = vld [vmem:[%s22131_s5 + $0x49c] sm:$0xff]   ;;  %v17891_v33 = vld [vmem:[%s22131_s5 + $0x4f4] sm:$0xff]  }
 0xbf9   : > { %v10754_v38 = vpop.f32.mrf.mxu1  ;;  %v21372_v39 = vpop.f32.mrf.mxu0 }
 0xbfa   : > { %v10802_v48 = vadd.f32 %v10754_v38, %v21227_v2  ;;  %v21376_v46 = vadd.f32 %v21218_v57, %v10804_v53  ;;  %v17886_v2 = vld [vmem:[%s22131_s5 + $0x4a4] sm:$0xff]   ;;  %v21458_v53 = vpop.permute.xlu1 %14143 }
 0xbfb   : > { %v17218_v8 = vpop.f32.mrf.mxu1  ;;  %17433 = vmatmul.mubr.msk.bf16.gmra.mxu1 %vm9956_vm13, %v17881_v54  ;;  %v21382_v0 = vpop.f32.mrf.mxu0 }
 0xbfc   : > { %v10807_v49 = vadd.f32 %v17218_v8, %v21234_v12  ;;  %17436 = vmatprep.mubr.msk.bf16.mxu1 %vm9956_vm13, %v17884_v35  ;;  %v21390_v57 = vadd.f32 %v21229_v13, %v10802_v48  ;;  %v17885_v12 = vld [vmem:[%s22131_s5 + $0x3f8] ss:$0 sps:$4 sm:$0xff]  }
 0xbfd   : > { %v10767_v44 = vpop.f32.mrf.mxu1  ;;  %v21392_v5 = vpop.f32.mrf.mxu0 }
 0xbfe   : > { %v10805_v61 = vadd.f32 %v10767_v44, %v21249_v56  ;;  %v21396_v34 = vadd.f32 %v21240_v20, %v10807_v49  ;;  %v17888_v56 = vld [vmem:[%s22131_s5 + $0x438] sm:$0xff]  }
 0xbff   : > { %v17219_v63 = vpop.f32.mrf.mxu1  ;;  %17487 = vmatmul.mubr.msk.bf16.gmra.mxu0 %vm9956_vm13, %v17883_v42  ;;  %v21402_v45 = vpop.f32.mrf.mxu0 }
 0xc00   : > { %v10808_v13 = vadd.f32 %v17219_v63, %v21256_v51  ;;  %17490 = vmatprep.mubr.msk.bf16.mxu0 %vm9956_vm13, %v17886_v2  ;;  %v21410_v20 = vadd.f32 %v21251_v32, %v10805_v61  ;;  %v17887_v51 = vld [vmem:[%s22131_s5 + $0x4ac] ss:$0 sps:$4 sm:$0xff]  }
 0xc01   : > { %v10770_v25 = vpop.f32.mrf.mxu1  ;;  %v21412_v1 = vpop.f32.mrf.mxu0 }
 0xc02   : > { %v10806_v11 = vadd.f32 %v10770_v25, %v21271_v21  ;;  %v21416_v55 = vadd.f32 %v21262_v22, %v10808_v13  ;;  %v17890_v21 = vld [vmem:[%s22131_s5 + $0x4ec] sm:$0xff]  }
 0xc03   : > { %v17222_v27 = vpop.f32.mrf.mxu1  ;;  %17437 = vmatmul.mubr.msk.bf16.gmra.mxu1 %vm9956_vm13, %v17885_v12  ;;  %v21422_v7 = vpop.f32.mrf.mxu0 }
 0xc04   : > { %v10811_v32 = vadd.f32 %v17222_v27, %v21276_v43  ;;  %17460 = vmatprep.mubr.msk.bf16.mxu1 %vm9956_vm13, %v17888_v56  ;;  %v21430_v22 = vadd.f32 %v21273_v10, %v10806_v11  ;;  %v17889_v43 = vld [vmem:[%s22131_s5 + $0x440] sm:$0xff]   ;;  %v17892_v10 = vld [vmem:[%s22131_s5 + $0x448] sm:$0xff]  }
 0xc05   : > { %v10783_v6 = vpop.f32.mrf.mxu1  ;;  %v21432_v18 = vpop.f32.mrf.mxu0 }
 0xc06   : > { %v10809_v36 = vadd.f32 %v10783_v6, %v21289_v59  ;;  %v21436_v3 = vadd.f32 %v21282_v29, %v10811_v32 }
 0xc07   : > { %v17223_v15 = vpop.f32.mrf.mxu1  ;;  %17491 = vmatmul.mubr.msk.bf16.gmra.mxu0 %vm9956_vm13, %v17887_v51  ;;  %v21442_v31 = vpop.f32.mrf.mxu0 }
 0xc08   : > { %17514 = vmatprep.mubr.msk.bf16.mxu0 %vm9956_vm13, %v17890_v21  ;;  %v21449_v59 = vadd.f32 %v21291_v62, %v10809_v36 }
 0xc09   : > { %v10786_v29 = vpop.f32.mrf.mxu1  ;;  %v21451_v50 = vpop.f32.mrf.mxu0 }
 0xc0a   : > { %v10810_v23 = vadd.f32 %v10786_v29, %v21305_v47  ;;  %v17902_v47 = vld [vmem:[%s22131_s5 + $0x4fc] sm:$0xff]  }
 0xc0b   : > { %v17246_v24 = vpop.f32.mrf.mxu1  ;;  %17461 = vmatmul.mubr.msk.bf16.vlgmr.msra.gmra.mxu1 %vm9956_vm13, %v17889_v43  ;;  %v17277_v54 = vpop.f32.mrf.mxu0 }
 0xc0c   : > { %v11183_v35 = vadd.f32 %v17246_v24, %v21312_v14  ;;  %17495 = vmatpush3.bf16.msra.mxu1 %v20456_v58  ;;  %17464 = vmatprep.mubr.msk.bf16.mxu1 %vm9956_vm13, %v17892_v10  ;;  %v21464_v62 = vadd.f32 %v21308_v16, %v10810_v23  ;;  %v17893_v16 = vld [vmem:[%s22131_s5 + $0x450] sm:$0xff]  }
 0xc0d   : > { %17530 = vmatprep.subr.bf16.mxu1 %v21458_v53  ;;  %v11119_v38 = vpop.f32.mrf.mxu1  ;;  %v21470_v48 = vpop.f32.mrf.mxu0 }
 0xc0e   : > { %v11181_v8 = vadd.f32 %v11119_v38, %v21329_v19  ;;  %v21474_v14 = vadd.f32 %v21318_v37, %v11183_v35  ;;  %v17894_v19 = vld [vmem:[%s22131_s5 + $0x458] sm:$0xff]  }
 0xc0f   : > { %v17247_v58 = vpop.f32.mrf.mxu1  ;;  %17515 = vmatmul.mubr.msk.bf16.vlgmr.msra.gmra.mxu0 %vm9956_vm13, %v17891_v33  ;;  %v21480_v42 = vpop.f32.mrf.mxu0 }
 0xc10   : > { %v11184_v49 = vadd.f32 %v17247_v58, %v21336_v28  ;;  %17549 = vmatpush3.bf16.msra.mxu0 %v21320_v17  ;;  %v21488_v37 = vadd.f32 %v21332_v30, %v11181_v8  ;;  %17518 = vmatprep.mubr.msk.bf16.mxu0 %vm9956_vm13, %v17902_v47  ;;  %v17903_v30 = vld [vmem:[%s22131_s5 + $0x504] sm:$0xff]  }
 0xc11   : > { %v11122_v2 = vpop.f32.mrf.mxu1  ;;  %v21491_v44 = vpop.f32.mrf.mxu0 }
 0xc12   : > { %v11182_v61 = vadd.f32 %v11122_v2, %v21350_v52  ;;  %v21495_v63 = vadd.f32 %v21342_v41, %v11184_v49  ;;  %v17906_v41 = vld [vmem:[%s22131_s5 + $0x50c] sm:$0xff]  }
 0xc13   : > { %v17250_v28 = vpop.f32.mrf.mxu1  ;;  %17465 = vmatmul.mubr.msk.bf16.gmra.mxu1 %vm9956_vm13, %v17893_v16  ;;  %v21498_v17 = vpop.f32.mrf.mxu0 }
 0xc14   : > { %v11187_v12 = vadd.f32 %v17250_v28, %v21356_v60  ;;  %17468 = vmatprep.mubr.msk.bf16.mxu1 %vm9956_vm13, %v17894_v19  ;;  %v21506_v13 = vadd.f32 %v21352_v26, %v11182_v61  ;;  %v17895_v60 = vld [vmem:[%s22131_s5 + $0x460] sm:$0xff]  }
 0xc15   : > { %v11135_v52 = vpop.f32.mrf.mxu1  ;;  %v21511_v56 = vpop.f32.mrf.mxu0 }
 0xc16   : > { %v11185_v25 = vadd.f32 %v11135_v52, %v21370_v9  ;;  %v21515_v11 = vadd.f32 %v21362_v4, %v11187_v12  ;;  %v17896_v9 = vld [vmem:[%s22131_s5 + $0x468] sm:$0xff]   ;;  %v17900_v12 = vld [vmem:[%s22131_s5 + $0x4c0] sm:$0xff]  }
 0xc17   : > { %v17251_v27 = vpop.f32.mrf.mxu1  ;;  %v21520_v51 = vpop.f32.mrf.mxu0  ;;  %17519 = vmatmul.mubr.msk.bf16.gmra.mxu0 %vm9956_vm13, %v17903_v30 }
 0xc18   : > { %v11188_v26 = vadd.f32 %v17251_v27, %v21376_v46  ;;  %v21525_v32 = vadd.f32 %v21372_v39, %v11185_v25  ;;  %17522 = vmatprep.mubr.msk.bf16.mxu0 %vm9956_vm13, %v17906_v41  ;;  %v17907_v39 = vld [vmem:[%s22131_s5 + $0x514] sm:$0xff]   ;;  %v21617_v27 = vpop.permute.xlu1 %14527 }
 0xc19   : > { %v11138_v4 = vpop.f32.mrf.mxu1  ;;  %v21531_v21 = vpop.f32.mrf.mxu0 }
 0xc1a   : > { %v11186_v6 = vadd.f32 %v11138_v4, %v21390_v57  ;;  %v21535_v36 = vadd.f32 %v21382_v0, %v11188_v26  ;;  %v17910_v0 = vld [vmem:[%s22131_s5 + $0x51c] sm:$0xff]  }
 0xc1b   : > { %v17254_v15 = vpop.f32.mrf.mxu1  ;;  %17469 = vmatmul.mubr.msk.bf16.gmra.mxu1 %vm9956_vm13, %v17895_v60  ;;  %v21538_v46 = vpop.f32.mrf.mxu0 }
 0xc1c   : > { %v11191_v43 = vadd.f32 %v17254_v15, %v21396_v34  ;;  %v21545_v10 = vadd.f32 %v21392_v5, %v11186_v6  ;;  %17472 = vmatprep.mubr.msk.bf16.mxu1 %vm9956_vm13, %v17896_v9  ;;  %v17897_v5 = vld [vmem:[%s22131_s5 + $0x470] ss:$0 sps:$4 sm:$0xff]  }
 0xc1d   : > { %v11151_v57 = vpop.f32.mrf.mxu1  ;;  %v21551_v29 = vpop.f32.mrf.mxu0 }
 0xc1e   : > { %v11189_v23 = vadd.f32 %v11151_v57, %v21410_v20  ;;  %v21555_v24 = vadd.f32 %v21402_v45, %v11191_v43  ;;  %v17898_v20 = vld [vmem:[%s22131_s5 + $0x4b0] sm:$0xff]  }
 0xc1f   : > { %v17255_v33 = vpop.f32.mrf.mxu1  ;;  %v21560_v34 = vpop.f32.mrf.mxu0  ;;  %17523 = vmatmul.mubr.msk.bf16.gmra.mxu0 %vm9956_vm13, %v17907_v39 }
 0xc20   : > { %v11192_v54 = vadd.f32 %v17255_v33, %v21416_v55  ;;  %v21565_v35 = vadd.f32 %v21412_v1, %v11189_v23  ;;  %17526 = vmatprep.mubr.msk.bf16.mxu0 %vm9956_vm13, %v17910_v0  ;;  %v17911_v1 = vld [vmem:[%s22131_s5 + $0x524] ss:$0 sps:$4 sm:$0xff]  }
 0xc21   : > { %v11154_v45 = vpop.f32.mrf.mxu1  ;;  %v21571_v47 = vpop.f32.mrf.mxu0 }
 0xc22   : > { %v11190_v38 = vadd.f32 %v11154_v45, %v21430_v22  ;;  %v21575_v8 = vadd.f32 %v21422_v7, %v11192_v54  ;;  %v17914_v7 = vld [vmem:[%s22131_s5 + $0x564] sm:$0xff]  }
 0xc23   : > { %v17258_v58 = vpop.f32.mrf.mxu1  ;;  %17473 = vmatmul.mubr.msk.bf16.gmra.mxu1 %vm9956_vm13, %v17897_v5  ;;  %v21578_v55 = vpop.f32.mrf.mxu0 }
 0xc24   : > { %v11195_v16 = vadd.f32 %v17258_v58, %v21436_v3  ;;  %v21585_v49 = vadd.f32 %v21432_v18, %v11190_v38  ;;  %17496 = vmatprep.mubr.msk.bf16.mxu1 %vm9956_vm13, %v17898_v20  ;;  %v17899_v18 = vld [vmem:[%s22131_s5 + $0x4b8] sm:$0xff]  }
 0xc25   : > { %v11167_v22 = vpop.f32.mrf.mxu1  ;;  %v21591_v19 = vpop.f32.mrf.mxu0 }
 0xc26   : > { %v11193_v2 = vadd.f32 %v11167_v22, %v21449_v59  ;;  %v21595_v61 = vadd.f32 %v21442_v31, %v11195_v16 }
 0xc27   : > { %v17259_v28 = vpop.f32.mrf.mxu1  ;;  %v21600_v3 = vpop.f32.mrf.mxu0  ;;  %17527 = vmatmul.mubr.msk.bf16.gmra.mxu0 %vm9956_vm13, %v17911_v1 }
 0xc28   : > { %v21604_v30 = vadd.f32 %v21451_v50, %v11193_v2  ;;  %17550 = vmatprep.mubr.msk.bf16.mxu0 %vm9956_vm13, %v17914_v7  ;;  %v17915_v50 = vld [vmem:[%s22131_s5 + $0x56c] sm:$0xff]  }
 0xc29   : > { %v11170_v31 = vpop.f32.mrf.mxu1  ;;  %v21610_v59 = vpop.f32.mrf.mxu0 }
 0xc2a   : > { %v11194_v41 = vadd.f32 %v11170_v31, %v21464_v62  ;;  %v17918_v62 = vld [vmem:[%s22131_s5 + $0x574] sm:$0xff]  }
 0xc2b   : > { %v17282_v52 = vpop.f32.mrf.mxu1  ;;  %17497 = vmatmul.mubr.msk.bf16.vlgmr.msra.gmra.mxu1 %vm9956_vm13, %v17899_v18  ;;  %v17313_v25 = vpop.f32.mrf.mxu0 }
 0xc2c   : > { %v21620_v60 = vadd.f32 %v21470_v48, %v11194_v41  ;;  %v11567_v26 = vadd.f32 %v17282_v52, %v21474_v14  ;;  %17531 = vmatpush3.bf16.msra.mxu1 %v21458_v53  ;;  %17500 = vmatprep.mubr.msk.bf16.mxu1 %vm9956_vm13, %v17900_v12  ;;  %v17901_v53 = vld [vmem:[%s22131_s5 + $0x4c8] sm:$0xff]  }
 0xc2d   : > { %17566 = vmatprep.subr.bf16.mxu1 %v21617_v27  ;;  %v11503_v9 = vpop.f32.mrf.mxu1  ;;  %v21629_v4 = vpop.f32.mrf.mxu0 }
 0xc2e   : > { %v11565_v6 = vadd.f32 %v11503_v9, %v21488_v37  ;;  %v21633_v48 = vadd.f32 %v21480_v42, %v11567_v26  ;;  %v17904_v37 = vld [vmem:[%s22131_s5 + $0x4d0] sm:$0xff]  }
 0xc2f   : > { %v17283_v15 = vpop.f32.mrf.mxu1  ;;  %v21638_v14 = vpop.f32.mrf.mxu0  ;;  %17551 = vmatmul.mubr.msk.bf16.vlgmr.msra.gmra.mxu0 %vm9956_vm13, %v17915_v50 }
 0xc30   : > { %v11568_v39 = vadd.f32 %v17283_v15, %v21495_v63  ;;  %v21643_v43 = vadd.f32 %v21491_v44, %v11565_v6  ;;  %17554 = vmatprep.mubr.msk.bf16.mxu0 %vm9956_vm13, %v17918_v62  ;;  %v17919_v44 = vld [vmem:[%s22131_s5 + $0x57c] sm:$0xff]  }
 0xc31   : > { %v11506_v42 = vpop.f32.mrf.mxu1  ;;  %v21649_v0 = vpop.f32.mrf.mxu0 }
 0xc32   : > { %v11566_v57 = vadd.f32 %v11506_v42, %v21506_v13  ;;  %v21653_v23 = vadd.f32 %v21498_v17, %v11568_v39  ;;  %v17922_v17 = vld [vmem:[%s22131_s5 + $0x584] sm:$0xff]  }
 0xc33   : > { %v17286_v33 = vpop.f32.mrf.mxu1  ;;  %17501 = vmatmul.mubr.msk.bf16.gmra.mxu1 %vm9956_vm13, %v17901_v53  ;;  %v21656_v63 = vpop.f32.mrf.mxu0 }
 0xc34   : > { %v11571_v5 = vadd.f32 %v17286_v33, %v21515_v11  ;;  %v21663_v54 = vadd.f32 %v21511_v56, %v11566_v57  ;;  %17504 = vmatprep.mubr.msk.bf16.mxu1 %vm9956_vm13, %v17904_v37  ;;  %v17905_v56 = vld [vmem:[%s22131_s5 + $0x4d8] sm:$0xff]   ;;  %v17913_v33 = vld [vmem:[%s22131_s5 + $0x530] sm:$0xff]  }
 0xc35   : > { %v11519_v13 = vpop.f32.mrf.mxu1  ;;  %v21669_v20 = vpop.f32.mrf.mxu0 }
 0xc36   : > { %v11569_v45 = vadd.f32 %v11519_v13, %v21525_v32  ;;  %v21673_v38 = vadd.f32 %v21520_v51, %v11571_v5  ;;  %v17908_v32 = vld [vmem:[%s22131_s5 + $0x4e0] sm:$0xff]  }
 0xc37   : > { %v17287_v58 = vpop.f32.mrf.mxu1  ;;  %v21678_v11 = vpop.f32.mrf.mxu0  ;;  %17555 = vmatmul.mubr.msk.bf16.gmra.mxu0 %vm9956_vm13, %v17919_v44 }
 0xc38   : > { %v11572_v1 = vadd.f32 %v17287_v58, %v21535_v36  ;;  %v21683_v16 = vadd.f32 %v21531_v21, %v11569_v45  ;;  %17558 = vmatprep.mubr.msk.bf16.mxu0 %vm9956_vm13, %v17922_v17  ;;  %v17923_v21 = vld [vmem:[%s22131_s5 + $0x58c] sm:$0xff]  }
 0xc39   : > { %v11522_v51 = vpop.f32.mrf.mxu1  ;;  %v21689_v7 = vpop.f32.mrf.mxu0 }
 0xc3a   : > { %v11570_v22 = vadd.f32 %v11522_v51, %v21545_v10  ;;  %v21693_v2 = vadd.f32 %v21538_v46, %v11572_v1  ;;  %v17926_v46 = vld [vmem:[%s22131_s5 + $0x594] sm:$0xff]  }
 0xc3b   : > { %v17290_v28 = vpop.f32.mrf.mxu1  ;;  %17505 = vmatmul.mubr.msk.bf16.gmra.mxu1 %vm9956_vm13, %v17905_v56  ;;  %v21696_v36 = vpop.f32.mrf.mxu0 }
 0xc3c   : > { %v11575_v18 = vadd.f32 %v17290_v28, %v21555_v24  ;;  %v21703_v12 = vadd.f32 %v21551_v29, %v11570_v22  ;;  %17508 = vmatprep.mubr.msk.bf16.mxu1 %vm9956_vm13, %v17908_v32  ;;  %v17909_v29 = vld [vmem:[%s22131_s5 + $0x4e8] ss:$0 sps:$4 sm:$0xff]  }
 0xc3d   : > { %v11535_v10 = vpop.f32.mrf.mxu1  ;;  %v21709_v31 = vpop.f32.mrf.mxu0  ;;  %v17920_v22 = vld [vmem:[%s22131_s5 + $0x548] sm:$0xff]  }
 0xc3e   : > { %v11573_v41 = vadd.f32 %v11535_v10, %v21565_v35  ;;  %v21713_v52 = vadd.f32 %v21560_v34, %v11575_v18  ;;  %v17912_v35 = vld [vmem:[%s22131_s5 + $0x528] sm:$0xff]  }
 0xc3f   : > { %v17291_v25 = vpop.f32.mrf.mxu1  ;;  %v21718_v24 = vpop.f32.mrf.mxu0  ;;  %17559 = vmatmul.mubr.msk.bf16.gmra.mxu0 %vm9956_vm13, %v17923_v21 }
 0xc40   : > { %v11576_v50 = vadd.f32 %v17291_v25, %v21575_v8  ;;  %v21723_v26 = vadd.f32 %v21571_v47, %v11573_v41  ;;  %17562 = vmatprep.mubr.msk.bf16.mxu0 %vm9956_vm13, %v17926_v46  ;;  %v17927_v47 = vld [vmem:[%s22131_s5 + $0x59c] ss:$0 sps:$4 sm:$0xff]  }
 0xc41   : > { %v11538_v34 = vpop.f32.mrf.mxu1  ;;  %v21729_v62 = vpop.f32.mrf.mxu0 }
 0xc42   : > { %v11574_v9 = vadd.f32 %v11538_v34, %v21585_v49  ;;  %v21733_v6 = vadd.f32 %v21578_v55, %v11576_v50 }
 0xc43   : > { %v17294_v15 = vpop.f32.mrf.mxu1  ;;  %17509 = vmatmul.mubr.msk.bf16.gmra.mxu1 %vm9956_vm13, %v17909_v29  ;;  %v21736_v8 = vpop.f32.mrf.mxu0 }
 0xc44   : > { %v11579_v53 = vadd.f32 %v17294_v15, %v21595_v61  ;;  %v21743_v39 = vadd.f32 %v21591_v19, %v11574_v9  ;;  %17532 = vmatprep.mubr.msk.bf16.mxu1 %vm9956_vm13, %v17912_v35  ;;  %v17916_v61 = vld [vmem:[%s22131_s5 + $0x538] sm:$0xff]  }
 0xc45   : > { %v11551_v49 = vpop.f32.mrf.mxu1  ;;  %v21746_v37 = vpop.f32.mrf.mxu0  ;;  %v17924_v35 = vld [vmem:[%s22131_s5 + $0x558] sm:$0xff]  }
 0xc46   : > { %v11577_v55 = vadd.f32 %v11551_v49, %v21604_v30  ;;  %v21750_v42 = vadd.f32 %v21600_v3, %v11579_v53 }
 0xc47   : > { %v17295_v57 = vpop.f32.mrf.mxu1  ;;  %v21755_v44 = vpop.f32.mrf.mxu0  ;;  %17563 = vmatmul.mubr.msk.bf16.gmra.mxu0 %vm9956_vm13, %v17927_v47 }
 0xc48   : > { %v21759_v19 = vadd.f32 %v21610_v59, %v11577_v55 }
 0xc49   : > { %v11554_v30 = vpop.f32.mrf.mxu1  ;;  %v21764_v5 = vpop.f32.mrf.mxu0 }
 0xc4a   : > { %v11578_v3 = vadd.f32 %v11554_v30, %v21620_v60 }
 0xc4b   : > { %v17318_v17 = vpop.f32.mrf.mxu1  ;;  %17533 = vmatmul.mubr.msk.bf16.vlgmr.msra.gmra.mxu1 %vm9956_vm13, %v17913_v33  ;;  %v17349_v13 = vpop.f32.mrf.mxu0 }
 0xc4c   : > { %v21769_v45 = vadd.f32 %v21629_v4, %v11578_v3  ;;  %v11951_v58 = vadd.f32 %v17318_v17, %v21633_v48  ;;  %17567 = vmatpush3.bf16.msra.mxu1 %v21617_v27  ;;  %17536 = vmatprep.mubr.msk.bf16.mxu1 %vm9956_vm13, %v17916_v61  ;;  %v17917_v4 = vld [vmem:[%s22131_s5 + $0x540] sm:$0xff]  }
 0xc4d   : > { %v11887_v59 = vpop.f32.mrf.mxu1  ;;  %v21774_v56 = vpop.f32.mrf.mxu0  ;;  %v17928_v61 = vld [vmem:[%s22131_s5 + $0x5a0] sm:$0xff]  }
 0xc4e   : > { %v11949_v1 = vadd.f32 %v11887_v59, %v21643_v43  ;;  %v21778_v60 = vadd.f32 %v21638_v14, %v11951_v58 }
 0xc4f   : > { %v17319_v32 = vpop.f32.mrf.mxu1  ;;  %v21783_v51 = vpop.f32.mrf.mxu0 }
 0xc50   : > { %v11952_v48 = vadd.f32 %v17319_v32, %v21653_v23  ;;  %v21787_v27 = vadd.f32 %v21649_v0, %v11949_v1 }
 0xc51   : > { %v11890_v43 = vpop.f32.mrf.mxu1  ;;  %v21792_v28 = vpop.f32.mrf.mxu0 }
 0xc52   : > { %v21795_v14 = vadd.f32 %v11890_v43, %v21663_v54  ;;  %v21798_v21 = vadd.f32 %v21656_v63, %v11952_v48  ;;  %v17921_v63 = vld [vmem:[%s22131_s5 + $0x550] sm:$0xff]  }
 0xc53   : > { %v17322_v18 = vpop.f32.mrf.mxu1  ;;  %17537 = vmatmul.mubr.msk.bf16.gmra.mxu1 %vm9956_vm13, %v17917_v4  ;;  %v21801_v23 = vpop.f32.mrf.mxu0 }
 0xc54   : > { %v11955_v0 = vadd.f32 %v17322_v18, %v21673_v38  ;;  %17540 = vmatprep.mubr.msk.bf16.mxu1 %vm9956_vm13, %v17920_v22 }
 0xc55   : > { %v11903_v46 = vpop.f32.mrf.mxu1  ;;  %v21805_v10 = vpop.f32.mrf.mxu0 }
 0xc56   : > { %v11953_v41 = vadd.f32 %v11903_v46, %v21683_v16  ;;  %v21809_v54 = vadd.f32 %v21678_v11, %v11955_v0 }
 0xc57   : > { %v17323_v25 = vpop.f32.mrf.mxu1  ;;  %v21814_v29 = vpop.f32.mrf.mxu0 }
 0xc58   : > { %v11956_v50 = vadd.f32 %v17323_v25, %v21693_v2  ;;  %v21818_v38 = vadd.f32 %v21689_v7, %v11953_v41 }
 0xc59   : > { %v11906_v16 = vpop.f32.mrf.mxu1  ;;  %v21823_v34 = vpop.f32.mrf.mxu0 }
 0xc5a   : > { %v21826_v11 = vadd.f32 %v11906_v16, %v21703_v12  ;;  %v21829_v9 = vadd.f32 %v21696_v36, %v11956_v50  ;;  %v17925_v36 = vld [vmem:[%s22131_s5 + $0x560] ss:$0 sps:$4 sm:$0xff]  }
 0xc5b   : > { %v17326_v15 = vpop.f32.mrf.mxu1  ;;  %17541 = vmatmul.mubr.msk.bf16.gmra.mxu1 %vm9956_vm13, %v17921_v63  ;;  %v21832_v2 = vpop.f32.mrf.mxu0 }
 0xc5c   : > { %v11959_v7 = vadd.f32 %v17326_v15, %v21713_v52  ;;  %17544 = vmatprep.mubr.msk.bf16.mxu1 %vm9956_vm13, %v17924_v35 }
 0xc5d   : > { %v11919_v47 = vpop.f32.mrf.mxu1  ;;  %v21836_v53 = vpop.f32.mrf.mxu0 }
 0xc5e   : > { %v11957_v49 = vadd.f32 %v11919_v47, %v21723_v26  ;;  %v21840_v12 = vadd.f32 %v21718_v24, %v11959_v7 }
 0xc5f   : > { %v17327_v55 = vpop.f32.mrf.mxu1  ;;  %v21845_v57 = vpop.f32.mrf.mxu0 }
 0xc60   : > { %v11960_v33 = vadd.f32 %v17327_v55, %v21733_v6  ;;  %v21849_v52 = vadd.f32 %v21729_v62, %v11957_v49 }
 0xc61   : > { %v11922_v26 = vpop.f32.mrf.mxu1  ;;  %v21854_v30 = vpop.f32.mrf.mxu0 }
 0xc62   : > { %v21857_v24 = vadd.f32 %v11922_v26, %v21743_v39  ;;  %v21860_v3 = vadd.f32 %v21736_v8, %v11960_v33  ;;  %v17929_v8 = vld [vmem:[%s22131_s5 + $0x5a8] sm:$0xff]  }
 0xc63   : > { %v17330_v17 = vpop.f32.mrf.mxu1  ;;  %17545 = vmatmul.mubr.msk.bf16.gmra.mxu1 %vm9956_vm13, %v17925_v36  ;;  %v21863_v6 = vpop.f32.mrf.mxu0  ;;  %v17933_v33 = vld [vmem:[%s22131_s5 + $0x5c8] sm:$0xff]  }
 0xc64   : > { %v11963_v62 = vadd.f32 %v17330_v17, %v21750_v42  ;;  %17568 = vmatprep.mubr.msk.bf16.mxu1 %vm9956_vm13, %v17928_v61  ;;  %v17930_v42 = vld [vmem:[%s22131_s5 + $0x5b0] sm:$0xff]  }
 0xc65   : > { %v11935_v13 = vpop.f32.mrf.mxu1  ;;  %v21867_v58 = vpop.f32.mrf.mxu0 }
 0xc66   : > { %v11961_v59 = vadd.f32 %v11935_v13, %v21759_v19  ;;  %v21871_v39 = vadd.f32 %v21755_v44, %v11963_v62 }
 0xc67   : > { %v17331_v1 = vpop.f32.mrf.mxu1  ;;  %v21876_v32 = vpop.f32.mrf.mxu0 }
 0xc68   : > { %v21879_v4 = vadd.f32 %v21764_v5, %v11961_v59 }
 0xc69   : > { %v11938_v48 = vpop.f32.mrf.mxu1  ;;  %v21884_v22 = vpop.f32.mrf.mxu0 }
 0xc6a   : > { %v21887_v44 = vadd.f32 %v11938_v48, %v21769_v45  ;;  %v17931_v45 = vld [vmem:[%s22131_s5 + $0x5b8] sm:$0xff]  }
 0xc6b   : > { %v17354_v19 = vpop.f32.mrf.mxu1  ;;  %17569 = vmatmul.mubr.msk.bf16.vlgmr.msra.gmra.mxu1 %vm9956_vm13, %v17929_v8  ;;  %v17385_v43 = vpop.f32.mrf.mxu0  ;;  %v17935_v48 = vld [vmem:[%s22131_s5 + $0x5d8] ss:$0 sps:$4 sm:$0xff]  }
 0xc6c   : > { %v12335_v18 = vadd.f32 %v17354_v19, %v21778_v60  ;;  %17572 = vmatprep.mubr.msk.bf16.mxu1 %vm9956_vm13, %v17930_v42  ;;  %v12142_v60 = vadd.f32 %v21669_v20, %v21795_v14 }
 0xc6d   : > { %v12271_v5 = vpop.f32.mrf.mxu1  ;;  %v21892_v0 = vpop.f32.mrf.mxu0 }
 0xc6e   : > { %v12333_v46 = vadd.f32 %v12271_v5, %v21787_v27  ;;  %v21896_v41 = vadd.f32 %v21783_v51, %v12335_v18  ;;  %v17932_v51 = vld [vmem:[%s22131_s5 + $0x5c0] sm:$0xff]  }
 0xc6f   : > { %v17355_v25 = vpop.f32.mrf.mxu1  ;;  %v21901_v63 = vpop.f32.mrf.mxu0 }
 0xc70   : > { %v12336_v50 = vadd.f32 %v17355_v25, %v21798_v21  ;;  %v21907_v35 = vadd.f32 %v21792_v28, %v12333_v46 }
 0xc71   : > { %v12274_v27 = vpop.f32.mrf.mxu1  ;;  %v21912_v16 = vpop.f32.mrf.mxu0 }
 0xc72   : > { %v12334_v15 = vadd.f32 %v12274_v27, %v12142_v60  ;;  %v21915_v7 = vadd.f32 %v21801_v23, %v12336_v50  ;;  %v12154_v27 = vadd.f32 %v21774_v56, %v21887_v44 }
 0xc73   : > { %v17358_v47 = vpop.f32.mrf.mxu1  ;;  %17573 = vmatmul.mubr.msk.bf16.gmra.mxu1 %vm9956_vm13, %v17931_v45  ;;  %v21918_v20 = vpop.f32.mrf.mxu0 }
 0xc74   : > { %v12339_v14 = vadd.f32 %v17358_v47, %v21809_v54  ;;  %v21922_v28 = vadd.f32 %v21805_v10, %v12334_v15  ;;  %17576 = vmatprep.mubr.msk.bf16.mxu1 %vm9956_vm13, %v17932_v51  ;;  %v12146_v10 = vadd.f32 %v21709_v31, %v21826_v11 }
 0xc75   : > { %v12287_v21 = vpop.f32.mrf.mxu1  ;;  %v21925_v49 = vpop.f32.mrf.mxu0 }
 0xc76   : > { %v12337_v55 = vadd.f32 %v12287_v21, %v21818_v38  ;;  %v21929_v23 = vadd.f32 %v21814_v29, %v12339_v14  ;;  %v17934_v29 = vld [vmem:[%s22131_s5 + $0x5d0] sm:$0xff]  }
 0xc77   : > { %v17359_v36 = vpop.f32.mrf.mxu1  ;;  %v21934_v61 = vpop.f32.mrf.mxu0 }
 0xc78   : > { %v12340_v54 = vadd.f32 %v17359_v36, %v21829_v9  ;;  %v21940_v26 = vadd.f32 %v21823_v34, %v12337_v55 }
 0xc79   : > { %v12290_v38 = vpop.f32.mrf.mxu1  ;;  %v21945_v17 = vpop.f32.mrf.mxu0 }
 0xc7a   : > { %v12338_v62 = vadd.f32 %v12290_v38, %v12146_v10  ;;  %v21948_v13 = vadd.f32 %v21832_v2, %v12340_v54 }
 0xc7b   : > { %v17362_v59 = vpop.f32.mrf.mxu1  ;;  %17577 = vmatmul.mubr.msk.bf16.gmra.mxu1 %vm9956_vm13, %v17933_v33  ;;  %v21951_v31 = vpop.f32.mrf.mxu0 }
 0xc7c   : > { %v12343_v11 = vadd.f32 %v17362_v59, %v21840_v12  ;;  %v12530_v34 = vadd.f32 %v21836_v53, %v12338_v62  ;;  %17580 = vmatprep.mubr.msk.bf16.mxu1 %vm9956_vm13, %v17934_v29  ;;  %v12150_v12 = vadd.f32 %v21746_v37, %v21857_v24 }
 0xc7d   : > { %v12303_v9 = vpop.f32.mrf.mxu1  ;;  %v21956_v1 = vpop.f32.mrf.mxu0 }
 0xc7e   : > { %v12341_v8 = vadd.f32 %v12303_v9, %v21849_v52  ;;  %v12535_v42 = vadd.f32 %v21845_v57, %v12343_v11 }
 0xc7f   : > { %v17363_v2 = vpop.f32.mrf.mxu1  ;;  %v21963_v19 = vpop.f32.mrf.mxu0 }
 0xc80   : > { %v12344_v53 = vadd.f32 %v17363_v2, %v21860_v3  ;;  %v12533_v43 = vadd.f32 %v21854_v30, %v12341_v8 }
 0xc81   : > { %v12306_v18 = vpop.f32.mrf.mxu1  ;;  %v12879_v5 = vpop.f32.mrf.mxu0 }
 0xc82   : > { %v12342_v46 = vadd.f32 %v12306_v18, %v12150_v12  ;;  %v12536_v52 = vadd.f32 %v21863_v6, %v12344_v53 }
 0xc83   : > { %v17366_v57 = vpop.f32.mrf.mxu1  ;;  %17581 = vmatmul.mubr.msk.bf16.gmra.mxu1 %vm9956_vm13, %v17935_v48  ;;  %v17417_v25 = vpop.f32.mrf.mxu0 }
 0xc84   : > { %v12347_v45 = vadd.f32 %v17366_v57, %v21871_v39  ;;  %v12534_v60 = vadd.f32 %v21867_v58, %v12342_v46 }
 0xc85   : > { %v12319_v50 = vpop.f32.mrf.mxu1  ;;  %v12882_v51 = vpop.f32.mrf.mxu0 }
 0xc86   : > { %v12345_v37 = vadd.f32 %v12319_v50, %v21879_v4  ;;  %v12539_v24 = vadd.f32 %v21876_v32, %v12347_v45 }
 0xc87   : > { %v17367_v30 = vpop.f32.mrf.mxu1  ;;  %v17420_v3 = vpop.f32.mrf.mxu0 }
 0xc88   : > { %v12537_v6 = vadd.f32 %v21884_v22, %v12345_v37 }
 0xc89   : > { %v12322_v15 = vpop.f32.mrf.mxu1  ;;  %v12895_v47 = vpop.f32.mrf.mxu0 }
 0xc8a   : > { %v12346_v14 = vadd.f32 %v12322_v15, %v12154_v27 }
 0xc8b   : > { %v17390_v21 = vpop.f32.mrf.mxu1  ;;  %v17421_v39 = vpop.f32.mrf.mxu0 }
 0xc8c   : > { %v12538_v58 = vadd.f32 %v21892_v0, %v12346_v14  ;;  %v12719_v55 = vadd.f32 %v17390_v21, %v21896_v41 }
 0xc8d   : > { %v12655_v36 = vpop.f32.mrf.mxu1  ;;  %v12898_v4 = vpop.f32.mrf.mxu0 }
 0xc8e   : > { %v12717_v32 = vadd.f32 %v12655_v36, %v21907_v35  ;;  %v12911_v33 = vadd.f32 %v21901_v63, %v12719_v55 }
 0xc8f   : > { %v17391_v10 = vpop.f32.mrf.mxu1  ;;  %v17444_v54 = vpop.f32.mrf.mxu0 }
 0xc90   : > { %v12720_v56 = vadd.f32 %v17391_v10, %v21915_v7  ;;  %v12909_v22 = vadd.f32 %v21912_v16, %v12717_v32 }
 0xc91   : > { %v12658_v44 = vpop.f32.mrf.mxu1  ;;  %v13240_v29 = vpop.f32.mrf.mxu0 }
 0xc92   : > { %v12718_v38 = vadd.f32 %v12658_v44, %v21922_v28  ;;  %v12912_v0 = vadd.f32 %v21918_v20, %v12720_v56 }
 0xc93   : > { %v17394_v62 = vpop.f32.mrf.mxu1  ;;  %v17445_v41 = vpop.f32.mrf.mxu0 }
 0xc94   : > { %v12723_v59 = vadd.f32 %v17394_v62, %v21929_v23  ;;  %v12910_v35 = vadd.f32 %v21925_v49, %v12718_v38 }
 0xc95   : > { %v12671_v11 = vpop.f32.mrf.mxu1  ;;  %v13243_v63 = vpop.f32.mrf.mxu0 }
 0xc96   : > { %v12721_v9 = vadd.f32 %v12671_v11, %v21940_v26  ;;  %v12915_v7 = vadd.f32 %v21934_v61, %v12723_v59 }
 0xc97   : > { %v17395_v8 = vpop.f32.mrf.mxu1  ;;  %v17448_v16 = vpop.f32.mrf.mxu0 }
 0xc98   : > { %v12724_v2 = vadd.f32 %v17395_v8, %v21948_v13  ;;  %v12913_v28 = vadd.f32 %v21945_v17, %v12721_v9 }
 0xc99   : > { %v12674_v48 = vpop.f32.mrf.mxu1  ;;  %v13256_v20 = vpop.f32.mrf.mxu0 }
 0xc9a   : > { %v12722_v12 = vadd.f32 %v12674_v48, %v12530_v34  ;;  %v12916_v53 = vadd.f32 %v21951_v31, %v12724_v2 }
 0xc9b   : > { %v17398_v23 = vpop.f32.mrf.mxu1  ;;  %v17449_v18 = vpop.f32.mrf.mxu0 }
 0xc9c   : > { %v12727_v49 = vadd.f32 %v17398_v23, %v12535_v42  ;;  %v12914_v46 = vadd.f32 %v21956_v1, %v12722_v12 }
 0xc9d   : > { %v12687_v57 = vpop.f32.mrf.mxu1  ;;  %v13259_v26 = vpop.f32.mrf.mxu0 }
 0xc9e   : > { %v12725_v45 = vadd.f32 %v12687_v57, %v12533_v43  ;;  %v12919_v61 = vadd.f32 %v21963_v19, %v12727_v49 }
 0xc9f   : > { %v17399_v50 = vpop.f32.mrf.mxu1  ;;  %v17452_v37 = vpop.f32.mrf.mxu0 }
 0xca0   : > { %v12728_v13 = vadd.f32 %v17399_v50, %v12536_v52  ;;  %v12917_v30 = vadd.f32 %v12879_v5, %v12725_v45 }
 0xca1   : > { %v12690_v17 = vpop.f32.mrf.mxu1  ;;  %v13272_v27 = vpop.f32.mrf.mxu0 }
 0xca2   : > { %v12726_v15 = vadd.f32 %v12690_v17, %v12534_v60  ;;  %v12920_v34 = vadd.f32 %v17417_v25, %v12728_v13 }
 0xca3   : > { %v17402_v14 = vpop.f32.mrf.mxu1  ;;  %v17453_v31 = vpop.f32.mrf.mxu0 }
 0xca4   : > { %v12731_v21 = vadd.f32 %v17402_v14, %v12539_v24  ;;  %v12918_v39 = vadd.f32 %v12882_v51, %v12726_v15 }
 0xca5   : > { %v12703_v42 = vpop.f32.mrf.mxu1  ;;  %v13275_v55 = vpop.f32.mrf.mxu0 }
 0xca6   : > { %v12729_v1 = vadd.f32 %v12703_v42, %v12537_v6  ;;  %v12923_v36 = vadd.f32 %v17420_v3, %v12731_v21 }
 0xca7   : > { %v17403_v32 = vpop.f32.mrf.mxu1  ;;  %v17456_v43 = vpop.f32.mrf.mxu0 }
 0xca8   : > { %v12921_v10 = vadd.f32 %v12895_v47, %v12729_v1 }
 0xca9   : > { %v12706_v19 = vpop.f32.mrf.mxu1  ;;  %v13288_v56 = vpop.f32.mrf.mxu0 }
 0xcaa   : > { %v12730_v44 = vadd.f32 %v12706_v19, %v12538_v58 }
 0xcab   : > { %v17426_v52 = vpop.f32.mrf.mxu1  ;;  %v17457_v5 = vpop.f32.mrf.mxu0 }
 0xcac   : > { %v12922_v38 = vadd.f32 %v12898_v4, %v12730_v44  ;;  %v13109_v62 = vadd.f32 %v17426_v52, %v12911_v33 }
 0xcad   : > { %v13045_v60 = vpop.f32.mrf.mxu1  ;;  %v13291_v25 = vpop.f32.mrf.mxu0 }
 0xcae   : > { %v13107_v59 = vadd.f32 %v13045_v60, %v12909_v22  ;;  %v13304_v11 = vadd.f32 %v17444_v54, %v13109_v62 }
 0xcaf   : > { %v17427_v24 = vpop.f32.mrf.mxu1  ;;  %v17480_v51 = vpop.f32.mrf.mxu0 }
 0xcb0   : > { %v13110_v9 = vadd.f32 %v17427_v24, %v12912_v0  ;;  %v13302_v8 = vadd.f32 %v13240_v29, %v13107_v59 }
 0xcb1   : > { %v13048_v6 = vpop.f32.mrf.mxu1  ;;  %v13630_v3 = vpop.f32.mrf.mxu0 }
 0xcb2   : > { %v13108_v2 = vadd.f32 %v13048_v6, %v12910_v35  ;;  %v13305_v48 = vadd.f32 %v17445_v41, %v13110_v9 }
 0xcb3   : > { %v17430_v47 = vpop.f32.mrf.mxu1  ;;  %v17481_v12 = vpop.f32.mrf.mxu0 }
 0xcb4   : > { %v13113_v23 = vadd.f32 %v17430_v47, %v12915_v7  ;;  %v13303_v58 = vadd.f32 %v13243_v63, %v13108_v2 }
 0xcb5   : > { %v13061_v49 = vpop.f32.mrf.mxu1  ;;  %v13633_v57 = vpop.f32.mrf.mxu0 }
 0xcb6   : > { %v13111_v4 = vadd.f32 %v13061_v49, %v12913_v28  ;;  %v13308_v33 = vadd.f32 %v17448_v16, %v13113_v23 }
 0xcb7   : > { %v17431_v45 = vpop.f32.mrf.mxu1  ;;  %v17484_v50 = vpop.f32.mrf.mxu0 }
 0xcb8   : > { %v13114_v22 = vadd.f32 %v17431_v45, %v12916_v53  ;;  %v13306_v54 = vadd.f32 %v13256_v20, %v13111_v4 }
 0xcb9   : > { %v13064_v13 = vpop.f32.mrf.mxu1  ;;  %v13646_v17 = vpop.f32.mrf.mxu0 }
 0xcba   : > { %v13112_v0 = vadd.f32 %v13064_v13, %v12914_v46  ;;  %v13309_v29 = vadd.f32 %v17449_v18, %v13114_v22 }
 0xcbb   : > { %v17434_v15 = vpop.f32.mrf.mxu1  ;;  %v17485_v14 = vpop.f32.mrf.mxu0 }
 0xcbc   : > { %v13117_v35 = vadd.f32 %v17434_v15, %v12919_v61  ;;  %v13307_v41 = vadd.f32 %v13259_v26, %v13112_v0 }
 0xcbd   : > { %v13077_v21 = vpop.f32.mrf.mxu1  ;;  %v13649_v42 = vpop.f32.mrf.mxu0 }
 0xcbe   : > { %v13115_v7 = vadd.f32 %v13077_v21, %v12917_v30  ;;  %v13312_v63 = vadd.f32 %v17452_v37, %v13117_v35 }
 0xcbf   : > { %v17435_v1 = vpop.f32.mrf.mxu1  ;;  %v17488_v32 = vpop.f32.mrf.mxu0 }
 0xcc0   : > { %v13118_v28 = vadd.f32 %v17435_v1, %v12920_v34  ;;  %v13310_v16 = vadd.f32 %v13272_v27, %v13115_v7 }
 0xcc1   : > { %v13080_v19 = vpop.f32.mrf.mxu1  ;;  %v13662_v44 = vpop.f32.mrf.mxu0 }
 0xcc2   : > { %v13116_v53 = vadd.f32 %v13080_v19, %v12918_v39  ;;  %v13313_v20 = vadd.f32 %v17453_v31, %v13118_v28 }
 0xcc3   : > { %v17438_v52 = vpop.f32.mrf.mxu1  ;;  %v17489_v5 = vpop.f32.mrf.mxu0 }
 0xcc4   : > { %v13121_v46 = vadd.f32 %v17438_v52, %v12923_v36  ;;  %v13311_v18 = vadd.f32 %v13275_v55, %v13116_v53 }
 0xcc5   : > { %v13093_v62 = vpop.f32.mrf.mxu1  ;;  %v13665_v60 = vpop.f32.mrf.mxu0 }
 0xcc6   : > { %v13119_v61 = vadd.f32 %v13093_v62, %v12921_v10  ;;  %v13316_v26 = vadd.f32 %v17456_v43, %v13121_v46 }
 0xcc7   : > { %v17439_v59 = vpop.f32.mrf.mxu1  ;;  %v17492_v24 = vpop.f32.mrf.mxu0 }
 0xcc8   : > { %v13314_v30 = vadd.f32 %v13288_v56, %v13119_v61 }
 0xcc9   : > { %v13096_v37 = vpop.f32.mrf.mxu1  ;;  %v13678_v9 = vpop.f32.mrf.mxu0 }
 0xcca   : > { %v13120_v6 = vadd.f32 %v13096_v37, %v12922_v38 }
 0xccb   : > { %v17462_v34 = vpop.f32.mrf.mxu1  ;;  %v17493_v27 = vpop.f32.mrf.mxu0 }
 0xccc   : > { %v13315_v2 = vadd.f32 %v13291_v25, %v13120_v6  ;;  %v13499_v47 = vadd.f32 %v17462_v34, %v13304_v11 }
 0xccd   : > { %v13435_v39 = vpop.f32.mrf.mxu1  ;;  %v13681_v31 = vpop.f32.mrf.mxu0 }
 0xcce   : > { %v13497_v23 = vadd.f32 %v13435_v39, %v13302_v8  ;;  %v13694_v49 = vadd.f32 %v17480_v51, %v13499_v47 }
 0xccf   : > { %v17463_v36 = vpop.f32.mrf.mxu1  ;;  %v21995_v55 = vpop.f32.mrf.mxu0 }
 0xcd0   : > { %v13500_v4 = vadd.f32 %v17463_v36, %v13305_v48  ;;  %v13692_v10 = vadd.f32 %v13630_v3, %v13497_v23 }
 0xcd1   : > { %v13438_v43 = vpop.f32.mrf.mxu1  ;;  %v21997_v45 = vpop.f32.mrf.mxu0 }
 0xcd2   : > { %v13498_v56 = vadd.f32 %v13438_v43, %v13303_v58  ;;  %v13695_v22 = vadd.f32 %v17481_v12, %v13500_v4 }
 0xcd3   : > { %v17466_v13 = vpop.f32.mrf.mxu1  ;;  %v21999_v38 = vpop.f32.mrf.mxu0 }
 0xcd4   : > { %v13503_v0 = vadd.f32 %v17466_v13, %v13308_v33  ;;  %v13693_v25 = vadd.f32 %v13633_v57, %v13498_v56 }
 0xcd5   : > { %v13451_v11 = vpop.f32.mrf.mxu1  ;;  %v22001_v15 = vpop.f32.mrf.mxu0 }
 0xcd6   : > { %v13501_v8 = vadd.f32 %v13451_v11, %v13306_v54  ;;  %v13698_v51 = vadd.f32 %v17484_v50, %v13503_v0 }
 0xcd7   : > { %v17467_v35 = vpop.f32.mrf.mxu1  ;;  %v22003_v21 = vpop.f32.mrf.mxu0 }
 0xcd8   : > { %v13504_v48 = vadd.f32 %v17467_v35, %v13309_v29  ;;  %v13696_v3 = vadd.f32 %v13646_v17, %v13501_v8 }
 0xcd9   : > { %v13454_v7 = vpop.f32.mrf.mxu1  ;;  %v22005_v1 = vpop.f32.mrf.mxu0 }
 0xcda   : > { %v13502_v58 = vadd.f32 %v13454_v7, %v13307_v41  ;;  %v13699_v12 = vadd.f32 %v17485_v14, %v13504_v48 }
 0xcdb   : > { %v17470_v28 = vpop.f32.mrf.mxu1  ;;  %v22007_v19 = vpop.f32.mrf.mxu0 }
 0xcdc   : > { %v13507_v33 = vadd.f32 %v17470_v28, %v13312_v63  ;;  %v13697_v57 = vadd.f32 %v13649_v42, %v13502_v58 }
 0xcdd   : > { %v13467_v53 = vpop.f32.mrf.mxu1  ;;  %v22009_v52 = vpop.f32.mrf.mxu0 }
 0xcde   : > { %v13505_v54 = vadd.f32 %v13467_v53, %v13310_v16  ;;  %v13702_v50 = vadd.f32 %v17488_v32, %v13507_v33 }
 0xcdf   : > { %v17471_v46 = vpop.f32.mrf.mxu1  ;;  %v22011_v62 = vpop.f32.mrf.mxu0 }
 0xce0   : > { %v13508_v29 = vadd.f32 %v17471_v46, %v13313_v20  ;;  %v13700_v17 = vadd.f32 %v13662_v44, %v13505_v54 }
 0xce1   : > { %v13470_v61 = vpop.f32.mrf.mxu1  ;;  %v22013_v59 = vpop.f32.mrf.mxu0 }
 0xce2   : > { %v13506_v41 = vadd.f32 %v13470_v61, %v13311_v18  ;;  %v13703_v14 = vadd.f32 %v17489_v5, %v13508_v29 }
 0xce3   : > { %v17474_v37 = vpop.f32.mrf.mxu1  ;;  %v22015_v6 = vpop.f32.mrf.mxu0 }
 0xce4   : > { %v13511_v63 = vadd.f32 %v17474_v37, %v13316_v26  ;;  %v13701_v42 = vadd.f32 %v13665_v60, %v13506_v41  ;;  %v17936_v26 = vld [vmem:[%s22133_s7] sm:$0xff]  }
 0xce5   : > { %v13483_v34 = vpop.f32.mrf.mxu1  ;;  %v22017_v27 = vpop.f32.mrf.mxu0  ;;  %17600 = vmatprep.mubr.msk.bf16.mxu0 %vm14898_vm4, %v17936_v26 }
 0xce6   : > { %v13509_v16 = vadd.f32 %v13483_v34, %v13314_v30  ;;  %v13706_v32 = vadd.f32 %v17492_v24, %v13511_v63 }
 0xce7   : > { %v17475_v47 = vpop.f32.mrf.mxu1  ;;  %v22019_v39 = vpop.f32.mrf.mxu0 }
 0xce8   : > { %v13704_v20 = vadd.f32 %v13678_v9, %v13509_v16 }
 0xce9   : > { %v13486_v44 = vpop.f32.mrf.mxu1  ;;  %v22021_v23 = vpop.f32.mrf.mxu0 }
 0xcea   : > { %v13510_v36 = vadd.f32 %v13486_v44, %v13315_v2 }
 0xceb   : > { %v17498_v18 = vpop.f32.mrf.mxu1  ;;  %v17529_v5 = vpop.f32.mrf.mxu0 }
 0xcec   : > { %v13705_v60 = vadd.f32 %v13681_v31, %v13510_v36  ;;  %v13884_v4 = vadd.f32 %v17498_v18, %v13694_v49 }
 0xced   : > { %v13820_v43 = vpop.f32.mrf.mxu1  ;;  %v14063_v30 = vpop.f32.mrf.mxu0 }
 0xcee   : > { %v13882_v24 = vadd.f32 %v13820_v43, %v13692_v10  ;;  %v14076_v9 = vadd.f32 %v21995_v55, %v13884_v4 }
 0xcef   : > { %v17499_v56 = vpop.f32.mrf.mxu1  ;;  %v17552_v13 = vpop.f32.mrf.mxu0 }
 0xcf0   : > { %v13885_v0 = vadd.f32 %v17499_v56, %v13695_v22  ;;  %v14074_v2 = vadd.f32 %v21997_v45, %v13882_v24 }
 0xcf1   : > { %v13823_v11 = vpop.f32.mrf.mxu1  ;;  %v14396_v8 = vpop.f32.mrf.mxu0 }
 0xcf2   : > { %v13883_v35 = vadd.f32 %v13823_v11, %v13693_v25  ;;  %v14077_v48 = vadd.f32 %v21999_v38, %v13885_v0  ;;  %v22053_v0 = vpop.permute.xlu1 %14742 }
 0xcf3   : > { %v17502_v7 = vpop.f32.mrf.mxu1  ;;  %v17553_v31 = vpop.f32.mrf.mxu0 }
 0xcf4   : > { %v13888_v49 = vadd.f32 %v17502_v7, %v13698_v51  ;;  %v14075_v58 = vadd.f32 %v22001_v15, %v13883_v35 }
 0xcf5   : > { %v13836_v28 = vpop.f32.mrf.mxu1  ;;  %v14399_v33 = vpop.f32.mrf.mxu0 }
 0xcf6   : > { %v13886_v10 = vadd.f32 %v13836_v28, %v13696_v3  ;;  %v14080_v55 = vadd.f32 %v22003_v21, %v13888_v49 }
 0xcf7   : > { %v17503_v53 = vpop.f32.mrf.mxu1  ;;  %v17556_v54 = vpop.f32.mrf.mxu0 }
 0xcf8   : > { %v13889_v22 = vadd.f32 %v17503_v53, %v13699_v12  ;;  %v14078_v45 = vadd.f32 %v22005_v1, %v13886_v10 }
 0xcf9   : > { %v13839_v46 = vpop.f32.mrf.mxu1  ;;  %v14412_v29 = vpop.f32.mrf.mxu0 }
 0xcfa   : > { %v13887_v25 = vadd.f32 %v13839_v46, %v13697_v57  ;;  %v14081_v38 = vadd.f32 %v22007_v19, %v13889_v22  ;;  %v22057_v46 = vpop.permute.xlu1 %14732 }
 0xcfb   : > { %v17506_v61 = vpop.f32.mrf.mxu1  ;;  %v17557_v41 = vpop.f32.mrf.mxu0 }
 0xcfc   : > { %v13892_v51 = vadd.f32 %v17506_v61, %v13702_v50  ;;  %v14079_v15 = vadd.f32 %v22009_v52, %v13887_v25 }
 0xcfd   : > { %v13852_v37 = vpop.f32.mrf.mxu1  ;;  %v14415_v63 = vpop.f32.mrf.mxu0 }
 0xcfe   : > { %v13890_v3 = vadd.f32 %v13852_v37, %v13700_v17  ;;  %v14084_v21 = vadd.f32 %v22011_v62, %v13892_v51 }
 0xcff   : > { %v17507_v34 = vpop.f32.mrf.mxu1  ;;  %v17560_v16 = vpop.f32.mrf.mxu0 }
 0xd00   : > { %v13893_v12 = vadd.f32 %v17507_v34, %v13703_v14  ;;  %v14082_v1 = vadd.f32 %v22013_v59, %v13890_v3  ;;  %v22044_v59 = vpop.permute.xlu0 %14752  ;;  %v22061_v34 = vpop.permute.xlu1 %14722 }
 0xd01   : > { %v13855_v47 = vpop.f32.mrf.mxu1  ;;  %v14428_v44 = vpop.f32.mrf.mxu0 }
 0xd02   : > { %v13891_v57 = vadd.f32 %v13855_v47, %v13701_v42  ;;  %v14085_v19 = vadd.f32 %v22015_v6, %v13893_v12 }
 0xd03   : > { %v17510_v36 = vpop.f32.mrf.mxu1  ;;  %v17561_v18 = vpop.f32.mrf.mxu0 }
 0xd04   : > { %v13896_v50 = vadd.f32 %v17510_v36, %v13706_v32  ;;  %v14083_v52 = vadd.f32 %v22017_v27, %v13891_v57  ;;  %v22055_v7 = vpop.permute.xlu0 %14747 }
 0xd05   : > { %v13868_v5 = vpop.f32.mrf.mxu1  ;;  %v14431_v26 = vpop.f32.mrf.mxu0 }
 0xd06   : > { %v13894_v17 = vadd.f32 %v13868_v5, %v13704_v20  ;;  %v22040_v62 = vadd.f32 %v22019_v39, %v13896_v50  ;;  %v14713_v50 = vpop.permute.xlu1 %14712 }
 0xd07   : > { %v17511_v4 = vpop.f32.mrf.mxu1  ;;  %v22042_v14 = vpop.f32.mrf.mxu0 }
 0xd08   : > { %v22047_v42 = vadd.f32 %v22021_v23, %v13894_v17  ;;  %v22059_v61 = vpop.permute.xlu0 %14737 }
 0xd09   : > { %v13871_v6 = vpop.f32.mrf.mxu1  ;;  %v22049_v43 = vpop.f32.mrf.mxu0 }
 0xd0a   : > { %v13895_v32 = vadd.f32 %v13871_v6, %v13705_v60 }
 0xd0b   : > { %v17534_v24 = vpop.f32.mrf.mxu1  ;;  %v17565_v27 = vpop.f32.mrf.mxu0 }
 0xd0c   : > { %v22051_v56 = vadd.f32 %v14063_v30, %v13895_v32  ;;  %v14268_v20 = vadd.f32 %v17534_v24, %v14076_v9 }
 0xd0d   : > { %v14204_v39 = vpop.f32.mrf.mxu1 }
 0xd0e   : > { %v14266_v11 = vadd.f32 %v14204_v39, %v14074_v2  ;;  %v14460_v35 = vadd.f32 %v17552_v13, %v14268_v20 }
 0xd0f   : > { %v17535_v49 = vpop.f32.mrf.mxu1 }
 0xd10   : > { %v14269_v28 = vadd.f32 %v17535_v49, %v14077_v48  ;;  %v14458_v23 = vadd.f32 %v14396_v8, %v14266_v11 }
 0xd11   : > { %v14207_v10 = vpop.f32.mrf.mxu1 }
 0xd12   : > { %v14267_v53 = vadd.f32 %v14207_v10, %v14075_v58  ;;  %v14461_v22 = vadd.f32 %v17553_v31, %v14269_v28  ;;  %v22063_v58 = vpop.permute.xlu0 %14727 }
 0xd13   : > { %v17538_v60 = vpop.f32.mrf.mxu1 }
 0xd14   : > { %v14272_v25 = vadd.f32 %v17538_v60, %v14080_v55  ;;  %v14459_v30 = vadd.f32 %v14399_v33, %v14267_v53 }
 0xd15   : > { %v14220_v9 = vpop.f32.mrf.mxu1 }
 0xd16   : > { %v14270_v51 = vadd.f32 %v14220_v9, %v14078_v45  ;;  %v14464_v37 = vadd.f32 %v17556_v54, %v14272_v25  ;;  %v14718_v17 = vpop.permute.xlu0 %14717 }
 0xd17   : > { %v17539_v2 = vpop.f32.mrf.mxu1 }
 0xd18   : > { %v14273_v13 = vadd.f32 %v17539_v2, %v14081_v38  ;;  %v14462_v3 = vadd.f32 %v14412_v29, %v14270_v51 }
 0xd19   : > { %v14223_v48 = vpop.f32.mrf.mxu1 }
 0xd1a   : > { %v14271_v8 = vadd.f32 %v14223_v48, %v14079_v15  ;;  %v14465_v12 = vadd.f32 %v17557_v41, %v14273_v13  ;;  %v14703_v15 = vpop.permute.xlu1 %14702  ;;  %v14708_v24 = vpop.permute.xlu0 %14707 }
 0xd1b   : > { %v17542_v31 = vpop.f32.mrf.mxu1 }
 0xd1c   : > { %v14276_v47 = vadd.f32 %v17542_v31, %v14084_v21  ;;  %v14463_v57 = vadd.f32 %v14415_v63, %v14271_v8 }
 0xd1d   : > { %v14236_v55 = vpop.f32.mrf.mxu1 }
 0xd1e   : > { %v14274_v33 = vadd.f32 %v14236_v55, %v14082_v1  ;;  %v14468_v36 = vadd.f32 %v17560_v16, %v14276_v47  ;;  %v14693_v21 = vpop.permute.xlu1 %14692  ;;  %v14698_v1 = vpop.permute.xlu0 %14697 }
 0xd1f   : > { %v17543_v5 = vpop.f32.mrf.mxu1 }
 0xd20   : > { %v14277_v45 = vadd.f32 %v17543_v5, %v14085_v19  ;;  %v14466_v54 = vadd.f32 %v14428_v44, %v14274_v33 }
 0xd21   : > { %v14239_v38 = vpop.f32.mrf.mxu1 }
 0xd22   : > { %v14275_v29 = vadd.f32 %v14239_v38, %v14083_v52  ;;  %v14469_v4 = vadd.f32 %v17561_v18, %v14277_v45  ;;  %v14683_v28 = vpop.permute.xlu1 %14682 }
 0xd23   : > { %v17546_v6 = vpop.f32.mrf.mxu1 }
 0xd24   : > { %v14467_v32 = vadd.f32 %v14431_v26, %v14275_v29  ;;  %v14688_v26 = vpop.permute.xlu0 %14687 }
 0xd25   : > { %v14252_v41 = vpop.f32.mrf.mxu1 }
 0xd27   : > { %v17547_v27 = vpop.f32.mrf.mxu1 }
 0xd29   : > { %v14255_v20 = vpop.f32.mrf.mxu1 }
 0xd2b   : > { %v17570_v63 = vpop.f32.mrf.mxu1 }
 0xd2c   : > { %v14652_v39 = vadd.f32 %v17570_v63, %v14460_v35  ;;  %v14280_v63 = vadd.f32 %v17546_v6, %v22040_v62 }
 0xd2d   : > { %v14588_v16 = vpop.f32.mrf.mxu1 }
 0xd2e   : > { %v14650_v11 = vadd.f32 %v14588_v16, %v14458_v23  ;;  %v14757_v19 = vadd.f32 %v14693_v21, %v14652_v39 }
 0xd2f   : > { %v17571_v49 = vpop.f32.mrf.mxu1 }
 0xd30   : > { %v14653_v44 = vadd.f32 %v17571_v49, %v14461_v22  ;;  %v14755_v52 = vadd.f32 %v14683_v28, %v14650_v11  ;;  %v14772_v25 = vmax.f32 %v14757_v19, 0.0 }
 0xd31   : > { %v14591_v10 = vpop.f32.mrf.mxu1 }
 0xd32   : > { %v14758_v18 = vadd.f32 %v14698_v1, %v14653_v44  ;;  %v14651_v53 = vadd.f32 %v14591_v10, %v14459_v30  ;;  %v14770_v48 = vmax.f32 %v14755_v52, 0.0 }
 0xd33   : > { %v17574_v60 = vpop.f32.mrf.mxu1 }
 0xd34   : > { %v14773_v9 = vmax.f32 %v14758_v18, 0.0  ;;  %v14756_v51 = vadd.f32 %v14688_v26, %v14651_v53  ;;  %v14656_v2 = vadd.f32 %v17574_v60, %v14464_v37 }
 0xd35   : > { %v14604_v13 = vpop.f32.mrf.mxu1 }
 0xd36   : > { %v14771_v35 = vmax.f32 %v14756_v51, 0.0  ;;  %v14654_v8 = vadd.f32 %v14604_v13, %v14462_v3  ;;  %v22065_v31 = vpack.c.bf16 %v14773_v9, %v14772_v25  ;;  %v14761_v47 = vadd.f32 %v14713_v50, %v14656_v2  ;;  %v17939_v13 = vld [vmem:[%s22133_s7 + $0x18] sm:$0xff]  }
 0xd37   : > { %v17575_v23 = vpop.f32.mrf.mxu1 }
 0xd38   : > { %v14657_v22 = vadd.f32 %v17575_v23, %v14465_v12  ;;  %v22067_v55 = vpack.c.bf16 %v14771_v35, %v14770_v48  ;;  %v14759_v5 = vadd.f32 %v14703_v15, %v14654_v8  ;;  %v14776_v29 = vmax.f32 %v14761_v47, 0.0  ;;  %v17940_v48 = vld [vmem:[%s22133_s7 + $0x20] sm:$0xff]   ;;  %v17941_v35 = vld [vmem:[%s22133_s7 + $0x28] ss:$0 sps:$4 sm:$0x33]   ;;  %v14868_v23 = vpop.permute.xlu1 %14867 }
 0xd39   : > { %v14607_v33 = vpop.f32.mrf.mxu1  ;;  %v14278_v12 = vadd.f32 %v14252_v41, %v22047_v42 }
 0xd3a   : > { %v14762_v30 = vadd.f32 %v14718_v17, %v14657_v22  ;;  %v14655_v45 = vadd.f32 %v14607_v33, %v14463_v57  ;;  %v14774_v3 = vmax.f32 %v14759_v5, 0.0 }
 0xd3b   : > { %v17578_v38 = vpop.f32.mrf.mxu1  ;;  %v14470_v6 = vadd.f32 %v22049_v43, %v14278_v12 }
 0xd3c   : > { %v14777_v27 = vmax.f32 %v14762_v30, 0.0  ;;  %v14760_v21 = vadd.f32 %v14708_v24, %v14655_v45  ;;  %v14660_v37 = vadd.f32 %v17578_v38, %v14468_v36  ;;  %v14472_v24 = vadd.f32 %v22042_v14, %v14280_v63  ;;  %v14863_v33 = vpop.permute.xlu1 %14862  ;;  %v14858_v30 = vpop.permute.xlu0 %14857 }
 0xd3d   : > { %v14620_v39 = vpop.f32.mrf.mxu1 }
 0xd3e   : > { %v14775_v1 = vmax.f32 %v14760_v21, 0.0  ;;  %v14658_v16 = vadd.f32 %v14620_v39, %v14466_v54  ;;  %v14788_v11 = vpack.c.bf16 %v14777_v27, %v14776_v29  ;;  %v14765_v49 = vadd.f32 %v22057_v46, %v14660_v37 }
 0xd3f   : > { %v17579_v50 = vpop.f32.mrf.mxu1  ;;  %v14279_v54 = vadd.f32 %v14255_v20, %v22051_v56 }
 0xd40   : > { %v14661_v15 = vadd.f32 %v17579_v50, %v14469_v4  ;;  %v14787_v17 = vpack.c.bf16 %v14775_v1, %v14774_v3  ;;  %v14763_v57 = vadd.f32 %v22061_v34, %v14658_v16  ;;  %v14780_v28 = vmax.f32 %v14765_v49, 0.0  ;;  %v14447_v4 = vpop.f32.mrf.mxu0  ;;  %v14853_v29 = vpop.permute.xlu1 %14852 }
 0xd41   : > { %v14623_v19 = vpop.f32.mrf.mxu1  ;;  %v14848_v37 = vpop.permute.xlu0 %14847 }
 0xd42   : > { %v14766_v36 = vadd.f32 %v22059_v61, %v14661_v15  ;;  %v14659_v62 = vadd.f32 %v14623_v19, %v14467_v32  ;;  %v14778_v10 = vmax.f32 %v14763_v57, 0.0  ;;  %v14471_v32 = vadd.f32 %v14447_v4, %v14279_v54 }
 0xd43   : > { %v17582_v44 = vpop.f32.mrf.mxu1 }
 0xd44   : > { %v14781_v42 = vmax.f32 %v14766_v36, 0.0  ;;  %v14764_v41 = vadd.f32 %v22063_v58, %v14659_v62  ;;  %v14664_v46 = vadd.f32 %v17582_v44, %v14472_v24 }
 0xd45   : > { %v14636_v52 = vpop.f32.mrf.mxu1 }
 0xd46   : > { %v14779_v34 = vmax.f32 %v14764_v41, 0.0  ;;  %v14769_v18 = vadd.f32 %v22044_v59, %v14664_v46  ;;  %v14662_v14 = vadd.f32 %v14636_v52, %v14470_v6  ;;  %v14790_v53 = vpack.c.bf16 %v14781_v42, %v14780_v28 }
 0xd47   : > { %v17583_v61 = vpop.f32.mrf.mxu1 }
 0xd48   : > { %v14784_v26 = vmax.f32 %v14769_v18, 0.0  ;;  %v14789_v43 = vpack.c.bf16 %v14779_v34, %v14778_v10  ;;  %v14767_v20 = vadd.f32 %v22053_v0, %v14662_v14  ;;  %v17937_v0 = vld [vmem:[%s22133_s7 + $0x8] sm:$0xff]  }
 0xd49   : > { %v14639_v60 = vpop.f32.mrf.mxu1 }
 0xd4a   : > { %v14792_v56 = vpack.c.bf16 %v14784_v26, %v14784_v26  ;;  %v14663_v25 = vadd.f32 %v14639_v60, %v14471_v32  ;;  %v14782_v51 = vmax.f32 %v14767_v20, 0.0 }
 0xd4c   : > { %v14768_v58 = vadd.f32 %v22055_v7, %v14663_v25  ;;  %17628 = vmatprep.subr.msk.bf16.mxu0 %vm393_vm8, %v14792_v56  ;;  %v14918_v9 = vsel %vm393_vm8, %v14792_v56, 0  ;;  %v17938_v7 = vld [vmem:[%s22133_s7 + $0x10] sm:$0xff]   ;;  %v17942_v25 = vld [vmem:[%s22135_s9] sm:$0x1f]  }
 0xd4d   : > { %17585 = vmatpush3.bf16.msra.mxu0 %v14918_v9 }
 0xd4e   : > { %v14783_v59 = vmax.f32 %v14768_v58, 0.0 }
 0xd50   : > { %v14791_v2 = vpack.c.bf16 %v14783_v59, %v14782_v51 }
 0xd52   : > { %17586 = vmatprep.subr.bf16.mxu0 %v14791_v2 }
 0xd53   : > { %17587 = vmatpush3.bf16.msra.mxu0 %v14791_v2 }
 0xd54   : > { %17588 = vmatprep.subr.bf16.mxu0 %v14790_v53 }
 0xd57   : > { %17589 = vmatpush3.bf16.msra.mxu0 %v14790_v53 }
 0xd58   : > { %17590 = vmatprep.subr.bf16.mxu0 %v14789_v43 }
 0xd5b   : > { %17591 = vmatpush3.bf16.msra.mxu0 %v14789_v43 }
 0xd5c   : > { %17592 = vmatprep.subr.bf16.mxu0 %v14788_v11 }
 0xd5f   : > { %17593 = vmatpush3.bf16.msra.mxu0 %v14788_v11  ;;  %v14843_v11 = vpop.permute.xlu1 %14842 }
 0xd60   : > { %17594 = vmatprep.subr.bf16.mxu0 %v14787_v17 }
 0xd63   : > { %17595 = vmatpush3.bf16.msra.mxu0 %v14787_v17  ;;  %v14838_v17 = vpop.permute.xlu0 %14837  ;;  %v14833_v54 = vpop.permute.xlu1 %14832 }
 0xd64   : > { %17596 = vmatprep.subr.bf16.mxu0 %v22065_v31 }
 0xd67   : > { %17597 = vmatpush3.bf16.msra.mxu0 %v22065_v31  ;;  %v14828_v42 = vpop.permute.xlu0 %14827  ;;  %v14823_v34 = vpop.permute.xlu1 %14822 }
 0xd68   : > { %17598 = vmatprep.subr.bf16.mxu0 %v22067_v55 }
 0xd6b   : > { %17599 = vmatpush3.bf16.msra.mxu0 %v22067_v55  ;;  %v14818_v61 = vpop.permute.xlu0 %14817 }
 0xd6c   : > { %17612 = vmatprep.subr.bf16.mxu0 %v22240_v40 }
 0xd6e   : > { %17601 = vmatmul.mubr.msk.bf16.vlgmr.msra.gmra.mxu0 %vm14898_vm4, %v17937_v0 }
 0xd6f   : > { %17604 = vmatprep.mubr.msk.bf16.mxu0 %vm14898_vm4, %v17938_v7  ;;  %v15024_v58 = vpop.permute.xlu0 %15023 }
 0xd76   : > { %17605 = vmatmul.mubr.msk.bf16.gmra.mxu0 %vm14898_vm4, %v17939_v13 }
 0xd77   : > { %17608 = vmatprep.mubr.msk.bf16.mxu0 %vm14898_vm4, %v17940_v48 }
 0xd7e   : > { %17609 = vmatmul.mubr.msk.bf16.gmra.mxu0 %vm14898_vm4, %v17941_v35 }
 0xd7f   : > { %17624 = vmatprep.mubr.msk.bf16.mxu0 %vm17964_vm5, %v22240_v40  ;;  %vm22261_vm5 = vcmask 1041408  }
 0xe2e   : > { %v17602_v8 = vpop.f32.mrf.mxu0 }
 0xe2f   : > { %v14963_v10 = vadd.f32 %v17602_v8, %v14828_v42 }
 0xe30   : > { %v14954_v31 = vpop.f32.mrf.mxu0 }
 0xe31   : > { %v15002_v32 = vmax.f32 %v14963_v10, 0.0  ;;  %v14955_v26 = vadd.f32 %v14954_v31, %v14818_v61 }
 0xe32   : > { %v17603_v47 = vpop.f32.mrf.mxu0 }
 0xe33   : > { %v14966_v41 = vadd.f32 %v17603_v47, %v14833_v54  ;;  %v15000_v56 = vmax.f32 %v14955_v26, 0.0 }
 0xe34   : > { %v14957_v22 = vpop.f32.mrf.mxu0 }
 0xe35   : > { %v15003_v18 = vmax.f32 %v14966_v41, 0.0  ;;  %v14958_v14 = vadd.f32 %v14957_v22, %v14823_v34 }
 0xe36   : > { %v17606_v55 = vpop.f32.mrf.mxu0 }
 0xe37   : > { %v14979_v57 = vadd.f32 %v17606_v55, %v14848_v37  ;;  %v15012_v43 = vpack.c.bf16 %v15003_v18, %v15002_v32  ;;  %v15001_v60 = vmax.f32 %v14958_v14, 0.0 }
 0xe38   : > { %v14970_v5 = vpop.f32.mrf.mxu0 }
 0xe39   : > { %v15006_v44 = vmax.f32 %v14979_v57, 0.0  ;;  %v14971_v28 = vadd.f32 %v14970_v5, %v14838_v17  ;;  %v15011_v20 = vpack.c.bf16 %v15001_v60, %v15000_v56 }
 0xe3a   : > { %v17607_v45 = vpop.f32.mrf.mxu0 }
 0xe3b   : > { %v14982_v50 = vadd.f32 %v17607_v45, %v14853_v29  ;;  %v15004_v52 = vmax.f32 %v14971_v28, 0.0 }
 0xe3c   : > { %v14973_v38 = vpop.f32.mrf.mxu0 }
 0xe3d   : > { %v15007_v36 = vmax.f32 %v14982_v50, 0.0  ;;  %v14974_v62 = vadd.f32 %v14973_v38, %v14843_v11 }
 0xe3e   : > { %v17610_v27 = vpop.f32.mrf.mxu0 }
 0xe3f   : > { %v14995_v21 = vadd.f32 %v17610_v27, %v14868_v23  ;;  %v15014_v46 = vpack.c.bf16 %v15007_v36, %v15006_v44  ;;  %v15005_v4 = vmax.f32 %v14974_v62, 0.0 }
 0xe40   : > { %v14986_v63 = vpop.f32.mrf.mxu0 }
 0xe41   : > { %v15010_v39 = vmax.f32 %v14995_v21, 0.0  ;;  %v14987_v16 = vadd.f32 %v14986_v63, %v14858_v30  ;;  %v15013_v53 = vpack.c.bf16 %v15005_v4, %v15004_v52 }
 0xe42   : > { %v17611_v3 = vpop.f32.mrf.mxu0 }
 0xe43   : > { %v15016_v1 = vpack.c.bf16 %v15010_v39, %v15010_v39  ;;  %v15008_v19 = vmax.f32 %v14987_v16, 0.0 }
 0xe44   : > { %v14989_v12 = vpop.f32.mrf.mxu0 }
 0xe45   : > { %v14990_v49 = vadd.f32 %v14989_v12, %v14863_v33  ;;  %v15041_v15 = vsel %vm22261_vm5, %v15016_v1, 0 }
 0xe46   : > { %17613 = vmatpush3.bf16.msra.mxu0 %v15041_v15 }
 0xe47   : > { %v15009_v24 = vmax.f32 %v14990_v49, 0.0  ;;  %17614 = vmatprep.subr.bf16.mxu0 %v22240_v40 }
 0xe49   : > { %v15015_v6 = vpack.c.bf16 %v15009_v24, %v15008_v19 }
 0xe4b   : > { %17615 = vmatpush3.bf16.msra.mxu0 %v15015_v6 }
 0xe4c   : > { %17616 = vmatprep.subr.bf16.mxu0 %v22240_v40 }
 0xe4f   : > { %17617 = vmatpush3.bf16.msra.mxu0 %v15014_v46 }
 0xe50   : > { %17618 = vmatprep.subr.bf16.mxu0 %v22240_v40 }
 0xe53   : > { %17619 = vmatpush3.bf16.msra.mxu0 %v15013_v53 }
 0xe54   : > { %17620 = vmatprep.subr.bf16.mxu0 %v22240_v40 }
 0xe57   : > { %17621 = vmatpush3.bf16.msra.mxu0 %v15012_v43 }
 0xe58   : > { %17622 = vmatprep.subr.bf16.mxu0 %v22240_v40  ;;  %v15029_v40 = vpop.permute.xlu1 %15028 }
 0xe5b   : > { %17623 = vmatpush3.bf16.msra.mxu0 %v15011_v20 }
 0xe5e   : > { %17625 = vmatmul.mubr.msk.bf16.vlgmr.msra.gmra.mxu0 %vm15036_vm6, %v17942_v25 }
 0xf1e   : > { %v15077_v9 = vpop.f32.mrf.mxu0 }
 0xf1f   : > { %v15078_v51 = vadd.f32 %v15077_v9, %v15024_v58 }
 0xf20   : > { %v17626_v59 = vpop.f32.mrf.mxu0 }
 0xf21   : > { %15085 = vst.msk [vmem:[%s386_s19] sm:$0xff] %vm15084_vm7, %v15078_v51 }
 0xf22   : > { %v15080_v2 = vpop.f32.mrf.mxu0 }
 0xf23   : > { %v15081_v0 = vadd.f32 %v15080_v2, %v15029_v40 }
 0xf24   : > { %v17627_v7 = vpop.f32.mrf.mxu0 }
 0xf25   : > { %15087 = vst.msk [vmem:[%s386_s19 + $0x8] sm:$0x3] %vm15086_vm2, %v15081_v0 }
 0xf26 PF: > { %s21_s17 = sadd.s32 1, %s17949_s17  }
 0xf27   : > { %p18_p4 = scmp.ge.s32.totalorder %s21_s17, 4  }
 0xf29   :  { %20 = sbr.rel (!%p18_p4) target bundleno = 1 (0x1), region = 166 }

</bundles_post_ra>
